<compile_context>
chip_gen: v6e
topology: v6e:2x2x1
jax: 0.10.0
libtpu: 0.0.40
codegen_flags: <defaults>
</compile_context>

<pallas_src>
import functools
import numpy as np
import jax
import jax.numpy as jnp
from jax.experimental import pallas as pl
from jax.experimental.pallas import tpu as pltpu

# ------------------------------------------------------------------ config ---
C64, C128, C256, C512 = 8, 16, 32, 64     # scaled stand-ins for 64/128/256/512
INPUT_NC = 3
IMG = 32                                   # stand-in for 256x256 input
STYLE_COUNT = 18                           # style_count * style_multiplayer (defaults)
COARSE_IND = 3
MIDDLE_IND = 7
SPATIAL_NUM = [16] * COARSE_IND + [32] * (MIDDLE_IND - COARSE_IND) \
              + [64] * (STYLE_COUNT - MIDDLE_IND)
BN_EPS = 1e-5
LEAKY_SLOPE = 0.01                         # torch nn.LeakyReLU default

# ------------------------------------------------------------ tiling utils ---
def _round_up(x, m):
    return -(-x // m) * m


_TM_CANDS = (512, 256, 128, 64, 32, 16)    # multiples of 16 (bf16 sublane tile)
_TK_CANDS = (512, 256, 128)                # K tiles must be multiples of 128


def _pick_tile_m(m_pad, g):
    """Largest M tile that divides m_pad; if g==1 insist on >=2 blocks (v7x 2 TCs)."""
    need_two = (g == 1)
    for t in _TM_CANDS:
        if m_pad % t == 0 and (not need_two or m_pad // t >= 2):
            return t
    return m_pad


def _pick_tile_k(k):
    for t in _TK_CANDS:
        if k % t == 0 and k // t >= 2:
            return t
    return k          # K not a 128-multiple: single full-K block (lane-sparse loads)

# ----------------------------------------------------- batched GEMM kernel ---
def _make_gemm_kernel(act, nk, has_bias, has_residual):
    """out = act(a @ w [+ bias]) [+ residual]; act in {"none","leaky","prelu"}."""

    def body(*refs):
        idx = 0
        a_ref = refs[idx]; idx += 1
        w_ref = refs[idx]; idx += 1
        b_ref = None
        if has_bias:
            b_ref = refs[idx]; idx += 1
        s_ref = None
        if act == "prelu":
            s_ref = refs[idx]; idx += 1
        r_ref = None
        if has_residual:
            r_ref = refs[idx]; idx += 1
        o_ref = refs[idx]; idx += 1
        acc_ref = refs[idx]

        k = pl.program_id(2)

        @pl.when(k == 0)
        def _init():
            acc_ref[...] = jnp.zeros_like(acc_ref)

        acc_ref[...] += jnp.dot(a_ref[0], w_ref[0],
                                preferred_element_type=jnp.float32)

        @pl.when(k == nk - 1)
        def _finalize():
            acc = acc_ref[...]
            if has_bias:
                acc = acc + b_ref[0]
            if act == "leaky":
                acc = jnp.where(acc >= 0, acc, LEAKY_SLOPE * acc)
            elif act == "prelu":
                acc = jnp.where(acc >= 0, acc, s_ref[0] * acc)
            if has_residual:
                acc = acc + r_ref[0].astype(jnp.float32)
            o_ref[0] = acc.astype(o_ref.dtype)

    return body


@functools.lru_cache(maxsize=None)
def _build_gemm(g, m, k, n, tm, tk, act, has_bias, has_residual, out_dtype_name):
    out_dtype = jnp.dtype(out_dtype_name)
    nk = k // tk
    kernel = _make_gemm_kernel(act, nk, has_bias, has_residual)
    in_specs = [
        pl.BlockSpec((1, tm, tk), lambda gi, mi, ki: (gi, mi, ki)),   # activations
        pl.BlockSpec((1, tk, n), lambda gi, mi, ki: (gi, ki, 0)),     # weights
    ]
    if has_bias:
        in_specs.append(pl.BlockSpec((1, 1, n), lambda gi, mi, ki: (gi, 0, 0)))
    if act == "prelu":
        in_specs.append(pl.BlockSpec((1, 1, n), lambda gi, mi, ki: (gi, 0, 0)))
    if has_residual:
        in_specs.append(pl.BlockSpec((1, tm, n), lambda gi, mi, ki: (gi, mi, 0)))
    out_bytes = out_dtype.itemsize
    # double-buffered bf16 A/W (+residual) tiles, out double-buffer, f32 acc scratch
    est = (2 * tm * tk * 2 + 2 * tk * n * 2 + 2 * tm * n * out_bytes + tm * n * 4
           + (2 * tm * n * 2 if has_residual else 0) + 8 * n * 4)
    vmem_limit = int(min(48 * 2**20, max(32 * 2**20, 2 * est)))   # fits v7x 64MiB/TC
    return pl.pallas_call(
        kernel,
        out_shape=jax.ShapeDtypeStruct((g, m, n), out_dtype),
        grid=(g, m // tm, nk),
        in_specs=in_specs,
        out_specs=pl.BlockSpec((1, tm, n), lambda gi, mi, ki: (gi, mi, 0)),
        scratch_shapes=[pltpu.VMEM((tm, n), jnp.float32)],
        compiler_params=pltpu.CompilerParams(
            dimension_semantics=("parallel", "parallel", "arbitrary"),
            vmem_limit_bytes=vmem_limit),
    )


def batched_matmul_bias_act(a, w, bias=None, act="none", prelu_slope=None,
                            residual=None, out_dtype=jnp.bfloat16):
    """out[g] = act(a[g] @ w[g] [+ bias[g]]) [+ residual[g]] — one launch for all g."""
    g, m, k = a.shape
    n = w.shape[-1]
    m_pad = _round_up(m, 16)
    n_pad = _round_up(n, 128)            # lane-dense output blocks (unmasked stores)
    if m_pad != m:
        a = jnp.pad(a, ((0, 0), (0, m_pad - m), (0, 0)))
        if residual is not None:
            residual = jnp.pad(residual, ((0, 0), (0, m_pad - m), (0, 0)))
    if n_pad != n:
        w = jnp.pad(w, ((0, 0), (0, 0), (0, n_pad - n)))
        if residual is not None:
            residual = jnp.pad(residual, ((0, 0), (0, 0), (0, n_pad - n)))

    args = [a.astype(jnp.bfloat16), w.astype(jnp.bfloat16)]
    if bias is not None:
        b = bias.reshape(g, n).astype(jnp.float32)
        if n_pad != n:
            b = jnp.pad(b, ((0, 0), (0, n_pad - n)))
        args.append(b.reshape(g, 1, n_pad))
    if act == "prelu":
        if prelu_slope is None:
            s = jnp.zeros((g, n_pad), jnp.float32)
        else:
            s = prelu_slope.reshape(g, n).astype(jnp.float32)
            if n_pad != n:
                s = jnp.pad(s, ((0, 0), (0, n_pad - n)))
        args.append(s.reshape(g, 1, n_pad))
    if residual is not None:
        args.append(residual.astype(jnp.bfloat16))

    tm = _pick_tile_m(m_pad, g)
    tk = _pick_tile_k(k)
    fn = _build_gemm(g, m_pad, k, n_pad, tm, tk, act, bias is not None,
                     residual is not None, jnp.dtype(out_dtype).name)
    out = fn(*args)
    return out[:, :m, :n]


def matmul_bias_act(a, w, bias=None, act="none", prelu_slope=None, residual=None,
                    out_dtype=jnp.bfloat16):
    out = batched_matmul_bias_act(
        a[None], w[None],
        None if bias is None else bias[None],
        act=act,
        prelu_slope=None if prelu_slope is None else prelu_slope[None],
        residual=None if residual is None else residual[None],
        out_dtype=out_dtype)
    return out[0]

# --------------------------------------------------------- conv / BN helpers ---
def _im2col_nhwc(x, kh, kw, stride, pad):
    """(B,H,W,C) NHWC -> (B*Ho*Wo, kh*kw*C); K is tap-major, channel-minor."""
    # TODO(synk): fuse this into the GEMM kernel (tap grid axis) to avoid the 9x
    # materialized patch tensor; kept XLA-side for robustness.
    b, h, w, c = x.shape
    if pad:
        x = jnp.pad(x, ((0, 0), (pad, pad), (pad, pad), (0, 0)))
    ho = (h + 2 * pad - kh) // stride + 1
    wo = (w + 2 * pad - kw) // stride + 1
    cols = []
    for di in range(kh):
        for dj in range(kw):
            cols.append(x[:, di:di + stride * (ho - 1) + 1:stride,
                          dj:dj + stride * (wo - 1) + 1:stride, :])
    col = jnp.concatenate(cols, axis=-1) if len(cols) > 1 else cols[0]
    return col.reshape(b * ho * wo, kh * kw * c), ho, wo


def _conv_weight_to_gemm(w):
    """PyTorch (out_c, in_c, kh, kw) -> (kh*kw*in_c, out_c) matching _im2col_nhwc."""
    out_c, in_c, kh, kw = w.shape
    return jnp.transpose(w, (2, 3, 1, 0)).reshape(kh * kw * in_c, out_c)


def conv2d(x, w, bias=None, stride=1, padding=0, act="none", prelu_slope=None,
           residual=None, pre_scale=None, pre_shift=None, out_dtype=jnp.bfloat16):
    """PyTorch-equivalent Conv2d on NHWC activations via im2col + fused Pallas GEMM.

    pre_scale/pre_shift implement an eval-BN that precedes the conv (bn1 of the IR
    bottleneck): applied *before* zero padding so semantics match BN -> Conv(pad=1).
    XLA fuses the affine into the im2col producer (no standalone pass).
    """
    out_c = w.shape[0]
    b = x.shape[0]
    if pre_scale is not None:
        x = x.astype(jnp.float32) * pre_scale + pre_shift
    col, ho, wo = _im2col_nhwc(x.astype(jnp.bfloat16), w.shape[2], w.shape[3],
                               stride, padding)
    res = None if residual is None else residual.reshape(b * ho * wo, out_c)
    out = matmul_bias_act(col, _conv_weight_to_gemm(w), bias, act=act,
                          prelu_slope=prelu_slope, residual=res, out_dtype=out_dtype)
    return out.reshape(b, ho, wo, out_c)


def _bn_scale_shift(bn):
    scale = bn["gamma"] / jnp.sqrt(bn["var"] + BN_EPS)
    shift = bn["beta"] - bn["mean"] * scale
    return scale, shift


def fold_bn_into_conv(w, bias, bn):
    """Fold a BN that FOLLOWS the conv into the conv weights/bias (exact)."""
    scale, shift = _bn_scale_shift(bn)
    w2 = w * scale[:, None, None, None]
    b2 = shift if bias is None else shift + scale * bias
    return w2, b2


def upsample_bilinear_align_corners(x, oh, ow):
    """F.interpolate(mode='bilinear', align_corners=True) on NHWC — XLA gather glue."""
    x = x.astype(jnp.float32)
    b, h, w, c = x.shape
    def coords(o, i):
        if o == 1 or i == 1:
            return jnp.zeros((o,), jnp.float32)
        return jnp.arange(o, dtype=jnp.float32) * ((i - 1) / (o - 1))
    ys, xs = coords(oh, h), coords(ow, w)
    y0 = jnp.clip(jnp.floor(ys).astype(jnp.int32), 0, h - 1)
    x0 = jnp.clip(jnp.floor(xs).astype(jnp.int32), 0, w - 1)
    y1 = jnp.clip(y0 + 1, 0, h - 1)
    x1 = jnp.clip(x0 + 1, 0, w - 1)
    wy = (ys - y0.astype(jnp.float32))[None, :, None, None]
    wx = (xs - x0.astype(jnp.float32))[None, None, :, None]
    r0 = jnp.take(x, y0, axis=1)
    r1 = jnp.take(x, y1, axis=1)
    v00 = jnp.take(r0, x0, axis=2)
    v01 = jnp.take(r0, x1, axis=2)
    v10 = jnp.take(r1, x0, axis=2)
    v11 = jnp.take(r1, x1, axis=2)
    top = v00 * (1.0 - wx) + v01 * wx
    bot = v10 * (1.0 - wx) + v11 * wx
    return top * (1.0 - wy) + bot * wy

# ---------------------------------------------------------- parameter init ----
class KeyGen:
    def __init__(self, key):
        self._key = key
    def __call__(self):
        self._key, sub = jax.random.split(self._key)
        return sub


def init_conv(kg, out_c, in_c, kh, kw, bias):
    fan_in = in_c * kh * kw
    w = jax.random.normal(kg(), (out_c, in_c, kh, kw), jnp.float32) / np.sqrt(fan_in)
    b = 0.1 * jax.random.normal(kg(), (out_c,), jnp.float32) if bias else None
    return {"w": w, "b": b}


def init_bn(kg, c):
    return {
        "gamma": 1.0 + 0.1 * jax.random.normal(kg(), (c,), jnp.float32),
        "beta": 0.1 * jax.random.normal(kg(), (c,), jnp.float32),
        "mean": 0.1 * jax.random.normal(kg(), (c,), jnp.float32),
        "var": 1.0 + 0.1 * jnp.abs(jax.random.normal(kg(), (c,), jnp.float32)),
    }


def make_res_blocks():
    # IR-50 backbone (num_layers=50): groups of (in, depth, num_units) = 3/4/14/3.
    cfg = [(C64, C64, 3), (C64, C128, 4), (C128, C256, 14), (C256, C512, 3)]
    units = []
    for in_c, depth, n in cfg:
        units.append((in_c, depth, 2))
        units.extend([(depth, depth, 1)] * (n - 1))
    return units                                        # 24 bottleneck_IR units


def init_bottleneck(kg, in_c, depth, stride):
    p = {"in_c": in_c, "depth": depth, "stride": stride}
    p["bn1"] = init_bn(kg, in_c)
    p["conv1"] = init_conv(kg, depth, in_c, 3, 3, bias=False)
    p["prelu"] = jnp.full((depth,), 0.25, jnp.float32)  # torch PReLU default init
    p["conv2"] = init_conv(kg, depth, depth, 3, 3, bias=False)
    p["bn2"] = init_bn(kg, depth)
    if in_c != depth:
        p["sc_conv"] = init_conv(kg, depth, in_c, 1, 1, bias=False)
        p["sc_bn"] = init_bn(kg, depth)
    return p


def init_style_block(kg, in_c, out_c, spatial):
    num_pools = int(np.log2(spatial))
    convs = [init_conv(kg, out_c, in_c, 3, 3, bias=True)]
    for _ in range(num_pools - 1):
        convs.append(init_conv(kg, out_c, out_c, 3, 3, bias=True))
    # EqualLinear(out_c, out_c, lr_mul=1): effective weight = randn(out,in)/sqrt(in)
    lin_w = jax.random.normal(kg(), (out_c, out_c), jnp.float32) / np.sqrt(out_c)
    lin_b = jnp.zeros((out_c,), jnp.float32)            # bias_init=0, lr_mul=1
    return {"convs": convs, "lin_w": lin_w.T, "lin_b": lin_b, "out_c": out_c}


def init_encoder(kg):
    params = {}
    params["input"] = {
        "conv": init_conv(kg, C64, INPUT_NC, 3, 3, bias=False),
        "bn": init_bn(kg, C64),
        "prelu": jnp.full((C64,), 0.25, jnp.float32),
    }
    params["body"] = [init_bottleneck(kg, i, d, s) for (i, d, s) in make_res_blocks()]
    params["styles"] = [init_style_block(kg, C512, C512, SPATIAL_NUM[i])
                        for i in range(STYLE_COUNT)]
    params["lat1"] = init_conv(kg, C512, C256, 1, 1, bias=True)   # latlayer1: 256->512
    params["lat2"] = init_conv(kg, C512, C128, 1, 1, bias=True)   # latlayer2: 128->512
    return params

# ------------------------------------------------------------ forward pass ----
def input_layer_fwd(x, p):
    # Conv(bias=False) -> BN -> PReLU == one GEMM with BN folded + fused PReLU.
    w, b = fold_bn_into_conv(p["conv"]["w"], None, p["bn"])
    return conv2d(x, w, b, stride=1, padding=1, act="prelu", prelu_slope=p["prelu"])


def bottleneck_ir_fwd(x, p):
    stride = p["stride"]
    if p["in_c"] == p["depth"]:
        shortcut = x[:, ::stride, ::stride, :]          # MaxPool2d(kernel=1, stride)
    else:
        w, b = fold_bn_into_conv(p["sc_conv"]["w"], None, p["sc_bn"])
        shortcut = conv2d(x, w, b, stride=stride, padding=0)
    # bn1 applied as pre-affine fused (by XLA) into conv1's im2col; PReLU fused
    # into the GEMM epilogue.  conv1 has no bias (specialized kernel, no bias DMA).
    scale1, shift1 = _bn_scale_shift(p["bn1"])
    h = conv2d(x, p["conv1"]["w"], None, stride=1, padding=1,
               act="prelu", prelu_slope=p["prelu"],
               pre_scale=scale1, pre_shift=shift1)
    w2, b2 = fold_bn_into_conv(p["conv2"]["w"], None, p["bn2"])
    # residual add fused into the conv2 GEMM epilogue
    return conv2d(h, w2, b2, stride=stride, padding=1, residual=shortcut)


def style_group_fwd(feat, group_params):
    """All GradualStyleBlocks that share one FPN feature, batched into few launches."""
    g = len(group_params)
    cout = group_params[0]["out_c"]
    # first conv: weights of all styles concatenated along N (lane-dense output)
    w0 = jnp.concatenate([p["convs"][0]["w"] for p in group_params], axis=0)
    b0 = jnp.concatenate([p["convs"][0]["b"] for p in group_params], axis=0)
    y = conv2d(feat, w0, b0, stride=2, padding=1, act="leaky")     # (B,Ho,Wo,g*cout)
    bsz, ho, wo, _ = y.shape
    y = y.reshape(bsz, ho, wo, g, cout).transpose(3, 0, 1, 2, 4)   # (g,B,Ho,Wo,cout)
    # remaining convs: one batched GEMM per stage with a grid axis over the style idx
    n_stages = len(group_params[0]["convs"])
    for st in range(1, n_stages):
        _, _, h, w, c = y.shape
        col, ho2, wo2 = _im2col_nhwc(
            y.reshape(g * bsz, h, w, c).astype(jnp.bfloat16), 3, 3, 2, 1)
        col = col.reshape(g, bsz * ho2 * wo2, 9 * c)
        wst = jnp.stack([_conv_weight_to_gemm(p["convs"][st]["w"])
                         for p in group_params], axis=0)           # (g, 9c, cout)
        bst = jnp.stack([p["convs"][st]["b"] for p in group_params], axis=0)
        y = batched_matmul_bias_act(col, wst, bst, act="leaky")
        y = y.reshape(g, bsz, ho2, wo2, cout)
    return y.reshape(g, -1, cout)                                  # (g, B, cout)


def gradual_style_encoder_fwd(x_nchw, params):
    x = jnp.transpose(x_nchw, (0, 2, 3, 1))   # single NCHW->NHWC boundary conversion
    x = input_layer_fwd(x, params["input"])
    c1 = c2 = c3 = None
    for i, bp in enumerate(params["body"]):
        x = bottleneck_ir_fwd(x, bp)
        if i == 6:
            c1 = x
        elif i == 20:
            c2 = x
        elif i == 23:
            c3 = x
    sp = params["styles"]
    feats = [style_group_fwd(c3, sp[:COARSE_IND])]
    # FPN: upsample+add fused into the lateral 1x1 conv epilogue (residual=)
    up3 = upsample_bilinear_align_corners(c3, c2.shape[1], c2.shape[2])
    p2 = conv2d(c2, params["lat1"]["w"], params["lat1"]["b"], stride=1, padding=0,
                residual=up3)
    feats.append(style_group_fwd(p2, sp[COARSE_IND:MIDDLE_IND]))
    up2 = upsample_bilinear_align_corners(p2, c1.shape[1], c1.shape[2])
    p1 = conv2d(c1, params["lat2"]["w"], params["lat2"]["b"], stride=1, padding=0,
                residual=up2)
    feats.append(style_group_fwd(p1, sp[MIDDLE_IND:]))
    feats = jnp.concatenate(feats, axis=0)              # (style_count, B, C512)
    # all 18 EqualLinears in a single batched GEMM launch; final output stays f32
    lin_w = jnp.stack([p["lin_w"] for p in sp], axis=0)
    lin_b = jnp.stack([p["lin_b"] for p in sp], axis=0)
    lat = batched_matmul_bias_act(feats, lin_w, lin_b, out_dtype=jnp.float32)
    return jnp.transpose(lat, (1, 0, 2))                # (B, style_count, C512)

# --------------------------------------------------------------------- main ---
if __name__ == "__main__":
    root = jax.random.PRNGKey(0)
    key_x, key_p = jax.random.split(root)
    params = init_encoder(KeyGen(key_p))
    x = jax.random.normal(key_x, (2, INPUT_NC, IMG, IMG), jnp.float32)

    forward = jax.jit(lambda inp: gradual_style_encoder_fwd(inp, params))
    out = forward(x)
    out = jax.block_until_ready(out)

    assert out.shape == (2, STYLE_COUNT, C512), out.shape
    assert bool(jnp.all(jnp.isfinite(out)))
    print("KERNEL_OK")
</pallas_src>

<mosaic_0001>
module attributes {stable_mosaic.version = 11 : i64} {
  func.func @body(%arg0: i32, %arg1: i32, %arg2: i32, %arg3: memref<1x512x27xbf16, #tpu.memory_space<vmem>>, %arg4: memref<1x27x128xbf16, #tpu.memory_space<vmem>>, %arg5: memref<1x1x128xf32, #tpu.memory_space<vmem>>, %arg6: memref<1x1x128xf32, #tpu.memory_space<vmem>>, %arg7: memref<1x512x128xbf16, #tpu.memory_space<vmem>>, %arg8: memref<512x128xf32, #tpu.memory_space<vmem>>) attributes {dimension_semantics = [#tpu.dimension_semantics<parallel>, #tpu.dimension_semantics<parallel>, #tpu.dimension_semantics<arbitrary>], iteration_bounds = array<i64: 1, 4, 1>, scalar_prefetch = 0 : i64, scratch_operands = 1 : i64, tpu.core_type = #tpu.core_type<tc>, window_params = [{transform_indices = @transform_0, window_bounds = array<i64: 1, 512, 27>}, {transform_indices = @transform_1, window_bounds = array<i64: 1, 27, 128>}, {transform_indices = @transform_2, window_bounds = array<i64: 1, 1, 128>}, {transform_indices = @transform_3, window_bounds = array<i64: 1, 1, 128>}, {transform_indices = @transform_4, window_bounds = array<i64: 1, 512, 128>}]} {
    %c0_i32 = arith.constant 0 : i32
    %0 = arith.cmpi eq, %arg2, %c0_i32 : i32
    %1 = arith.extui %0 : i1 to i32
    %c0_i32_0 = arith.constant 0 : i32
    %2 = arith.cmpi ne, %1, %c0_i32_0 : i32
    scf.if %2 {
      %cst_12 = arith.constant 0.000000e+00 : f32
      %14 = vector.broadcast %cst_12 : f32 to vector<512x128xf32>
      %c0_13 = arith.constant 0 : index
      %c0_14 = arith.constant 0 : index
      %15 = vector.load %arg8[%c0_13, %c0_14] : memref<512x128xf32, #tpu.memory_space<vmem>>, vector<512x128xf32>
      tpu.vector_store %arg8[%c0_13, %c0_14], %14 {strides = array<i32>} : memref<512x128xf32, #tpu.memory_space<vmem>>, vector<512x128xf32>,
    } else {
    }
    %c0 = arith.constant 0 : index
    %c0_1 = arith.constant 0 : index
    %3 = vector.load %arg8[%c0, %c0_1] : memref<512x128xf32, #tpu.memory_space<vmem>>, vector<512x128xf32>
    %c0_2 = arith.constant 0 : index
    %c0_3 = arith.constant 0 : index
    %c0_4 = arith.constant 0 : index
    %4 = vector.load %arg3[%c0_2, %c0_3, %c0_4] : memref<1x512x27xbf16, #tpu.memory_space<vmem>>, vector<1x512x27xbf16>
    %5 = vector.shape_cast %4 : vector<1x512x27xbf16> to vector<512x27xbf16>
    %c0_5 = arith.constant 0 : index
    %c0_6 = arith.constant 0 : index
    %c0_7 = arith.constant 0 : index
    %6 = vector.load %arg4[%c0_5, %c0_6, %c0_7] : memref<1x27x128xbf16, #tpu.memory_space<vmem>>, vector<1x27x128xbf16>
    %7 = vector.shape_cast %6 : vector<1x27x128xbf16> to vector<27x128xbf16>
    %cst = arith.constant dense<0.000000e+00> : vector<512x128xf32>
    %8 = tpu.matmul %5, %7, %cst {dimension_numbers = #tpu.dot_dimension_numbers<[1], [0], [0], [1], [0, 0, 1, 1], [], []>} : vector<512x27xbf16>, vector<27x128xbf16>, vector<512x128xf32> -> vector<512x128xf32>
    %9 = arith.addf %3, %8 : vector<512x128xf32>
    %c0_8 = arith.constant 0 : index
    %c0_9 = arith.constant 0 : index
    %10 = vector.load %arg8[%c0_8, %c0_9] : memref<512x128xf32, #tpu.memory_space<vmem>>, vector<512x128xf32>
    tpu.vector_store %arg8[%c0_8, %c0_9], %9 {strides = array<i32>} : memref<512x128xf32, #tpu.memory_space<vmem>>, vector<512x128xf32>,
    %c0_i32_10 = arith.constant 0 : i32
    %11 = arith.cmpi eq, %arg2, %c0_i32_10 : i32
    %12 = arith.extui %11 : i1 to i32
    %c0_i32_11 = arith.constant 0 : i32
    %13 = arith.cmpi ne, %12, %c0_i32_11 : i32
    scf.if %13 {
      %c0_12 = arith.constant 0 : index
      %c0_13 = arith.constant 0 : index
      %14 = vector.load %arg8[%c0_12, %c0_13] : memref<512x128xf32, #tpu.memory_space<vmem>>, vector<512x128xf32>
      %c0_14 = arith.constant 0 : index
      %c0_15 = arith.constant 0 : index
      %c0_16 = arith.constant 0 : index
      %15 = vector.load %arg5[%c0_14, %c0_15, %c0_16] : memref<1x1x128xf32, #tpu.memory_space<vmem>>, vector<1x1x128xf32>
      %16 = vector.shape_cast %15 : vector<1x1x128xf32> to vector<1x128xf32>
      %17 = vector.broadcast %16 : vector<1x128xf32> to vector<512x128xf32>
      %18 = arith.addf %14, %17 : vector<512x128xf32>
      %cst_17 = arith.constant 0.000000e+00 : f32
      %19 = vector.broadcast %cst_17 : f32 to vector<512x128xf32>
      %20 = arith.cmpf oge, %18, %19 : vector<512x128xf32>
      %c0_18 = arith.constant 0 : index
      %c0_19 = arith.constant 0 : index
      %c0_20 = arith.constant 0 : index
      %21 = vector.load %arg6[%c0_18, %c0_19, %c0_20] : memref<1x1x128xf32, #tpu.memory_space<vmem>>, vector<1x1x128xf32>
      %22 = vector.shape_cast %21 : vector<1x1x128xf32> to vector<1x128xf32>
      %23 = vector.broadcast %22 : vector<1x128xf32> to vector<512x128xf32>
      %24 = arith.mulf %23, %18 : vector<512x128xf32>
      %25 = arith.select %20, %18, %24 : vector<512x128xi1>, vector<512x128xf32>
      %26 = arith.truncf %25 : vector<512x128xf32> to vector<512x128xbf16>
      %c0_21 = arith.constant 0 : index
      %c0_22 = arith.constant 0 : index
      %c0_23 = arith.constant 0 : index
      %27 = vector.load %arg7[%c0_21, %c0_22, %c0_23] : memref<1x512x128xbf16, #tpu.memory_space<vmem>>, vector<1x512x128xbf16>
      %28 = vector.shape_cast %27 : vector<1x512x128xbf16> to vector<512x128xbf16>
      %29 = vector.shape_cast %26 : vector<512x128xbf16> to vector<1x512x128xbf16>
      tpu.vector_store %arg7[%c0_21, %c0_22, %c0_23], %29 {strides = array<i32>} : memref<1x512x128xbf16, #tpu.memory_space<vmem>>, vector<1x512x128xbf16>,
    } else {
    }
    return
  }
  func.func @transform_0(%arg0: i32, %arg1: i32, %arg2: i32) -> (i32, i32, i32) {
    %c0_i32 = arith.constant 0 : i32
    return %arg0, %arg1, %arg2 : i32, i32, i32
  }
  func.func @transform_1(%arg0: i32, %arg1: i32, %arg2: i32) -> (i32, i32, i32) {
    %c0_i32 = arith.constant 0 : i32
    %c0_i32_0 = arith.constant 0 : i32
    return %arg0, %arg2, %c0_i32 : i32, i32, i32
  }
  func.func @transform_2(%arg0: i32, %arg1: i32, %arg2: i32) -> (i32, i32, i32) {
    %c0_i32 = arith.constant 0 : i32
    %c0_i32_0 = arith.constant 0 : i32
    %c0_i32_1 = arith.constant 0 : i32
    return %arg0, %c0_i32, %c0_i32_0 : i32, i32, i32
  }
  func.func @transform_3(%arg0: i32, %arg1: i32, %arg2: i32) -> (i32, i32, i32) {
    %c0_i32 = arith.constant 0 : i32
    %c0_i32_0 = arith.constant 0 : i32
    %c0_i32_1 = arith.constant 0 : i32
    return %arg0, %c0_i32, %c0_i32_0 : i32, i32, i32
  }
  func.func @transform_4(%arg0: i32, %arg1: i32, %arg2: i32) -> (i32, i32, i32) {
    %c0_i32 = arith.constant 0 : i32
    %c0_i32_0 = arith.constant 0 : i32
    return %arg0, %arg1, %c0_i32 : i32, i32, i32
  }
}

module attributes {stable_mosaic.version = 11 : i64} {
  func.func @body(%arg0: i32, %arg1: i32, %arg2: i32, %arg3: memref<1x512x72xbf16, #tpu.memory_space<vmem>>, %arg4: memref<1x72x128xbf16, #tpu.memory_space<vmem>>, %arg5: memref<1x1x128xf32, #tpu.memory_space<vmem>>, %arg6: memref<1x512x128xbf16, #tpu.memory_space<vmem>>, %arg7: memref<512x128xf32, #tpu.memory_space<vmem>>) attributes {dimension_semantics = [#tpu.dimension_semantics<parallel>, #tpu.dimension_semantics<parallel>, #tpu.dimension_semantics<arbitrary>], iteration_bounds = array<i64: 1, 4, 1>, scalar_prefetch = 0 : i64, scratch_operands = 1 : i64, tpu.core_type = #tpu.core_type<tc>, window_params = [{transform_indices = @transform_0, window_bounds = array<i64: 1, 512, 72>}, {transform_indices = @transform_1, window_bounds = array<i64: 1, 72, 128>}, {transform_indices = @transform_2, window_bounds = array<i64: 1, 1, 128>}, {transform_indices = @transform_3, window_bounds = array<i64: 1, 512, 128>}]} {
    %c0_i32 = arith.constant 0 : i32
    %0 = arith.cmpi eq, %arg2, %c0_i32 : i32
    %1 = arith.extui %0 : i1 to i32
    %c0_i32_0 = arith.constant 0 : i32
    %2 = arith.cmpi ne, %1, %c0_i32_0 : i32
    scf.if %2 {
      %cst_12 = arith.constant 0.000000e+00 : f32
      %14 = vector.broadcast %cst_12 : f32 to vector<512x128xf32>
      %c0_13 = arith.constant 0 : index
      %c0_14 = arith.constant 0 : index
      %15 = vector.load %arg7[%c0_13, %c0_14] : memref<512x128xf32, #tpu.memory_space<vmem>>, vector<512x128xf32>
      tpu.vector_store %arg7[%c0_13, %c0_14], %14 {strides = array<i32>} : memref<512x128xf32, #tpu.memory_space<vmem>>, vector<512x128xf32>,
    } else {
    }
    %c0 = arith.constant 0 : index
    %c0_1 = arith.constant 0 : index
    %3 = vector.load %arg7[%c0, %c0_1] : memref<512x128xf32, #tpu.memory_space<vmem>>, vector<512x128xf32>
    %c0_2 = arith.constant 0 : index
    %c0_3 = arith.constant 0 : index
    %c0_4 = arith.constant 0 : index
    %4 = vector.load %arg3[%c0_2, %c0_3, %c0_4] : memref<1x512x72xbf16, #tpu.memory_space<vmem>>, vector<1x512x72xbf16>
    %5 = vector.shape_cast %4 : vector<1x512x72xbf16> to vector<512x72xbf16>
    %c0_5 = arith.constant 0 : index
    %c0_6 = arith.constant 0 : index
    %c0_7 = arith.constant 0 : index
    %6 = vector.load %arg4[%c0_5, %c0_6, %c0_7] : memref<1x72x128xbf16, #tpu.memory_space<vmem>>, vector<1x72x128xbf16>
    %7 = vector.shape_cast %6 : vector<1x72x128xbf16> to vector<72x128xbf16>
    %cst = arith.constant dense<0.000000e+00> : vector<512x128xf32>
    %8 = tpu.matmul %5, %7, %cst {dimension_numbers = #tpu.dot_dimension_numbers<[1], [0], [0], [1], [0, 0, 1, 1], [], []>} : vector<512x72xbf16>, vector<72x128xbf16>, vector<512x128xf32> -> vector<512x128xf32>
    %9 = arith.addf %3, %8 : vector<512x128xf32>
    %c0_8 = arith.constant 0 : index
    %c0_9 = arith.constant 0 : index
    %10 = vector.load %arg7[%c0_8, %c0_9] : memref<512x128xf32, #tpu.memory_space<vmem>>, vector<512x128xf32>
    tpu.vector_store %arg7[%c0_8, %c0_9], %9 {strides = array<i32>} : memref<512x128xf32, #tpu.memory_space<vmem>>, vector<512x128xf32>,
    %c0_i32_10 = arith.constant 0 : i32
    %11 = arith.cmpi eq, %arg2, %c0_i32_10 : i32
    %12 = arith.extui %11 : i1 to i32
    %c0_i32_11 = arith.constant 0 : i32
    %13 = arith.cmpi ne, %12, %c0_i32_11 : i32
    scf.if %13 {
      %c0_12 = arith.constant 0 : index
      %c0_13 = arith.constant 0 : index
      %14 = vector.load %arg7[%c0_12, %c0_13] : memref<512x128xf32, #tpu.memory_space<vmem>>, vector<512x128xf32>
      %cst_14 = arith.constant 0.000000e+00 : f32
      %15 = vector.broadcast %cst_14 : f32 to vector<512x128xf32>
      %16 = arith.cmpf oge, %14, %15 : vector<512x128xf32>
      %c0_15 = arith.constant 0 : index
      %c0_16 = arith.constant 0 : index
      %c0_17 = arith.constant 0 : index
      %17 = vector.load %arg5[%c0_15, %c0_16, %c0_17] : memref<1x1x128xf32, #tpu.memory_space<vmem>>, vector<1x1x128xf32>
      %18 = vector.shape_cast %17 : vector<1x1x128xf32> to vector<1x128xf32>
      %19 = vector.broadcast %18 : vector<1x128xf32> to vector<512x128xf32>
      %20 = arith.mulf %19, %14 : vector<512x128xf32>
      %21 = arith.select %16, %14, %20 : vector<512x128xi1>, vector<512x128xf32>
      %22 = arith.truncf %21 : vector<512x128xf32> to vector<512x128xbf16>
      %c0_18 = arith.constant 0 : index
      %c0_19 = arith.constant 0 : index
      %c0_20 = arith.constant 0 : index
      %23 = vector.load %arg6[%c0_18, %c0_19, %c0_20] : memref<1x512x128xbf16, #tpu.memory_space<vmem>>, vector<1x512x128xbf16>
      %24 = vector.shape_cast %23 : vector<1x512x128xbf16> to vector<512x128xbf16>
      %25 = vector.shape_cast %22 : vector<512x128xbf16> to vector<1x512x128xbf16>
      tpu.vector_store %arg6[%c0_18, %c0_19, %c0_20], %25 {strides = array<i32>} : memref<1x512x128xbf16, #tpu.memory_space<vmem>>, vector<1x512x128xbf16>,
    } else {
    }
    return
  }
  func.func @transform_0(%arg0: i32, %arg1: i32, %arg2: i32) -> (i32, i32, i32) {
    %c0_i32 = arith.constant 0 : i32
    return %arg0, %arg1, %arg2 : i32, i32, i32
  }
  func.func @transform_1(%arg0: i32, %arg1: i32, %arg2: i32) -> (i32, i32, i32) {
    %c0_i32 = arith.constant 0 : i32
    %c0_i32_0 = arith.constant 0 : i32
    return %arg0, %arg2, %c0_i32 : i32, i32, i32
  }
  func.func @transform_2(%arg0: i32, %arg1: i32, %arg2: i32) -> (i32, i32, i32) {
    %c0_i32 = arith.constant 0 : i32
    %c0_i32_0 = arith.constant 0 : i32
    %c0_i32_1 = arith.constant 0 : i32
    return %arg0, %c0_i32, %c0_i32_0 : i32, i32, i32
  }
  func.func @transform_3(%arg0: i32, %arg1: i32, %arg2: i32) -> (i32, i32, i32) {
    %c0_i32 = arith.constant 0 : i32
    %c0_i32_0 = arith.constant 0 : i32
    return %arg0, %arg1, %c0_i32 : i32, i32, i32
  }
}

module attributes {stable_mosaic.version = 11 : i64} {
  func.func @body(%arg0: i32, %arg1: i32, %arg2: i32, %arg3: memref<1x256x72xbf16, #tpu.memory_space<vmem>>, %arg4: memref<1x72x128xbf16, #tpu.memory_space<vmem>>, %arg5: memref<1x1x128xf32, #tpu.memory_space<vmem>>, %arg6: memref<1x256x128xbf16, #tpu.memory_space<vmem>>, %arg7: memref<1x256x128xbf16, #tpu.memory_space<vmem>>, %arg8: memref<256x128xf32, #tpu.memory_space<vmem>>) attributes {dimension_semantics = [#tpu.dimension_semantics<parallel>, #tpu.dimension_semantics<parallel>, #tpu.dimension_semantics<arbitrary>], iteration_bounds = array<i64: 1, 2, 1>, scalar_prefetch = 0 : i64, scratch_operands = 1 : i64, tpu.core_type = #tpu.core_type<tc>, window_params = [{transform_indices = @transform_0, window_bounds = array<i64: 1, 256, 72>}, {transform_indices = @transform_1, window_bounds = array<i64: 1, 72, 128>}, {transform_indices = @transform_2, window_bounds = array<i64: 1, 1, 128>}, {transform_indices = @transform_3, window_bounds = array<i64: 1, 256, 128>}, {transform_indices = @transform_4, window_bounds = array<i64: 1, 256, 128>}]} {
    %c0_i32 = arith.constant 0 : i32
    %0 = arith.cmpi eq, %arg2, %c0_i32 : i32
    %1 = arith.extui %0 : i1 to i32
    %c0_i32_0 = arith.constant 0 : i32
    %2 = arith.cmpi ne, %1, %c0_i32_0 : i32
    scf.if %2 {
      %cst_12 = arith.constant 0.000000e+00 : f32
      %14 = vector.broadcast %cst_12 : f32 to vector<256x128xf32>
      %c0_13 = arith.constant 0 : index
      %c0_14 = arith.constant 0 : index
      %15 = vector.load %arg8[%c0_13, %c0_14] : memref<256x128xf32, #tpu.memory_space<vmem>>, vector<256x128xf32>
      tpu.vector_store %arg8[%c0_13, %c0_14], %14 {strides = array<i32>} : memref<256x128xf32, #tpu.memory_space<vmem>>, vector<256x128xf32>,
    } else {
    }
    %c0 = arith.constant 0 : index
    %c0_1 = arith.constant 0 : index
    %3 = vector.load %arg8[%c0, %c0_1] : memref<256x128xf32, #tpu.memory_space<vmem>>, vector<256x128xf32>
    %c0_2 = arith.constant 0 : index
    %c0_3 = arith.constant 0 : index
    %c0_4 = arith.constant 0 : index
    %4 = vector.load %arg3[%c0_2, %c0_3, %c0_4] : memref<1x256x72xbf16, #tpu.memory_space<vmem>>, vector<1x256x72xbf16>
    %5 = vector.shape_cast %4 : vector<1x256x72xbf16> to vector<256x72xbf16>
    %c0_5 = arith.constant 0 : index
    %c0_6 = arith.constant 0 : index
    %c0_7 = arith.constant 0 : index
    %6 = vector.load %arg4[%c0_5, %c0_6, %c0_7] : memref<1x72x128xbf16, #tpu.memory_space<vmem>>, vector<1x72x128xbf16>
    %7 = vector.shape_cast %6 : vector<1x72x128xbf16> to vector<72x128xbf16>
    %cst = arith.constant dense<0.000000e+00> : vector<256x128xf32>
    %8 = tpu.matmul %5, %7, %cst {dimension_numbers = #tpu.dot_dimension_numbers<[1], [0], [0], [1], [0, 0, 1, 1], [], []>} : vector<256x72xbf16>, vector<72x128xbf16>, vector<256x128xf32> -> vector<256x128xf32>
    %9 = arith.addf %3, %8 : vector<256x128xf32>
    %c0_8 = arith.constant 0 : index
    %c0_9 = arith.constant 0 : index
    %10 = vector.load %arg8[%c0_8, %c0_9] : memref<256x128xf32, #tpu.memory_space<vmem>>, vector<256x128xf32>
    tpu.vector_store %arg8[%c0_8, %c0_9], %9 {strides = array<i32>} : memref<256x128xf32, #tpu.memory_space<vmem>>, vector<256x128xf32>,
    %c0_i32_10 = arith.constant 0 : i32
    %11 = arith.cmpi eq, %arg2, %c0_i32_10 : i32
    %12 = arith.extui %11 : i1 to i32
    %c0_i32_11 = arith.constant 0 : i32
    %13 = arith.cmpi ne, %12, %c0_i32_11 : i32
    scf.if %13 {
      %c0_12 = arith.constant 0 : index
      %c0_13 = arith.constant 0 : index
      %14 = vector.load %arg8[%c0_12, %c0_13] : memref<256x128xf32, #tpu.memory_space<vmem>>, vector<256x128xf32>
      %c0_14 = arith.constant 0 : index
      %c0_15 = arith.constant 0 : index
      %c0_16 = arith.constant 0 : index
      %15 = vector.load %arg5[%c0_14, %c0_15, %c0_16] : memref<1x1x128xf32, #tpu.memory_space<vmem>>, vector<1x1x128xf32>
      %16 = vector.shape_cast %15 : vector<1x1x128xf32> to vector<1x128xf32>
      %17 = vector.broadcast %16 : vector<1x128xf32> to vector<256x128xf32>
      %18 = arith.addf %14, %17 : vector<256x128xf32>
      %c0_17 = arith.constant 0 : index
      %c0_18 = arith.constant 0 : index
      %c0_19 = arith.constant 0 : index
      %19 = vector.load %arg6[%c0_17, %c0_18, %c0_19] : memref<1x256x128xbf16, #tpu.memory_space<vmem>>, vector<1x256x128xbf16>
      %20 = vector.shape_cast %19 : vector<1x256x128xbf16> to vector<256x128xbf16>
      %21 = arith.extf %20 : vector<256x128xbf16> to vector<256x128xf32>
      %22 = arith.addf %18, %21 : vector<256x128xf32>
      %23 = arith.truncf %22 : vector<256x128xf32> to vector<256x128xbf16>
      %c0_20 = arith.constant 0 : index
      %c0_21 = arith.constant 0 : index
      %c0_22 = arith.constant 0 : index
      %24 = vector.load %arg7[%c0_20, %c0_21, %c0_22] : memref<1x256x128xbf16, #tpu.memory_space<vmem>>, vector<1x256x128xbf16>
      %25 = vector.shape_cast %24 : vector<1x256x128xbf16> to vector<256x128xbf16>
      %26 = vector.shape_cast %23 : vector<256x128xbf16> to vector<1x256x128xbf16>
      tpu.vector_store %arg7[%c0_20, %c0_21, %c0_22], %26 {strides = array<i32>} : memref<1x256x128xbf16, #tpu.memory_space<vmem>>, vector<1x256x128xbf16>,
    } else {
    }
    return
  }
  func.func @transform_0(%arg0: i32, %arg1: i32, %arg2: i32) -> (i32, i32, i32) {
    %c0_i32 = arith.constant 0 : i32
    return %arg0, %arg1, %arg2 : i32, i32, i32
  }
  func.func @transform_1(%arg0: i32, %arg1: i32, %arg2: i32) -> (i32, i32, i32) {
    %c0_i32 = arith.constant 0 : i32
    %c0_i32_0 = arith.constant 0 : i32
    return %arg0, %arg2, %c0_i32 : i32, i32, i32
  }
  func.func @transform_2(%arg0: i32, %arg1: i32, %arg2: i32) -> (i32, i32, i32) {
    %c0_i32 = arith.constant 0 : i32
    %c0_i32_0 = arith.constant 0 : i32
    %c0_i32_1 = arith.constant 0 : i32
    return %arg0, %c0_i32, %c0_i32_0 : i32, i32, i32
  }
  func.func @transform_3(%arg0: i32, %arg1: i32, %arg2: i32) -> (i32, i32, i32) {
    %c0_i32 = arith.constant 0 : i32
    %c0_i32_0 = arith.constant 0 : i32
    return %arg0, %arg1, %c0_i32 : i32, i32, i32
  }
  func.func @transform_4(%arg0: i32, %arg1: i32, %arg2: i32) -> (i32, i32, i32) {
    %c0_i32 = arith.constant 0 : i32
    %c0_i32_0 = arith.constant 0 : i32
    return %arg0, %arg1, %c0_i32 : i32, i32, i32
  }
}

module attributes {stable_mosaic.version = 11 : i64} {
  func.func @body(%arg0: i32, %arg1: i32, %arg2: i32, %arg3: memref<1x256x72xbf16, #tpu.memory_space<vmem>>, %arg4: memref<1x72x128xbf16, #tpu.memory_space<vmem>>, %arg5: memref<1x1x128xf32, #tpu.memory_space<vmem>>, %arg6: memref<1x256x128xbf16, #tpu.memory_space<vmem>>, %arg7: memref<256x128xf32, #tpu.memory_space<vmem>>) attributes {dimension_semantics = [#tpu.dimension_semantics<parallel>, #tpu.dimension_semantics<parallel>, #tpu.dimension_semantics<arbitrary>], iteration_bounds = array<i64: 1, 2, 1>, scalar_prefetch = 0 : i64, scratch_operands = 1 : i64, tpu.core_type = #tpu.core_type<tc>, window_params = [{transform_indices = @transform_0, window_bounds = array<i64: 1, 256, 72>}, {transform_indices = @transform_1, window_bounds = array<i64: 1, 72, 128>}, {transform_indices = @transform_2, window_bounds = array<i64: 1, 1, 128>}, {transform_indices = @transform_3, window_bounds = array<i64: 1, 256, 128>}]} {
    %c0_i32 = arith.constant 0 : i32
    %0 = arith.cmpi eq, %arg2, %c0_i32 : i32
    %1 = arith.extui %0 : i1 to i32
    %c0_i32_0 = arith.constant 0 : i32
    %2 = arith.cmpi ne, %1, %c0_i32_0 : i32
    scf.if %2 {
      %cst_12 = arith.constant 0.000000e+00 : f32
      %14 = vector.broadcast %cst_12 : f32 to vector<256x128xf32>
      %c0_13 = arith.constant 0 : index
      %c0_14 = arith.constant 0 : index
      %15 = vector.load %arg7[%c0_13, %c0_14] : memref<256x128xf32, #tpu.memory_space<vmem>>, vector<256x128xf32>
      tpu.vector_store %arg7[%c0_13, %c0_14], %14 {strides = array<i32>} : memref<256x128xf32, #tpu.memory_space<vmem>>, vector<256x128xf32>,
    } else {
    }
    %c0 = arith.constant 0 : index
    %c0_1 = arith.constant 0 : index
    %3 = vector.load %arg7[%c0, %c0_1] : memref<256x128xf32, #tpu.memory_space<vmem>>, vector<256x128xf32>
    %c0_2 = arith.constant 0 : index
    %c0_3 = arith.constant 0 : index
    %c0_4 = arith.constant 0 : index
    %4 = vector.load %arg3[%c0_2, %c0_3, %c0_4] : memref<1x256x72xbf16, #tpu.memory_space<vmem>>, vector<1x256x72xbf16>
    %5 = vector.shape_cast %4 : vector<1x256x72xbf16> to vector<256x72xbf16>
    %c0_5 = arith.constant 0 : index
    %c0_6 = arith.constant 0 : index
    %c0_7 = arith.constant 0 : index
    %6 = vector.load %arg4[%c0_5, %c0_6, %c0_7] : memref<1x72x128xbf16, #tpu.memory_space<vmem>>, vector<1x72x128xbf16>
    %7 = vector.shape_cast %6 : vector<1x72x128xbf16> to vector<72x128xbf16>
    %cst = arith.constant dense<0.000000e+00> : vector<256x128xf32>
    %8 = tpu.matmul %5, %7, %cst {dimension_numbers = #tpu.dot_dimension_numbers<[1], [0], [0], [1], [0, 0, 1, 1], [], []>} : vector<256x72xbf16>, vector<72x128xbf16>, vector<256x128xf32> -> vector<256x128xf32>
    %9 = arith.addf %3, %8 : vector<256x128xf32>
    %c0_8 = arith.constant 0 : index
    %c0_9 = arith.constant 0 : index
    %10 = vector.load %arg7[%c0_8, %c0_9] : memref<256x128xf32, #tpu.memory_space<vmem>>, vector<256x128xf32>
    tpu.vector_store %arg7[%c0_8, %c0_9], %9 {strides = array<i32>} : memref<256x128xf32, #tpu.memory_space<vmem>>, vector<256x128xf32>,
    %c0_i32_10 = arith.constant 0 : i32
    %11 = arith.cmpi eq, %arg2, %c0_i32_10 : i32
    %12 = arith.extui %11 : i1 to i32
    %c0_i32_11 = arith.constant 0 : i32
    %13 = arith.cmpi ne, %12, %c0_i32_11 : i32
    scf.if %13 {
      %c0_12 = arith.constant 0 : index
      %c0_13 = arith.constant 0 : index
      %14 = vector.load %arg7[%c0_12, %c0_13] : memref<256x128xf32, #tpu.memory_space<vmem>>, vector<256x128xf32>
      %cst_14 = arith.constant 0.000000e+00 : f32
      %15 = vector.broadcast %cst_14 : f32 to vector<256x128xf32>
      %16 = arith.cmpf oge, %14, %15 : vector<256x128xf32>
      %c0_15 = arith.constant 0 : index
      %c0_16 = arith.constant 0 : index
      %c0_17 = arith.constant 0 : index
      %17 = vector.load %arg5[%c0_15, %c0_16, %c0_17] : memref<1x1x128xf32, #tpu.memory_space<vmem>>, vector<1x1x128xf32>
      %18 = vector.shape_cast %17 : vector<1x1x128xf32> to vector<1x128xf32>
      %19 = vector.broadcast %18 : vector<1x128xf32> to vector<256x128xf32>
      %20 = arith.mulf %19, %14 : vector<256x128xf32>
      %21 = arith.select %16, %14, %20 : vector<256x128xi1>, vector<256x128xf32>
      %22 = arith.truncf %21 : vector<256x128xf32> to vector<256x128xbf16>
      %c0_18 = arith.constant 0 : index
      %c0_19 = arith.constant 0 : index
      %c0_20 = arith.constant 0 : index
      %23 = vector.load %arg6[%c0_18, %c0_19, %c0_20] : memref<1x256x128xbf16, #tpu.memory_space<vmem>>, vector<1x256x128xbf16>
      %24 = vector.shape_cast %23 : vector<1x256x128xbf16> to vector<256x128xbf16>
      %25 = vector.shape_cast %22 : vector<256x128xbf16> to vector<1x256x128xbf16>
      tpu.vector_store %arg6[%c0_18, %c0_19, %c0_20], %25 {strides = array<i32>} : memref<1x256x128xbf16, #tpu.memory_space<vmem>>, vector<1x256x128xbf16>,
    } else {
    }
    return
  }
  func.func @transform_0(%arg0: i32, %arg1: i32, %arg2: i32) -> (i32, i32, i32) {
    %c0_i32 = arith.constant 0 : i32
    return %arg0, %arg1, %arg2 : i32, i32, i32
  }
  func.func @transform_1(%arg0: i32, %arg1: i32, %arg2: i32) -> (i32, i32, i32) {
    %c0_i32 = arith.constant 0 : i32
    %c0_i32_0 = arith.constant 0 : i32
    return %arg0, %arg2, %c0_i32 : i32, i32, i32
  }
  func.func @transform_2(%arg0: i32, %arg1: i32, %arg2: i32) -> (i32, i32, i32) {
    %c0_i32 = arith.constant 0 : i32
    %c0_i32_0 = arith.constant 0 : i32
    %c0_i32_1 = arith.constant 0 : i32
    return %arg0, %c0_i32, %c0_i32_0 : i32, i32, i32
  }
  func.func @transform_3(%arg0: i32, %arg1: i32, %arg2: i32) -> (i32, i32, i32) {
    %c0_i32 = arith.constant 0 : i32
    %c0_i32_0 = arith.constant 0 : i32
    return %arg0, %arg1, %c0_i32 : i32, i32, i32
  }
}

module attributes {stable_mosaic.version = 11 : i64} {
  func.func @body(%arg0: i32, %arg1: i32, %arg2: i32, %arg3: memref<1x64x8xbf16, #tpu.memory_space<vmem>>, %arg4: memref<1x8x128xbf16, #tpu.memory_space<vmem>>, %arg5: memref<1x1x128xf32, #tpu.memory_space<vmem>>, %arg6: memref<1x64x128xbf16, #tpu.memory_space<vmem>>, %arg7: memref<64x128xf32, #tpu.memory_space<vmem>>) attributes {dimension_semantics = [#tpu.dimension_semantics<parallel>, #tpu.dimension_semantics<parallel>, #tpu.dimension_semantics<arbitrary>], iteration_bounds = array<i64: 1, 2, 1>, scalar_prefetch = 0 : i64, scratch_operands = 1 : i64, tpu.core_type = #tpu.core_type<tc>, window_params = [{transform_indices = @transform_0, window_bounds = array<i64: 1, 64, 8>}, {transform_indices = @transform_1, window_bounds = array<i64: 1, 8, 128>}, {transform_indices = @transform_2, window_bounds = array<i64: 1, 1, 128>}, {transform_indices = @transform_3, window_bounds = array<i64: 1, 64, 128>}]} {
    %c0_i32 = arith.constant 0 : i32
    %0 = arith.cmpi eq, %arg2, %c0_i32 : i32
    %1 = arith.extui %0 : i1 to i32
    %c0_i32_0 = arith.constant 0 : i32
    %2 = arith.cmpi ne, %1, %c0_i32_0 : i32
    scf.if %2 {
      %cst_12 = arith.constant 0.000000e+00 : f32
      %14 = vector.broadcast %cst_12 : f32 to vector<64x128xf32>
      %c0_13 = arith.constant 0 : index
      %c0_14 = arith.constant 0 : index
      %15 = vector.load %arg7[%c0_13, %c0_14] : memref<64x128xf32, #tpu.memory_space<vmem>>, vector<64x128xf32>
      tpu.vector_store %arg7[%c0_13, %c0_14], %14 {strides = array<i32>} : memref<64x128xf32, #tpu.memory_space<vmem>>, vector<64x128xf32>,
    } else {
    }
    %c0 = arith.constant 0 : index
    %c0_1 = arith.constant 0 : index
    %3 = vector.load %arg7[%c0, %c0_1] : memref<64x128xf32, #tpu.memory_space<vmem>>, vector<64x128xf32>
    %c0_2 = arith.constant 0 : index
    %c0_3 = arith.constant 0 : index
    %c0_4 = arith.constant 0 : index
    %4 = vector.load %arg3[%c0_2, %c0_3, %c0_4] : memref<1x64x8xbf16, #tpu.memory_space<vmem>>, vector<1x64x8xbf16>
    %5 = vector.shape_cast %4 : vector<1x64x8xbf16> to vector<64x8xbf16>
    %c0_5 = arith.constant 0 : index
    %c0_6 = arith.constant 0 : index
    %c0_7 = arith.constant 0 : index
    %6 = vector.load %arg4[%c0_5, %c0_6, %c0_7] : memref<1x8x128xbf16, #tpu.memory_space<vmem>>, vector<1x8x128xbf16>
    %7 = vector.shape_cast %6 : vector<1x8x128xbf16> to vector<8x128xbf16>
    %cst = arith.constant dense<0.000000e+00> : vector<64x128xf32>
    %8 = tpu.matmul %5, %7, %cst {dimension_numbers = #tpu.dot_dimension_numbers<[1], [0], [0], [1], [0, 0, 1, 1], [], []>} : vector<64x8xbf16>, vector<8x128xbf16>, vector<64x128xf32> -> vector<64x128xf32>
    %9 = arith.addf %3, %8 : vector<64x128xf32>
    %c0_8 = arith.constant 0 : index
    %c0_9 = arith.constant 0 : index
    %10 = vector.load %arg7[%c0_8, %c0_9] : memref<64x128xf32, #tpu.memory_space<vmem>>, vector<64x128xf32>
    tpu.vector_store %arg7[%c0_8, %c0_9], %9 {strides = array<i32>} : memref<64x128xf32, #tpu.memory_space<vmem>>, vector<64x128xf32>,
    %c0_i32_10 = arith.constant 0 : i32
    %11 = arith.cmpi eq, %arg2, %c0_i32_10 : i32
    %12 = arith.extui %11 : i1 to i32
    %c0_i32_11 = arith.constant 0 : i32
    %13 = arith.cmpi ne, %12, %c0_i32_11 : i32
    scf.if %13 {
      %c0_12 = arith.constant 0 : index
      %c0_13 = arith.constant 0 : index
      %14 = vector.load %arg7[%c0_12, %c0_13] : memref<64x128xf32, #tpu.memory_space<vmem>>, vector<64x128xf32>
      %c0_14 = arith.constant 0 : index
      %c0_15 = arith.constant 0 : index
      %c0_16 = arith.constant 0 : index
      %15 = vector.load %arg5[%c0_14, %c0_15, %c0_16] : memref<1x1x128xf32, #tpu.memory_space<vmem>>, vector<1x1x128xf32>
      %16 = vector.shape_cast %15 : vector<1x1x128xf32> to vector<1x128xf32>
      %17 = vector.broadcast %16 : vector<1x128xf32> to vector<64x128xf32>
      %18 = arith.addf %14, %17 : vector<64x128xf32>
      %19 = arith.truncf %18 : vector<64x128xf32> to vector<64x128xbf16>
      %c0_17 = arith.constant 0 : index
      %c0_18 = arith.constant 0 : index
      %c0_19 = arith.constant 0 : index
      %20 = vector.load %arg6[%c0_17, %c0_18, %c0_19] : memref<1x64x128xbf16, #tpu.memory_space<vmem>>, vector<1x64x128xbf16>
      %21 = vector.shape_cast %20 : vector<1x64x128xbf16> to vector<64x128xbf16>
      %22 = vector.shape_cast %19 : vector<64x128xbf16> to vector<1x64x128xbf16>
      tpu.vector_store %arg6[%c0_17, %c0_18, %c0_19], %22 {strides = array<i32>} : memref<1x64x128xbf16, #tpu.memory_space<vmem>>, vector<1x64x128xbf16>,
    } else {
    }
    return
  }
  func.func @transform_0(%arg0: i32, %arg1: i32, %arg2: i32) -> (i32, i32, i32) {
    %c0_i32 = arith.constant 0 : i32
    return %arg0, %arg1, %arg2 : i32, i32, i32
  }
  func.func @transform_1(%arg0: i32, %arg1: i32, %arg2: i32) -> (i32, i32, i32) {
    %c0_i32 = arith.constant 0 : i32
    %c0_i32_0 = arith.constant 0 : i32
    return %arg0, %arg2, %c0_i32 : i32, i32, i32
  }
  func.func @transform_2(%arg0: i32, %arg1: i32, %arg2: i32) -> (i32, i32, i32) {
    %c0_i32 = arith.constant 0 : i32
    %c0_i32_0 = arith.constant 0 : i32
    %c0_i32_1 = arith.constant 0 : i32
    return %arg0, %c0_i32, %c0_i32_0 : i32, i32, i32
  }
  func.func @transform_3(%arg0: i32, %arg1: i32, %arg2: i32) -> (i32, i32, i32) {
    %c0_i32 = arith.constant 0 : i32
    %c0_i32_0 = arith.constant 0 : i32
    return %arg0, %arg1, %c0_i32 : i32, i32, i32
  }
}

module attributes {stable_mosaic.version = 11 : i64} {
  func.func @body(%arg0: i32, %arg1: i32, %arg2: i32, %arg3: memref<1x64x144xbf16, #tpu.memory_space<vmem>>, %arg4: memref<1x144x128xbf16, #tpu.memory_space<vmem>>, %arg5: memref<1x1x128xf32, #tpu.memory_space<vmem>>, %arg6: memref<1x64x128xbf16, #tpu.memory_space<vmem>>, %arg7: memref<1x64x128xbf16, #tpu.memory_space<vmem>>, %arg8: memref<64x128xf32, #tpu.memory_space<vmem>>) attributes {dimension_semantics = [#tpu.dimension_semantics<parallel>, #tpu.dimension_semantics<parallel>, #tpu.dimension_semantics<arbitrary>], iteration_bounds = array<i64: 1, 2, 1>, scalar_prefetch = 0 : i64, scratch_operands = 1 : i64, tpu.core_type = #tpu.core_type<tc>, window_params = [{transform_indices = @transform_0, window_bounds = array<i64: 1, 64, 144>}, {transform_indices = @transform_1, window_bounds = array<i64: 1, 144, 128>}, {transform_indices = @transform_2, window_bounds = array<i64: 1, 1, 128>}, {transform_indices = @transform_3, window_bounds = array<i64: 1, 64, 128>}, {transform_indices = @transform_4, window_bounds = array<i64: 1, 64, 128>}]} {
    %c0_i32 = arith.constant 0 : i32
    %0 = arith.cmpi eq, %arg2, %c0_i32 : i32
    %1 = arith.extui %0 : i1 to i32
    %c0_i32_0 = arith.constant 0 : i32
    %2 = arith.cmpi ne, %1, %c0_i32_0 : i32
    scf.if %2 {
      %cst_12 = arith.constant 0.000000e+00 : f32
      %14 = vector.broadcast %cst_12 : f32 to vector<64x128xf32>
      %c0_13 = arith.constant 0 : index
      %c0_14 = arith.constant 0 : index
      %15 = vector.load %arg8[%c0_13, %c0_14] : memref<64x128xf32, #tpu.memory_space<vmem>>, vector<64x128xf32>
      tpu.vector_store %arg8[%c0_13, %c0_14], %14 {strides = array<i32>} : memref<64x128xf32, #tpu.memory_space<vmem>>, vector<64x128xf32>,
    } else {
    }
    %c0 = arith.constant 0 : index
    %c0_1 = arith.constant 0 : index
    %3 = vector.load %arg8[%c0, %c0_1] : memref<64x128xf32, #tpu.memory_space<vmem>>, vector<64x128xf32>
    %c0_2 = arith.constant 0 : index
    %c0_3 = arith.constant 0 : index
    %c0_4 = arith.constant 0 : index
    %4 = vector.load %arg3[%c0_2, %c0_3, %c0_4] : memref<1x64x144xbf16, #tpu.memory_space<vmem>>, vector<1x64x144xbf16>
    %5 = vector.shape_cast %4 : vector<1x64x144xbf16> to vector<64x144xbf16>
    %c0_5 = arith.constant 0 : index
    %c0_6 = arith.constant 0 : index
    %c0_7 = arith.constant 0 : index
    %6 = vector.load %arg4[%c0_5, %c0_6, %c0_7] : memref<1x144x128xbf16, #tpu.memory_space<vmem>>, vector<1x144x128xbf16>
    %7 = vector.shape_cast %6 : vector<1x144x128xbf16> to vector<144x128xbf16>
    %cst = arith.constant dense<0.000000e+00> : vector<64x128xf32>
    %8 = tpu.matmul %5, %7, %cst {dimension_numbers = #tpu.dot_dimension_numbers<[1], [0], [0], [1], [0, 0, 1, 1], [], []>} : vector<64x144xbf16>, vector<144x128xbf16>, vector<64x128xf32> -> vector<64x128xf32>
    %9 = arith.addf %3, %8 : vector<64x128xf32>
    %c0_8 = arith.constant 0 : index
    %c0_9 = arith.constant 0 : index
    %10 = vector.load %arg8[%c0_8, %c0_9] : memref<64x128xf32, #tpu.memory_space<vmem>>, vector<64x128xf32>
    tpu.vector_store %arg8[%c0_8, %c0_9], %9 {strides = array<i32>} : memref<64x128xf32, #tpu.memory_space<vmem>>, vector<64x128xf32>,
    %c0_i32_10 = arith.constant 0 : i32
    %11 = arith.cmpi eq, %arg2, %c0_i32_10 : i32
    %12 = arith.extui %11 : i1 to i32
    %c0_i32_11 = arith.constant 0 : i32
    %13 = arith.cmpi ne, %12, %c0_i32_11 : i32
    scf.if %13 {
      %c0_12 = arith.constant 0 : index
      %c0_13 = arith.constant 0 : index
      %14 = vector.load %arg8[%c0_12, %c0_13] : memref<64x128xf32, #tpu.memory_space<vmem>>, vector<64x128xf32>
      %c0_14 = arith.constant 0 : index
      %c0_15 = arith.constant 0 : index
      %c0_16 = arith.constant 0 : index
      %15 = vector.load %arg5[%c0_14, %c0_15, %c0_16] : memref<1x1x128xf32, #tpu.memory_space<vmem>>, vector<1x1x128xf32>
      %16 = vector.shape_cast %15 : vector<1x1x128xf32> to vector<1x128xf32>
      %17 = vector.broadcast %16 : vector<1x128xf32> to vector<64x128xf32>
      %18 = arith.addf %14, %17 : vector<64x128xf32>
      %c0_17 = arith.constant 0 : index
      %c0_18 = arith.constant 0 : index
      %c0_19 = arith.constant 0 : index
      %19 = vector.load %arg6[%c0_17, %c0_18, %c0_19] : memref<1x64x128xbf16, #tpu.memory_space<vmem>>, vector<1x64x128xbf16>
      %20 = vector.shape_cast %19 : vector<1x64x128xbf16> to vector<64x128xbf16>
      %21 = arith.extf %20 : vector<64x128xbf16> to vector<64x128xf32>
      %22 = arith.addf %18, %21 : vector<64x128xf32>
      %23 = arith.truncf %22 : vector<64x128xf32> to vector<64x128xbf16>
      %c0_20 = arith.constant 0 : index
      %c0_21 = arith.constant 0 : index
      %c0_22 = arith.constant 0 : index
      %24 = vector.load %arg7[%c0_20, %c0_21, %c0_22] : memref<1x64x128xbf16, #tpu.memory_space<vmem>>, vector<1x64x128xbf16>
      %25 = vector.shape_cast %24 : vector<1x64x128xbf16> to vector<64x128xbf16>
      %26 = vector.shape_cast %23 : vector<64x128xbf16> to vector<1x64x128xbf16>
      tpu.vector_store %arg7[%c0_20, %c0_21, %c0_22], %26 {strides = array<i32>} : memref<1x64x128xbf16, #tpu.memory_space<vmem>>, vector<1x64x128xbf16>,
    } else {
    }
    return
  }
  func.func @transform_0(%arg0: i32, %arg1: i32, %arg2: i32) -> (i32, i32, i32) {
    %c0_i32 = arith.constant 0 : i32
    return %arg0, %arg1, %arg2 : i32, i32, i32
  }
  func.func @transform_1(%arg0: i32, %arg1: i32, %arg2: i32) -> (i32, i32, i32) {
    %c0_i32 = arith.constant 0 : i32
    %c0_i32_0 = arith.constant 0 : i32
    return %arg0, %arg2, %c0_i32 : i32, i32, i32
  }
  func.func @transform_2(%arg0: i32, %arg1: i32, %arg2: i32) -> (i32, i32, i32) {
    %c0_i32 = arith.constant 0 : i32
    %c0_i32_0 = arith.constant 0 : i32
    %c0_i32_1 = arith.constant 0 : i32
    return %arg0, %c0_i32, %c0_i32_0 : i32, i32, i32
  }
  func.func @transform_3(%arg0: i32, %arg1: i32, %arg2: i32) -> (i32, i32, i32) {
    %c0_i32 = arith.constant 0 : i32
    %c0_i32_0 = arith.constant 0 : i32
    return %arg0, %arg1, %c0_i32 : i32, i32, i32
  }
  func.func @transform_4(%arg0: i32, %arg1: i32, %arg2: i32) -> (i32, i32, i32) {
    %c0_i32 = arith.constant 0 : i32
    %c0_i32_0 = arith.constant 0 : i32
    return %arg0, %arg1, %c0_i32 : i32, i32, i32
  }
}

module attributes {stable_mosaic.version = 11 : i64} {
  func.func @body(%arg0: i32, %arg1: i32, %arg2: i32, %arg3: memref<1x64x144xbf16, #tpu.memory_space<vmem>>, %arg4: memref<1x144x128xbf16, #tpu.memory_space<vmem>>, %arg5: memref<1x1x128xf32, #tpu.memory_space<vmem>>, %arg6: memref<1x64x128xbf16, #tpu.memory_space<vmem>>, %arg7: memref<64x128xf32, #tpu.memory_space<vmem>>) attributes {dimension_semantics = [#tpu.dimension_semantics<parallel>, #tpu.dimension_semantics<parallel>, #tpu.dimension_semantics<arbitrary>], iteration_bounds = array<i64: 1, 2, 1>, scalar_prefetch = 0 : i64, scratch_operands = 1 : i64, tpu.core_type = #tpu.core_type<tc>, window_params = [{transform_indices = @transform_0, window_bounds = array<i64: 1, 64, 144>}, {transform_indices = @transform_1, window_bounds = array<i64: 1, 144, 128>}, {transform_indices = @transform_2, window_bounds = array<i64: 1, 1, 128>}, {transform_indices = @transform_3, window_bounds = array<i64: 1, 64, 128>}]} {
    %c0_i32 = arith.constant 0 : i32
    %0 = arith.cmpi eq, %arg2, %c0_i32 : i32
    %1 = arith.extui %0 : i1 to i32
    %c0_i32_0 = arith.constant 0 : i32
    %2 = arith.cmpi ne, %1, %c0_i32_0 : i32
    scf.if %2 {
      %cst_12 = arith.constant 0.000000e+00 : f32
      %14 = vector.broadcast %cst_12 : f32 to vector<64x128xf32>
      %c0_13 = arith.constant 0 : index
      %c0_14 = arith.constant 0 : index
      %15 = vector.load %arg7[%c0_13, %c0_14] : memref<64x128xf32, #tpu.memory_space<vmem>>, vector<64x128xf32>
      tpu.vector_store %arg7[%c0_13, %c0_14], %14 {strides = array<i32>} : memref<64x128xf32, #tpu.memory_space<vmem>>, vector<64x128xf32>,
    } else {
    }
    %c0 = arith.constant 0 : index
    %c0_1 = arith.constant 0 : index
    %3 = vector.load %arg7[%c0, %c0_1] : memref<64x128xf32, #tpu.memory_space<vmem>>, vector<64x128xf32>
    %c0_2 = arith.constant 0 : index
    %c0_3 = arith.constant 0 : index
    %c0_4 = arith.constant 0 : index
    %4 = vector.load %arg3[%c0_2, %c0_3, %c0_4] : memref<1x64x144xbf16, #tpu.memory_space<vmem>>, vector<1x64x144xbf16>
    %5 = vector.shape_cast %4 : vector<1x64x144xbf16> to vector<64x144xbf16>
    %c0_5 = arith.constant 0 : index
    %c0_6 = arith.constant 0 : index
    %c0_7 = arith.constant 0 : index
    %6 = vector.load %arg4[%c0_5, %c0_6, %c0_7] : memref<1x144x128xbf16, #tpu.memory_space<vmem>>, vector<1x144x128xbf16>
    %7 = vector.shape_cast %6 : vector<1x144x128xbf16> to vector<144x128xbf16>
    %cst = arith.constant dense<0.000000e+00> : vector<64x128xf32>
    %8 = tpu.matmul %5, %7, %cst {dimension_numbers = #tpu.dot_dimension_numbers<[1], [0], [0], [1], [0, 0, 1, 1], [], []>} : vector<64x144xbf16>, vector<144x128xbf16>, vector<64x128xf32> -> vector<64x128xf32>
    %9 = arith.addf %3, %8 : vector<64x128xf32>
    %c0_8 = arith.constant 0 : index
    %c0_9 = arith.constant 0 : index
    %10 = vector.load %arg7[%c0_8, %c0_9] : memref<64x128xf32, #tpu.memory_space<vmem>>, vector<64x128xf32>
    tpu.vector_store %arg7[%c0_8, %c0_9], %9 {strides = array<i32>} : memref<64x128xf32, #tpu.memory_space<vmem>>, vector<64x128xf32>,
    %c0_i32_10 = arith.constant 0 : i32
    %11 = arith.cmpi eq, %arg2, %c0_i32_10 : i32
    %12 = arith.extui %11 : i1 to i32
    %c0_i32_11 = arith.constant 0 : i32
    %13 = arith.cmpi ne, %12, %c0_i32_11 : i32
    scf.if %13 {
      %c0_12 = arith.constant 0 : index
      %c0_13 = arith.constant 0 : index
      %14 = vector.load %arg7[%c0_12, %c0_13] : memref<64x128xf32, #tpu.memory_space<vmem>>, vector<64x128xf32>
      %cst_14 = arith.constant 0.000000e+00 : f32
      %15 = vector.broadcast %cst_14 : f32 to vector<64x128xf32>
      %16 = arith.cmpf oge, %14, %15 : vector<64x128xf32>
      %c0_15 = arith.constant 0 : index
      %c0_16 = arith.constant 0 : index
      %c0_17 = arith.constant 0 : index
      %17 = vector.load %arg5[%c0_15, %c0_16, %c0_17] : memref<1x1x128xf32, #tpu.memory_space<vmem>>, vector<1x1x128xf32>
      %18 = vector.shape_cast %17 : vector<1x1x128xf32> to vector<1x128xf32>
      %19 = vector.broadcast %18 : vector<1x128xf32> to vector<64x128xf32>
      %20 = arith.mulf %19, %14 : vector<64x128xf32>
      %21 = arith.select %16, %14, %20 : vector<64x128xi1>, vector<64x128xf32>
      %22 = arith.truncf %21 : vector<64x128xf32> to vector<64x128xbf16>
      %c0_18 = arith.constant 0 : index
      %c0_19 = arith.constant 0 : index
      %c0_20 = arith.constant 0 : index
      %23 = vector.load %arg6[%c0_18, %c0_19, %c0_20] : memref<1x64x128xbf16, #tpu.memory_space<vmem>>, vector<1x64x128xbf16>
      %24 = vector.shape_cast %23 : vector<1x64x128xbf16> to vector<64x128xbf16>
      %25 = vector.shape_cast %22 : vector<64x128xbf16> to vector<1x64x128xbf16>
      tpu.vector_store %arg6[%c0_18, %c0_19, %c0_20], %25 {strides = array<i32>} : memref<1x64x128xbf16, #tpu.memory_space<vmem>>, vector<1x64x128xbf16>,
    } else {
    }
    return
  }
  func.func @transform_0(%arg0: i32, %arg1: i32, %arg2: i32) -> (i32, i32, i32) {
    %c0_i32 = arith.constant 0 : i32
    return %arg0, %arg1, %arg2 : i32, i32, i32
  }
  func.func @transform_1(%arg0: i32, %arg1: i32, %arg2: i32) -> (i32, i32, i32) {
    %c0_i32 = arith.constant 0 : i32
    %c0_i32_0 = arith.constant 0 : i32
    return %arg0, %arg2, %c0_i32 : i32, i32, i32
  }
  func.func @transform_2(%arg0: i32, %arg1: i32, %arg2: i32) -> (i32, i32, i32) {
    %c0_i32 = arith.constant 0 : i32
    %c0_i32_0 = arith.constant 0 : i32
    %c0_i32_1 = arith.constant 0 : i32
    return %arg0, %c0_i32, %c0_i32_0 : i32, i32, i32
  }
  func.func @transform_3(%arg0: i32, %arg1: i32, %arg2: i32) -> (i32, i32, i32) {
    %c0_i32 = arith.constant 0 : i32
    %c0_i32_0 = arith.constant 0 : i32
    return %arg0, %arg1, %c0_i32 : i32, i32, i32
  }
}

module attributes {stable_mosaic.version = 11 : i64} {
  func.func @body(%arg0: i32, %arg1: i32, %arg2: i32, %arg3: memref<1x16x16xbf16, #tpu.memory_space<vmem>>, %arg4: memref<1x16x128xbf16, #tpu.memory_space<vmem>>, %arg5: memref<1x1x128xf32, #tpu.memory_space<vmem>>, %arg6: memref<1x16x128xbf16, #tpu.memory_space<vmem>>, %arg7: memref<16x128xf32, #tpu.memory_space<vmem>>) attributes {dimension_semantics = [#tpu.dimension_semantics<parallel>, #tpu.dimension_semantics<parallel>, #tpu.dimension_semantics<arbitrary>], iteration_bounds = array<i64: 1, 2, 1>, scalar_prefetch = 0 : i64, scratch_operands = 1 : i64, tpu.core_type = #tpu.core_type<tc>, window_params = [{transform_indices = @transform_0, window_bounds = array<i64: 1, 16, 16>}, {transform_indices = @transform_1, window_bounds = array<i64: 1, 16, 128>}, {transform_indices = @transform_2, window_bounds = array<i64: 1, 1, 128>}, {transform_indices = @transform_3, window_bounds = array<i64: 1, 16, 128>}]} {
    %c0_i32 = arith.constant 0 : i32
    %0 = arith.cmpi eq, %arg2, %c0_i32 : i32
    %1 = arith.extui %0 : i1 to i32
    %c0_i32_0 = arith.constant 0 : i32
    %2 = arith.cmpi ne, %1, %c0_i32_0 : i32
    scf.if %2 {
      %cst_12 = arith.constant 0.000000e+00 : f32
      %14 = vector.broadcast %cst_12 : f32 to vector<16x128xf32>
      %c0_13 = arith.constant 0 : index
      %c0_14 = arith.constant 0 : index
      %15 = vector.load %arg7[%c0_13, %c0_14] : memref<16x128xf32, #tpu.memory_space<vmem>>, vector<16x128xf32>
      tpu.vector_store %arg7[%c0_13, %c0_14], %14 {strides = array<i32>} : memref<16x128xf32, #tpu.memory_space<vmem>>, vector<16x128xf32>,
    } else {
    }
    %c0 = arith.constant 0 : index
    %c0_1 = arith.constant 0 : index
    %3 = vector.load %arg7[%c0, %c0_1] : memref<16x128xf32, #tpu.memory_space<vmem>>, vector<16x128xf32>
    %c0_2 = arith.constant 0 : index
    %c0_3 = arith.constant 0 : index
    %c0_4 = arith.constant 0 : index
    %4 = vector.load %arg3[%c0_2, %c0_3, %c0_4] : memref<1x16x16xbf16, #tpu.memory_space<vmem>>, vector<1x16x16xbf16>
    %5 = vector.shape_cast %4 : vector<1x16x16xbf16> to vector<16x16xbf16>
    %c0_5 = arith.constant 0 : index
    %c0_6 = arith.constant 0 : index
    %c0_7 = arith.constant 0 : index
    %6 = vector.load %arg4[%c0_5, %c0_6, %c0_7] : memref<1x16x128xbf16, #tpu.memory_space<vmem>>, vector<1x16x128xbf16>
    %7 = vector.shape_cast %6 : vector<1x16x128xbf16> to vector<16x128xbf16>
    %cst = arith.constant dense<0.000000e+00> : vector<16x128xf32>
    %8 = tpu.matmul %5, %7, %cst {dimension_numbers = #tpu.dot_dimension_numbers<[1], [0], [0], [1], [0, 0, 1, 1], [], []>} : vector<16x16xbf16>, vector<16x128xbf16>, vector<16x128xf32> -> vector<16x128xf32>
    %9 = arith.addf %3, %8 : vector<16x128xf32>
    %c0_8 = arith.constant 0 : index
    %c0_9 = arith.constant 0 : index
    %10 = vector.load %arg7[%c0_8, %c0_9] : memref<16x128xf32, #tpu.memory_space<vmem>>, vector<16x128xf32>
    tpu.vector_store %arg7[%c0_8, %c0_9], %9 {strides = array<i32>} : memref<16x128xf32, #tpu.memory_space<vmem>>, vector<16x128xf32>,
    %c0_i32_10 = arith.constant 0 : i32
    %11 = arith.cmpi eq, %arg2, %c0_i32_10 : i32
    %12 = arith.extui %11 : i1 to i32
    %c0_i32_11 = arith.constant 0 : i32
    %13 = arith.cmpi ne, %12, %c0_i32_11 : i32
    scf.if %13 {
      %c0_12 = arith.constant 0 : index
      %c0_13 = arith.constant 0 : index
      %14 = vector.load %arg7[%c0_12, %c0_13] : memref<16x128xf32, #tpu.memory_space<vmem>>, vector<16x128xf32>
      %c0_14 = arith.constant 0 : index
      %c0_15 = arith.constant 0 : index
      %c0_16 = arith.constant 0 : index
      %15 = vector.load %arg5[%c0_14, %c0_15, %c0_16] : memref<1x1x128xf32, #tpu.memory_space<vmem>>, vector<1x1x128xf32>
      %16 = vector.shape_cast %15 : vector<1x1x128xf32> to vector<1x128xf32>
      %17 = vector.broadcast %16 : vector<1x128xf32> to vector<16x128xf32>
      %18 = arith.addf %14, %17 : vector<16x128xf32>
      %19 = arith.truncf %18 : vector<16x128xf32> to vector<16x128xbf16>
      %c0_17 = arith.constant 0 : index
      %c0_18 = arith.constant 0 : index
      %c0_19 = arith.constant 0 : index
      %20 = vector.load %arg6[%c0_17, %c0_18, %c0_19] : memref<1x16x128xbf16, #tpu.memory_space<vmem>>, vector<1x16x128xbf16>
      %21 = vector.shape_cast %20 : vector<1x16x128xbf16> to vector<16x128xbf16>
      %22 = vector.shape_cast %19 : vector<16x128xbf16> to vector<1x16x128xbf16>
      tpu.vector_store %arg6[%c0_17, %c0_18, %c0_19], %22 {strides = array<i32>} : memref<1x16x128xbf16, #tpu.memory_space<vmem>>, vector<1x16x128xbf16>,
    } else {
    }
    return
  }
  func.func @transform_0(%arg0: i32, %arg1: i32, %arg2: i32) -> (i32, i32, i32) {
    %c0_i32 = arith.constant 0 : i32
    return %arg0, %arg1, %arg2 : i32, i32, i32
  }
  func.func @transform_1(%arg0: i32, %arg1: i32, %arg2: i32) -> (i32, i32, i32) {
    %c0_i32 = arith.constant 0 : i32
    %c0_i32_0 = arith.constant 0 : i32
    return %arg0, %arg2, %c0_i32 : i32, i32, i32
  }
  func.func @transform_2(%arg0: i32, %arg1: i32, %arg2: i32) -> (i32, i32, i32) {
    %c0_i32 = arith.constant 0 : i32
    %c0_i32_0 = arith.constant 0 : i32
    %c0_i32_1 = arith.constant 0 : i32
    return %arg0, %c0_i32, %c0_i32_0 : i32, i32, i32
  }
  func.func @transform_3(%arg0: i32, %arg1: i32, %arg2: i32) -> (i32, i32, i32) {
    %c0_i32 = arith.constant 0 : i32
    %c0_i32_0 = arith.constant 0 : i32
    return %arg0, %arg1, %c0_i32 : i32, i32, i32
  }
}

module attributes {stable_mosaic.version = 11 : i64} {
  func.func @body(%arg0: i32, %arg1: i32, %arg2: i32, %arg3: memref<1x16x288xbf16, #tpu.memory_space<vmem>>, %arg4: memref<1x288x128xbf16, #tpu.memory_space<vmem>>, %arg5: memref<1x1x128xf32, #tpu.memory_space<vmem>>, %arg6: memref<1x16x128xbf16, #tpu.memory_space<vmem>>, %arg7: memref<1x16x128xbf16, #tpu.memory_space<vmem>>, %arg8: memref<16x128xf32, #tpu.memory_space<vmem>>) attributes {dimension_semantics = [#tpu.dimension_semantics<parallel>, #tpu.dimension_semantics<parallel>, #tpu.dimension_semantics<arbitrary>], iteration_bounds = array<i64: 1, 2, 1>, scalar_prefetch = 0 : i64, scratch_operands = 1 : i64, tpu.core_type = #tpu.core_type<tc>, window_params = [{transform_indices = @transform_0, window_bounds = array<i64: 1, 16, 288>}, {transform_indices = @transform_1, window_bounds = array<i64: 1, 288, 128>}, {transform_indices = @transform_2, window_bounds = array<i64: 1, 1, 128>}, {transform_indices = @transform_3, window_bounds = array<i64: 1, 16, 128>}, {transform_indices = @transform_4, window_bounds = array<i64: 1, 16, 128>}]} {
    %c0_i32 = arith.constant 0 : i32
    %0 = arith.cmpi eq, %arg2, %c0_i32 : i32
    %1 = arith.extui %0 : i1 to i32
    %c0_i32_0 = arith.constant 0 : i32
    %2 = arith.cmpi ne, %1, %c0_i32_0 : i32
    scf.if %2 {
      %cst_12 = arith.constant 0.000000e+00 : f32
      %14 = vector.broadcast %cst_12 : f32 to vector<16x128xf32>
      %c0_13 = arith.constant 0 : index
      %c0_14 = arith.constant 0 : index
      %15 = vector.load %arg8[%c0_13, %c0_14] : memref<16x128xf32, #tpu.memory_space<vmem>>, vector<16x128xf32>
      tpu.vector_store %arg8[%c0_13, %c0_14], %14 {strides = array<i32>} : memref<16x128xf32, #tpu.memory_space<vmem>>, vector<16x128xf32>,
    } else {
    }
    %c0 = arith.constant 0 : index
    %c0_1 = arith.constant 0 : index
    %3 = vector.load %arg8[%c0, %c0_1] : memref<16x128xf32, #tpu.memory_space<vmem>>, vector<16x128xf32>
    %c0_2 = arith.constant 0 : index
    %c0_3 = arith.constant 0 : index
    %c0_4 = arith.constant 0 : index
    %4 = vector.load %arg3[%c0_2, %c0_3, %c0_4] : memref<1x16x288xbf16, #tpu.memory_space<vmem>>, vector<1x16x288xbf16>
    %5 = vector.shape_cast %4 : vector<1x16x288xbf16> to vector<16x288xbf16>
    %c0_5 = arith.constant 0 : index
    %c0_6 = arith.constant 0 : index
    %c0_7 = arith.constant 0 : index
    %6 = vector.load %arg4[%c0_5, %c0_6, %c0_7] : memref<1x288x128xbf16, #tpu.memory_space<vmem>>, vector<1x288x128xbf16>
    %7 = vector.shape_cast %6 : vector<1x288x128xbf16> to vector<288x128xbf16>
    %cst = arith.constant dense<0.000000e+00> : vector<16x128xf32>
    %8 = tpu.matmul %5, %7, %cst {dimension_numbers = #tpu.dot_dimension_numbers<[1], [0], [0], [1], [0, 0, 1, 1], [], []>} : vector<16x288xbf16>, vector<288x128xbf16>, vector<16x128xf32> -> vector<16x128xf32>
    %9 = arith.addf %3, %8 : vector<16x128xf32>
    %c0_8 = arith.constant 0 : index
    %c0_9 = arith.constant 0 : index
    %10 = vector.load %arg8[%c0_8, %c0_9] : memref<16x128xf32, #tpu.memory_space<vmem>>, vector<16x128xf32>
    tpu.vector_store %arg8[%c0_8, %c0_9], %9 {strides = array<i32>} : memref<16x128xf32, #tpu.memory_space<vmem>>, vector<16x128xf32>,
    %c0_i32_10 = arith.constant 0 : i32
    %11 = arith.cmpi eq, %arg2, %c0_i32_10 : i32
    %12 = arith.extui %11 : i1 to i32
    %c0_i32_11 = arith.constant 0 : i32
    %13 = arith.cmpi ne, %12, %c0_i32_11 : i32
    scf.if %13 {
      %c0_12 = arith.constant 0 : index
      %c0_13 = arith.constant 0 : index
      %14 = vector.load %arg8[%c0_12, %c0_13] : memref<16x128xf32, #tpu.memory_space<vmem>>, vector<16x128xf32>
      %c0_14 = arith.constant 0 : index
      %c0_15 = arith.constant 0 : index
      %c0_16 = arith.constant 0 : index
      %15 = vector.load %arg5[%c0_14, %c0_15, %c0_16] : memref<1x1x128xf32, #tpu.memory_space<vmem>>, vector<1x1x128xf32>
      %16 = vector.shape_cast %15 : vector<1x1x128xf32> to vector<1x128xf32>
      %17 = vector.broadcast %16 : vector<1x128xf32> to vector<16x128xf32>
      %18 = arith.addf %14, %17 : vector<16x128xf32>
      %c0_17 = arith.constant 0 : index
      %c0_18 = arith.constant 0 : index
      %c0_19 = arith.constant 0 : index
      %19 = vector.load %arg6[%c0_17, %c0_18, %c0_19] : memref<1x16x128xbf16, #tpu.memory_space<vmem>>, vector<1x16x128xbf16>
      %20 = vector.shape_cast %19 : vector<1x16x128xbf16> to vector<16x128xbf16>
      %21 = arith.extf %20 : vector<16x128xbf16> to vector<16x128xf32>
      %22 = arith.addf %18, %21 : vector<16x128xf32>
      %23 = arith.truncf %22 : vector<16x128xf32> to vector<16x128xbf16>
      %c0_20 = arith.constant 0 : index
      %c0_21 = arith.constant 0 : index
      %c0_22 = arith.constant 0 : index
      %24 = vector.load %arg7[%c0_20, %c0_21, %c0_22] : memref<1x16x128xbf16, #tpu.memory_space<vmem>>, vector<1x16x128xbf16>
      %25 = vector.shape_cast %24 : vector<1x16x128xbf16> to vector<16x128xbf16>
      %26 = vector.shape_cast %23 : vector<16x128xbf16> to vector<1x16x128xbf16>
      tpu.vector_store %arg7[%c0_20, %c0_21, %c0_22], %26 {strides = array<i32>} : memref<1x16x128xbf16, #tpu.memory_space<vmem>>, vector<1x16x128xbf16>,
    } else {
    }
    return
  }
  func.func @transform_0(%arg0: i32, %arg1: i32, %arg2: i32) -> (i32, i32, i32) {
    %c0_i32 = arith.constant 0 : i32
    return %arg0, %arg1, %arg2 : i32, i32, i32
  }
  func.func @transform_1(%arg0: i32, %arg1: i32, %arg2: i32) -> (i32, i32, i32) {
    %c0_i32 = arith.constant 0 : i32
    %c0_i32_0 = arith.constant 0 : i32
    return %arg0, %arg2, %c0_i32 : i32, i32, i32
  }
  func.func @transform_2(%arg0: i32, %arg1: i32, %arg2: i32) -> (i32, i32, i32) {
    %c0_i32 = arith.constant 0 : i32
    %c0_i32_0 = arith.constant 0 : i32
    %c0_i32_1 = arith.constant 0 : i32
    return %arg0, %c0_i32, %c0_i32_0 : i32, i32, i32
  }
  func.func @transform_3(%arg0: i32, %arg1: i32, %arg2: i32) -> (i32, i32, i32) {
    %c0_i32 = arith.constant 0 : i32
    %c0_i32_0 = arith.constant 0 : i32
    return %arg0, %arg1, %c0_i32 : i32, i32, i32
  }
  func.func @transform_4(%arg0: i32, %arg1: i32, %arg2: i32) -> (i32, i32, i32) {
    %c0_i32 = arith.constant 0 : i32
    %c0_i32_0 = arith.constant 0 : i32
    return %arg0, %arg1, %c0_i32 : i32, i32, i32
  }
}

module attributes {stable_mosaic.version = 11 : i64} {
  func.func @body(%arg0: i32, %arg1: i32, %arg2: i32, %arg3: memref<1x16x288xbf16, #tpu.memory_space<vmem>>, %arg4: memref<1x288x128xbf16, #tpu.memory_space<vmem>>, %arg5: memref<1x1x128xf32, #tpu.memory_space<vmem>>, %arg6: memref<1x16x128xbf16, #tpu.memory_space<vmem>>, %arg7: memref<16x128xf32, #tpu.memory_space<vmem>>) attributes {dimension_semantics = [#tpu.dimension_semantics<parallel>, #tpu.dimension_semantics<parallel>, #tpu.dimension_semantics<arbitrary>], iteration_bounds = array<i64: 1, 2, 1>, scalar_prefetch = 0 : i64, scratch_operands = 1 : i64, tpu.core_type = #tpu.core_type<tc>, window_params = [{transform_indices = @transform_0, window_bounds = array<i64: 1, 16, 288>}, {transform_indices = @transform_1, window_bounds = array<i64: 1, 288, 128>}, {transform_indices = @transform_2, window_bounds = array<i64: 1, 1, 128>}, {transform_indices = @transform_3, window_bounds = array<i64: 1, 16, 128>}]} {
    %c0_i32 = arith.constant 0 : i32
    %0 = arith.cmpi eq, %arg2, %c0_i32 : i32
    %1 = arith.extui %0 : i1 to i32
    %c0_i32_0 = arith.constant 0 : i32
    %2 = arith.cmpi ne, %1, %c0_i32_0 : i32
    scf.if %2 {
      %cst_12 = arith.constant 0.000000e+00 : f32
      %14 = vector.broadcast %cst_12 : f32 to vector<16x128xf32>
      %c0_13 = arith.constant 0 : index
      %c0_14 = arith.constant 0 : index
      %15 = vector.load %arg7[%c0_13, %c0_14] : memref<16x128xf32, #tpu.memory_space<vmem>>, vector<16x128xf32>
      tpu.vector_store %arg7[%c0_13, %c0_14], %14 {strides = array<i32>} : memref<16x128xf32, #tpu.memory_space<vmem>>, vector<16x128xf32>,
    } else {
    }
    %c0 = arith.constant 0 : index
    %c0_1 = arith.constant 0 : index
    %3 = vector.load %arg7[%c0, %c0_1] : memref<16x128xf32, #tpu.memory_space<vmem>>, vector<16x128xf32>
    %c0_2 = arith.constant 0 : index
    %c0_3 = arith.constant 0 : index
    %c0_4 = arith.constant 0 : index
    %4 = vector.load %arg3[%c0_2, %c0_3, %c0_4] : memref<1x16x288xbf16, #tpu.memory_space<vmem>>, vector<1x16x288xbf16>
    %5 = vector.shape_cast %4 : vector<1x16x288xbf16> to vector<16x288xbf16>
    %c0_5 = arith.constant 0 : index
    %c0_6 = arith.constant 0 : index
    %c0_7 = arith.constant 0 : index
    %6 = vector.load %arg4[%c0_5, %c0_6, %c0_7] : memref<1x288x128xbf16, #tpu.memory_space<vmem>>, vector<1x288x128xbf16>
    %7 = vector.shape_cast %6 : vector<1x288x128xbf16> to vector<288x128xbf16>
    %cst = arith.constant dense<0.000000e+00> : vector<16x128xf32>
    %8 = tpu.matmul %5, %7, %cst {dimension_numbers = #tpu.dot_dimension_numbers<[1], [0], [0], [1], [0, 0, 1, 1], [], []>} : vector<16x288xbf16>, vector<288x128xbf16>, vector<16x128xf32> -> vector<16x128xf32>
    %9 = arith.addf %3, %8 : vector<16x128xf32>
    %c0_8 = arith.constant 0 : index
    %c0_9 = arith.constant 0 : index
    %10 = vector.load %arg7[%c0_8, %c0_9] : memref<16x128xf32, #tpu.memory_space<vmem>>, vector<16x128xf32>
    tpu.vector_store %arg7[%c0_8, %c0_9], %9 {strides = array<i32>} : memref<16x128xf32, #tpu.memory_space<vmem>>, vector<16x128xf32>,
    %c0_i32_10 = arith.constant 0 : i32
    %11 = arith.cmpi eq, %arg2, %c0_i32_10 : i32
    %12 = arith.extui %11 : i1 to i32
    %c0_i32_11 = arith.constant 0 : i32
    %13 = arith.cmpi ne, %12, %c0_i32_11 : i32
    scf.if %13 {
      %c0_12 = arith.constant 0 : index
      %c0_13 = arith.constant 0 : index
      %14 = vector.load %arg7[%c0_12, %c0_13] : memref<16x128xf32, #tpu.memory_space<vmem>>, vector<16x128xf32>
      %cst_14 = arith.constant 0.000000e+00 : f32
      %15 = vector.broadcast %cst_14 : f32 to vector<16x128xf32>
      %16 = arith.cmpf oge, %14, %15 : vector<16x128xf32>
      %c0_15 = arith.constant 0 : index
      %c0_16 = arith.constant 0 : index
      %c0_17 = arith.constant 0 : index
      %17 = vector.load %arg5[%c0_15, %c0_16, %c0_17] : memref<1x1x128xf32, #tpu.memory_space<vmem>>, vector<1x1x128xf32>
      %18 = vector.shape_cast %17 : vector<1x1x128xf32> to vector<1x128xf32>
      %19 = vector.broadcast %18 : vector<1x128xf32> to vector<16x128xf32>
      %20 = arith.mulf %19, %14 : vector<16x128xf32>
      %21 = arith.select %16, %14, %20 : vector<16x128xi1>, vector<16x128xf32>
      %22 = arith.truncf %21 : vector<16x128xf32> to vector<16x128xbf16>
      %c0_18 = arith.constant 0 : index
      %c0_19 = arith.constant 0 : index
      %c0_20 = arith.constant 0 : index
      %23 = vector.load %arg6[%c0_18, %c0_19, %c0_20] : memref<1x16x128xbf16, #tpu.memory_space<vmem>>, vector<1x16x128xbf16>
      %24 = vector.shape_cast %23 : vector<1x16x128xbf16> to vector<16x128xbf16>
      %25 = vector.shape_cast %22 : vector<16x128xbf16> to vector<1x16x128xbf16>
      tpu.vector_store %arg6[%c0_18, %c0_19, %c0_20], %25 {strides = array<i32>} : memref<1x16x128xbf16, #tpu.memory_space<vmem>>, vector<1x16x128xbf16>,
    } else {
    }
    return
  }
  func.func @transform_0(%arg0: i32, %arg1: i32, %arg2: i32) -> (i32, i32, i32) {
    %c0_i32 = arith.constant 0 : i32
    return %arg0, %arg1, %arg2 : i32, i32, i32
  }
  func.func @transform_1(%arg0: i32, %arg1: i32, %arg2: i32) -> (i32, i32, i32) {
    %c0_i32 = arith.constant 0 : i32
    %c0_i32_0 = arith.constant 0 : i32
    return %arg0, %arg2, %c0_i32 : i32, i32, i32
  }
  func.func @transform_2(%arg0: i32, %arg1: i32, %arg2: i32) -> (i32, i32, i32) {
    %c0_i32 = arith.constant 0 : i32
    %c0_i32_0 = arith.constant 0 : i32
    %c0_i32_1 = arith.constant 0 : i32
    return %arg0, %c0_i32, %c0_i32_0 : i32, i32, i32
  }
  func.func @transform_3(%arg0: i32, %arg1: i32, %arg2: i32) -> (i32, i32, i32) {
    %c0_i32 = arith.constant 0 : i32
    %c0_i32_0 = arith.constant 0 : i32
    return %arg0, %arg1, %c0_i32 : i32, i32, i32
  }
}

module attributes {stable_mosaic.version = 11 : i64} {
  func.func @body(%arg0: i32, %arg1: i32, %arg2: i32, %arg3: memref<1x16x32xbf16, #tpu.memory_space<vmem>>, %arg4: memref<1x32x128xbf16, #tpu.memory_space<vmem>>, %arg5: memref<1x1x128xf32, #tpu.memory_space<vmem>>, %arg6: memref<1x16x128xbf16, #tpu.memory_space<vmem>>, %arg7: memref<16x128xf32, #tpu.memory_space<vmem>>) attributes {dimension_semantics = [#tpu.dimension_semantics<parallel>, #tpu.dimension_semantics<parallel>, #tpu.dimension_semantics<arbitrary>], iteration_bounds = array<i64: 1, 1, 1>, scalar_prefetch = 0 : i64, scratch_operands = 1 : i64, tpu.core_type = #tpu.core_type<tc>, window_params = [{transform_indices = @transform_0, window_bounds = array<i64: 1, 16, 32>}, {transform_indices = @transform_1, window_bounds = array<i64: 1, 32, 128>}, {transform_indices = @transform_2, window_bounds = array<i64: 1, 1, 128>}, {transform_indices = @transform_3, window_bounds = array<i64: 1, 16, 128>}]} {
    %c0_i32 = arith.constant 0 : i32
    %0 = arith.cmpi eq, %arg2, %c0_i32 : i32
    %1 = arith.extui %0 : i1 to i32
    %c0_i32_0 = arith.constant 0 : i32
    %2 = arith.cmpi ne, %1, %c0_i32_0 : i32
    scf.if %2 {
      %cst_12 = arith.constant 0.000000e+00 : f32
      %14 = vector.broadcast %cst_12 : f32 to vector<16x128xf32>
      %c0_13 = arith.constant 0 : index
      %c0_14 = arith.constant 0 : index
      %15 = vector.load %arg7[%c0_13, %c0_14] : memref<16x128xf32, #tpu.memory_space<vmem>>, vector<16x128xf32>
      tpu.vector_store %arg7[%c0_13, %c0_14], %14 {strides = array<i32>} : memref<16x128xf32, #tpu.memory_space<vmem>>, vector<16x128xf32>,
    } else {
    }
    %c0 = arith.constant 0 : index
    %c0_1 = arith.constant 0 : index
    %3 = vector.load %arg7[%c0, %c0_1] : memref<16x128xf32, #tpu.memory_space<vmem>>, vector<16x128xf32>
    %c0_2 = arith.constant 0 : index
    %c0_3 = arith.constant 0 : index
    %c0_4 = arith.constant 0 : index
    %4 = vector.load %arg3[%c0_2, %c0_3, %c0_4] : memref<1x16x32xbf16, #tpu.memory_space<vmem>>, vector<1x16x32xbf16>
    %5 = vector.shape_cast %4 : vector<1x16x32xbf16> to vector<16x32xbf16>
    %c0_5 = arith.constant 0 : index
    %c0_6 = arith.constant 0 : index
    %c0_7 = arith.constant 0 : index
    %6 = vector.load %arg4[%c0_5, %c0_6, %c0_7] : memref<1x32x128xbf16, #tpu.memory_space<vmem>>, vector<1x32x128xbf16>
    %7 = vector.shape_cast %6 : vector<1x32x128xbf16> to vector<32x128xbf16>
    %cst = arith.constant dense<0.000000e+00> : vector<16x128xf32>
    %8 = tpu.matmul %5, %7, %cst {dimension_numbers = #tpu.dot_dimension_numbers<[1], [0], [0], [1], [0, 0, 1, 1], [], []>} : vector<16x32xbf16>, vector<32x128xbf16>, vector<16x128xf32> -> vector<16x128xf32>
    %9 = arith.addf %3, %8 : vector<16x128xf32>
    %c0_8 = arith.constant 0 : index
    %c0_9 = arith.constant 0 : index
    %10 = vector.load %arg7[%c0_8, %c0_9] : memref<16x128xf32, #tpu.memory_space<vmem>>, vector<16x128xf32>
    tpu.vector_store %arg7[%c0_8, %c0_9], %9 {strides = array<i32>} : memref<16x128xf32, #tpu.memory_space<vmem>>, vector<16x128xf32>,
    %c0_i32_10 = arith.constant 0 : i32
    %11 = arith.cmpi eq, %arg2, %c0_i32_10 : i32
    %12 = arith.extui %11 : i1 to i32
    %c0_i32_11 = arith.constant 0 : i32
    %13 = arith.cmpi ne, %12, %c0_i32_11 : i32
    scf.if %13 {
      %c0_12 = arith.constant 0 : index
      %c0_13 = arith.constant 0 : index
      %14 = vector.load %arg7[%c0_12, %c0_13] : memref<16x128xf32, #tpu.memory_space<vmem>>, vector<16x128xf32>
      %c0_14 = arith.constant 0 : index
      %c0_15 = arith.constant 0 : index
      %c0_16 = arith.constant 0 : index
      %15 = vector.load %arg5[%c0_14, %c0_15, %c0_16] : memref<1x1x128xf32, #tpu.memory_space<vmem>>, vector<1x1x128xf32>
      %16 = vector.shape_cast %15 : vector<1x1x128xf32> to vector<1x128xf32>
      %17 = vector.broadcast %16 : vector<1x128xf32> to vector<16x128xf32>
      %18 = arith.addf %14, %17 : vector<16x128xf32>
      %19 = arith.truncf %18 : vector<16x128xf32> to vector<16x128xbf16>
      %c0_17 = arith.constant 0 : index
      %c0_18 = arith.constant 0 : index
      %c0_19 = arith.constant 0 : index
      %20 = vector.load %arg6[%c0_17, %c0_18, %c0_19] : memref<1x16x128xbf16, #tpu.memory_space<vmem>>, vector<1x16x128xbf16>
      %21 = vector.shape_cast %20 : vector<1x16x128xbf16> to vector<16x128xbf16>
      %22 = vector.shape_cast %19 : vector<16x128xbf16> to vector<1x16x128xbf16>
      tpu.vector_store %arg6[%c0_17, %c0_18, %c0_19], %22 {strides = array<i32>} : memref<1x16x128xbf16, #tpu.memory_space<vmem>>, vector<1x16x128xbf16>,
    } else {
    }
    return
  }
  func.func @transform_0(%arg0: i32, %arg1: i32, %arg2: i32) -> (i32, i32, i32) {
    %c0_i32 = arith.constant 0 : i32
    return %arg0, %arg1, %arg2 : i32, i32, i32
  }
  func.func @transform_1(%arg0: i32, %arg1: i32, %arg2: i32) -> (i32, i32, i32) {
    %c0_i32 = arith.constant 0 : i32
    %c0_i32_0 = arith.constant 0 : i32
    return %arg0, %arg2, %c0_i32 : i32, i32, i32
  }
  func.func @transform_2(%arg0: i32, %arg1: i32, %arg2: i32) -> (i32, i32, i32) {
    %c0_i32 = arith.constant 0 : i32
    %c0_i32_0 = arith.constant 0 : i32
    %c0_i32_1 = arith.constant 0 : i32
    return %arg0, %c0_i32, %c0_i32_0 : i32, i32, i32
  }
  func.func @transform_3(%arg0: i32, %arg1: i32, %arg2: i32) -> (i32, i32, i32) {
    %c0_i32 = arith.constant 0 : i32
    %c0_i32_0 = arith.constant 0 : i32
    return %arg0, %arg1, %c0_i32 : i32, i32, i32
  }
}

module attributes {stable_mosaic.version = 11 : i64} {
  func.func @body(%arg0: i32, %arg1: i32, %arg2: i32, %arg3: memref<1x16x576xbf16, #tpu.memory_space<vmem>>, %arg4: memref<1x576x128xbf16, #tpu.memory_space<vmem>>, %arg5: memref<1x1x128xf32, #tpu.memory_space<vmem>>, %arg6: memref<1x16x128xbf16, #tpu.memory_space<vmem>>, %arg7: memref<16x128xf32, #tpu.memory_space<vmem>>) attributes {dimension_semantics = [#tpu.dimension_semantics<parallel>, #tpu.dimension_semantics<parallel>, #tpu.dimension_semantics<arbitrary>], iteration_bounds = array<i64: 1, 1, 1>, scalar_prefetch = 0 : i64, scratch_operands = 1 : i64, tpu.core_type = #tpu.core_type<tc>, window_params = [{transform_indices = @transform_0, window_bounds = array<i64: 1, 16, 576>}, {transform_indices = @transform_1, window_bounds = array<i64: 1, 576, 128>}, {transform_indices = @transform_2, window_bounds = array<i64: 1, 1, 128>}, {transform_indices = @transform_3, window_bounds = array<i64: 1, 16, 128>}]} {
    %c0_i32 = arith.constant 0 : i32
    %0 = arith.cmpi eq, %arg2, %c0_i32 : i32
    %1 = arith.extui %0 : i1 to i32
    %c0_i32_0 = arith.constant 0 : i32
    %2 = arith.cmpi ne, %1, %c0_i32_0 : i32
    scf.if %2 {
      %cst_12 = arith.constant 0.000000e+00 : f32
      %14 = vector.broadcast %cst_12 : f32 to vector<16x128xf32>
      %c0_13 = arith.constant 0 : index
      %c0_14 = arith.constant 0 : index
      %15 = vector.load %arg7[%c0_13, %c0_14] : memref<16x128xf32, #tpu.memory_space<vmem>>, vector<16x128xf32>
      tpu.vector_store %arg7[%c0_13, %c0_14], %14 {strides = array<i32>} : memref<16x128xf32, #tpu.memory_space<vmem>>, vector<16x128xf32>,
    } else {
    }
    %c0 = arith.constant 0 : index
    %c0_1 = arith.constant 0 : index
    %3 = vector.load %arg7[%c0, %c0_1] : memref<16x128xf32, #tpu.memory_space<vmem>>, vector<16x128xf32>
    %c0_2 = arith.constant 0 : index
    %c0_3 = arith.constant 0 : index
    %c0_4 = arith.constant 0 : index
    %4 = vector.load %arg3[%c0_2, %c0_3, %c0_4] : memref<1x16x576xbf16, #tpu.memory_space<vmem>>, vector<1x16x576xbf16>
    %5 = vector.shape_cast %4 : vector<1x16x576xbf16> to vector<16x576xbf16>
    %c0_5 = arith.constant 0 : index
    %c0_6 = arith.constant 0 : index
    %c0_7 = arith.constant 0 : index
    %6 = vector.load %arg4[%c0_5, %c0_6, %c0_7] : memref<1x576x128xbf16, #tpu.memory_space<vmem>>, vector<1x576x128xbf16>
    %7 = vector.shape_cast %6 : vector<1x576x128xbf16> to vector<576x128xbf16>
    %cst = arith.constant dense<0.000000e+00> : vector<16x128xf32>
    %8 = tpu.matmul %5, %7, %cst {dimension_numbers = #tpu.dot_dimension_numbers<[1], [0], [0], [1], [0, 0, 1, 1], [], []>} : vector<16x576xbf16>, vector<576x128xbf16>, vector<16x128xf32> -> vector<16x128xf32>
    %9 = arith.addf %3, %8 : vector<16x128xf32>
    %c0_8 = arith.constant 0 : index
    %c0_9 = arith.constant 0 : index
    %10 = vector.load %arg7[%c0_8, %c0_9] : memref<16x128xf32, #tpu.memory_space<vmem>>, vector<16x128xf32>
    tpu.vector_store %arg7[%c0_8, %c0_9], %9 {strides = array<i32>} : memref<16x128xf32, #tpu.memory_space<vmem>>, vector<16x128xf32>,
    %c0_i32_10 = arith.constant 0 : i32
    %11 = arith.cmpi eq, %arg2, %c0_i32_10 : i32
    %12 = arith.extui %11 : i1 to i32
    %c0_i32_11 = arith.constant 0 : i32
    %13 = arith.cmpi ne, %12, %c0_i32_11 : i32
    scf.if %13 {
      %c0_12 = arith.constant 0 : index
      %c0_13 = arith.constant 0 : index
      %14 = vector.load %arg7[%c0_12, %c0_13] : memref<16x128xf32, #tpu.memory_space<vmem>>, vector<16x128xf32>
      %cst_14 = arith.constant 0.000000e+00 : f32
      %15 = vector.broadcast %cst_14 : f32 to vector<16x128xf32>
      %16 = arith.cmpf oge, %14, %15 : vector<16x128xf32>
      %c0_15 = arith.constant 0 : index
      %c0_16 = arith.constant 0 : index
      %c0_17 = arith.constant 0 : index
      %17 = vector.load %arg5[%c0_15, %c0_16, %c0_17] : memref<1x1x128xf32, #tpu.memory_space<vmem>>, vector<1x1x128xf32>
      %18 = vector.shape_cast %17 : vector<1x1x128xf32> to vector<1x128xf32>
      %19 = vector.broadcast %18 : vector<1x128xf32> to vector<16x128xf32>
      %20 = arith.mulf %19, %14 : vector<16x128xf32>
      %21 = arith.select %16, %14, %20 : vector<16x128xi1>, vector<16x128xf32>
      %22 = arith.truncf %21 : vector<16x128xf32> to vector<16x128xbf16>
      %c0_18 = arith.constant 0 : index
      %c0_19 = arith.constant 0 : index
      %c0_20 = arith.constant 0 : index
      %23 = vector.load %arg6[%c0_18, %c0_19, %c0_20] : memref<1x16x128xbf16, #tpu.memory_space<vmem>>, vector<1x16x128xbf16>
      %24 = vector.shape_cast %23 : vector<1x16x128xbf16> to vector<16x128xbf16>
      %25 = vector.shape_cast %22 : vector<16x128xbf16> to vector<1x16x128xbf16>
      tpu.vector_store %arg6[%c0_18, %c0_19, %c0_20], %25 {strides = array<i32>} : memref<1x16x128xbf16, #tpu.memory_space<vmem>>, vector<1x16x128xbf16>,
    } else {
    }
    return
  }
  func.func @transform_0(%arg0: i32, %arg1: i32, %arg2: i32) -> (i32, i32, i32) {
    %c0_i32 = arith.constant 0 : i32
    return %arg0, %arg1, %arg2 : i32, i32, i32
  }
  func.func @transform_1(%arg0: i32, %arg1: i32, %arg2: i32) -> (i32, i32, i32) {
    %c0_i32 = arith.constant 0 : i32
    %c0_i32_0 = arith.constant 0 : i32
    return %arg0, %arg2, %c0_i32 : i32, i32, i32
  }
  func.func @transform_2(%arg0: i32, %arg1: i32, %arg2: i32) -> (i32, i32, i32) {
    %c0_i32 = arith.constant 0 : i32
    %c0_i32_0 = arith.constant 0 : i32
    %c0_i32_1 = arith.constant 0 : i32
    return %arg0, %c0_i32, %c0_i32_0 : i32, i32, i32
  }
  func.func @transform_3(%arg0: i32, %arg1: i32, %arg2: i32) -> (i32, i32, i32) {
    %c0_i32 = arith.constant 0 : i32
    %c0_i32_0 = arith.constant 0 : i32
    return %arg0, %arg1, %c0_i32 : i32, i32, i32
  }
}

module attributes {stable_mosaic.version = 11 : i64} {
  func.func @body(%arg0: i32, %arg1: i32, %arg2: i32, %arg3: memref<1x16x576xbf16, #tpu.memory_space<vmem>>, %arg4: memref<1x576x128xbf16, #tpu.memory_space<vmem>>, %arg5: memref<1x1x128xf32, #tpu.memory_space<vmem>>, %arg6: memref<1x16x128xbf16, #tpu.memory_space<vmem>>, %arg7: memref<1x16x128xbf16, #tpu.memory_space<vmem>>, %arg8: memref<16x128xf32, #tpu.memory_space<vmem>>) attributes {dimension_semantics = [#tpu.dimension_semantics<parallel>, #tpu.dimension_semantics<parallel>, #tpu.dimension_semantics<arbitrary>], iteration_bounds = array<i64: 1, 1, 1>, scalar_prefetch = 0 : i64, scratch_operands = 1 : i64, tpu.core_type = #tpu.core_type<tc>, window_params = [{transform_indices = @transform_0, window_bounds = array<i64: 1, 16, 576>}, {transform_indices = @transform_1, window_bounds = array<i64: 1, 576, 128>}, {transform_indices = @transform_2, window_bounds = array<i64: 1, 1, 128>}, {transform_indices = @transform_3, window_bounds = array<i64: 1, 16, 128>}, {transform_indices = @transform_4, window_bounds = array<i64: 1, 16, 128>}]} {
    %c0_i32 = arith.constant 0 : i32
    %0 = arith.cmpi eq, %arg2, %c0_i32 : i32
    %1 = arith.extui %0 : i1 to i32
    %c0_i32_0 = arith.constant 0 : i32
    %2 = arith.cmpi ne, %1, %c0_i32_0 : i32
    scf.if %2 {
      %cst_12 = arith.constant 0.000000e+00 : f32
      %14 = vector.broadcast %cst_12 : f32 to vector<16x128xf32>
      %c0_13 = arith.constant 0 : index
      %c0_14 = arith.constant 0 : index
      %15 = vector.load %arg8[%c0_13, %c0_14] : memref<16x128xf32, #tpu.memory_space<vmem>>, vector<16x128xf32>
      tpu.vector_store %arg8[%c0_13, %c0_14], %14 {strides = array<i32>} : memref<16x128xf32, #tpu.memory_space<vmem>>, vector<16x128xf32>,
    } else {
    }
    %c0 = arith.constant 0 : index
    %c0_1 = arith.constant 0 : index
    %3 = vector.load %arg8[%c0, %c0_1] : memref<16x128xf32, #tpu.memory_space<vmem>>, vector<16x128xf32>
    %c0_2 = arith.constant 0 : index
    %c0_3 = arith.constant 0 : index
    %c0_4 = arith.constant 0 : index
    %4 = vector.load %arg3[%c0_2, %c0_3, %c0_4] : memref<1x16x576xbf16, #tpu.memory_space<vmem>>, vector<1x16x576xbf16>
    %5 = vector.shape_cast %4 : vector<1x16x576xbf16> to vector<16x576xbf16>
    %c0_5 = arith.constant 0 : index
    %c0_6 = arith.constant 0 : index
    %c0_7 = arith.constant 0 : index
    %6 = vector.load %arg4[%c0_5, %c0_6, %c0_7] : memref<1x576x128xbf16, #tpu.memory_space<vmem>>, vector<1x576x128xbf16>
    %7 = vector.shape_cast %6 : vector<1x576x128xbf16> to vector<576x128xbf16>
    %cst = arith.constant dense<0.000000e+00> : vector<16x128xf32>
    %8 = tpu.matmul %5, %7, %cst {dimension_numbers = #tpu.dot_dimension_numbers<[1], [0], [0], [1], [0, 0, 1, 1], [], []>} : vector<16x576xbf16>, vector<576x128xbf16>, vector<16x128xf32> -> vector<16x128xf32>
    %9 = arith.addf %3, %8 : vector<16x128xf32>
    %c0_8 = arith.constant 0 : index
    %c0_9 = arith.constant 0 : index
    %10 = vector.load %arg8[%c0_8, %c0_9] : memref<16x128xf32, #tpu.memory_space<vmem>>, vector<16x128xf32>
    tpu.vector_store %arg8[%c0_8, %c0_9], %9 {strides = array<i32>} : memref<16x128xf32, #tpu.memory_space<vmem>>, vector<16x128xf32>,
    %c0_i32_10 = arith.constant 0 : i32
    %11 = arith.cmpi eq, %arg2, %c0_i32_10 : i32
    %12 = arith.extui %11 : i1 to i32
    %c0_i32_11 = arith.constant 0 : i32
    %13 = arith.cmpi ne, %12, %c0_i32_11 : i32
    scf.if %13 {
      %c0_12 = arith.constant 0 : index
      %c0_13 = arith.constant 0 : index
      %14 = vector.load %arg8[%c0_12, %c0_13] : memref<16x128xf32, #tpu.memory_space<vmem>>, vector<16x128xf32>
      %c0_14 = arith.constant 0 : index
      %c0_15 = arith.constant 0 : index
      %c0_16 = arith.constant 0 : index
      %15 = vector.load %arg5[%c0_14, %c0_15, %c0_16] : memref<1x1x128xf32, #tpu.memory_space<vmem>>, vector<1x1x128xf32>
      %16 = vector.shape_cast %15 : vector<1x1x128xf32> to vector<1x128xf32>
      %17 = vector.broadcast %16 : vector<1x128xf32> to vector<16x128xf32>
      %18 = arith.addf %14, %17 : vector<16x128xf32>
      %c0_17 = arith.constant 0 : index
      %c0_18 = arith.constant 0 : index
      %c0_19 = arith.constant 0 : index
      %19 = vector.load %arg6[%c0_17, %c0_18, %c0_19] : memref<1x16x128xbf16, #tpu.memory_space<vmem>>, vector<1x16x128xbf16>
      %20 = vector.shape_cast %19 : vector<1x16x128xbf16> to vector<16x128xbf16>
      %21 = arith.extf %20 : vector<16x128xbf16> to vector<16x128xf32>
      %22 = arith.addf %18, %21 : vector<16x128xf32>
      %23 = arith.truncf %22 : vector<16x128xf32> to vector<16x128xbf16>
      %c0_20 = arith.constant 0 : index
      %c0_21 = arith.constant 0 : index
      %c0_22 = arith.constant 0 : index
      %24 = vector.load %arg7[%c0_20, %c0_21, %c0_22] : memref<1x16x128xbf16, #tpu.memory_space<vmem>>, vector<1x16x128xbf16>
      %25 = vector.shape_cast %24 : vector<1x16x128xbf16> to vector<16x128xbf16>
      %26 = vector.shape_cast %23 : vector<16x128xbf16> to vector<1x16x128xbf16>
      tpu.vector_store %arg7[%c0_20, %c0_21, %c0_22], %26 {strides = array<i32>} : memref<1x16x128xbf16, #tpu.memory_space<vmem>>, vector<1x16x128xbf16>,
    } else {
    }
    return
  }
  func.func @transform_0(%arg0: i32, %arg1: i32, %arg2: i32) -> (i32, i32, i32) {
    %c0_i32 = arith.constant 0 : i32
    return %arg0, %arg1, %arg2 : i32, i32, i32
  }
  func.func @transform_1(%arg0: i32, %arg1: i32, %arg2: i32) -> (i32, i32, i32) {
    %c0_i32 = arith.constant 0 : i32
    %c0_i32_0 = arith.constant 0 : i32
    return %arg0, %arg2, %c0_i32 : i32, i32, i32
  }
  func.func @transform_2(%arg0: i32, %arg1: i32, %arg2: i32) -> (i32, i32, i32) {
    %c0_i32 = arith.constant 0 : i32
    %c0_i32_0 = arith.constant 0 : i32
    %c0_i32_1 = arith.constant 0 : i32
    return %arg0, %c0_i32, %c0_i32_0 : i32, i32, i32
  }
  func.func @transform_3(%arg0: i32, %arg1: i32, %arg2: i32) -> (i32, i32, i32) {
    %c0_i32 = arith.constant 0 : i32
    %c0_i32_0 = arith.constant 0 : i32
    return %arg0, %arg1, %c0_i32 : i32, i32, i32
  }
  func.func @transform_4(%arg0: i32, %arg1: i32, %arg2: i32) -> (i32, i32, i32) {
    %c0_i32 = arith.constant 0 : i32
    %c0_i32_0 = arith.constant 0 : i32
    return %arg0, %arg1, %c0_i32 : i32, i32, i32
  }
}

module attributes {stable_mosaic.version = 11 : i64} {
  func.func @body(%arg0: i32, %arg1: i32, %arg2: i32, %arg3: memref<1x16x32xbf16, #tpu.memory_space<vmem>>, %arg4: memref<1x32x128xbf16, #tpu.memory_space<vmem>>, %arg5: memref<1x1x128xf32, #tpu.memory_space<vmem>>, %arg6: memref<1x16x128xbf16, #tpu.memory_space<vmem>>, %arg7: memref<1x16x128xbf16, #tpu.memory_space<vmem>>, %arg8: memref<16x128xf32, #tpu.memory_space<vmem>>) attributes {dimension_semantics = [#tpu.dimension_semantics<parallel>, #tpu.dimension_semantics<parallel>, #tpu.dimension_semantics<arbitrary>], iteration_bounds = array<i64: 1, 2, 1>, scalar_prefetch = 0 : i64, scratch_operands = 1 : i64, tpu.core_type = #tpu.core_type<tc>, window_params = [{transform_indices = @transform_0, window_bounds = array<i64: 1, 16, 32>}, {transform_indices = @transform_1, window_bounds = array<i64: 1, 32, 128>}, {transform_indices = @transform_2, window_bounds = array<i64: 1, 1, 128>}, {transform_indices = @transform_3, window_bounds = array<i64: 1, 16, 128>}, {transform_indices = @transform_4, window_bounds = array<i64: 1, 16, 128>}]} {
    %c0_i32 = arith.constant 0 : i32
    %0 = arith.cmpi eq, %arg2, %c0_i32 : i32
    %1 = arith.extui %0 : i1 to i32
    %c0_i32_0 = arith.constant 0 : i32
    %2 = arith.cmpi ne, %1, %c0_i32_0 : i32
    scf.if %2 {
      %cst_12 = arith.constant 0.000000e+00 : f32
      %14 = vector.broadcast %cst_12 : f32 to vector<16x128xf32>
      %c0_13 = arith.constant 0 : index
      %c0_14 = arith.constant 0 : index
      %15 = vector.load %arg8[%c0_13, %c0_14] : memref<16x128xf32, #tpu.memory_space<vmem>>, vector<16x128xf32>
      tpu.vector_store %arg8[%c0_13, %c0_14], %14 {strides = array<i32>} : memref<16x128xf32, #tpu.memory_space<vmem>>, vector<16x128xf32>,
    } else {
    }
    %c0 = arith.constant 0 : index
    %c0_1 = arith.constant 0 : index
    %3 = vector.load %arg8[%c0, %c0_1] : memref<16x128xf32, #tpu.memory_space<vmem>>, vector<16x128xf32>
    %c0_2 = arith.constant 0 : index
    %c0_3 = arith.constant 0 : index
    %c0_4 = arith.constant 0 : index
    %4 = vector.load %arg3[%c0_2, %c0_3, %c0_4] : memref<1x16x32xbf16, #tpu.memory_space<vmem>>, vector<1x16x32xbf16>
    %5 = vector.shape_cast %4 : vector<1x16x32xbf16> to vector<16x32xbf16>
    %c0_5 = arith.constant 0 : index
    %c0_6 = arith.constant 0 : index
    %c0_7 = arith.constant 0 : index
    %6 = vector.load %arg4[%c0_5, %c0_6, %c0_7] : memref<1x32x128xbf16, #tpu.memory_space<vmem>>, vector<1x32x128xbf16>
    %7 = vector.shape_cast %6 : vector<1x32x128xbf16> to vector<32x128xbf16>
    %cst = arith.constant dense<0.000000e+00> : vector<16x128xf32>
    %8 = tpu.matmul %5, %7, %cst {dimension_numbers = #tpu.dot_dimension_numbers<[1], [0], [0], [1], [0, 0, 1, 1], [], []>} : vector<16x32xbf16>, vector<32x128xbf16>, vector<16x128xf32> -> vector<16x128xf32>
    %9 = arith.addf %3, %8 : vector<16x128xf32>
    %c0_8 = arith.constant 0 : index
    %c0_9 = arith.constant 0 : index
    %10 = vector.load %arg8[%c0_8, %c0_9] : memref<16x128xf32, #tpu.memory_space<vmem>>, vector<16x128xf32>
    tpu.vector_store %arg8[%c0_8, %c0_9], %9 {strides = array<i32>} : memref<16x128xf32, #tpu.memory_space<vmem>>, vector<16x128xf32>,
    %c0_i32_10 = arith.constant 0 : i32
    %11 = arith.cmpi eq, %arg2, %c0_i32_10 : i32
    %12 = arith.extui %11 : i1 to i32
    %c0_i32_11 = arith.constant 0 : i32
    %13 = arith.cmpi ne, %12, %c0_i32_11 : i32
    scf.if %13 {
      %c0_12 = arith.constant 0 : index
      %c0_13 = arith.constant 0 : index
      %14 = vector.load %arg8[%c0_12, %c0_13] : memref<16x128xf32, #tpu.memory_space<vmem>>, vector<16x128xf32>
      %c0_14 = arith.constant 0 : index
      %c0_15 = arith.constant 0 : index
      %c0_16 = arith.constant 0 : index
      %15 = vector.load %arg5[%c0_14, %c0_15, %c0_16] : memref<1x1x128xf32, #tpu.memory_space<vmem>>, vector<1x1x128xf32>
      %16 = vector.shape_cast %15 : vector<1x1x128xf32> to vector<1x128xf32>
      %17 = vector.broadcast %16 : vector<1x128xf32> to vector<16x128xf32>
      %18 = arith.addf %14, %17 : vector<16x128xf32>
      %c0_17 = arith.constant 0 : index
      %c0_18 = arith.constant 0 : index
      %c0_19 = arith.constant 0 : index
      %19 = vector.load %arg6[%c0_17, %c0_18, %c0_19] : memref<1x16x128xbf16, #tpu.memory_space<vmem>>, vector<1x16x128xbf16>
      %20 = vector.shape_cast %19 : vector<1x16x128xbf16> to vector<16x128xbf16>
      %21 = arith.extf %20 : vector<16x128xbf16> to vector<16x128xf32>
      %22 = arith.addf %18, %21 : vector<16x128xf32>
      %23 = arith.truncf %22 : vector<16x128xf32> to vector<16x128xbf16>
      %c0_20 = arith.constant 0 : index
      %c0_21 = arith.constant 0 : index
      %c0_22 = arith.constant 0 : index
      %24 = vector.load %arg7[%c0_20, %c0_21, %c0_22] : memref<1x16x128xbf16, #tpu.memory_space<vmem>>, vector<1x16x128xbf16>
      %25 = vector.shape_cast %24 : vector<1x16x128xbf16> to vector<16x128xbf16>
      %26 = vector.shape_cast %23 : vector<16x128xbf16> to vector<1x16x128xbf16>
      tpu.vector_store %arg7[%c0_20, %c0_21, %c0_22], %26 {strides = array<i32>} : memref<1x16x128xbf16, #tpu.memory_space<vmem>>, vector<1x16x128xbf16>,
    } else {
    }
    return
  }
  func.func @transform_0(%arg0: i32, %arg1: i32, %arg2: i32) -> (i32, i32, i32) {
    %c0_i32 = arith.constant 0 : i32
    return %arg0, %arg1, %arg2 : i32, i32, i32
  }
  func.func @transform_1(%arg0: i32, %arg1: i32, %arg2: i32) -> (i32, i32, i32) {
    %c0_i32 = arith.constant 0 : i32
    %c0_i32_0 = arith.constant 0 : i32
    return %arg0, %arg2, %c0_i32 : i32, i32, i32
  }
  func.func @transform_2(%arg0: i32, %arg1: i32, %arg2: i32) -> (i32, i32, i32) {
    %c0_i32 = arith.constant 0 : i32
    %c0_i32_0 = arith.constant 0 : i32
    %c0_i32_1 = arith.constant 0 : i32
    return %arg0, %c0_i32, %c0_i32_0 : i32, i32, i32
  }
  func.func @transform_3(%arg0: i32, %arg1: i32, %arg2: i32) -> (i32, i32, i32) {
    %c0_i32 = arith.constant 0 : i32
    %c0_i32_0 = arith.constant 0 : i32
    return %arg0, %arg1, %c0_i32 : i32, i32, i32
  }
  func.func @transform_4(%arg0: i32, %arg1: i32, %arg2: i32) -> (i32, i32, i32) {
    %c0_i32 = arith.constant 0 : i32
    %c0_i32_0 = arith.constant 0 : i32
    return %arg0, %arg1, %c0_i32 : i32, i32, i32
  }
}

module attributes {stable_mosaic.version = 11 : i64} {
  func.func @body(%arg0: i32, %arg1: i32, %arg2: i32, %arg3: memref<1x16x576xbf16, #tpu.memory_space<vmem>>, %arg4: memref<1x576x256xbf16, #tpu.memory_space<vmem>>, %arg5: memref<1x1x256xf32, #tpu.memory_space<vmem>>, %arg6: memref<1x16x256xbf16, #tpu.memory_space<vmem>>, %arg7: memref<16x256xf32, #tpu.memory_space<vmem>>) attributes {dimension_semantics = [#tpu.dimension_semantics<parallel>, #tpu.dimension_semantics<parallel>, #tpu.dimension_semantics<arbitrary>], iteration_bounds = array<i64: 1, 1, 1>, scalar_prefetch = 0 : i64, scratch_operands = 1 : i64, tpu.core_type = #tpu.core_type<tc>, window_params = [{transform_indices = @transform_0, window_bounds = array<i64: 1, 16, 576>}, {transform_indices = @transform_1, window_bounds = array<i64: 1, 576, 256>}, {transform_indices = @transform_2, window_bounds = array<i64: 1, 1, 256>}, {transform_indices = @transform_3, window_bounds = array<i64: 1, 16, 256>}]} {
    %c0_i32 = arith.constant 0 : i32
    %0 = arith.cmpi eq, %arg2, %c0_i32 : i32
    %1 = arith.extui %0 : i1 to i32
    %c0_i32_0 = arith.constant 0 : i32
    %2 = arith.cmpi ne, %1, %c0_i32_0 : i32
    scf.if %2 {
      %cst_12 = arith.constant 0.000000e+00 : f32
      %14 = vector.broadcast %cst_12 : f32 to vector<16x256xf32>
      %c0_13 = arith.constant 0 : index
      %c0_14 = arith.constant 0 : index
      %15 = vector.load %arg7[%c0_13, %c0_14] : memref<16x256xf32, #tpu.memory_space<vmem>>, vector<16x256xf32>
      tpu.vector_store %arg7[%c0_13, %c0_14], %14 {strides = array<i32>} : memref<16x256xf32, #tpu.memory_space<vmem>>, vector<16x256xf32>,
    } else {
    }
    %c0 = arith.constant 0 : index
    %c0_1 = arith.constant 0 : index
    %3 = vector.load %arg7[%c0, %c0_1] : memref<16x256xf32, #tpu.memory_space<vmem>>, vector<16x256xf32>
    %c0_2 = arith.constant 0 : index
    %c0_3 = arith.constant 0 : index
    %c0_4 = arith.constant 0 : index
    %4 = vector.load %arg3[%c0_2, %c0_3, %c0_4] : memref<1x16x576xbf16, #tpu.memory_space<vmem>>, vector<1x16x576xbf16>
    %5 = vector.shape_cast %4 : vector<1x16x576xbf16> to vector<16x576xbf16>
    %c0_5 = arith.constant 0 : index
    %c0_6 = arith.constant 0 : index
    %c0_7 = arith.constant 0 : index
    %6 = vector.load %arg4[%c0_5, %c0_6, %c0_7] : memref<1x576x256xbf16, #tpu.memory_space<vmem>>, vector<1x576x256xbf16>
    %7 = vector.shape_cast %6 : vector<1x576x256xbf16> to vector<576x256xbf16>
    %cst = arith.constant dense<0.000000e+00> : vector<16x256xf32>
    %8 = tpu.matmul %5, %7, %cst {dimension_numbers = #tpu.dot_dimension_numbers<[1], [0], [0], [1], [0, 0, 1, 1], [], []>} : vector<16x576xbf16>, vector<576x256xbf16>, vector<16x256xf32> -> vector<16x256xf32>
    %9 = arith.addf %3, %8 : vector<16x256xf32>
    %c0_8 = arith.constant 0 : index
    %c0_9 = arith.constant 0 : index
    %10 = vector.load %arg7[%c0_8, %c0_9] : memref<16x256xf32, #tpu.memory_space<vmem>>, vector<16x256xf32>
    tpu.vector_store %arg7[%c0_8, %c0_9], %9 {strides = array<i32>} : memref<16x256xf32, #tpu.memory_space<vmem>>, vector<16x256xf32>,
    %c0_i32_10 = arith.constant 0 : i32
    %11 = arith.cmpi eq, %arg2, %c0_i32_10 : i32
    %12 = arith.extui %11 : i1 to i32
    %c0_i32_11 = arith.constant 0 : i32
    %13 = arith.cmpi ne, %12, %c0_i32_11 : i32
    scf.if %13 {
      %c0_12 = arith.constant 0 : index
      %c0_13 = arith.constant 0 : index
      %14 = vector.load %arg7[%c0_12, %c0_13] : memref<16x256xf32, #tpu.memory_space<vmem>>, vector<16x256xf32>
      %c0_14 = arith.constant 0 : index
      %c0_15 = arith.constant 0 : index
      %c0_16 = arith.constant 0 : index
      %15 = vector.load %arg5[%c0_14, %c0_15, %c0_16] : memref<1x1x256xf32, #tpu.memory_space<vmem>>, vector<1x1x256xf32>
      %16 = vector.shape_cast %15 : vector<1x1x256xf32> to vector<1x256xf32>
      %17 = vector.broadcast %16 : vector<1x256xf32> to vector<16x256xf32>
      %18 = arith.addf %14, %17 : vector<16x256xf32>
      %cst_17 = arith.constant 0.000000e+00 : f32
      %19 = vector.broadcast %cst_17 : f32 to vector<16x256xf32>
      %20 = arith.cmpf oge, %18, %19 : vector<16x256xf32>
      %cst_18 = arith.constant 0.00999999977 : f32
      %21 = vector.broadcast %cst_18 : f32 to vector<16x256xf32>
      %22 = arith.mulf %21, %18 : vector<16x256xf32>
      %23 = arith.select %20, %18, %22 : vector<16x256xi1>, vector<16x256xf32>
      %24 = arith.truncf %23 : vector<16x256xf32> to vector<16x256xbf16>
      %c0_19 = arith.constant 0 : index
      %c0_20 = arith.constant 0 : index
      %c0_21 = arith.constant 0 : index
      %25 = vector.load %arg6[%c0_19, %c0_20, %c0_21] : memref<1x16x256xbf16, #tpu.memory_space<vmem>>, vector<1x16x256xbf16>
      %26 = vector.shape_cast %25 : vector<1x16x256xbf16> to vector<16x256xbf16>
      %27 = vector.shape_cast %24 : vector<16x256xbf16> to vector<1x16x256xbf16>
      tpu.vector_store %arg6[%c0_19, %c0_20, %c0_21], %27 {strides = array<i32>} : memref<1x16x256xbf16, #tpu.memory_space<vmem>>, vector<1x16x256xbf16>,
    } else {
    }
    return
  }
  func.func @transform_0(%arg0: i32, %arg1: i32, %arg2: i32) -> (i32, i32, i32) {
    %c0_i32 = arith.constant 0 : i32
    return %arg0, %arg1, %arg2 : i32, i32, i32
  }
  func.func @transform_1(%arg0: i32, %arg1: i32, %arg2: i32) -> (i32, i32, i32) {
    %c0_i32 = arith.constant 0 : i32
    %c0_i32_0 = arith.constant 0 : i32
    return %arg0, %arg2, %c0_i32 : i32, i32, i32
  }
  func.func @transform_2(%arg0: i32, %arg1: i32, %arg2: i32) -> (i32, i32, i32) {
    %c0_i32 = arith.constant 0 : i32
    %c0_i32_0 = arith.constant 0 : i32
    %c0_i32_1 = arith.constant 0 : i32
    return %arg0, %c0_i32, %c0_i32_0 : i32, i32, i32
  }
  func.func @transform_3(%arg0: i32, %arg1: i32, %arg2: i32) -> (i32, i32, i32) {
    %c0_i32 = arith.constant 0 : i32
    %c0_i32_0 = arith.constant 0 : i32
    return %arg0, %arg1, %c0_i32 : i32, i32, i32
  }
}

module attributes {stable_mosaic.version = 11 : i64} {
  func.func @body(%arg0: i32, %arg1: i32, %arg2: i32, %arg3: memref<1x16x576xbf16, #tpu.memory_space<vmem>>, %arg4: memref<1x576x128xbf16, #tpu.memory_space<vmem>>, %arg5: memref<1x1x128xf32, #tpu.memory_space<vmem>>, %arg6: memref<1x16x128xbf16, #tpu.memory_space<vmem>>, %arg7: memref<16x128xf32, #tpu.memory_space<vmem>>) attributes {dimension_semantics = [#tpu.dimension_semantics<parallel>, #tpu.dimension_semantics<parallel>, #tpu.dimension_semantics<arbitrary>], iteration_bounds = array<i64: 3, 1, 1>, scalar_prefetch = 0 : i64, scratch_operands = 1 : i64, tpu.core_type = #tpu.core_type<tc>, window_params = [{transform_indices = @transform_0, window_bounds = array<i64: 1, 16, 576>}, {transform_indices = @transform_1, window_bounds = array<i64: 1, 576, 128>}, {transform_indices = @transform_2, window_bounds = array<i64: 1, 1, 128>}, {transform_indices = @transform_3, window_bounds = array<i64: 1, 16, 128>}]} {
    %c0_i32 = arith.constant 0 : i32
    %0 = arith.cmpi eq, %arg2, %c0_i32 : i32
    %1 = arith.extui %0 : i1 to i32
    %c0_i32_0 = arith.constant 0 : i32
    %2 = arith.cmpi ne, %1, %c0_i32_0 : i32
    scf.if %2 {
      %cst_12 = arith.constant 0.000000e+00 : f32
      %14 = vector.broadcast %cst_12 : f32 to vector<16x128xf32>
      %c0_13 = arith.constant 0 : index
      %c0_14 = arith.constant 0 : index
      %15 = vector.load %arg7[%c0_13, %c0_14] : memref<16x128xf32, #tpu.memory_space<vmem>>, vector<16x128xf32>
      tpu.vector_store %arg7[%c0_13, %c0_14], %14 {strides = array<i32>} : memref<16x128xf32, #tpu.memory_space<vmem>>, vector<16x128xf32>,
    } else {
    }
    %c0 = arith.constant 0 : index
    %c0_1 = arith.constant 0 : index
    %3 = vector.load %arg7[%c0, %c0_1] : memref<16x128xf32, #tpu.memory_space<vmem>>, vector<16x128xf32>
    %c0_2 = arith.constant 0 : index
    %c0_3 = arith.constant 0 : index
    %c0_4 = arith.constant 0 : index
    %4 = vector.load %arg3[%c0_2, %c0_3, %c0_4] : memref<1x16x576xbf16, #tpu.memory_space<vmem>>, vector<1x16x576xbf16>
    %5 = vector.shape_cast %4 : vector<1x16x576xbf16> to vector<16x576xbf16>
    %c0_5 = arith.constant 0 : index
    %c0_6 = arith.constant 0 : index
    %c0_7 = arith.constant 0 : index
    %6 = vector.load %arg4[%c0_5, %c0_6, %c0_7] : memref<1x576x128xbf16, #tpu.memory_space<vmem>>, vector<1x576x128xbf16>
    %7 = vector.shape_cast %6 : vector<1x576x128xbf16> to vector<576x128xbf16>
    %cst = arith.constant dense<0.000000e+00> : vector<16x128xf32>
    %8 = tpu.matmul %5, %7, %cst {dimension_numbers = #tpu.dot_dimension_numbers<[1], [0], [0], [1], [0, 0, 1, 1], [], []>} : vector<16x576xbf16>, vector<576x128xbf16>, vector<16x128xf32> -> vector<16x128xf32>
    %9 = arith.addf %3, %8 : vector<16x128xf32>
    %c0_8 = arith.constant 0 : index
    %c0_9 = arith.constant 0 : index
    %10 = vector.load %arg7[%c0_8, %c0_9] : memref<16x128xf32, #tpu.memory_space<vmem>>, vector<16x128xf32>
    tpu.vector_store %arg7[%c0_8, %c0_9], %9 {strides = array<i32>} : memref<16x128xf32, #tpu.memory_space<vmem>>, vector<16x128xf32>,
    %c0_i32_10 = arith.constant 0 : i32
    %11 = arith.cmpi eq, %arg2, %c0_i32_10 : i32
    %12 = arith.extui %11 : i1 to i32
    %c0_i32_11 = arith.constant 0 : i32
    %13 = arith.cmpi ne, %12, %c0_i32_11 : i32
    scf.if %13 {
      %c0_12 = arith.constant 0 : index
      %c0_13 = arith.constant 0 : index
      %14 = vector.load %arg7[%c0_12, %c0_13] : memref<16x128xf32, #tpu.memory_space<vmem>>, vector<16x128xf32>
      %c0_14 = arith.constant 0 : index
      %c0_15 = arith.constant 0 : index
      %c0_16 = arith.constant 0 : index
      %15 = vector.load %arg5[%c0_14, %c0_15, %c0_16] : memref<1x1x128xf32, #tpu.memory_space<vmem>>, vector<1x1x128xf32>
      %16 = vector.shape_cast %15 : vector<1x1x128xf32> to vector<1x128xf32>
      %17 = vector.broadcast %16 : vector<1x128xf32> to vector<16x128xf32>
      %18 = arith.addf %14, %17 : vector<16x128xf32>
      %cst_17 = arith.constant 0.000000e+00 : f32
      %19 = vector.broadcast %cst_17 : f32 to vector<16x128xf32>
      %20 = arith.cmpf oge, %18, %19 : vector<16x128xf32>
      %cst_18 = arith.constant 0.00999999977 : f32
      %21 = vector.broadcast %cst_18 : f32 to vector<16x128xf32>
      %22 = arith.mulf %21, %18 : vector<16x128xf32>
      %23 = arith.select %20, %18, %22 : vector<16x128xi1>, vector<16x128xf32>
      %24 = arith.truncf %23 : vector<16x128xf32> to vector<16x128xbf16>
      %c0_19 = arith.constant 0 : index
      %c0_20 = arith.constant 0 : index
      %c0_21 = arith.constant 0 : index
      %25 = vector.load %arg6[%c0_19, %c0_20, %c0_21] : memref<1x16x128xbf16, #tpu.memory_space<vmem>>, vector<1x16x128xbf16>
      %26 = vector.shape_cast %25 : vector<1x16x128xbf16> to vector<16x128xbf16>
      %27 = vector.shape_cast %24 : vector<16x128xbf16> to vector<1x16x128xbf16>
      tpu.vector_store %arg6[%c0_19, %c0_20, %c0_21], %27 {strides = array<i32>} : memref<1x16x128xbf16, #tpu.memory_space<vmem>>, vector<1x16x128xbf16>,
    } else {
    }
    return
  }
  func.func @transform_0(%arg0: i32, %arg1: i32, %arg2: i32) -> (i32, i32, i32) {
    %c0_i32 = arith.constant 0 : i32
    return %arg0, %arg1, %arg2 : i32, i32, i32
  }
  func.func @transform_1(%arg0: i32, %arg1: i32, %arg2: i32) -> (i32, i32, i32) {
    %c0_i32 = arith.constant 0 : i32
    %c0_i32_0 = arith.constant 0 : i32
    return %arg0, %arg2, %c0_i32 : i32, i32, i32
  }
  func.func @transform_2(%arg0: i32, %arg1: i32, %arg2: i32) -> (i32, i32, i32) {
    %c0_i32 = arith.constant 0 : i32
    %c0_i32_0 = arith.constant 0 : i32
    %c0_i32_1 = arith.constant 0 : i32
    return %arg0, %c0_i32, %c0_i32_0 : i32, i32, i32
  }
  func.func @transform_3(%arg0: i32, %arg1: i32, %arg2: i32) -> (i32, i32, i32) {
    %c0_i32 = arith.constant 0 : i32
    %c0_i32_0 = arith.constant 0 : i32
    return %arg0, %arg1, %c0_i32 : i32, i32, i32
  }
}

module attributes {stable_mosaic.version = 11 : i64} {
  func.func @body(%arg0: i32, %arg1: i32, %arg2: i32, %arg3: memref<1x64x16xbf16, #tpu.memory_space<vmem>>, %arg4: memref<1x16x128xbf16, #tpu.memory_space<vmem>>, %arg5: memref<1x1x128xf32, #tpu.memory_space<vmem>>, %arg6: memref<1x64x128xbf16, #tpu.memory_space<vmem>>, %arg7: memref<1x64x128xbf16, #tpu.memory_space<vmem>>, %arg8: memref<64x128xf32, #tpu.memory_space<vmem>>) attributes {dimension_semantics = [#tpu.dimension_semantics<parallel>, #tpu.dimension_semantics<parallel>, #tpu.dimension_semantics<arbitrary>], iteration_bounds = array<i64: 1, 2, 1>, scalar_prefetch = 0 : i64, scratch_operands = 1 : i64, tpu.core_type = #tpu.core_type<tc>, window_params = [{transform_indices = @transform_0, window_bounds = array<i64: 1, 64, 16>}, {transform_indices = @transform_1, window_bounds = array<i64: 1, 16, 128>}, {transform_indices = @transform_2, window_bounds = array<i64: 1, 1, 128>}, {transform_indices = @transform_3, window_bounds = array<i64: 1, 64, 128>}, {transform_indices = @transform_4, window_bounds = array<i64: 1, 64, 128>}]} {
    %c0_i32 = arith.constant 0 : i32
    %0 = arith.cmpi eq, %arg2, %c0_i32 : i32
    %1 = arith.extui %0 : i1 to i32
    %c0_i32_0 = arith.constant 0 : i32
    %2 = arith.cmpi ne, %1, %c0_i32_0 : i32
    scf.if %2 {
      %cst_12 = arith.constant 0.000000e+00 : f32
      %14 = vector.broadcast %cst_12 : f32 to vector<64x128xf32>
      %c0_13 = arith.constant 0 : index
      %c0_14 = arith.constant 0 : index
      %15 = vector.load %arg8[%c0_13, %c0_14] : memref<64x128xf32, #tpu.memory_space<vmem>>, vector<64x128xf32>
      tpu.vector_store %arg8[%c0_13, %c0_14], %14 {strides = array<i32>} : memref<64x128xf32, #tpu.memory_space<vmem>>, vector<64x128xf32>,
    } else {
    }
    %c0 = arith.constant 0 : index
    %c0_1 = arith.constant 0 : index
    %3 = vector.load %arg8[%c0, %c0_1] : memref<64x128xf32, #tpu.memory_space<vmem>>, vector<64x128xf32>
    %c0_2 = arith.constant 0 : index
    %c0_3 = arith.constant 0 : index
    %c0_4 = arith.constant 0 : index
    %4 = vector.load %arg3[%c0_2, %c0_3, %c0_4] : memref<1x64x16xbf16, #tpu.memory_space<vmem>>, vector<1x64x16xbf16>
    %5 = vector.shape_cast %4 : vector<1x64x16xbf16> to vector<64x16xbf16>
    %c0_5 = arith.constant 0 : index
    %c0_6 = arith.constant 0 : index
    %c0_7 = arith.constant 0 : index
    %6 = vector.load %arg4[%c0_5, %c0_6, %c0_7] : memref<1x16x128xbf16, #tpu.memory_space<vmem>>, vector<1x16x128xbf16>
    %7 = vector.shape_cast %6 : vector<1x16x128xbf16> to vector<16x128xbf16>
    %cst = arith.constant dense<0.000000e+00> : vector<64x128xf32>
    %8 = tpu.matmul %5, %7, %cst {dimension_numbers = #tpu.dot_dimension_numbers<[1], [0], [0], [1], [0, 0, 1, 1], [], []>} : vector<64x16xbf16>, vector<16x128xbf16>, vector<64x128xf32> -> vector<64x128xf32>
    %9 = arith.addf %3, %8 : vector<64x128xf32>
    %c0_8 = arith.constant 0 : index
    %c0_9 = arith.constant 0 : index
    %10 = vector.load %arg8[%c0_8, %c0_9] : memref<64x128xf32, #tpu.memory_space<vmem>>, vector<64x128xf32>
    tpu.vector_store %arg8[%c0_8, %c0_9], %9 {strides = array<i32>} : memref<64x128xf32, #tpu.memory_space<vmem>>, vector<64x128xf32>,
    %c0_i32_10 = arith.constant 0 : i32
    %11 = arith.cmpi eq, %arg2, %c0_i32_10 : i32
    %12 = arith.extui %11 : i1 to i32
    %c0_i32_11 = arith.constant 0 : i32
    %13 = arith.cmpi ne, %12, %c0_i32_11 : i32
    scf.if %13 {
      %c0_12 = arith.constant 0 : index
      %c0_13 = arith.constant 0 : index
      %14 = vector.load %arg8[%c0_12, %c0_13] : memref<64x128xf32, #tpu.memory_space<vmem>>, vector<64x128xf32>
      %c0_14 = arith.constant 0 : index
      %c0_15 = arith.constant 0 : index
      %c0_16 = arith.constant 0 : index
      %15 = vector.load %arg5[%c0_14, %c0_15, %c0_16] : memref<1x1x128xf32, #tpu.memory_space<vmem>>, vector<1x1x128xf32>
      %16 = vector.shape_cast %15 : vector<1x1x128xf32> to vector<1x128xf32>
      %17 = vector.broadcast %16 : vector<1x128xf32> to vector<64x128xf32>
      %18 = arith.addf %14, %17 : vector<64x128xf32>
      %c0_17 = arith.constant 0 : index
      %c0_18 = arith.constant 0 : index
      %c0_19 = arith.constant 0 : index
      %19 = vector.load %arg6[%c0_17, %c0_18, %c0_19] : memref<1x64x128xbf16, #tpu.memory_space<vmem>>, vector<1x64x128xbf16>
      %20 = vector.shape_cast %19 : vector<1x64x128xbf16> to vector<64x128xbf16>
      %21 = arith.extf %20 : vector<64x128xbf16> to vector<64x128xf32>
      %22 = arith.addf %18, %21 : vector<64x128xf32>
      %23 = arith.truncf %22 : vector<64x128xf32> to vector<64x128xbf16>
      %c0_20 = arith.constant 0 : index
      %c0_21 = arith.constant 0 : index
      %c0_22 = arith.constant 0 : index
      %24 = vector.load %arg7[%c0_20, %c0_21, %c0_22] : memref<1x64x128xbf16, #tpu.memory_space<vmem>>, vector<1x64x128xbf16>
      %25 = vector.shape_cast %24 : vector<1x64x128xbf16> to vector<64x128xbf16>
      %26 = vector.shape_cast %23 : vector<64x128xbf16> to vector<1x64x128xbf16>
      tpu.vector_store %arg7[%c0_20, %c0_21, %c0_22], %26 {strides = array<i32>} : memref<1x64x128xbf16, #tpu.memory_space<vmem>>, vector<1x64x128xbf16>,
    } else {
    }
    return
  }
  func.func @transform_0(%arg0: i32, %arg1: i32, %arg2: i32) -> (i32, i32, i32) {
    %c0_i32 = arith.constant 0 : i32
    return %arg0, %arg1, %arg2 : i32, i32, i32
  }
  func.func @transform_1(%arg0: i32, %arg1: i32, %arg2: i32) -> (i32, i32, i32) {
    %c0_i32 = arith.constant 0 : i32
    %c0_i32_0 = arith.constant 0 : i32
    return %arg0, %arg2, %c0_i32 : i32, i32, i32
  }
  func.func @transform_2(%arg0: i32, %arg1: i32, %arg2: i32) -> (i32, i32, i32) {
    %c0_i32 = arith.constant 0 : i32
    %c0_i32_0 = arith.constant 0 : i32
    %c0_i32_1 = arith.constant 0 : i32
    return %arg0, %c0_i32, %c0_i32_0 : i32, i32, i32
  }
  func.func @transform_3(%arg0: i32, %arg1: i32, %arg2: i32) -> (i32, i32, i32) {
    %c0_i32 = arith.constant 0 : i32
    %c0_i32_0 = arith.constant 0 : i32
    return %arg0, %arg1, %c0_i32 : i32, i32, i32
  }
  func.func @transform_4(%arg0: i32, %arg1: i32, %arg2: i32) -> (i32, i32, i32) {
    %c0_i32 = arith.constant 0 : i32
    %c0_i32_0 = arith.constant 0 : i32
    return %arg0, %arg1, %c0_i32 : i32, i32, i32
  }
}

module attributes {stable_mosaic.version = 11 : i64} {
  func.func @body(%arg0: i32, %arg1: i32, %arg2: i32, %arg3: memref<1x16x576xbf16, #tpu.memory_space<vmem>>, %arg4: memref<1x576x128xbf16, #tpu.memory_space<vmem>>, %arg5: memref<1x1x128xf32, #tpu.memory_space<vmem>>, %arg6: memref<1x16x128xbf16, #tpu.memory_space<vmem>>, %arg7: memref<16x128xf32, #tpu.memory_space<vmem>>) attributes {dimension_semantics = [#tpu.dimension_semantics<parallel>, #tpu.dimension_semantics<parallel>, #tpu.dimension_semantics<arbitrary>], iteration_bounds = array<i64: 4, 1, 1>, scalar_prefetch = 0 : i64, scratch_operands = 1 : i64, tpu.core_type = #tpu.core_type<tc>, window_params = [{transform_indices = @transform_0, window_bounds = array<i64: 1, 16, 576>}, {transform_indices = @transform_1, window_bounds = array<i64: 1, 576, 128>}, {transform_indices = @transform_2, window_bounds = array<i64: 1, 1, 128>}, {transform_indices = @transform_3, window_bounds = array<i64: 1, 16, 128>}]} {
    %c0_i32 = arith.constant 0 : i32
    %0 = arith.cmpi eq, %arg2, %c0_i32 : i32
    %1 = arith.extui %0 : i1 to i32
    %c0_i32_0 = arith.constant 0 : i32
    %2 = arith.cmpi ne, %1, %c0_i32_0 : i32
    scf.if %2 {
      %cst_12 = arith.constant 0.000000e+00 : f32
      %14 = vector.broadcast %cst_12 : f32 to vector<16x128xf32>
      %c0_13 = arith.constant 0 : index
      %c0_14 = arith.constant 0 : index
      %15 = vector.load %arg7[%c0_13, %c0_14] : memref<16x128xf32, #tpu.memory_space<vmem>>, vector<16x128xf32>
      tpu.vector_store %arg7[%c0_13, %c0_14], %14 {strides = array<i32>} : memref<16x128xf32, #tpu.memory_space<vmem>>, vector<16x128xf32>,
    } else {
    }
    %c0 = arith.constant 0 : index
    %c0_1 = arith.constant 0 : index
    %3 = vector.load %arg7[%c0, %c0_1] : memref<16x128xf32, #tpu.memory_space<vmem>>, vector<16x128xf32>
    %c0_2 = arith.constant 0 : index
    %c0_3 = arith.constant 0 : index
    %c0_4 = arith.constant 0 : index
    %4 = vector.load %arg3[%c0_2, %c0_3, %c0_4] : memref<1x16x576xbf16, #tpu.memory_space<vmem>>, vector<1x16x576xbf16>
    %5 = vector.shape_cast %4 : vector<1x16x576xbf16> to vector<16x576xbf16>
    %c0_5 = arith.constant 0 : index
    %c0_6 = arith.constant 0 : index
    %c0_7 = arith.constant 0 : index
    %6 = vector.load %arg4[%c0_5, %c0_6, %c0_7] : memref<1x576x128xbf16, #tpu.memory_space<vmem>>, vector<1x576x128xbf16>
    %7 = vector.shape_cast %6 : vector<1x576x128xbf16> to vector<576x128xbf16>
    %cst = arith.constant dense<0.000000e+00> : vector<16x128xf32>
    %8 = tpu.matmul %5, %7, %cst {dimension_numbers = #tpu.dot_dimension_numbers<[1], [0], [0], [1], [0, 0, 1, 1], [], []>} : vector<16x576xbf16>, vector<576x128xbf16>, vector<16x128xf32> -> vector<16x128xf32>
    %9 = arith.addf %3, %8 : vector<16x128xf32>
    %c0_8 = arith.constant 0 : index
    %c0_9 = arith.constant 0 : index
    %10 = vector.load %arg7[%c0_8, %c0_9] : memref<16x128xf32, #tpu.memory_space<vmem>>, vector<16x128xf32>
    tpu.vector_store %arg7[%c0_8, %c0_9], %9 {strides = array<i32>} : memref<16x128xf32, #tpu.memory_space<vmem>>, vector<16x128xf32>,
    %c0_i32_10 = arith.constant 0 : i32
    %11 = arith.cmpi eq, %arg2, %c0_i32_10 : i32
    %12 = arith.extui %11 : i1 to i32
    %c0_i32_11 = arith.constant 0 : i32
    %13 = arith.cmpi ne, %12, %c0_i32_11 : i32
    scf.if %13 {
      %c0_12 = arith.constant 0 : index
      %c0_13 = arith.constant 0 : index
      %14 = vector.load %arg7[%c0_12, %c0_13] : memref<16x128xf32, #tpu.memory_space<vmem>>, vector<16x128xf32>
      %c0_14 = arith.constant 0 : index
      %c0_15 = arith.constant 0 : index
      %c0_16 = arith.constant 0 : index
      %15 = vector.load %arg5[%c0_14, %c0_15, %c0_16] : memref<1x1x128xf32, #tpu.memory_space<vmem>>, vector<1x1x128xf32>
      %16 = vector.shape_cast %15 : vector<1x1x128xf32> to vector<1x128xf32>
      %17 = vector.broadcast %16 : vector<1x128xf32> to vector<16x128xf32>
      %18 = arith.addf %14, %17 : vector<16x128xf32>
      %cst_17 = arith.constant 0.000000e+00 : f32
      %19 = vector.broadcast %cst_17 : f32 to vector<16x128xf32>
      %20 = arith.cmpf oge, %18, %19 : vector<16x128xf32>
      %cst_18 = arith.constant 0.00999999977 : f32
      %21 = vector.broadcast %cst_18 : f32 to vector<16x128xf32>
      %22 = arith.mulf %21, %18 : vector<16x128xf32>
      %23 = arith.select %20, %18, %22 : vector<16x128xi1>, vector<16x128xf32>
      %24 = arith.truncf %23 : vector<16x128xf32> to vector<16x128xbf16>
      %c0_19 = arith.constant 0 : index
      %c0_20 = arith.constant 0 : index
      %c0_21 = arith.constant 0 : index
      %25 = vector.load %arg6[%c0_19, %c0_20, %c0_21] : memref<1x16x128xbf16, #tpu.memory_space<vmem>>, vector<1x16x128xbf16>
      %26 = vector.shape_cast %25 : vector<1x16x128xbf16> to vector<16x128xbf16>
      %27 = vector.shape_cast %24 : vector<16x128xbf16> to vector<1x16x128xbf16>
      tpu.vector_store %arg6[%c0_19, %c0_20, %c0_21], %27 {strides = array<i32>} : memref<1x16x128xbf16, #tpu.memory_space<vmem>>, vector<1x16x128xbf16>,
    } else {
    }
    return
  }
  func.func @transform_0(%arg0: i32, %arg1: i32, %arg2: i32) -> (i32, i32, i32) {
    %c0_i32 = arith.constant 0 : i32
    return %arg0, %arg1, %arg2 : i32, i32, i32
  }
  func.func @transform_1(%arg0: i32, %arg1: i32, %arg2: i32) -> (i32, i32, i32) {
    %c0_i32 = arith.constant 0 : i32
    %c0_i32_0 = arith.constant 0 : i32
    return %arg0, %arg2, %c0_i32 : i32, i32, i32
  }
  func.func @transform_2(%arg0: i32, %arg1: i32, %arg2: i32) -> (i32, i32, i32) {
    %c0_i32 = arith.constant 0 : i32
    %c0_i32_0 = arith.constant 0 : i32
    %c0_i32_1 = arith.constant 0 : i32
    return %arg0, %c0_i32, %c0_i32_0 : i32, i32, i32
  }
  func.func @transform_3(%arg0: i32, %arg1: i32, %arg2: i32) -> (i32, i32, i32) {
    %c0_i32 = arith.constant 0 : i32
    %c0_i32_0 = arith.constant 0 : i32
    return %arg0, %arg1, %c0_i32 : i32, i32, i32
  }
}

module attributes {stable_mosaic.version = 11 : i64} {
  func.func @body(%arg0: i32, %arg1: i32, %arg2: i32, %arg3: memref<1x16x576xbf16, #tpu.memory_space<vmem>>, %arg4: memref<1x576x768xbf16, #tpu.memory_space<vmem>>, %arg5: memref<1x1x768xf32, #tpu.memory_space<vmem>>, %arg6: memref<1x16x768xbf16, #tpu.memory_space<vmem>>, %arg7: memref<16x768xf32, #tpu.memory_space<vmem>>) attributes {dimension_semantics = [#tpu.dimension_semantics<parallel>, #tpu.dimension_semantics<parallel>, #tpu.dimension_semantics<arbitrary>], iteration_bounds = array<i64: 1, 2, 1>, scalar_prefetch = 0 : i64, scratch_operands = 1 : i64, tpu.core_type = #tpu.core_type<tc>, window_params = [{transform_indices = @transform_0, window_bounds = array<i64: 1, 16, 576>}, {transform_indices = @transform_1, window_bounds = array<i64: 1, 576, 768>}, {transform_indices = @transform_2, window_bounds = array<i64: 1, 1, 768>}, {transform_indices = @transform_3, window_bounds = array<i64: 1, 16, 768>}]} {
    %c0_i32 = arith.constant 0 : i32
    %0 = arith.cmpi eq, %arg2, %c0_i32 : i32
    %1 = arith.extui %0 : i1 to i32
    %c0_i32_0 = arith.constant 0 : i32
    %2 = arith.cmpi ne, %1, %c0_i32_0 : i32
    scf.if %2 {
      %cst_12 = arith.constant 0.000000e+00 : f32
      %14 = vector.broadcast %cst_12 : f32 to vector<16x768xf32>
      %c0_13 = arith.constant 0 : index
      %c0_14 = arith.constant 0 : index
      %15 = vector.load %arg7[%c0_13, %c0_14] : memref<16x768xf32, #tpu.memory_space<vmem>>, vector<16x768xf32>
      tpu.vector_store %arg7[%c0_13, %c0_14], %14 {strides = array<i32>} : memref<16x768xf32, #tpu.memory_space<vmem>>, vector<16x768xf32>,
    } else {
    }
    %c0 = arith.constant 0 : index
    %c0_1 = arith.constant 0 : index
    %3 = vector.load %arg7[%c0, %c0_1] : memref<16x768xf32, #tpu.memory_space<vmem>>, vector<16x768xf32>
    %c0_2 = arith.constant 0 : index
    %c0_3 = arith.constant 0 : index
    %c0_4 = arith.constant 0 : index
    %4 = vector.load %arg3[%c0_2, %c0_3, %c0_4] : memref<1x16x576xbf16, #tpu.memory_space<vmem>>, vector<1x16x576xbf16>
    %5 = vector.shape_cast %4 : vector<1x16x576xbf16> to vector<16x576xbf16>
    %c0_5 = arith.constant 0 : index
    %c0_6 = arith.constant 0 : index
    %c0_7 = arith.constant 0 : index
    %6 = vector.load %arg4[%c0_5, %c0_6, %c0_7] : memref<1x576x768xbf16, #tpu.memory_space<vmem>>, vector<1x576x768xbf16>
    %7 = vector.shape_cast %6 : vector<1x576x768xbf16> to vector<576x768xbf16>
    %cst = arith.constant dense<0.000000e+00> : vector<16x768xf32>
    %8 = tpu.matmul %5, %7, %cst {dimension_numbers = #tpu.dot_dimension_numbers<[1], [0], [0], [1], [0, 0, 1, 1], [], []>} : vector<16x576xbf16>, vector<576x768xbf16>, vector<16x768xf32> -> vector<16x768xf32>
    %9 = arith.addf %3, %8 : vector<16x768xf32>
    %c0_8 = arith.constant 0 : index
    %c0_9 = arith.constant 0 : index
    %10 = vector.load %arg7[%c0_8, %c0_9] : memref<16x768xf32, #tpu.memory_space<vmem>>, vector<16x768xf32>
    tpu.vector_store %arg7[%c0_8, %c0_9], %9 {strides = array<i32>} : memref<16x768xf32, #tpu.memory_space<vmem>>, vector<16x768xf32>,
    %c0_i32_10 = arith.constant 0 : i32
    %11 = arith.cmpi eq, %arg2, %c0_i32_10 : i32
    %12 = arith.extui %11 : i1 to i32
    %c0_i32_11 = arith.constant 0 : i32
    %13 = arith.cmpi ne, %12, %c0_i32_11 : i32
    scf.if %13 {
      %c0_12 = arith.constant 0 : index
      %c0_13 = arith.constant 0 : index
      %14 = vector.load %arg7[%c0_12, %c0_13] : memref<16x768xf32, #tpu.memory_space<vmem>>, vector<16x768xf32>
      %c0_14 = arith.constant 0 : index
      %c0_15 = arith.constant 0 : index
      %c0_16 = arith.constant 0 : index
      %15 = vector.load %arg5[%c0_14, %c0_15, %c0_16] : memref<1x1x768xf32, #tpu.memory_space<vmem>>, vector<1x1x768xf32>
      %16 = vector.shape_cast %15 : vector<1x1x768xf32> to vector<1x768xf32>
      %17 = vector.broadcast %16 : vector<1x768xf32> to vector<16x768xf32>
      %18 = arith.addf %14, %17 : vector<16x768xf32>
      %cst_17 = arith.constant 0.000000e+00 : f32
      %19 = vector.broadcast %cst_17 : f32 to vector<16x768xf32>
      %20 = arith.cmpf oge, %18, %19 : vector<16x768xf32>
      %cst_18 = arith.constant 0.00999999977 : f32
      %21 = vector.broadcast %cst_18 : f32 to vector<16x768xf32>
      %22 = arith.mulf %21, %18 : vector<16x768xf32>
      %23 = arith.select %20, %18, %22 : vector<16x768xi1>, vector<16x768xf32>
      %24 = arith.truncf %23 : vector<16x768xf32> to vector<16x768xbf16>
      %c0_19 = arith.constant 0 : index
      %c0_20 = arith.constant 0 : index
      %c0_21 = arith.constant 0 : index
      %25 = vector.load %arg6[%c0_19, %c0_20, %c0_21] : memref<1x16x768xbf16, #tpu.memory_space<vmem>>, vector<1x16x768xbf16>
      %26 = vector.shape_cast %25 : vector<1x16x768xbf16> to vector<16x768xbf16>
      %27 = vector.shape_cast %24 : vector<16x768xbf16> to vector<1x16x768xbf16>
      tpu.vector_store %arg6[%c0_19, %c0_20, %c0_21], %27 {strides = array<i32>} : memref<1x16x768xbf16, #tpu.memory_space<vmem>>, vector<1x16x768xbf16>,
    } else {
    }
    return
  }
  func.func @transform_0(%arg0: i32, %arg1: i32, %arg2: i32) -> (i32, i32, i32) {
    %c0_i32 = arith.constant 0 : i32
    return %arg0, %arg1, %arg2 : i32, i32, i32
  }
  func.func @transform_1(%arg0: i32, %arg1: i32, %arg2: i32) -> (i32, i32, i32) {
    %c0_i32 = arith.constant 0 : i32
    %c0_i32_0 = arith.constant 0 : i32
    return %arg0, %arg2, %c0_i32 : i32, i32, i32
  }
  func.func @transform_2(%arg0: i32, %arg1: i32, %arg2: i32) -> (i32, i32, i32) {
    %c0_i32 = arith.constant 0 : i32
    %c0_i32_0 = arith.constant 0 : i32
    %c0_i32_1 = arith.constant 0 : i32
    return %arg0, %c0_i32, %c0_i32_0 : i32, i32, i32
  }
  func.func @transform_3(%arg0: i32, %arg1: i32, %arg2: i32) -> (i32, i32, i32) {
    %c0_i32 = arith.constant 0 : i32
    %c0_i32_0 = arith.constant 0 : i32
    return %arg0, %arg1, %c0_i32 : i32, i32, i32
  }
}

module attributes {stable_mosaic.version = 11 : i64} {
  func.func @body(%arg0: i32, %arg1: i32, %arg2: i32, %arg3: memref<1x16x576xbf16, #tpu.memory_space<vmem>>, %arg4: memref<1x576x128xbf16, #tpu.memory_space<vmem>>, %arg5: memref<1x1x128xf32, #tpu.memory_space<vmem>>, %arg6: memref<1x16x128xbf16, #tpu.memory_space<vmem>>, %arg7: memref<16x128xf32, #tpu.memory_space<vmem>>) attributes {dimension_semantics = [#tpu.dimension_semantics<parallel>, #tpu.dimension_semantics<parallel>, #tpu.dimension_semantics<arbitrary>], iteration_bounds = array<i64: 11, 1, 1>, scalar_prefetch = 0 : i64, scratch_operands = 1 : i64, tpu.core_type = #tpu.core_type<tc>, window_params = [{transform_indices = @transform_0, window_bounds = array<i64: 1, 16, 576>}, {transform_indices = @transform_1, window_bounds = array<i64: 1, 576, 128>}, {transform_indices = @transform_2, window_bounds = array<i64: 1, 1, 128>}, {transform_indices = @transform_3, window_bounds = array<i64: 1, 16, 128>}]} {
    %c0_i32 = arith.constant 0 : i32
    %0 = arith.cmpi eq, %arg2, %c0_i32 : i32
    %1 = arith.extui %0 : i1 to i32
    %c0_i32_0 = arith.constant 0 : i32
    %2 = arith.cmpi ne, %1, %c0_i32_0 : i32
    scf.if %2 {
      %cst_12 = arith.constant 0.000000e+00 : f32
      %14 = vector.broadcast %cst_12 : f32 to vector<16x128xf32>
      %c0_13 = arith.constant 0 : index
      %c0_14 = arith.constant 0 : index
      %15 = vector.load %arg7[%c0_13, %c0_14] : memref<16x128xf32, #tpu.memory_space<vmem>>, vector<16x128xf32>
      tpu.vector_store %arg7[%c0_13, %c0_14], %14 {strides = array<i32>} : memref<16x128xf32, #tpu.memory_space<vmem>>, vector<16x128xf32>,
    } else {
    }
    %c0 = arith.constant 0 : index
    %c0_1 = arith.constant 0 : index
    %3 = vector.load %arg7[%c0, %c0_1] : memref<16x128xf32, #tpu.memory_space<vmem>>, vector<16x128xf32>
    %c0_2 = arith.constant 0 : index
    %c0_3 = arith.constant 0 : index
    %c0_4 = arith.constant 0 : index
    %4 = vector.load %arg3[%c0_2, %c0_3, %c0_4] : memref<1x16x576xbf16, #tpu.memory_space<vmem>>, vector<1x16x576xbf16>
    %5 = vector.shape_cast %4 : vector<1x16x576xbf16> to vector<16x576xbf16>
    %c0_5 = arith.constant 0 : index
    %c0_6 = arith.constant 0 : index
    %c0_7 = arith.constant 0 : index
    %6 = vector.load %arg4[%c0_5, %c0_6, %c0_7] : memref<1x576x128xbf16, #tpu.memory_space<vmem>>, vector<1x576x128xbf16>
    %7 = vector.shape_cast %6 : vector<1x576x128xbf16> to vector<576x128xbf16>
    %cst = arith.constant dense<0.000000e+00> : vector<16x128xf32>
    %8 = tpu.matmul %5, %7, %cst {dimension_numbers = #tpu.dot_dimension_numbers<[1], [0], [0], [1], [0, 0, 1, 1], [], []>} : vector<16x576xbf16>, vector<576x128xbf16>, vector<16x128xf32> -> vector<16x128xf32>
    %9 = arith.addf %3, %8 : vector<16x128xf32>
    %c0_8 = arith.constant 0 : index
    %c0_9 = arith.constant 0 : index
    %10 = vector.load %arg7[%c0_8, %c0_9] : memref<16x128xf32, #tpu.memory_space<vmem>>, vector<16x128xf32>
    tpu.vector_store %arg7[%c0_8, %c0_9], %9 {strides = array<i32>} : memref<16x128xf32, #tpu.memory_space<vmem>>, vector<16x128xf32>,
    %c0_i32_10 = arith.constant 0 : i32
    %11 = arith.cmpi eq, %arg2, %c0_i32_10 : i32
    %12 = arith.extui %11 : i1 to i32
    %c0_i32_11 = arith.constant 0 : i32
    %13 = arith.cmpi ne, %12, %c0_i32_11 : i32
    scf.if %13 {
      %c0_12 = arith.constant 0 : index
      %c0_13 = arith.constant 0 : index
      %14 = vector.load %arg7[%c0_12, %c0_13] : memref<16x128xf32, #tpu.memory_space<vmem>>, vector<16x128xf32>
      %c0_14 = arith.constant 0 : index
      %c0_15 = arith.constant 0 : index
      %c0_16 = arith.constant 0 : index
      %15 = vector.load %arg5[%c0_14, %c0_15, %c0_16] : memref<1x1x128xf32, #tpu.memory_space<vmem>>, vector<1x1x128xf32>
      %16 = vector.shape_cast %15 : vector<1x1x128xf32> to vector<1x128xf32>
      %17 = vector.broadcast %16 : vector<1x128xf32> to vector<16x128xf32>
      %18 = arith.addf %14, %17 : vector<16x128xf32>
      %cst_17 = arith.constant 0.000000e+00 : f32
      %19 = vector.broadcast %cst_17 : f32 to vector<16x128xf32>
      %20 = arith.cmpf oge, %18, %19 : vector<16x128xf32>
      %cst_18 = arith.constant 0.00999999977 : f32
      %21 = vector.broadcast %cst_18 : f32 to vector<16x128xf32>
      %22 = arith.mulf %21, %18 : vector<16x128xf32>
      %23 = arith.select %20, %18, %22 : vector<16x128xi1>, vector<16x128xf32>
      %24 = arith.truncf %23 : vector<16x128xf32> to vector<16x128xbf16>
      %c0_19 = arith.constant 0 : index
      %c0_20 = arith.constant 0 : index
      %c0_21 = arith.constant 0 : index
      %25 = vector.load %arg6[%c0_19, %c0_20, %c0_21] : memref<1x16x128xbf16, #tpu.memory_space<vmem>>, vector<1x16x128xbf16>
      %26 = vector.shape_cast %25 : vector<1x16x128xbf16> to vector<16x128xbf16>
      %27 = vector.shape_cast %24 : vector<16x128xbf16> to vector<1x16x128xbf16>
      tpu.vector_store %arg6[%c0_19, %c0_20, %c0_21], %27 {strides = array<i32>} : memref<1x16x128xbf16, #tpu.memory_space<vmem>>, vector<1x16x128xbf16>,
    } else {
    }
    return
  }
  func.func @transform_0(%arg0: i32, %arg1: i32, %arg2: i32) -> (i32, i32, i32) {
    %c0_i32 = arith.constant 0 : i32
    return %arg0, %arg1, %arg2 : i32, i32, i32
  }
  func.func @transform_1(%arg0: i32, %arg1: i32, %arg2: i32) -> (i32, i32, i32) {
    %c0_i32 = arith.constant 0 : i32
    %c0_i32_0 = arith.constant 0 : i32
    return %arg0, %arg2, %c0_i32 : i32, i32, i32
  }
  func.func @transform_2(%arg0: i32, %arg1: i32, %arg2: i32) -> (i32, i32, i32) {
    %c0_i32 = arith.constant 0 : i32
    %c0_i32_0 = arith.constant 0 : i32
    %c0_i32_1 = arith.constant 0 : i32
    return %arg0, %c0_i32, %c0_i32_0 : i32, i32, i32
  }
  func.func @transform_3(%arg0: i32, %arg1: i32, %arg2: i32) -> (i32, i32, i32) {
    %c0_i32 = arith.constant 0 : i32
    %c0_i32_0 = arith.constant 0 : i32
    return %arg0, %arg1, %c0_i32 : i32, i32, i32
  }
}

module attributes {stable_mosaic.version = 11 : i64} {
  func.func @body(%arg0: i32, %arg1: i32, %arg2: i32, %arg3: memref<1x16x64xbf16, #tpu.memory_space<vmem>>, %arg4: memref<1x64x128xbf16, #tpu.memory_space<vmem>>, %arg5: memref<1x1x128xf32, #tpu.memory_space<vmem>>, %arg6: memref<1x16x128xf32, #tpu.memory_space<vmem>>, %arg7: memref<16x128xf32, #tpu.memory_space<vmem>>) attributes {dimension_semantics = [#tpu.dimension_semantics<parallel>, #tpu.dimension_semantics<parallel>, #tpu.dimension_semantics<arbitrary>], iteration_bounds = array<i64: 18, 1, 1>, scalar_prefetch = 0 : i64, scratch_operands = 1 : i64, tpu.core_type = #tpu.core_type<tc>, window_params = [{transform_indices = @transform_0, window_bounds = array<i64: 1, 16, 64>}, {transform_indices = @transform_1, window_bounds = array<i64: 1, 64, 128>}, {transform_indices = @transform_2, window_bounds = array<i64: 1, 1, 128>}, {transform_indices = @transform_3, window_bounds = array<i64: 1, 16, 128>}]} {
    %c0_i32 = arith.constant 0 : i32
    %0 = arith.cmpi eq, %arg2, %c0_i32 : i32
    %1 = arith.extui %0 : i1 to i32
    %c0_i32_0 = arith.constant 0 : i32
    %2 = arith.cmpi ne, %1, %c0_i32_0 : i32
    scf.if %2 {
      %cst_12 = arith.constant 0.000000e+00 : f32
      %14 = vector.broadcast %cst_12 : f32 to vector<16x128xf32>
      %c0_13 = arith.constant 0 : index
      %c0_14 = arith.constant 0 : index
      %15 = vector.load %arg7[%c0_13, %c0_14] : memref<16x128xf32, #tpu.memory_space<vmem>>, vector<16x128xf32>
      tpu.vector_store %arg7[%c0_13, %c0_14], %14 {strides = array<i32>} : memref<16x128xf32, #tpu.memory_space<vmem>>, vector<16x128xf32>,
    } else {
    }
    %c0 = arith.constant 0 : index
    %c0_1 = arith.constant 0 : index
    %3 = vector.load %arg7[%c0, %c0_1] : memref<16x128xf32, #tpu.memory_space<vmem>>, vector<16x128xf32>
    %c0_2 = arith.constant 0 : index
    %c0_3 = arith.constant 0 : index
    %c0_4 = arith.constant 0 : index
    %4 = vector.load %arg3[%c0_2, %c0_3, %c0_4] : memref<1x16x64xbf16, #tpu.memory_space<vmem>>, vector<1x16x64xbf16>
    %5 = vector.shape_cast %4 : vector<1x16x64xbf16> to vector<16x64xbf16>
    %c0_5 = arith.constant 0 : index
    %c0_6 = arith.constant 0 : index
    %c0_7 = arith.constant 0 : index
    %6 = vector.load %arg4[%c0_5, %c0_6, %c0_7] : memref<1x64x128xbf16, #tpu.memory_space<vmem>>, vector<1x64x128xbf16>
    %7 = vector.shape_cast %6 : vector<1x64x128xbf16> to vector<64x128xbf16>
    %cst = arith.constant dense<0.000000e+00> : vector<16x128xf32>
    %8 = tpu.matmul %5, %7, %cst {dimension_numbers = #tpu.dot_dimension_numbers<[1], [0], [0], [1], [0, 0, 1, 1], [], []>} : vector<16x64xbf16>, vector<64x128xbf16>, vector<16x128xf32> -> vector<16x128xf32>
    %9 = arith.addf %3, %8 : vector<16x128xf32>
    %c0_8 = arith.constant 0 : index
    %c0_9 = arith.constant 0 : index
    %10 = vector.load %arg7[%c0_8, %c0_9] : memref<16x128xf32, #tpu.memory_space<vmem>>, vector<16x128xf32>
    tpu.vector_store %arg7[%c0_8, %c0_9], %9 {strides = array<i32>} : memref<16x128xf32, #tpu.memory_space<vmem>>, vector<16x128xf32>,
    %c0_i32_10 = arith.constant 0 : i32
    %11 = arith.cmpi eq, %arg2, %c0_i32_10 : i32
    %12 = arith.extui %11 : i1 to i32
    %c0_i32_11 = arith.constant 0 : i32
    %13 = arith.cmpi ne, %12, %c0_i32_11 : i32
    scf.if %13 {
      %c0_12 = arith.constant 0 : index
      %c0_13 = arith.constant 0 : index
      %14 = vector.load %arg7[%c0_12, %c0_13] : memref<16x128xf32, #tpu.memory_space<vmem>>, vector<16x128xf32>
      %c0_14 = arith.constant 0 : index
      %c0_15 = arith.constant 0 : index
      %c0_16 = arith.constant 0 : index
      %15 = vector.load %arg5[%c0_14, %c0_15, %c0_16] : memref<1x1x128xf32, #tpu.memory_space<vmem>>, vector<1x1x128xf32>
      %16 = vector.shape_cast %15 : vector<1x1x128xf32> to vector<1x128xf32>
      %17 = vector.broadcast %16 : vector<1x128xf32> to vector<16x128xf32>
      %18 = arith.addf %14, %17 : vector<16x128xf32>
      %c0_17 = arith.constant 0 : index
      %c0_18 = arith.constant 0 : index
      %c0_19 = arith.constant 0 : index
      %19 = vector.load %arg6[%c0_17, %c0_18, %c0_19] : memref<1x16x128xf32, #tpu.memory_space<vmem>>, vector<1x16x128xf32>
      %20 = vector.shape_cast %19 : vector<1x16x128xf32> to vector<16x128xf32>
      %21 = vector.shape_cast %18 : vector<16x128xf32> to vector<1x16x128xf32>
      tpu.vector_store %arg6[%c0_17, %c0_18, %c0_19], %21 {strides = array<i32>} : memref<1x16x128xf32, #tpu.memory_space<vmem>>, vector<1x16x128xf32>,
    } else {
    }
    return
  }
  func.func @transform_0(%arg0: i32, %arg1: i32, %arg2: i32) -> (i32, i32, i32) {
    %c0_i32 = arith.constant 0 : i32
    return %arg0, %arg1, %arg2 : i32, i32, i32
  }
  func.func @transform_1(%arg0: i32, %arg1: i32, %arg2: i32) -> (i32, i32, i32) {
    %c0_i32 = arith.constant 0 : i32
    %c0_i32_0 = arith.constant 0 : i32
    return %arg0, %arg2, %c0_i32 : i32, i32, i32
  }
  func.func @transform_2(%arg0: i32, %arg1: i32, %arg2: i32) -> (i32, i32, i32) {
    %c0_i32 = arith.constant 0 : i32
    %c0_i32_0 = arith.constant 0 : i32
    %c0_i32_1 = arith.constant 0 : i32
    return %arg0, %c0_i32, %c0_i32_0 : i32, i32, i32
  }
  func.func @transform_3(%arg0: i32, %arg1: i32, %arg2: i32) -> (i32, i32, i32) {
    %c0_i32 = arith.constant 0 : i32
    %c0_i32_0 = arith.constant 0 : i32
    return %arg0, %arg1, %c0_i32 : i32, i32, i32
  }
}

</mosaic_0001>

<bundles_post_ra>
// kernel: _lambda_.70
= control target key start
LH: loop header
LB: loop body
LE: loop exit
PB: predicated region body
PF: predicated region fallthrough
CT: control target
= control target key end

     0   :  { %s2623_s15 = smov 0   ;;  %s2625_s16 = smov 0   ;;  %s2910_s0 = inlined_call_operand.vmem [shape: bf16[1,2048,27], index: 0, kind: input, shape index: {}]   ;;  %s2911_s1 = inlined_call_operand.vmem [shape: bf16[1,27,128], index: 1, kind: input, shape index: {}]   ;;  %s2912_s2 = inlined_call_operand.vmem [shape: f32[1,1,128], index: 2, kind: input, shape index: {}]   ;;  %s2913_s3 = inlined_call_operand.vmem [shape: f32[1,1,128], index: 3, kind: input, shape index: {}]   ;;  %s2914_s4 = inlined_call_operand.vmem [shape: bf16[1,2048,128], index: 4, kind: output, shape index: {}]  }
   0x1   :  { %s2627_s17 = smov 0  }
   0x2 LB: > { %s29_s18 = sadd.s32 1, %s2591_s16  ;;  %p2014_p0 = scmp.ge.s32.totalorder %s2595_s17, 1  ;;  %s2595_s17 = sphi %s2627_s17, %s14_s17   ;;  %s2591_s16 = sphi %s2625_s16, %s2916_s16   ;;  %s2587_s15 = sphi %s2623_s15, %s2915_s15  }
   0x3   : > { %p31_p1 = scmp.ge.s32.totalorder %s29_s18, 4  ;;  %p228_p2 = scmp.lt.s32.totalorder %s2595_s17, 5 }
   0x5   : > { %s2918_s18 = smov (%p31_p1, %s29_s18), 0  ;;  %p229_p3 = pnand %p2014_p0, %p228_p2 }
   0x6   : > { %s2015_s21 = sshll.u32 (!%p229_p3), %s2587_s15, 6 }
   0x7   : > { %232 = sbr.rel (%p229_p3) target bundleno = 296 (0x128), region = 36  ;;  %p283_p4 = scmp.lt.s32.totalorder (!%p229_p3), %s2015_s21, 255 }
   0xc   : > { %v2539_v0 = vld [vmem:[%s2911_s1 + $0x8] sm:$0x3f]   ;;  %vm788_vm0 = vcmask 1044480   ;;  %vm789_vm1 = vcmask 1045504   ;;  %v2597_v1 = vmov 65535   ;;  %v2540_v5 = vld [vmem:[%s2911_s1] sm:$0xff]  }
   0xd   : > { %v790_v2 = vsel %vm788_vm0, 4294967295, %v2597_v1  ;;  %s2920_s21 = smov (!%p283_p4, %s2015_s21), 255  ;;  %vm691_vm2 = vcmask 220160   ;;  %v2724_v38 = vld [vmem:[%s2912_s2] ss:$0 sm:$0xff] }
   0xe   : > { %v791_v3 = vsel %vm789_vm1, %v790_v2, 0  ;;  %s2016_s24 = sshll.u32 %s2920_s21, 2  ;;  %v2729_v40 = vld [vmem:[%s2913_s3] ss:$0 sm:$0xff] }
   0xf   : > { %v793_v4 = vand.u32 %v2539_v0, %v791_v3  ;;  %s2655_s27 = scalar_lea.vmem %s2910_s0, %s2016_s24  ;;  %s2750_s8 = scalar_lea.vmem %s2914_s4, %s2016_s24 }
  0x10   : > { %v2541_v6 = vld [vmem:[%s2655_s27] sm:$0xff]   ;;  %v2543_v8 = vld [vmem:[%s2655_s27 + $0x8] sm:$0xff]   ;;  %v2545_v10 = vld [vmem:[%s2655_s27 + $0x10] sm:$0xff]  }
  0x11   : > { %2442 = vmatprep.subr.bf16.mxu0 %v793_v4  ;;  %2510 = vmatprep.subr.bf16.mxu1 %v793_v4  ;;  %v2542_v7 = vld [vmem:[%s2655_s27 + $0x80] sm:$0xff]   ;;  %v2544_v9 = vld [vmem:[%s2655_s27 + $0x88] sm:$0xff]   ;;  %v2546_v11 = vld [vmem:[%s2655_s27 + $0x90] sm:$0xff]  }
  0x12   : > { %2443 = vmatpush3.bf16.msra.mxu0 %v793_v4  ;;  %2512 = vmatpush3.bf16.msra.mxu1 %v793_v4  ;;  %v2547_v12 = vld [vmem:[%s2655_s27 + $0x18] sm:$0xff]   ;;  %v2549_v14 = vld [vmem:[%s2655_s27 + $0x20] sm:$0xff]   ;;  %v2551_v16 = vld [vmem:[%s2655_s27 + $0x28] sm:$0xff]  }
  0x13   : > { %2444 = vmatprep.subr.bf16.mxu0 %v2540_v5  ;;  %2511 = vmatprep.subr.bf16.mxu1 %v2540_v5  ;;  %v2548_v13 = vld [vmem:[%s2655_s27 + $0x98] sm:$0xff]   ;;  %v2550_v15 = vld [vmem:[%s2655_s27 + $0xa0] sm:$0xff]   ;;  %v2552_v17 = vld [vmem:[%s2655_s27 + $0xa8] sm:$0xff]  }
  0x14   : > { %2446 = vmatprep.mubr.msk.bf16.mxu0 %vm691_vm2, %v2541_v6  ;;  %2478 = vmatprep.mubr.msk.bf16.mxu1 %vm691_vm2, %v2542_v7  ;;  %v2553_v18 = vld [vmem:[%s2655_s27 + $0x30] sm:$0xff]   ;;  %v2555_v20 = vld [vmem:[%s2655_s27 + $0x38] sm:$0xff]   ;;  %v2557_v22 = vld [vmem:[%s2655_s27 + $0x40] sm:$0xff]  }
  0x15   : > { %v2554_v19 = vld [vmem:[%s2655_s27 + $0xb0] sm:$0xff]   ;;  %v2556_v21 = vld [vmem:[%s2655_s27 + $0xb8] sm:$0xff]   ;;  %v2558_v23 = vld [vmem:[%s2655_s27 + $0xc0] sm:$0xff]  }
  0x16   : > { %2445 = vmatpush3.bf16.msra.mxu0 %v2540_v5  ;;  %2513 = vmatpush3.bf16.msra.mxu1 %v2540_v5  ;;  %v2559_v24 = vld [vmem:[%s2655_s27 + $0x48] sm:$0xff]   ;;  %v2561_v26 = vld [vmem:[%s2655_s27 + $0x50] sm:$0xff]   ;;  %v2563_v28 = vld [vmem:[%s2655_s27 + $0x58] sm:$0xff]  }
  0x17   : > { %v2560_v25 = vld [vmem:[%s2655_s27 + $0xc8] sm:$0xff]   ;;  %v2562_v27 = vld [vmem:[%s2655_s27 + $0xd0] sm:$0xff]   ;;  %v2564_v29 = vld [vmem:[%s2655_s27 + $0xd8] sm:$0xff]  }
  0x18   : > { %v2565_v30 = vld [vmem:[%s2655_s27 + $0x60] sm:$0xff]   ;;  %v2567_v32 = vld [vmem:[%s2655_s27 + $0x68] sm:$0xff]   ;;  %v2569_v34 = vld [vmem:[%s2655_s27 + $0x70] sm:$0xff]  }
  0x19   : > { %2447 = vmatmul.mubr.msk.bf16.vlgmr.msra.gmra.mxu0 %vm691_vm2, %v2543_v8  ;;  %2479 = vmatmul.mubr.msk.bf16.vlgmr.msra.gmra.mxu1 %vm691_vm2, %v2544_v9  ;;  %v2566_v31 = vld [vmem:[%s2655_s27 + $0xe0] sm:$0xff]   ;;  %v2568_v33 = vld [vmem:[%s2655_s27 + $0xe8] sm:$0xff]   ;;  %v2570_v35 = vld [vmem:[%s2655_s27 + $0xf0] sm:$0xff]  }
  0x1a   : > { %2450 = vmatprep.mubr.msk.bf16.mxu0 %vm691_vm2, %v2545_v10  ;;  %2482 = vmatprep.mubr.msk.bf16.mxu1 %vm691_vm2, %v2546_v11  ;;  %v2571_v36 = vld [vmem:[%s2655_s27 + $0x78] sm:$0xff]  }
  0x1b   : > { %v2572_v37 = vld [vmem:[%s2655_s27 + $0xf8] sm:$0xff]  }
  0x21   : > { %2451 = vmatmul.mubr.msk.bf16.gmra.mxu0 %vm691_vm2, %v2547_v12  ;;  %2483 = vmatmul.mubr.msk.bf16.gmra.mxu1 %vm691_vm2, %v2548_v13 }
  0x22   : > { %2454 = vmatprep.mubr.msk.bf16.mxu0 %vm691_vm2, %v2549_v14  ;;  %2486 = vmatprep.mubr.msk.bf16.mxu1 %vm691_vm2, %v2550_v15 }
  0x29   : > { %2455 = vmatmul.mubr.msk.bf16.gmra.mxu0 %vm691_vm2, %v2551_v16  ;;  %2487 = vmatmul.mubr.msk.bf16.gmra.mxu1 %vm691_vm2, %v2552_v17 }
  0x2a   : > { %2458 = vmatprep.mubr.msk.bf16.mxu0 %vm691_vm2, %v2553_v18  ;;  %2490 = vmatprep.mubr.msk.bf16.mxu1 %vm691_vm2, %v2554_v19 }
  0x31   : > { %2459 = vmatmul.mubr.msk.bf16.gmra.mxu0 %vm691_vm2, %v2555_v20  ;;  %2491 = vmatmul.mubr.msk.bf16.gmra.mxu1 %vm691_vm2, %v2556_v21 }
  0x32   : > { %2462 = vmatprep.mubr.msk.bf16.mxu0 %vm691_vm2, %v2557_v22  ;;  %2494 = vmatprep.mubr.msk.bf16.mxu1 %vm691_vm2, %v2558_v23 }
  0x39   : > { %2463 = vmatmul.mubr.msk.bf16.gmra.mxu0 %vm691_vm2, %v2559_v24  ;;  %2495 = vmatmul.mubr.msk.bf16.gmra.mxu1 %vm691_vm2, %v2560_v25 }
  0x3a   : > { %2466 = vmatprep.mubr.msk.bf16.mxu0 %vm691_vm2, %v2561_v26  ;;  %2498 = vmatprep.mubr.msk.bf16.mxu1 %vm691_vm2, %v2562_v27 }
  0x41   : > { %2467 = vmatmul.mubr.msk.bf16.gmra.mxu0 %vm691_vm2, %v2563_v28  ;;  %2499 = vmatmul.mubr.msk.bf16.gmra.mxu1 %vm691_vm2, %v2564_v29 }
  0x42   : > { %2470 = vmatprep.mubr.msk.bf16.mxu0 %vm691_vm2, %v2565_v30  ;;  %2502 = vmatprep.mubr.msk.bf16.mxu1 %vm691_vm2, %v2566_v31 }
  0x49   : > { %2471 = vmatmul.mubr.msk.bf16.gmra.mxu0 %vm691_vm2, %v2567_v32  ;;  %2503 = vmatmul.mubr.msk.bf16.gmra.mxu1 %vm691_vm2, %v2568_v33 }
  0x4a   : > { %2474 = vmatprep.mubr.msk.bf16.mxu0 %vm691_vm2, %v2569_v34  ;;  %2506 = vmatprep.mubr.msk.bf16.mxu1 %vm691_vm2, %v2570_v35 }
  0x51   : > { %2475 = vmatmul.mubr.msk.bf16.gmra.mxu0 %vm691_vm2, %v2571_v36  ;;  %2507 = vmatmul.mubr.msk.bf16.gmra.mxu1 %vm691_vm2, %v2572_v37 }
  0xd9   : > { %v2448_v39 = vpop.f32.mrf.mxu0  ;;  %v2480_v41 = vpop.f32.mrf.mxu1 }
  0xda   : > { %v1288_v42 = vadd.f32 %v2448_v39, %v2724_v38  ;;  %v1320_v43 = vadd.f32 %v2480_v41, %v2724_v38 }
  0xdb   : > { %v829_v44 = vpop.f32.mrf.mxu0  ;;  %v957_v45 = vpop.f32.mrf.mxu1 }
  0xdc   : > { %vm1352_vm3 = vcmp.ge.f32.partialorder %v1288_v42, 0.0  ;;  %v1423_v46 = vmul.f32 %v2729_v40, %v1288_v42  ;;  %vm1384_vm4 = vcmp.ge.f32.partialorder %v1320_v43, 0.0  ;;  %v1455_v47 = vmul.f32 %v2729_v40, %v1320_v43 }
  0xdd   : > { %v1286_v48 = vadd.f32 %v2724_v38, %v829_v44  ;;  %v1318_v49 = vadd.f32 %v2724_v38, %v957_v45  ;;  %v2449_v50 = vpop.f32.mrf.mxu0  ;;  %v2481_v51 = vpop.f32.mrf.mxu1 }
  0xde   : > { %v1487_v52 = vsel %vm1352_vm3, %v1288_v42, %v1423_v46  ;;  %v1289_v53 = vadd.f32 %v2449_v50, %v2724_v38  ;;  %v1321_v54 = vadd.f32 %v2481_v51, %v2724_v38  ;;  %v1519_v55 = vsel %vm1384_vm4, %v1320_v43, %v1455_v47 }
  0xdf   : > { %vm1350_vm5 = vcmp.ge.f32.partialorder %v1286_v48, 0.0  ;;  %v1421_v56 = vmul.f32 %v2729_v40, %v1286_v48  ;;  %vm1382_vm6 = vcmp.ge.f32.partialorder %v1318_v49, 0.0  ;;  %v832_v57 = vpop.f32.mrf.mxu0  ;;  %v960_v58 = vpop.f32.mrf.mxu1  ;;  %v1453_v62 = vmul.f32 %v2729_v40, %v1318_v49 }
  0xe0   : > { %vm1353_vm7 = vcmp.ge.f32.partialorder %v1289_v53, 0.0  ;;  %v1424_v59 = vmul.f32 %v2729_v40, %v1289_v53  ;;  %vm1385_vm8 = vcmp.ge.f32.partialorder %v1321_v54, 0.0  ;;  %v1456_v60 = vmul.f32 %v2729_v40, %v1321_v54 }
  0xe1   : > { %v1485_v61 = vsel %vm1350_vm5, %v1286_v48, %v1421_v56  ;;  %v1287_v63 = vadd.f32 %v2724_v38, %v832_v57  ;;  %v1319_v0 = vadd.f32 %v2724_v38, %v960_v58  ;;  %v2452_v1 = vpop.f32.mrf.mxu0  ;;  %v2484_v2 = vpop.f32.mrf.mxu1  ;;  %v1517_v14 = vsel %vm1382_vm6, %v1318_v49, %v1453_v62 }
  0xe2   : > { %v1488_v3 = vsel %vm1353_vm7, %v1289_v53, %v1424_v59  ;;  %v1520_v4 = vsel %vm1385_vm8, %v1321_v54, %v1456_v60  ;;  %v1292_v5 = vadd.f32 %v2452_v1, %v2724_v38  ;;  %v1324_v6 = vadd.f32 %v2484_v2, %v2724_v38 }
  0xe3   : > { %v2225_v7 = vpack.c.bf16 %v1488_v3, %v1487_v52  ;;  %v2305_v8 = vpack.c.bf16 %v1520_v4, %v1519_v55  ;;  %vm1351_vm9 = vcmp.ge.f32.partialorder %v1287_v63, 0.0  ;;  %v1422_v9 = vmul.f32 %v2729_v40, %v1287_v63  ;;  %v845_v10 = vpop.f32.mrf.mxu0  ;;  %v973_v11 = vpop.f32.mrf.mxu1 }
  0xe4   : > { %vm1383_vm10 = vcmp.ge.f32.partialorder %v1319_v0, 0.0  ;;  %v1454_v12 = vmul.f32 %v2729_v40, %v1319_v0  ;;  %vm1356_vm11 = vcmp.ge.f32.partialorder %v1292_v5, 0.0  ;;  %v1427_v13 = vmul.f32 %v2729_v40, %v1292_v5 }
  0xe5   : > { %2377 = vst [vmem:[%s2750_s8 + $0x8] sm:$0xff] %v2225_v7   ;;  %2393 = vst [vmem:[%s2750_s8 + $0x88] sm:$0xff] %v2305_v8   ;;  %v1486_v15 = vsel %vm1351_vm9, %v1287_v63, %v1422_v9  ;;  %v1459_v16 = vmul.f32 %v2729_v40, %v1324_v6  ;;  %v1290_v17 = vadd.f32 %v2724_v38, %v845_v10  ;;  %v2453_v18 = vpop.f32.mrf.mxu0  ;;  %v2485_v19 = vpop.f32.mrf.mxu1  ;;  %vm1388_vm12 = vcmp.ge.f32.partialorder %v1324_v6, 0.0 }
  0xe6   : > { %v2220_v20 = vpack.c.bf16 %v1486_v15, %v1485_v61  ;;  %v1518_v21 = vsel %vm1383_vm10, %v1319_v0, %v1454_v12  ;;  %v1322_v22 = vadd.f32 %v2724_v38, %v973_v11  ;;  %v1491_v24 = vsel %vm1356_vm11, %v1292_v5, %v1427_v13 }
  0xe7   : > { %v2300_v23 = vpack.c.bf16 %v1518_v21, %v1517_v14  ;;  %vm1354_vm13 = vcmp.ge.f32.partialorder %v1290_v17, 0.0  ;;  %v1425_v25 = vmul.f32 %v2729_v40, %v1290_v17  ;;  %v848_v26 = vpop.f32.mrf.mxu0  ;;  %v976_v27 = vpop.f32.mrf.mxu1  ;;  %v1293_v29 = vadd.f32 %v2453_v18, %v2724_v38 }
  0xe8   : > { %2221 = vst [vmem:[%s2750_s8] sm:$0xff] %v2220_v20   ;;  %vm1386_vm14 = vcmp.ge.f32.partialorder %v1322_v22, 0.0  ;;  %v1457_v28 = vmul.f32 %v2729_v40, %v1322_v22  ;;  %v1325_v30 = vadd.f32 %v2485_v19, %v2724_v38  ;;  %v1523_v31 = vsel %vm1388_vm12, %v1324_v6, %v1459_v16 }
  0xe9   : > { %2392 = vst [vmem:[%s2750_s8 + $0x80] sm:$0xff] %v2300_v23   ;;  %v1489_v32 = vsel %vm1354_vm13, %v1290_v17, %v1425_v25  ;;  %v1291_v33 = vadd.f32 %v2724_v38, %v848_v26  ;;  %v1323_v34 = vadd.f32 %v2724_v38, %v976_v27  ;;  %v2456_v35 = vpop.f32.mrf.mxu0  ;;  %v2488_v36 = vpop.f32.mrf.mxu1  ;;  %vm1357_vm15 = vcmp.ge.f32.partialorder %v1293_v29, 0.0 }
  0xea   : > { %v1521_v37 = vsel %vm1386_vm14, %v1322_v22, %v1457_v28  ;;  %v1428_v39 = vmul.f32 %v2729_v40, %v1293_v29  ;;  %vm1389_vm0 = vcmp.ge.f32.partialorder %v1325_v30, 0.0  ;;  %v1460_v41 = vmul.f32 %v2729_v40, %v1325_v30 }
  0xeb   : > { %vm1355_vm1 = vcmp.ge.f32.partialorder %v1291_v33, 0.0  ;;  %v1426_v42 = vmul.f32 %v2729_v40, %v1291_v33  ;;  %vm1387_vm2 = vcmp.ge.f32.partialorder %v1323_v34, 0.0  ;;  %v861_v43 = vpop.f32.mrf.mxu0  ;;  %v989_v44 = vpop.f32.mrf.mxu1  ;;  %v1458_v46 = vmul.f32 %v2729_v40, %v1323_v34 }
  0xec   : > { %v1492_v45 = vsel %vm1357_vm15, %v1293_v29, %v1428_v39  ;;  %v1296_v47 = vadd.f32 %v2456_v35, %v2724_v38  ;;  %v1328_v48 = vadd.f32 %v2488_v36, %v2724_v38  ;;  %v1524_v50 = vsel %vm1389_vm0, %v1325_v30, %v1460_v41 }
  0xed   : > { %v2235_v49 = vpack.c.bf16 %v1492_v45, %v1491_v24  ;;  %v1490_v51 = vsel %vm1355_vm1, %v1291_v33, %v1426_v42  ;;  %v1294_v52 = vadd.f32 %v2724_v38, %v861_v43  ;;  %v2457_v53 = vpop.f32.mrf.mxu0  ;;  %v2489_v54 = vpop.f32.mrf.mxu1  ;;  %v2315_v55 = vpack.c.bf16 %v1524_v50, %v1523_v31 }
  0xee   : > { %v2230_v56 = vpack.c.bf16 %v1490_v51, %v1489_v32  ;;  %v1522_v57 = vsel %vm1387_vm2, %v1323_v34, %v1458_v46  ;;  %vm1360_vm3 = vcmp.ge.f32.partialorder %v1296_v47, 0.0  ;;  %v1431_v59 = vmul.f32 %v2729_v40, %v1296_v47 }
  0xef   : > { %2379 = vst [vmem:[%s2750_s8 + $0x18] sm:$0xff] %v2235_v49   ;;  %v2310_v58 = vpack.c.bf16 %v1522_v57, %v1521_v37  ;;  %vm1392_vm4 = vcmp.ge.f32.partialorder %v1328_v48, 0.0  ;;  %v1463_v60 = vmul.f32 %v2729_v40, %v1328_v48  ;;  %v864_v61 = vpop.f32.mrf.mxu0  ;;  %v992_v62 = vpop.f32.mrf.mxu1  ;;  %2395 = vst [vmem:[%s2750_s8 + $0x98] sm:$0xff] %v2315_v55   ;;  %vm1358_vm5 = vcmp.ge.f32.partialorder %v1294_v52, 0.0 }
  0xf0   : > { %2378 = vst [vmem:[%s2750_s8 + $0x10] sm:$0xff] %v2230_v56   ;;  %v1429_v63 = vmul.f32 %v2729_v40, %v1294_v52  ;;  %v1326_v0 = vadd.f32 %v2724_v38, %v989_v44  ;;  %v1297_v1 = vadd.f32 %v2457_v53, %v2724_v38  ;;  %v1495_v2 = vsel %vm1360_vm3, %v1296_v47, %v1431_v59 }
  0xf1   : > { %2394 = vst [vmem:[%s2750_s8 + $0x90] sm:$0xff] %v2310_v58   ;;  %v1527_v3 = vsel %vm1392_vm4, %v1328_v48, %v1463_v60  ;;  %v1329_v4 = vadd.f32 %v2489_v54, %v2724_v38  ;;  %v1295_v5 = vadd.f32 %v2724_v38, %v864_v61  ;;  %v2460_v6 = vpop.f32.mrf.mxu0  ;;  %v2492_v7 = vpop.f32.mrf.mxu1  ;;  %v1327_v16 = vadd.f32 %v2724_v38, %v992_v62 }
  0xf2   : > { %v1493_v8 = vsel %vm1358_vm5, %v1294_v52, %v1429_v63  ;;  %vm1390_vm6 = vcmp.ge.f32.partialorder %v1326_v0, 0.0  ;;  %v1461_v9 = vmul.f32 %v2729_v40, %v1326_v0  ;;  %vm1361_vm7 = vcmp.ge.f32.partialorder %v1297_v1, 0.0 }
  0xf3   : > { %v1432_v10 = vmul.f32 %v2729_v40, %v1297_v1  ;;  %vm1393_vm8 = vcmp.ge.f32.partialorder %v1329_v4, 0.0  ;;  %v1464_v11 = vmul.f32 %v2729_v40, %v1329_v4  ;;  %vm1359_vm9 = vcmp.ge.f32.partialorder %v1295_v5, 0.0  ;;  %v877_v12 = vpop.f32.mrf.mxu0  ;;  %v1005_v13 = vpop.f32.mrf.mxu1 }
  0xf4   : > { %v1525_v14 = vsel %vm1390_vm6, %v1326_v0, %v1461_v9  ;;  %v1430_v15 = vmul.f32 %v2729_v40, %v1295_v5  ;;  %v1300_v17 = vadd.f32 %v2460_v6, %v2724_v38  ;;  %v1332_v20 = vadd.f32 %v2492_v7, %v2724_v38 }
  0xf5   : > { %v1496_v18 = vsel %vm1361_vm7, %v1297_v1, %v1432_v10  ;;  %v1528_v19 = vsel %vm1393_vm8, %v1329_v4, %v1464_v11  ;;  %v1298_v21 = vadd.f32 %v2724_v38, %v877_v12  ;;  %v2461_v22 = vpop.f32.mrf.mxu0  ;;  %v2493_v23 = vpop.f32.mrf.mxu1  ;;  %vm1391_vm10 = vcmp.ge.f32.partialorder %v1327_v16, 0.0 }
  0xf6   : > { %v2245_v24 = vpack.c.bf16 %v1496_v18, %v1495_v2  ;;  %v2325_v25 = vpack.c.bf16 %v1528_v19, %v1527_v3  ;;  %v1494_v26 = vsel %vm1359_vm9, %v1295_v5, %v1430_v15  ;;  %v1462_v28 = vmul.f32 %v2729_v40, %v1327_v16 }
  0xf7   : > { %v2240_v27 = vpack.c.bf16 %v1494_v26, %v1493_v8  ;;  %vm1364_vm11 = vcmp.ge.f32.partialorder %v1300_v17, 0.0  ;;  %v1435_v29 = vmul.f32 %v2729_v40, %v1300_v17  ;;  %v880_v30 = vpop.f32.mrf.mxu0  ;;  %v1008_v31 = vpop.f32.mrf.mxu1  ;;  %vm1396_vm12 = vcmp.ge.f32.partialorder %v1332_v20, 0.0 }
  0xf8   : > { %2381 = vst [vmem:[%s2750_s8 + $0x28] sm:$0xff] %v2245_v24   ;;  %2397 = vst [vmem:[%s2750_s8 + $0xa8] sm:$0xff] %v2325_v25   ;;  %v1467_v32 = vmul.f32 %v2729_v40, %v1332_v20  ;;  %vm1362_vm13 = vcmp.ge.f32.partialorder %v1298_v21, 0.0  ;;  %v1433_v33 = vmul.f32 %v2729_v40, %v1298_v21  ;;  %v1526_v34 = vsel %vm1391_vm10, %v1327_v16, %v1462_v28 }
  0xf9   : > { %2380 = vst [vmem:[%s2750_s8 + $0x20] sm:$0xff] %v2240_v27   ;;  %v1499_v35 = vsel %vm1364_vm11, %v1300_v17, %v1435_v29  ;;  %v1330_v36 = vadd.f32 %v2724_v38, %v1005_v13  ;;  %v1301_v37 = vadd.f32 %v2461_v22, %v2724_v38  ;;  %v2464_v39 = vpop.f32.mrf.mxu0  ;;  %v2496_v41 = vpop.f32.mrf.mxu1  ;;  %v2320_v42 = vpack.c.bf16 %v1526_v34, %v1525_v14 }
  0xfa   : > { %v1531_v43 = vsel %vm1396_vm12, %v1332_v20, %v1467_v32  ;;  %v1497_v44 = vsel %vm1362_vm13, %v1298_v21, %v1433_v33  ;;  %v1333_v45 = vadd.f32 %v2493_v23, %v2724_v38  ;;  %v1299_v51 = vadd.f32 %v2724_v38, %v880_v30 }
  0xfb   : > { %vm1394_vm14 = vcmp.ge.f32.partialorder %v1330_v36, 0.0  ;;  %v1465_v46 = vmul.f32 %v2729_v40, %v1330_v36  ;;  %vm1365_vm15 = vcmp.ge.f32.partialorder %v1301_v37, 0.0  ;;  %v1436_v47 = vmul.f32 %v2729_v40, %v1301_v37  ;;  %v893_v48 = vpop.f32.mrf.mxu0  ;;  %v1021_v49 = vpop.f32.mrf.mxu1  ;;  %2396 = vst [vmem:[%s2750_s8 + $0xa0] sm:$0xff] %v2320_v42  }
  0xfc   : > { %vm1397_vm0 = vcmp.ge.f32.partialorder %v1333_v45, 0.0  ;;  %v1468_v50 = vmul.f32 %v2729_v40, %v1333_v45  ;;  %v1331_v52 = vadd.f32 %v2724_v38, %v1008_v31  ;;  %v1304_v55 = vadd.f32 %v2464_v39, %v2724_v38 }
  0xfd   : > { %v1529_v53 = vsel %vm1394_vm14, %v1330_v36, %v1465_v46  ;;  %v1500_v54 = vsel %vm1365_vm15, %v1301_v37, %v1436_v47  ;;  %v1336_v56 = vadd.f32 %v2496_v41, %v2724_v38  ;;  %v2465_v57 = vpop.f32.mrf.mxu0  ;;  %v2497_v58 = vpop.f32.mrf.mxu1  ;;  %vm1363_vm1 = vcmp.ge.f32.partialorder %v1299_v51, 0.0 }
  0xfe   : > { %v2255_v59 = vpack.c.bf16 %v1500_v54, %v1499_v35  ;;  %v1532_v60 = vsel %vm1397_vm0, %v1333_v45, %v1468_v50  ;;  %v1434_v61 = vmul.f32 %v2729_v40, %v1299_v51  ;;  %vm1395_vm2 = vcmp.ge.f32.partialorder %v1331_v52, 0.0 }
  0xff   : > { %v2335_v62 = vpack.c.bf16 %v1532_v60, %v1531_v43  ;;  %v1466_v63 = vmul.f32 %v2729_v40, %v1331_v52  ;;  %vm1368_vm3 = vcmp.ge.f32.partialorder %v1304_v55, 0.0  ;;  %v896_v0 = vpop.f32.mrf.mxu0  ;;  %v1024_v1 = vpop.f32.mrf.mxu1  ;;  %v1439_v3 = vmul.f32 %v2729_v40, %v1304_v55 }
 0x100   : > { %2383 = vst [vmem:[%s2750_s8 + $0x38] sm:$0xff] %v2255_v59   ;;  %v1498_v2 = vsel %vm1363_vm1, %v1299_v51, %v1434_v61  ;;  %vm1400_vm4 = vcmp.ge.f32.partialorder %v1336_v56, 0.0  ;;  %v1471_v4 = vmul.f32 %v2729_v40, %v1336_v56  ;;  %v1302_v7 = vadd.f32 %v2724_v38, %v893_v48 }
 0x101   : > { %2399 = vst [vmem:[%s2750_s8 + $0xb8] sm:$0xff] %v2335_v62   ;;  %v2250_v5 = vpack.c.bf16 %v1498_v2, %v1497_v44  ;;  %v1530_v6 = vsel %vm1395_vm2, %v1331_v52, %v1466_v63  ;;  %v1334_v8 = vadd.f32 %v2724_v38, %v1021_v49  ;;  %v2468_v9 = vpop.f32.mrf.mxu0  ;;  %v2500_v10 = vpop.f32.mrf.mxu1  ;;  %v1503_v12 = vsel %vm1368_vm3, %v1304_v55, %v1439_v3 }
 0x102   : > { %v2330_v11 = vpack.c.bf16 %v1530_v6, %v1529_v53  ;;  %v1535_v13 = vsel %vm1400_vm4, %v1336_v56, %v1471_v4  ;;  %v1305_v14 = vadd.f32 %v2465_v57, %v2724_v38  ;;  %vm1366_vm5 = vcmp.ge.f32.partialorder %v1302_v7, 0.0 }
 0x103   : > { %2382 = vst [vmem:[%s2750_s8 + $0x30] sm:$0xff] %v2250_v5   ;;  %v1437_v15 = vmul.f32 %v2729_v40, %v1302_v7  ;;  %vm1398_vm6 = vcmp.ge.f32.partialorder %v1334_v8, 0.0  ;;  %v1469_v16 = vmul.f32 %v2729_v40, %v1334_v8  ;;  %v909_v17 = vpop.f32.mrf.mxu0  ;;  %v1037_v18 = vpop.f32.mrf.mxu1  ;;  %v1337_v20 = vadd.f32 %v2497_v58, %v2724_v38 }
 0x104   : > { %2398 = vst [vmem:[%s2750_s8 + $0xb0] sm:$0xff] %v2330_v11   ;;  %vm1369_vm7 = vcmp.ge.f32.partialorder %v1305_v14, 0.0  ;;  %v1440_v19 = vmul.f32 %v2729_v40, %v1305_v14  ;;  %v1303_v21 = vadd.f32 %v2724_v38, %v896_v0  ;;  %v1335_v24 = vadd.f32 %v2724_v38, %v1024_v1 }
 0x105   : > { %v1501_v22 = vsel %vm1366_vm5, %v1302_v7, %v1437_v15  ;;  %v1533_v23 = vsel %vm1398_vm6, %v1334_v8, %v1469_v16  ;;  %v1308_v25 = vadd.f32 %v2468_v9, %v2724_v38  ;;  %v2469_v26 = vpop.f32.mrf.mxu0  ;;  %v2501_v27 = vpop.f32.mrf.mxu1  ;;  %vm1401_vm8 = vcmp.ge.f32.partialorder %v1337_v20, 0.0 }
 0x106   : > { %v1504_v28 = vsel %vm1369_vm7, %v1305_v14, %v1440_v19  ;;  %v1472_v29 = vmul.f32 %v2729_v40, %v1337_v20  ;;  %vm1367_vm9 = vcmp.ge.f32.partialorder %v1303_v21, 0.0  ;;  %v1438_v31 = vmul.f32 %v2729_v40, %v1303_v21 }
 0x107   : > { %v2265_v30 = vpack.c.bf16 %v1504_v28, %v1503_v12  ;;  %vm1399_vm10 = vcmp.ge.f32.partialorder %v1335_v24, 0.0  ;;  %v1470_v32 = vmul.f32 %v2729_v40, %v1335_v24  ;;  %v912_v33 = vpop.f32.mrf.mxu0  ;;  %v1040_v34 = vpop.f32.mrf.mxu1  ;;  %vm1372_vm11 = vcmp.ge.f32.partialorder %v1308_v25, 0.0 }
 0x108   : > { %v1536_v35 = vsel %vm1401_vm8, %v1337_v20, %v1472_v29  ;;  %v1443_v36 = vmul.f32 %v2729_v40, %v1308_v25  ;;  %v1340_v37 = vadd.f32 %v2500_v10, %v2724_v38  ;;  %v1502_v41 = vsel %vm1367_vm9, %v1303_v21, %v1438_v31 }
 0x109   : > { %2385 = vst [vmem:[%s2750_s8 + $0x48] sm:$0xff] %v2265_v30   ;;  %v2345_v39 = vpack.c.bf16 %v1536_v35, %v1535_v13  ;;  %v1534_v42 = vsel %vm1399_vm10, %v1335_v24, %v1470_v32  ;;  %v1306_v43 = vadd.f32 %v2724_v38, %v909_v17  ;;  %v2472_v44 = vpop.f32.mrf.mxu0  ;;  %v2504_v45 = vpop.f32.mrf.mxu1  ;;  %v2260_v46 = vpack.c.bf16 %v1502_v41, %v1501_v22 }
 0x10a   : > { %v2340_v47 = vpack.c.bf16 %v1534_v42, %v1533_v23  ;;  %v1507_v48 = vsel %vm1372_vm11, %v1308_v25, %v1443_v36  ;;  %vm1404_vm12 = vcmp.ge.f32.partialorder %v1340_v37, 0.0  ;;  %v1475_v49 = vmul.f32 %v2729_v40, %v1340_v37 }
 0x10b   : > { %2401 = vst [vmem:[%s2750_s8 + $0xc8] sm:$0xff] %v2345_v39   ;;  %vm1370_vm13 = vcmp.ge.f32.partialorder %v1306_v43, 0.0  ;;  %v1441_v50 = vmul.f32 %v2729_v40, %v1306_v43  ;;  %v1338_v51 = vadd.f32 %v2724_v38, %v1037_v18  ;;  %v925_v52 = vpop.f32.mrf.mxu0  ;;  %v1053_v53 = vpop.f32.mrf.mxu1  ;;  %2384 = vst [vmem:[%s2750_s8 + $0x40] sm:$0xff] %v2260_v46   ;;  %v1309_v54 = vadd.f32 %v2469_v26, %v2724_v38 }
 0x10c   : > { %2400 = vst [vmem:[%s2750_s8 + $0xc0] sm:$0xff] %v2340_v47   ;;  %v1341_v55 = vadd.f32 %v2501_v27, %v2724_v38  ;;  %v1307_v56 = vadd.f32 %v2724_v38, %v912_v33  ;;  %v1339_v57 = vadd.f32 %v2724_v38, %v1040_v34  ;;  %v1539_v58 = vsel %vm1404_vm12, %v1340_v37, %v1475_v49 }
 0x10d   : > { %v1505_v59 = vsel %vm1370_vm13, %v1306_v43, %v1441_v50  ;;  %vm1402_vm14 = vcmp.ge.f32.partialorder %v1338_v51, 0.0  ;;  %v1473_v60 = vmul.f32 %v2729_v40, %v1338_v51  ;;  %v2473_v61 = vpop.f32.mrf.mxu0  ;;  %v2505_v62 = vpop.f32.mrf.mxu1  ;;  %vm1373_vm15 = vcmp.ge.f32.partialorder %v1309_v54, 0.0 }
 0x10e   : > { %v1444_v63 = vmul.f32 %v2729_v40, %v1309_v54  ;;  %vm1405_vm0 = vcmp.ge.f32.partialorder %v1341_v55, 0.0  ;;  %v1476_v0 = vmul.f32 %v2729_v40, %v1341_v55  ;;  %vm1371_vm1 = vcmp.ge.f32.partialorder %v1307_v56, 0.0 }
 0x10f   : > { %v1537_v1 = vsel %vm1402_vm14, %v1338_v51, %v1473_v60  ;;  %v1442_v2 = vmul.f32 %v2729_v40, %v1307_v56  ;;  %vm1403_vm2 = vcmp.ge.f32.partialorder %v1339_v57, 0.0  ;;  %v928_v3 = vpop.f32.mrf.mxu0  ;;  %v1056_v4 = vpop.f32.mrf.mxu1  ;;  %v1474_v7 = vmul.f32 %v2729_v40, %v1339_v57 }
 0x110   : > { %v1508_v5 = vsel %vm1373_vm15, %v1309_v54, %v1444_v63  ;;  %v1540_v6 = vsel %vm1405_vm0, %v1341_v55, %v1476_v0  ;;  %v1312_v8 = vadd.f32 %v2472_v44, %v2724_v38  ;;  %v1344_v12 = vadd.f32 %v2504_v45, %v2724_v38 }
 0x111   : > { %v2275_v9 = vpack.c.bf16 %v1508_v5, %v1507_v48  ;;  %v2355_v10 = vpack.c.bf16 %v1540_v6, %v1539_v58  ;;  %v1506_v11 = vsel %vm1371_vm1, %v1307_v56, %v1442_v2  ;;  %v2476_v13 = vpop.f32.mrf.mxu0  ;;  %v2508_v14 = vpop.f32.mrf.mxu1  ;;  %v1538_v16 = vsel %vm1403_vm2, %v1339_v57, %v1474_v7 }
 0x112   : > { %v2270_v15 = vpack.c.bf16 %v1506_v11, %v1505_v59  ;;  %vm1376_vm3 = vcmp.ge.f32.partialorder %v1312_v8, 0.0  ;;  %v1447_v17 = vmul.f32 %v2729_v40, %v1312_v8  ;;  %v2350_v18 = vpack.c.bf16 %v1538_v16, %v1537_v1 }
 0x113   : > { %2387 = vst [vmem:[%s2750_s8 + $0x58] sm:$0xff] %v2275_v9   ;;  %2403 = vst [vmem:[%s2750_s8 + $0xd8] sm:$0xff] %v2355_v10   ;;  %vm1408_vm4 = vcmp.ge.f32.partialorder %v1344_v12, 0.0  ;;  %v1479_v19 = vmul.f32 %v2729_v40, %v1344_v12  ;;  %v1310_v20 = vadd.f32 %v2724_v38, %v925_v52  ;;  %v1342_v21 = vadd.f32 %v2724_v38, %v1053_v53  ;;  %v941_v27 = vpop.f32.mrf.mxu0  ;;  %v1069_v28 = vpop.f32.mrf.mxu1 }
 0x114   : > { %2386 = vst [vmem:[%s2750_s8 + $0x50] sm:$0xff] %v2270_v15   ;;  %v1313_v22 = vadd.f32 %v2473_v61, %v2724_v38  ;;  %v1345_v23 = vadd.f32 %v2505_v62, %v2724_v38  ;;  %2402 = vst [vmem:[%s2750_s8 + $0xd0] sm:$0xff] %v2350_v18   ;;  %v1511_v24 = vsel %vm1376_vm3, %v1312_v8, %v1447_v17 }
 0x115   : > { %vm1374_vm5 = vcmp.ge.f32.partialorder %v1310_v20, 0.0  ;;  %v1445_v25 = vmul.f32 %v2729_v40, %v1310_v20  ;;  %v1311_v26 = vadd.f32 %v2724_v38, %v928_v3  ;;  %v1543_v29 = vsel %vm1408_vm4, %v1344_v12, %v1479_v19  ;;  %v2477_v43 = vpop.f32.mrf.mxu0  ;;  %v2509_v44 = vpop.f32.mrf.mxu1 }
 0x116   : > { %vm1406_vm6 = vcmp.ge.f32.partialorder %v1342_v21, 0.0  ;;  %vm1377_vm7 = vcmp.ge.f32.partialorder %v1313_v22, 0.0  ;;  %v1448_v30 = vmul.f32 %v2729_v40, %v1313_v22  ;;  %v1477_v31 = vmul.f32 %v2729_v40, %v1342_v21 }
 0x117   : > { %vm1409_vm8 = vcmp.ge.f32.partialorder %v1345_v23, 0.0  ;;  %v1480_v32 = vmul.f32 %v2729_v40, %v1345_v23  ;;  %vm1375_vm9 = vcmp.ge.f32.partialorder %v1311_v26, 0.0  ;;  %v1509_v33 = vsel %vm1374_vm5, %v1310_v20, %v1445_v25  ;;  %v944_v58 = vpop.f32.mrf.mxu0  ;;  %v1072_v59 = vpop.f32.mrf.mxu1 }
 0x118   : > { %v1512_v34 = vsel %vm1377_vm7, %v1313_v22, %v1448_v30  ;;  %v1446_v35 = vmul.f32 %v2729_v40, %v1311_v26  ;;  %v1343_v36 = vadd.f32 %v2724_v38, %v1056_v4  ;;  %v1316_v41 = vadd.f32 %v2476_v13, %v2724_v38 }
 0x119   : > { %v2285_v37 = vpack.c.bf16 %v1512_v34, %v1511_v24  ;;  %v1544_v39 = vsel %vm1409_vm8, %v1345_v23, %v1480_v32  ;;  %v1348_v42 = vadd.f32 %v2508_v14, %v2724_v38  ;;  %v1541_v48 = vsel %vm1406_vm6, %v1342_v21, %v1477_v31 }
 0x11a   : > { %v2365_v45 = vpack.c.bf16 %v1544_v39, %v1543_v29  ;;  %v1510_v46 = vsel %vm1375_vm9, %v1311_v26, %v1446_v35  ;;  %vm1407_vm10 = vcmp.ge.f32.partialorder %v1343_v36, 0.0  ;;  %v1478_v47 = vmul.f32 %v2729_v40, %v1343_v36 }
 0x11b   : > { %2389 = vst [vmem:[%s2750_s8 + $0x68] sm:$0xff] %v2285_v37   ;;  %v2280_v49 = vpack.c.bf16 %v1510_v46, %v1509_v33  ;;  %vm1380_vm11 = vcmp.ge.f32.partialorder %v1316_v41, 0.0  ;;  %v1451_v50 = vmul.f32 %v2729_v40, %v1316_v41  ;;  %vm1412_vm12 = vcmp.ge.f32.partialorder %v1348_v42, 0.0 }
 0x11c   : > { %2405 = vst [vmem:[%s2750_s8 + $0xe8] sm:$0xff] %v2365_v45   ;;  %v1542_v51 = vsel %vm1407_vm10, %v1343_v36, %v1478_v47  ;;  %v1483_v52 = vmul.f32 %v2729_v40, %v1348_v42  ;;  %v1314_v53 = vadd.f32 %v2724_v38, %v941_v27  ;;  %v1346_v55 = vadd.f32 %v2724_v38, %v1069_v28 }
 0x11d   : > { %2388 = vst [vmem:[%s2750_s8 + $0x60] sm:$0xff] %v2280_v49   ;;  %v2360_v54 = vpack.c.bf16 %v1542_v51, %v1541_v48  ;;  %v1317_v56 = vadd.f32 %v2477_v43, %v2724_v38  ;;  %v1349_v57 = vadd.f32 %v2509_v44, %v2724_v38  ;;  %v1515_v60 = vsel %vm1380_vm11, %v1316_v41, %v1451_v50 }
 0x11e   : > { %v1547_v61 = vsel %vm1412_vm12, %v1348_v42, %v1483_v52  ;;  %v1449_v63 = vmul.f32 %v2729_v40, %v1314_v53  ;;  %v1315_v1 = vadd.f32 %v2724_v38, %v944_v58  ;;  %v1347_v2 = vadd.f32 %v2724_v38, %v1072_v59 }
 0x11f   : > { %2404 = vst [vmem:[%s2750_s8 + $0xe0] sm:$0xff] %v2360_v54   ;;  %vm1381_vm13 = vcmp.ge.f32.partialorder %v1317_v56, 0.0  ;;  %v1452_v62 = vmul.f32 %v2729_v40, %v1317_v56  ;;  %vm1413_vm14 = vcmp.ge.f32.partialorder %v1349_v57, 0.0  ;;  %v1484_v0 = vmul.f32 %v2729_v40, %v1349_v57 }
 0x120   : > { %vm1378_vm15 = vcmp.ge.f32.partialorder %v1314_v53, 0.0  ;;  %vm1410_vm0 = vcmp.ge.f32.partialorder %v1346_v55, 0.0  ;;  %v1481_v3 = vmul.f32 %v2729_v40, %v1346_v55  ;;  %vm1379_vm1 = vcmp.ge.f32.partialorder %v1315_v1, 0.0 }
 0x121   : > { %v1516_v4 = vsel %vm1381_vm13, %v1317_v56, %v1452_v62  ;;  %v1548_v6 = vsel %vm1413_vm14, %v1349_v57, %v1484_v0  ;;  %v1450_v7 = vmul.f32 %v2729_v40, %v1315_v1  ;;  %vm1411_vm2 = vcmp.ge.f32.partialorder %v1347_v2, 0.0 }
 0x122   : > { %v2295_v5 = vpack.c.bf16 %v1516_v4, %v1515_v60  ;;  %v2375_v8 = vpack.c.bf16 %v1548_v6, %v1547_v61  ;;  %v1482_v9 = vmul.f32 %v2729_v40, %v1347_v2  ;;  %v1513_v10 = vsel %vm1378_vm15, %v1314_v53, %v1449_v63 }
 0x123   : > { %v1514_v38 = vsel %vm1379_vm1, %v1315_v1, %v1450_v7  ;;  %v1545_v11 = vsel %vm1410_vm0, %v1346_v55, %v1481_v3 }
 0x124   : > { %2391 = vst [vmem:[%s2750_s8 + $0x78] sm:$0xff] %v2295_v5   ;;  %2407 = vst [vmem:[%s2750_s8 + $0xf8] sm:$0xff] %v2375_v8   ;;  %v2290_v12 = vpack.c.bf16 %v1514_v38, %v1513_v10  ;;  %v1546_v13 = vsel %vm1411_vm2, %v1347_v2, %v1482_v9 }
 0x125   : > { %v2370_v14 = vpack.c.bf16 %v1546_v13, %v1545_v11 }
 0x126   : > { %2390 = vst [vmem:[%s2750_s8 + $0x70] sm:$0xff] %v2290_v12  }
 0x127   : > { %2406 = vst [vmem:[%s2750_s8 + $0xf0] sm:$0xff] %v2370_v14  }
 0x128 PF: > { %s14_s17 = sadd.s32 1, %s2595_s17   ;;  %s2915_s15 = smov %s2591_s16 }
 0x129   : > { %p11_p5 = scmp.ge.s32.totalorder %s14_s17, 6   ;;  %s2916_s16 = smov %s2918_s18 }
 0x12b   :  { %13 = sbr.rel (!%p11_p5) target bundleno = 2 (0x2), region = 83 }

// kernel: _lambda_.71
= control target key start
LH: loop header
LB: loop body
LE: loop exit
PB: predicated region body
PF: predicated region fallthrough
CT: control target
= control target key end

     0   :  { %s2531_s12 = smov 0   ;;  %s2533_s13 = smov 0   ;;  %s2764_s0 = inlined_call_operand.vmem [shape: bf16[1,2048,72], index: 0, kind: input, shape index: {}]   ;;  %s2765_s1 = inlined_call_operand.vmem [shape: bf16[1,72,128], index: 1, kind: input, shape index: {}]   ;;  %s2766_s2 = inlined_call_operand.vmem [shape: f32[1,1,128], index: 2, kind: input, shape index: {}]   ;;  %s2767_s3 = inlined_call_operand.vmem [shape: bf16[1,2048,128], index: 3, kind: output, shape index: {}]  }
   0x1   :  { %s2535_s14 = smov 0  }
   0x2 LB: > { %s28_s15 = sadd.s32 1, %s2505_s13  ;;  %p1907_p0 = scmp.ge.s32.totalorder %s2509_s14, 1  ;;  %s2509_s14 = sphi %s2535_s14, %s13_s14   ;;  %s2505_s13 = sphi %s2533_s13, %s2769_s13   ;;  %s2501_s12 = sphi %s2531_s12, %s2768_s12  }
   0x3   : > { %p30_p1 = scmp.ge.s32.totalorder %s28_s15, 4  ;;  %p195_p2 = scmp.lt.s32.totalorder %s2509_s14, 5 }
   0x5   : > { %s2771_s15 = smov (%p30_p1, %s28_s15), 0  ;;  %p196_p3 = pnand %p1907_p0, %p195_p2 }
   0x6   : > { %s1908_s20 = sshll.u32 (!%p196_p3), %s2501_s12, 6 }
   0x7   : > { %199 = sbr.rel (%p196_p3) target bundleno = 295 (0x127), region = 32  ;;  %p245_p4 = scmp.lt.s32.totalorder (!%p196_p3), %s1908_s20, 255 }
   0xc   : > { %v2450_v0 = vld [vmem:[%s2765_s1 + $0x20] ss:$0 sps:$4 sm:$0xff]   ;;  %vm768_vm0 = vcmask 1043456   ;;  %v2451_v1 = vld [vmem:[%s2765_s1 + $0x18] sm:$0xff]   ;;  %v2452_v3 = vld [vmem:[%s2765_s1 + $0x10] sm:$0xff]   ;;  %s2773_s20 = smov (!%p245_p4, %s1908_s20), 255 }
   0xd   : > { %2424 = vmatprep.subr.msk.bf16.mxu0 %vm768_vm0, %v2450_v0  ;;  %2425 = vmatprep.subr.msk.bf16.mxu1 %vm768_vm0, %v2450_v0  ;;  %v770_v2 = vsel %vm768_vm0, %v2450_v0, 0  ;;  %v2453_v4 = vld [vmem:[%s2765_s1 + $0x8] sm:$0xff]   ;;  %s1909_s25 = sshll.u32 %s2773_s20, 2  ;;  %vm671_vm1 = vcmask 588800   ;;  %v2454_v7 = vld [vmem:[%s2765_s1] sm:$0xff]  }
   0xe   : > { %2341 = vmatpush3.bf16.msra.mxu0 %v770_v2  ;;  %2419 = vmatpush3.bf16.msra.mxu1 %v770_v2  ;;  %s2569_s28 = scalar_lea.vmem %s2764_s0, %s1909_s25  ;;  %v2641_v38 = vld [vmem:[%s2766_s2] ss:$0 sm:$0xff]  ;;  %s2654_s8 = scalar_lea.vmem %s2767_s3, %s1909_s25 }
   0xf   : > { %2342 = vmatprep.subr.bf16.mxu0 %v2451_v1  ;;  %2415 = vmatprep.subr.bf16.mxu1 %v2451_v1  ;;  %v2455_v5 = vld [vmem:[%s2569_s28] sm:$0xff]   ;;  %v2457_v8 = vld [vmem:[%s2569_s28 + $0x8] sm:$0xff]   ;;  %v2459_v10 = vld [vmem:[%s2569_s28 + $0x10] sm:$0xff]  }
  0x10   : > { %v2456_v6 = vld [vmem:[%s2569_s28 + $0x80] sm:$0xff]   ;;  %2350 = vmatprep.mubr.msk.bf16.mxu0 %vm671_vm1, %v2455_v5  ;;  %v2458_v9 = vld [vmem:[%s2569_s28 + $0x88] sm:$0xff]   ;;  %v2460_v11 = vld [vmem:[%s2569_s28 + $0x90] sm:$0xff]  }
  0x11   : > { %2382 = vmatprep.mubr.msk.bf16.mxu1 %vm671_vm1, %v2456_v6  ;;  %v2461_v12 = vld [vmem:[%s2569_s28 + $0x18] sm:$0xff]   ;;  %v2463_v14 = vld [vmem:[%s2569_s28 + $0x20] sm:$0xff]   ;;  %v2465_v16 = vld [vmem:[%s2569_s28 + $0x28] sm:$0xff]  }
  0x12   : > { %2343 = vmatpush3.bf16.msra.mxu0 %v2451_v1  ;;  %2420 = vmatpush3.bf16.msra.mxu1 %v2451_v1  ;;  %v2462_v13 = vld [vmem:[%s2569_s28 + $0x98] sm:$0xff]   ;;  %v2464_v15 = vld [vmem:[%s2569_s28 + $0xa0] sm:$0xff]   ;;  %v2466_v17 = vld [vmem:[%s2569_s28 + $0xa8] sm:$0xff]  }
  0x13   : > { %2344 = vmatprep.subr.bf16.mxu0 %v2452_v3  ;;  %2416 = vmatprep.subr.bf16.mxu1 %v2452_v3  ;;  %v2467_v18 = vld [vmem:[%s2569_s28 + $0x30] sm:$0xff]   ;;  %v2469_v20 = vld [vmem:[%s2569_s28 + $0x38] sm:$0xff]   ;;  %v2471_v22 = vld [vmem:[%s2569_s28 + $0x40] sm:$0xff]  }
  0x14   : > { %v2468_v19 = vld [vmem:[%s2569_s28 + $0xb0] sm:$0xff]   ;;  %v2470_v21 = vld [vmem:[%s2569_s28 + $0xb8] sm:$0xff]   ;;  %v2472_v23 = vld [vmem:[%s2569_s28 + $0xc0] sm:$0xff]  }
  0x15   : > { %v2473_v24 = vld [vmem:[%s2569_s28 + $0x48] sm:$0xff]   ;;  %v2475_v26 = vld [vmem:[%s2569_s28 + $0x50] sm:$0xff]   ;;  %v2477_v28 = vld [vmem:[%s2569_s28 + $0x58] sm:$0xff]  }
  0x16   : > { %2345 = vmatpush3.bf16.msra.mxu0 %v2452_v3  ;;  %2421 = vmatpush3.bf16.msra.mxu1 %v2452_v3  ;;  %v2474_v25 = vld [vmem:[%s2569_s28 + $0xc8] sm:$0xff]   ;;  %v2476_v27 = vld [vmem:[%s2569_s28 + $0xd0] sm:$0xff]   ;;  %v2478_v29 = vld [vmem:[%s2569_s28 + $0xd8] sm:$0xff]  }
  0x17   : > { %2346 = vmatprep.subr.bf16.mxu0 %v2453_v4  ;;  %2417 = vmatprep.subr.bf16.mxu1 %v2453_v4  ;;  %v2479_v30 = vld [vmem:[%s2569_s28 + $0x60] sm:$0xff]   ;;  %v2481_v32 = vld [vmem:[%s2569_s28 + $0x68] sm:$0xff]   ;;  %v2483_v34 = vld [vmem:[%s2569_s28 + $0x70] sm:$0xff]  }
  0x18   : > { %v2480_v31 = vld [vmem:[%s2569_s28 + $0xe0] sm:$0xff]   ;;  %v2482_v33 = vld [vmem:[%s2569_s28 + $0xe8] sm:$0xff]   ;;  %v2484_v35 = vld [vmem:[%s2569_s28 + $0xf0] sm:$0xff]  }
  0x19   : > { %v2485_v36 = vld [vmem:[%s2569_s28 + $0x78] sm:$0xff]  }
  0x1a   : > { %2347 = vmatpush3.bf16.msra.mxu0 %v2453_v4  ;;  %2422 = vmatpush3.bf16.msra.mxu1 %v2453_v4  ;;  %v2486_v37 = vld [vmem:[%s2569_s28 + $0xf8] sm:$0xff]  }
  0x1b   : > { %2348 = vmatprep.subr.bf16.mxu0 %v2454_v7  ;;  %2418 = vmatprep.subr.bf16.mxu1 %v2454_v7 }
  0x1e   : > { %2349 = vmatpush3.bf16.msra.mxu0 %v2454_v7  ;;  %2423 = vmatpush3.bf16.msra.mxu1 %v2454_v7 }
  0x21   : > { %2351 = vmatmul.mubr.msk.bf16.vlgmr.msra.gmra.mxu0 %vm671_vm1, %v2457_v8  ;;  %2383 = vmatmul.mubr.msk.bf16.vlgmr.msra.gmra.mxu1 %vm671_vm1, %v2458_v9 }
  0x22   : > { %2354 = vmatprep.mubr.msk.bf16.mxu0 %vm671_vm1, %v2459_v10  ;;  %2386 = vmatprep.mubr.msk.bf16.mxu1 %vm671_vm1, %v2460_v11 }
  0x29   : > { %2355 = vmatmul.mubr.msk.bf16.gmra.mxu0 %vm671_vm1, %v2461_v12  ;;  %2387 = vmatmul.mubr.msk.bf16.gmra.mxu1 %vm671_vm1, %v2462_v13 }
  0x2a   : > { %2358 = vmatprep.mubr.msk.bf16.mxu0 %vm671_vm1, %v2463_v14  ;;  %2390 = vmatprep.mubr.msk.bf16.mxu1 %vm671_vm1, %v2464_v15 }
  0x31   : > { %2359 = vmatmul.mubr.msk.bf16.gmra.mxu0 %vm671_vm1, %v2465_v16  ;;  %2391 = vmatmul.mubr.msk.bf16.gmra.mxu1 %vm671_vm1, %v2466_v17 }
  0x32   : > { %2362 = vmatprep.mubr.msk.bf16.mxu0 %vm671_vm1, %v2467_v18  ;;  %2394 = vmatprep.mubr.msk.bf16.mxu1 %vm671_vm1, %v2468_v19 }
  0x39   : > { %2363 = vmatmul.mubr.msk.bf16.gmra.mxu0 %vm671_vm1, %v2469_v20  ;;  %2395 = vmatmul.mubr.msk.bf16.gmra.mxu1 %vm671_vm1, %v2470_v21 }
  0x3a   : > { %2366 = vmatprep.mubr.msk.bf16.mxu0 %vm671_vm1, %v2471_v22  ;;  %2398 = vmatprep.mubr.msk.bf16.mxu1 %vm671_vm1, %v2472_v23 }
  0x41   : > { %2367 = vmatmul.mubr.msk.bf16.gmra.mxu0 %vm671_vm1, %v2473_v24  ;;  %2399 = vmatmul.mubr.msk.bf16.gmra.mxu1 %vm671_vm1, %v2474_v25 }
  0x42   : > { %2370 = vmatprep.mubr.msk.bf16.mxu0 %vm671_vm1, %v2475_v26  ;;  %2402 = vmatprep.mubr.msk.bf16.mxu1 %vm671_vm1, %v2476_v27 }
  0x49   : > { %2371 = vmatmul.mubr.msk.bf16.gmra.mxu0 %vm671_vm1, %v2477_v28  ;;  %2403 = vmatmul.mubr.msk.bf16.gmra.mxu1 %vm671_vm1, %v2478_v29 }
  0x4a   : > { %2374 = vmatprep.mubr.msk.bf16.mxu0 %vm671_vm1, %v2479_v30  ;;  %2406 = vmatprep.mubr.msk.bf16.mxu1 %vm671_vm1, %v2480_v31 }
  0x51   : > { %2375 = vmatmul.mubr.msk.bf16.gmra.mxu0 %vm671_vm1, %v2481_v32  ;;  %2407 = vmatmul.mubr.msk.bf16.gmra.mxu1 %vm671_vm1, %v2482_v33 }
  0x52   : > { %2378 = vmatprep.mubr.msk.bf16.mxu0 %vm671_vm1, %v2483_v34  ;;  %2410 = vmatprep.mubr.msk.bf16.mxu1 %vm671_vm1, %v2484_v35 }
  0x59   : > { %2379 = vmatmul.mubr.msk.bf16.gmra.mxu0 %vm671_vm1, %v2485_v36  ;;  %2411 = vmatmul.mubr.msk.bf16.gmra.mxu1 %vm671_vm1, %v2486_v37 }
  0xe1   : > { %v2352_v39 = vpop.f32.mrf.mxu0  ;;  %v2384_v40 = vpop.f32.mrf.mxu1 }
  0xe2   : > { %vm1258_vm2 = vcmp.ge.f32.partialorder %v2352_v39, 0.0  ;;  %v1329_v41 = vmul.f32 %v2352_v39, %v2641_v38  ;;  %v1361_v42 = vmul.f32 %v2384_v40, %v2641_v38  ;;  %vm1290_vm3 = vcmp.ge.f32.partialorder %v2384_v40, 0.0 }
  0xe3   : > { %v806_v43 = vpop.f32.mrf.mxu0  ;;  %v934_v44 = vpop.f32.mrf.mxu1 }
  0xe4   : > { %v1393_v45 = vsel %vm1258_vm2, %v2352_v39, %v1329_v41  ;;  %v1327_v46 = vmul.f32 %v2641_v38, %v806_v43  ;;  %vm1256_vm4 = vcmp.ge.f32.partialorder %v806_v43, 0.0  ;;  %v1425_v50 = vsel %vm1290_vm3, %v2384_v40, %v1361_v42 }
  0xe5   : > { %v2353_v47 = vpop.f32.mrf.mxu0  ;;  %v2385_v48 = vpop.f32.mrf.mxu1  ;;  %vm1288_vm7 = vcmp.ge.f32.partialorder %v934_v44, 0.0  ;;  %v1359_v51 = vmul.f32 %v2641_v38, %v934_v44 }
  0xe6   : > { %vm1259_vm5 = vcmp.ge.f32.partialorder %v2353_v47, 0.0  ;;  %v1330_v49 = vmul.f32 %v2353_v47, %v2641_v38  ;;  %vm1291_vm6 = vcmp.ge.f32.partialorder %v2385_v48, 0.0  ;;  %v1362_v52 = vmul.f32 %v2385_v48, %v2641_v38 }
  0xe7   : > { %v809_v53 = vpop.f32.mrf.mxu0  ;;  %v937_v54 = vpop.f32.mrf.mxu1  ;;  %v1391_v57 = vsel %vm1256_vm4, %v806_v43, %v1327_v46  ;;  %v1423_v2 = vsel %vm1288_vm7, %v934_v44, %v1359_v51 }
  0xe8   : > { %v1394_v55 = vsel %vm1259_vm5, %v2353_v47, %v1330_v49  ;;  %vm1257_vm8 = vcmp.ge.f32.partialorder %v809_v53, 0.0  ;;  %v1328_v56 = vmul.f32 %v2641_v38, %v809_v53  ;;  %vm1289_vm9 = vcmp.ge.f32.partialorder %v937_v54, 0.0 }
  0xe9   : > { %v2120_v58 = vpack.c.bf16 %v1394_v55, %v1393_v45  ;;  %v1426_v59 = vsel %vm1291_vm6, %v2385_v48, %v1362_v52  ;;  %v1360_v60 = vmul.f32 %v2641_v38, %v937_v54  ;;  %v2356_v61 = vpop.f32.mrf.mxu0  ;;  %v2388_v62 = vpop.f32.mrf.mxu1 }
  0xea   : > { %v2200_v63 = vpack.c.bf16 %v1426_v59, %v1425_v50  ;;  %v1392_v0 = vsel %vm1257_vm8, %v809_v53, %v1328_v56  ;;  %vm1262_vm10 = vcmp.ge.f32.partialorder %v2356_v61, 0.0  ;;  %v1333_v1 = vmul.f32 %v2356_v61, %v2641_v38 }
  0xeb   : > { %2272 = vst [vmem:[%s2654_s8 + $0x8] sm:$0xff] %v2120_v58   ;;  %v2115_v3 = vpack.c.bf16 %v1392_v0, %v1391_v57  ;;  %v1424_v4 = vsel %vm1289_vm9, %v937_v54, %v1360_v60  ;;  %v1365_v5 = vmul.f32 %v2388_v62, %v2641_v38  ;;  %v822_v6 = vpop.f32.mrf.mxu0  ;;  %v950_v7 = vpop.f32.mrf.mxu1  ;;  %vm1294_vm11 = vcmp.ge.f32.partialorder %v2388_v62, 0.0 }
  0xec   : > { %2288 = vst [vmem:[%s2654_s8 + $0x88] sm:$0xff] %v2200_v63   ;;  %v2195_v8 = vpack.c.bf16 %v1424_v4, %v1423_v2  ;;  %v1397_v9 = vsel %vm1262_vm10, %v2356_v61, %v1333_v1  ;;  %v1331_v10 = vmul.f32 %v2641_v38, %v822_v6  ;;  %vm1260_vm12 = vcmp.ge.f32.partialorder %v822_v6, 0.0 }
  0xed   : > { %2116 = vst [vmem:[%s2654_s8] sm:$0xff] %v2115_v3   ;;  %v2357_v11 = vpop.f32.mrf.mxu0  ;;  %v2389_v12 = vpop.f32.mrf.mxu1  ;;  %v1429_v14 = vsel %vm1294_vm11, %v2388_v62, %v1365_v5  ;;  %vm1292_vm15 = vcmp.ge.f32.partialorder %v950_v7, 0.0  ;;  %v1363_v15 = vmul.f32 %v2641_v38, %v950_v7 }
  0xee   : > { %2287 = vst [vmem:[%s2654_s8 + $0x80] sm:$0xff] %v2195_v8   ;;  %vm1263_vm13 = vcmp.ge.f32.partialorder %v2357_v11, 0.0  ;;  %v1334_v13 = vmul.f32 %v2357_v11, %v2641_v38  ;;  %vm1295_vm14 = vcmp.ge.f32.partialorder %v2389_v12, 0.0  ;;  %v1366_v16 = vmul.f32 %v2389_v12, %v2641_v38 }
  0xef   : > { %v825_v17 = vpop.f32.mrf.mxu0  ;;  %v953_v18 = vpop.f32.mrf.mxu1  ;;  %v1395_v21 = vsel %vm1260_vm12, %v822_v6, %v1331_v10  ;;  %v1427_v30 = vsel %vm1292_vm15, %v950_v7, %v1363_v15 }
  0xf0   : > { %v1398_v19 = vsel %vm1263_vm13, %v2357_v11, %v1334_v13  ;;  %vm1261_vm0 = vcmp.ge.f32.partialorder %v825_v17, 0.0  ;;  %v1332_v20 = vmul.f32 %v2641_v38, %v825_v17  ;;  %vm1293_vm1 = vcmp.ge.f32.partialorder %v953_v18, 0.0 }
  0xf1   : > { %v2130_v22 = vpack.c.bf16 %v1398_v19, %v1397_v9  ;;  %v1430_v23 = vsel %vm1295_vm14, %v2389_v12, %v1366_v16  ;;  %v1364_v24 = vmul.f32 %v2641_v38, %v953_v18  ;;  %v2360_v25 = vpop.f32.mrf.mxu0  ;;  %v2392_v26 = vpop.f32.mrf.mxu1 }
  0xf2   : > { %v2210_v27 = vpack.c.bf16 %v1430_v23, %v1429_v14  ;;  %v1396_v28 = vsel %vm1261_vm0, %v825_v17, %v1332_v20  ;;  %vm1266_vm2 = vcmp.ge.f32.partialorder %v2360_v25, 0.0  ;;  %v1337_v29 = vmul.f32 %v2360_v25, %v2641_v38 }
  0xf3   : > { %2274 = vst [vmem:[%s2654_s8 + $0x18] sm:$0xff] %v2130_v22   ;;  %v2125_v31 = vpack.c.bf16 %v1396_v28, %v1395_v21  ;;  %v1428_v32 = vsel %vm1293_vm1, %v953_v18, %v1364_v24  ;;  %v1369_v33 = vmul.f32 %v2392_v26, %v2641_v38  ;;  %v838_v34 = vpop.f32.mrf.mxu0  ;;  %v966_v35 = vpop.f32.mrf.mxu1  ;;  %vm1298_vm3 = vcmp.ge.f32.partialorder %v2392_v26, 0.0 }
  0xf4   : > { %2290 = vst [vmem:[%s2654_s8 + $0x98] sm:$0xff] %v2210_v27   ;;  %v2205_v36 = vpack.c.bf16 %v1428_v32, %v1427_v30  ;;  %v1401_v37 = vsel %vm1266_vm2, %v2360_v25, %v1337_v29  ;;  %v1335_v39 = vmul.f32 %v2641_v38, %v838_v34  ;;  %vm1264_vm4 = vcmp.ge.f32.partialorder %v838_v34, 0.0 }
  0xf5   : > { %2273 = vst [vmem:[%s2654_s8 + $0x10] sm:$0xff] %v2125_v31   ;;  %v2361_v40 = vpop.f32.mrf.mxu0  ;;  %v2393_v41 = vpop.f32.mrf.mxu1  ;;  %v1433_v43 = vsel %vm1298_vm3, %v2392_v26, %v1369_v33  ;;  %vm1296_vm7 = vcmp.ge.f32.partialorder %v966_v35, 0.0  ;;  %v1367_v44 = vmul.f32 %v2641_v38, %v966_v35 }
  0xf6   : > { %2289 = vst [vmem:[%s2654_s8 + $0x90] sm:$0xff] %v2205_v36   ;;  %vm1267_vm5 = vcmp.ge.f32.partialorder %v2361_v40, 0.0  ;;  %v1338_v42 = vmul.f32 %v2361_v40, %v2641_v38  ;;  %vm1299_vm6 = vcmp.ge.f32.partialorder %v2393_v41, 0.0  ;;  %v1370_v45 = vmul.f32 %v2393_v41, %v2641_v38 }
  0xf7   : > { %v841_v46 = vpop.f32.mrf.mxu0  ;;  %v969_v47 = vpop.f32.mrf.mxu1  ;;  %v1399_v50 = vsel %vm1264_vm4, %v838_v34, %v1335_v39  ;;  %v1431_v59 = vsel %vm1296_vm7, %v966_v35, %v1367_v44 }
  0xf8   : > { %v1402_v48 = vsel %vm1267_vm5, %v2361_v40, %v1338_v42  ;;  %vm1265_vm8 = vcmp.ge.f32.partialorder %v841_v46, 0.0  ;;  %v1336_v49 = vmul.f32 %v2641_v38, %v841_v46  ;;  %vm1297_vm9 = vcmp.ge.f32.partialorder %v969_v47, 0.0 }
  0xf9   : > { %v2140_v51 = vpack.c.bf16 %v1402_v48, %v1401_v37  ;;  %v1434_v52 = vsel %vm1299_vm6, %v2393_v41, %v1370_v45  ;;  %v1368_v53 = vmul.f32 %v2641_v38, %v969_v47  ;;  %v2364_v54 = vpop.f32.mrf.mxu0  ;;  %v2396_v55 = vpop.f32.mrf.mxu1 }
  0xfa   : > { %v2220_v56 = vpack.c.bf16 %v1434_v52, %v1433_v43  ;;  %v1400_v57 = vsel %vm1265_vm8, %v841_v46, %v1336_v49  ;;  %vm1270_vm10 = vcmp.ge.f32.partialorder %v2364_v54, 0.0  ;;  %v1341_v58 = vmul.f32 %v2364_v54, %v2641_v38 }
  0xfb   : > { %2276 = vst [vmem:[%s2654_s8 + $0x28] sm:$0xff] %v2140_v51   ;;  %v2135_v60 = vpack.c.bf16 %v1400_v57, %v1399_v50  ;;  %v1432_v61 = vsel %vm1297_vm9, %v969_v47, %v1368_v53  ;;  %v1373_v62 = vmul.f32 %v2396_v55, %v2641_v38  ;;  %v854_v63 = vpop.f32.mrf.mxu0  ;;  %v982_v0 = vpop.f32.mrf.mxu1  ;;  %vm1302_vm11 = vcmp.ge.f32.partialorder %v2396_v55, 0.0 }
  0xfc   : > { %2292 = vst [vmem:[%s2654_s8 + $0xa8] sm:$0xff] %v2220_v56   ;;  %v2215_v1 = vpack.c.bf16 %v1432_v61, %v1431_v59  ;;  %v1405_v2 = vsel %vm1270_vm10, %v2364_v54, %v1341_v58  ;;  %v1339_v3 = vmul.f32 %v2641_v38, %v854_v63  ;;  %vm1268_vm12 = vcmp.ge.f32.partialorder %v854_v63, 0.0 }
  0xfd   : > { %2275 = vst [vmem:[%s2654_s8 + $0x20] sm:$0xff] %v2135_v60   ;;  %v2365_v4 = vpop.f32.mrf.mxu0  ;;  %v2397_v5 = vpop.f32.mrf.mxu1  ;;  %v1437_v7 = vsel %vm1302_vm11, %v2396_v55, %v1373_v62  ;;  %vm1300_vm15 = vcmp.ge.f32.partialorder %v982_v0, 0.0  ;;  %v1371_v8 = vmul.f32 %v2641_v38, %v982_v0 }
  0xfe   : > { %2291 = vst [vmem:[%s2654_s8 + $0xa0] sm:$0xff] %v2215_v1   ;;  %vm1271_vm13 = vcmp.ge.f32.partialorder %v2365_v4, 0.0  ;;  %v1342_v6 = vmul.f32 %v2365_v4, %v2641_v38  ;;  %vm1303_vm14 = vcmp.ge.f32.partialorder %v2397_v5, 0.0  ;;  %v1374_v9 = vmul.f32 %v2397_v5, %v2641_v38 }
  0xff   : > { %v857_v10 = vpop.f32.mrf.mxu0  ;;  %v985_v11 = vpop.f32.mrf.mxu1  ;;  %v1403_v14 = vsel %vm1268_vm12, %v854_v63, %v1339_v3  ;;  %v1435_v23 = vsel %vm1300_vm15, %v982_v0, %v1371_v8 }
 0x100   : > { %v1406_v12 = vsel %vm1271_vm13, %v2365_v4, %v1342_v6  ;;  %vm1269_vm0 = vcmp.ge.f32.partialorder %v857_v10, 0.0  ;;  %v1340_v13 = vmul.f32 %v2641_v38, %v857_v10  ;;  %vm1301_vm1 = vcmp.ge.f32.partialorder %v985_v11, 0.0 }
 0x101   : > { %v2150_v15 = vpack.c.bf16 %v1406_v12, %v1405_v2  ;;  %v1438_v16 = vsel %vm1303_vm14, %v2397_v5, %v1374_v9  ;;  %v1372_v17 = vmul.f32 %v2641_v38, %v985_v11  ;;  %v2368_v18 = vpop.f32.mrf.mxu0  ;;  %v2400_v19 = vpop.f32.mrf.mxu1 }
 0x102   : > { %v2230_v20 = vpack.c.bf16 %v1438_v16, %v1437_v7  ;;  %v1404_v21 = vsel %vm1269_vm0, %v857_v10, %v1340_v13  ;;  %vm1274_vm2 = vcmp.ge.f32.partialorder %v2368_v18, 0.0  ;;  %v1345_v22 = vmul.f32 %v2368_v18, %v2641_v38 }
 0x103   : > { %2278 = vst [vmem:[%s2654_s8 + $0x38] sm:$0xff] %v2150_v15   ;;  %v2145_v24 = vpack.c.bf16 %v1404_v21, %v1403_v14  ;;  %v1436_v25 = vsel %vm1301_vm1, %v985_v11, %v1372_v17  ;;  %v1377_v26 = vmul.f32 %v2400_v19, %v2641_v38  ;;  %v870_v27 = vpop.f32.mrf.mxu0  ;;  %v998_v28 = vpop.f32.mrf.mxu1  ;;  %vm1306_vm3 = vcmp.ge.f32.partialorder %v2400_v19, 0.0 }
 0x104   : > { %2294 = vst [vmem:[%s2654_s8 + $0xb8] sm:$0xff] %v2230_v20   ;;  %v2225_v29 = vpack.c.bf16 %v1436_v25, %v1435_v23  ;;  %v1409_v30 = vsel %vm1274_vm2, %v2368_v18, %v1345_v22  ;;  %v1343_v31 = vmul.f32 %v2641_v38, %v870_v27  ;;  %vm1272_vm4 = vcmp.ge.f32.partialorder %v870_v27, 0.0 }
 0x105   : > { %2277 = vst [vmem:[%s2654_s8 + $0x30] sm:$0xff] %v2145_v24   ;;  %v2369_v32 = vpop.f32.mrf.mxu0  ;;  %v2401_v33 = vpop.f32.mrf.mxu1  ;;  %v1441_v35 = vsel %vm1306_vm3, %v2400_v19, %v1377_v26  ;;  %vm1304_vm7 = vcmp.ge.f32.partialorder %v998_v28, 0.0  ;;  %v1375_v36 = vmul.f32 %v2641_v38, %v998_v28 }
 0x106   : > { %2293 = vst [vmem:[%s2654_s8 + $0xb0] sm:$0xff] %v2225_v29   ;;  %vm1275_vm5 = vcmp.ge.f32.partialorder %v2369_v32, 0.0  ;;  %v1346_v34 = vmul.f32 %v2369_v32, %v2641_v38  ;;  %vm1307_vm6 = vcmp.ge.f32.partialorder %v2401_v33, 0.0  ;;  %v1378_v37 = vmul.f32 %v2401_v33, %v2641_v38 }
 0x107   : > { %v873_v39 = vpop.f32.mrf.mxu0  ;;  %v1001_v40 = vpop.f32.mrf.mxu1  ;;  %v1407_v43 = vsel %vm1272_vm4, %v870_v27, %v1343_v31  ;;  %v1439_v52 = vsel %vm1304_vm7, %v998_v28, %v1375_v36 }
 0x108   : > { %v1410_v41 = vsel %vm1275_vm5, %v2369_v32, %v1346_v34  ;;  %vm1273_vm8 = vcmp.ge.f32.partialorder %v873_v39, 0.0  ;;  %v1344_v42 = vmul.f32 %v2641_v38, %v873_v39  ;;  %vm1305_vm9 = vcmp.ge.f32.partialorder %v1001_v40, 0.0 }
 0x109   : > { %v2160_v44 = vpack.c.bf16 %v1410_v41, %v1409_v30  ;;  %v1442_v45 = vsel %vm1307_vm6, %v2401_v33, %v1378_v37  ;;  %v1376_v46 = vmul.f32 %v2641_v38, %v1001_v40  ;;  %v2372_v47 = vpop.f32.mrf.mxu0  ;;  %v2404_v48 = vpop.f32.mrf.mxu1 }
 0x10a   : > { %v2240_v49 = vpack.c.bf16 %v1442_v45, %v1441_v35  ;;  %v1408_v50 = vsel %vm1273_vm8, %v873_v39, %v1344_v42  ;;  %vm1278_vm10 = vcmp.ge.f32.partialorder %v2372_v47, 0.0  ;;  %v1349_v51 = vmul.f32 %v2372_v47, %v2641_v38 }
 0x10b   : > { %2280 = vst [vmem:[%s2654_s8 + $0x48] sm:$0xff] %v2160_v44   ;;  %v2155_v53 = vpack.c.bf16 %v1408_v50, %v1407_v43  ;;  %v1440_v54 = vsel %vm1305_vm9, %v1001_v40, %v1376_v46  ;;  %v1381_v55 = vmul.f32 %v2404_v48, %v2641_v38  ;;  %v886_v56 = vpop.f32.mrf.mxu0  ;;  %v1014_v57 = vpop.f32.mrf.mxu1  ;;  %vm1310_vm11 = vcmp.ge.f32.partialorder %v2404_v48, 0.0 }
 0x10c   : > { %2296 = vst [vmem:[%s2654_s8 + $0xc8] sm:$0xff] %v2240_v49   ;;  %v2235_v58 = vpack.c.bf16 %v1440_v54, %v1439_v52  ;;  %v1413_v59 = vsel %vm1278_vm10, %v2372_v47, %v1349_v51  ;;  %v1347_v60 = vmul.f32 %v2641_v38, %v886_v56  ;;  %vm1276_vm12 = vcmp.ge.f32.partialorder %v886_v56, 0.0 }
 0x10d   : > { %2279 = vst [vmem:[%s2654_s8 + $0x40] sm:$0xff] %v2155_v53   ;;  %v2373_v61 = vpop.f32.mrf.mxu0  ;;  %v2405_v62 = vpop.f32.mrf.mxu1  ;;  %v1445_v0 = vsel %vm1310_vm11, %v2404_v48, %v1381_v55  ;;  %vm1308_vm15 = vcmp.ge.f32.partialorder %v1014_v57, 0.0  ;;  %v1379_v1 = vmul.f32 %v2641_v38, %v1014_v57 }
 0x10e   : > { %2295 = vst [vmem:[%s2654_s8 + $0xc0] sm:$0xff] %v2235_v58   ;;  %vm1279_vm13 = vcmp.ge.f32.partialorder %v2373_v61, 0.0  ;;  %v1350_v63 = vmul.f32 %v2373_v61, %v2641_v38  ;;  %vm1311_vm14 = vcmp.ge.f32.partialorder %v2405_v62, 0.0  ;;  %v1382_v2 = vmul.f32 %v2405_v62, %v2641_v38 }
 0x10f   : > { %v889_v3 = vpop.f32.mrf.mxu0  ;;  %v1017_v4 = vpop.f32.mrf.mxu1  ;;  %v1411_v7 = vsel %vm1276_vm12, %v886_v56, %v1347_v60  ;;  %v1443_v16 = vsel %vm1308_vm15, %v1014_v57, %v1379_v1 }
 0x110   : > { %v1414_v5 = vsel %vm1279_vm13, %v2373_v61, %v1350_v63  ;;  %vm1277_vm0 = vcmp.ge.f32.partialorder %v889_v3, 0.0  ;;  %v1348_v6 = vmul.f32 %v2641_v38, %v889_v3  ;;  %vm1309_vm1 = vcmp.ge.f32.partialorder %v1017_v4, 0.0 }
 0x111   : > { %v2170_v8 = vpack.c.bf16 %v1414_v5, %v1413_v59  ;;  %v1446_v9 = vsel %vm1311_vm14, %v2405_v62, %v1382_v2  ;;  %v1380_v10 = vmul.f32 %v2641_v38, %v1017_v4  ;;  %v2376_v11 = vpop.f32.mrf.mxu0  ;;  %v2408_v12 = vpop.f32.mrf.mxu1 }
 0x112   : > { %v2250_v13 = vpack.c.bf16 %v1446_v9, %v1445_v0  ;;  %v1412_v14 = vsel %vm1277_vm0, %v889_v3, %v1348_v6  ;;  %vm1282_vm2 = vcmp.ge.f32.partialorder %v2376_v11, 0.0  ;;  %v1353_v15 = vmul.f32 %v2376_v11, %v2641_v38 }
 0x113   : > { %2282 = vst [vmem:[%s2654_s8 + $0x58] sm:$0xff] %v2170_v8   ;;  %v2165_v17 = vpack.c.bf16 %v1412_v14, %v1411_v7  ;;  %v1444_v18 = vsel %vm1309_vm1, %v1017_v4, %v1380_v10  ;;  %v1385_v19 = vmul.f32 %v2408_v12, %v2641_v38  ;;  %v902_v20 = vpop.f32.mrf.mxu0  ;;  %v1030_v21 = vpop.f32.mrf.mxu1  ;;  %vm1314_vm3 = vcmp.ge.f32.partialorder %v2408_v12, 0.0 }
 0x114   : > { %2298 = vst [vmem:[%s2654_s8 + $0xd8] sm:$0xff] %v2250_v13   ;;  %v2245_v22 = vpack.c.bf16 %v1444_v18, %v1443_v16  ;;  %v1417_v23 = vsel %vm1282_vm2, %v2376_v11, %v1353_v15  ;;  %v1351_v24 = vmul.f32 %v2641_v38, %v902_v20  ;;  %vm1280_vm4 = vcmp.ge.f32.partialorder %v902_v20, 0.0 }
 0x115   : > { %2281 = vst [vmem:[%s2654_s8 + $0x50] sm:$0xff] %v2165_v17   ;;  %v2377_v25 = vpop.f32.mrf.mxu0  ;;  %v2409_v26 = vpop.f32.mrf.mxu1  ;;  %v1449_v28 = vsel %vm1314_vm3, %v2408_v12, %v1385_v19  ;;  %vm1312_vm7 = vcmp.ge.f32.partialorder %v1030_v21, 0.0  ;;  %v1383_v29 = vmul.f32 %v2641_v38, %v1030_v21 }
 0x116   : > { %2297 = vst [vmem:[%s2654_s8 + $0xd0] sm:$0xff] %v2245_v22   ;;  %vm1283_vm5 = vcmp.ge.f32.partialorder %v2377_v25, 0.0  ;;  %v1354_v27 = vmul.f32 %v2377_v25, %v2641_v38  ;;  %vm1315_vm6 = vcmp.ge.f32.partialorder %v2409_v26, 0.0  ;;  %v1386_v30 = vmul.f32 %v2409_v26, %v2641_v38 }
 0x117   : > { %v905_v31 = vpop.f32.mrf.mxu0  ;;  %v1033_v32 = vpop.f32.mrf.mxu1  ;;  %v1415_v35 = vsel %vm1280_vm4, %v902_v20, %v1351_v24  ;;  %v1447_v45 = vsel %vm1312_vm7, %v1030_v21, %v1383_v29 }
 0x118   : > { %v1418_v33 = vsel %vm1283_vm5, %v2377_v25, %v1354_v27  ;;  %vm1281_vm8 = vcmp.ge.f32.partialorder %v905_v31, 0.0  ;;  %v1352_v34 = vmul.f32 %v2641_v38, %v905_v31  ;;  %vm1313_vm9 = vcmp.ge.f32.partialorder %v1033_v32, 0.0 }
 0x119   : > { %v2180_v36 = vpack.c.bf16 %v1418_v33, %v1417_v23  ;;  %v1450_v37 = vsel %vm1315_vm6, %v2409_v26, %v1386_v30  ;;  %v1384_v39 = vmul.f32 %v2641_v38, %v1033_v32  ;;  %v2380_v40 = vpop.f32.mrf.mxu0  ;;  %v2412_v41 = vpop.f32.mrf.mxu1 }
 0x11a   : > { %v2260_v42 = vpack.c.bf16 %v1450_v37, %v1449_v28  ;;  %v1416_v43 = vsel %vm1281_vm8, %v905_v31, %v1352_v34  ;;  %vm1286_vm10 = vcmp.ge.f32.partialorder %v2380_v40, 0.0  ;;  %v1357_v44 = vmul.f32 %v2380_v40, %v2641_v38 }
 0x11b   : > { %2284 = vst [vmem:[%s2654_s8 + $0x68] sm:$0xff] %v2180_v36   ;;  %v2175_v46 = vpack.c.bf16 %v1416_v43, %v1415_v35  ;;  %v1448_v47 = vsel %vm1313_vm9, %v1033_v32, %v1384_v39  ;;  %v918_v48 = vpop.f32.mrf.mxu0  ;;  %v1046_v49 = vpop.f32.mrf.mxu1  ;;  %vm1318_vm11 = vcmp.ge.f32.partialorder %v2412_v41, 0.0  ;;  %v1389_v52 = vmul.f32 %v2412_v41, %v2641_v38 }
 0x11c   : > { %2300 = vst [vmem:[%s2654_s8 + $0xe8] sm:$0xff] %v2260_v42   ;;  %v2255_v50 = vpack.c.bf16 %v1448_v47, %v1447_v45  ;;  %v1421_v51 = vsel %vm1286_vm10, %v2380_v40, %v1357_v44  ;;  %v1355_v55 = vmul.f32 %v2641_v38, %v918_v48  ;;  %vm1284_vm14 = vcmp.ge.f32.partialorder %v918_v48, 0.0 }
 0x11d   : > { %2283 = vst [vmem:[%s2654_s8 + $0x60] sm:$0xff] %v2175_v46   ;;  %v2381_v53 = vpop.f32.mrf.mxu0  ;;  %v2413_v54 = vpop.f32.mrf.mxu1  ;;  %vm1316_vm15 = vcmp.ge.f32.partialorder %v1046_v49, 0.0  ;;  %v1387_v57 = vmul.f32 %v2641_v38, %v1046_v49  ;;  %v1453_v63 = vsel %vm1318_vm11, %v2412_v41, %v1389_v52 }
 0x11e   : > { %2299 = vst [vmem:[%s2654_s8 + $0xe0] sm:$0xff] %v2255_v50   ;;  %vm1287_vm12 = vcmp.ge.f32.partialorder %v2381_v53, 0.0  ;;  %v1358_v56 = vmul.f32 %v2381_v53, %v2641_v38  ;;  %vm1319_vm13 = vcmp.ge.f32.partialorder %v2413_v54, 0.0  ;;  %v1390_v58 = vmul.f32 %v2413_v54, %v2641_v38 }
 0x11f   : > { %v921_v59 = vpop.f32.mrf.mxu0  ;;  %v1049_v60 = vpop.f32.mrf.mxu1  ;;  %v1419_v3 = vsel %vm1284_vm14, %v918_v48, %v1355_v55  ;;  %v1451_v6 = vsel %vm1316_vm15, %v1046_v49, %v1387_v57 }
 0x120   : > { %v1422_v61 = vsel %vm1287_vm12, %v2381_v53, %v1358_v56  ;;  %vm1285_vm0 = vcmp.ge.f32.partialorder %v921_v59, 0.0  ;;  %v1356_v62 = vmul.f32 %v2641_v38, %v921_v59  ;;  %vm1317_vm1 = vcmp.ge.f32.partialorder %v1049_v60, 0.0 }
 0x121   : > { %v2190_v0 = vpack.c.bf16 %v1422_v61, %v1421_v51  ;;  %v1454_v1 = vsel %vm1319_vm13, %v2413_v54, %v1390_v58  ;;  %v1388_v2 = vmul.f32 %v2641_v38, %v1049_v60 }
 0x122   : > { %v2270_v4 = vpack.c.bf16 %v1454_v1, %v1453_v63  ;;  %v1420_v5 = vsel %vm1285_vm0, %v921_v59, %v1356_v62 }
 0x123   : > { %2286 = vst [vmem:[%s2654_s8 + $0x78] sm:$0xff] %v2190_v0   ;;  %v2185_v7 = vpack.c.bf16 %v1420_v5, %v1419_v3  ;;  %v1452_v8 = vsel %vm1317_vm1, %v1049_v60, %v1388_v2 }
 0x124   : > { %2302 = vst [vmem:[%s2654_s8 + $0xf8] sm:$0xff] %v2270_v4   ;;  %v2265_v9 = vpack.c.bf16 %v1452_v8, %v1451_v6 }
 0x125   : > { %2285 = vst [vmem:[%s2654_s8 + $0x70] sm:$0xff] %v2185_v7  }
 0x126   : > { %2301 = vst [vmem:[%s2654_s8 + $0xf0] sm:$0xff] %v2265_v9  }
 0x127 PF: > { %s13_s14 = sadd.s32 1, %s2509_s14   ;;  %s2768_s12 = smov %s2505_s13 }
 0x128   : > { %p10_p5 = scmp.ge.s32.totalorder %s13_s14, 6   ;;  %s2769_s13 = smov %s2771_s15 }
 0x12a   :  { %12 = sbr.rel (!%p10_p5) target bundleno = 2 (0x2), region = 76 }

// kernel: _lambda_.72
= control target key start
LH: loop header
LB: loop body
LE: loop exit
PB: predicated region body
PF: predicated region fallthrough
CT: control target
= control target key end

     0   :  { %s1770_s15 = smov 0   ;;  %s1772_s16 = smov 0   ;;  %s1933_s0 = inlined_call_operand.vmem [shape: bf16[1,512,72], index: 0, kind: input, shape index: {}]   ;;  %s1934_s1 = inlined_call_operand.vmem [shape: bf16[1,72,128], index: 1, kind: input, shape index: {}]   ;;  %s1935_s2 = inlined_call_operand.vmem [shape: f32[1,1,128], index: 2, kind: input, shape index: {}]   ;;  %s1936_s3 = inlined_call_operand.vmem [shape: bf16[1,512,128], index: 3, kind: input, shape index: {}]   ;;  %s1937_s4 = inlined_call_operand.vmem [shape: bf16[1,512,128], index: 4, kind: output, shape index: {}]  }
   0x1   :  { %s1774_s17 = smov 0  }
   0x2 LB: > { %s29_s18 = sadd.s32 1, %s1739_s16  ;;  %p1316_p0 = scmp.ge.s32.totalorder %s1743_s17, 1  ;;  %s1743_s17 = sphi %s1774_s17, %s14_s17   ;;  %s1739_s16 = sphi %s1772_s16, %s1939_s16   ;;  %s1735_s15 = sphi %s1770_s15, %s1938_s15  }
   0x3   : > { %p31_p1 = scmp.ge.s32.totalorder %s29_s18, 2  ;;  %p237_p2 = scmp.lt.s32.totalorder %s1743_s17, 3 }
   0x5   : > { %s1941_s18 = smov (%p31_p1, %s29_s18), 0  ;;  %p238_p3 = pnand %p1316_p0, %p237_p2 }
   0x6   : > { %s1317_s23 = sshll.u32 (!%p238_p3), %s1735_s15, 5 }
   0x7   : > { %241 = sbr.rel (%p238_p3) target bundleno = 263 (0x107), region = 36  ;;  %p298_p4 = scmp.lt.s32.totalorder (!%p238_p3), %s1317_s23, 63 }
   0xc   : > { %v1700_v0 = vld [vmem:[%s1934_s1 + $0x20] ss:$0 sps:$4 sm:$0xff]   ;;  %vm607_vm0 = vcmask 1043456   ;;  %v1701_v1 = vld [vmem:[%s1934_s1 + $0x18] sm:$0xff]   ;;  %v1702_v3 = vld [vmem:[%s1934_s1 + $0x10] sm:$0xff]   ;;  %s1943_s23 = smov (!%p298_p4, %s1317_s23), 63 }
   0xd   : > { %1674 = vmatprep.subr.msk.bf16.mxu0 %vm607_vm0, %v1700_v0  ;;  %1675 = vmatprep.subr.msk.bf16.mxu1 %vm607_vm0, %v1700_v0  ;;  %v609_v2 = vsel %vm607_vm0, %v1700_v0, 0  ;;  %v1703_v4 = vld [vmem:[%s1934_s1 + $0x8] sm:$0xff]   ;;  %s1800_s28 = sshll.u32 %s1943_s23, 2  ;;  %vm558_vm1 = vcmask 588800   ;;  %v1704_v7 = vld [vmem:[%s1934_s1] sm:$0xff]  }
   0xe   : > { %1623 = vmatpush3.bf16.msra.mxu0 %v609_v2  ;;  %1669 = vmatpush3.bf16.msra.mxu1 %v609_v2  ;;  %s1806_s5 = scalar_lea.vmem %s1933_s0, %s1800_s28  ;;  %s1847_s10 = scalar_lea.vmem %s1936_s3, %s1800_s28  ;;  %v1852_v22 = vld [vmem:[%s1935_s2] ss:$0 sm:$0xff] }
   0xf   : > { %1624 = vmatprep.subr.bf16.mxu0 %v1701_v1  ;;  %1665 = vmatprep.subr.bf16.mxu1 %v1701_v1  ;;  %v1705_v5 = vld [vmem:[%s1806_s5] sm:$0xff]   ;;  %v1707_v8 = vld [vmem:[%s1806_s5 + $0x8] sm:$0xff]   ;;  %v1709_v10 = vld [vmem:[%s1806_s5 + $0x10] sm:$0xff]   ;;  %s1872_s15 = scalar_lea.vmem %s1937_s4, %s1800_s28 }
  0x10   : > { %v1706_v6 = vld [vmem:[%s1806_s5 + $0x40] sm:$0xff]   ;;  %1632 = vmatprep.mubr.msk.bf16.mxu0 %vm558_vm1, %v1705_v5  ;;  %v1708_v9 = vld [vmem:[%s1806_s5 + $0x48] sm:$0xff]   ;;  %v1710_v11 = vld [vmem:[%s1806_s5 + $0x50] sm:$0xff]  }
  0x11   : > { %1648 = vmatprep.mubr.msk.bf16.mxu1 %vm558_vm1, %v1706_v6  ;;  %v1711_v12 = vld [vmem:[%s1806_s5 + $0x18] sm:$0xff]   ;;  %v1713_v14 = vld [vmem:[%s1806_s5 + $0x20] sm:$0xff]   ;;  %v1715_v16 = vld [vmem:[%s1806_s5 + $0x28] sm:$0xff]  }
  0x12   : > { %1625 = vmatpush3.bf16.msra.mxu0 %v1701_v1  ;;  %1670 = vmatpush3.bf16.msra.mxu1 %v1701_v1  ;;  %v1712_v13 = vld [vmem:[%s1806_s5 + $0x58] sm:$0xff]   ;;  %v1714_v15 = vld [vmem:[%s1806_s5 + $0x60] sm:$0xff]   ;;  %v1716_v17 = vld [vmem:[%s1806_s5 + $0x68] sm:$0xff]  }
  0x13   : > { %1626 = vmatprep.subr.bf16.mxu0 %v1702_v3  ;;  %1666 = vmatprep.subr.bf16.mxu1 %v1702_v3  ;;  %v1717_v18 = vld [vmem:[%s1806_s5 + $0x30] sm:$0xff]   ;;  %v1719_v20 = vld [vmem:[%s1806_s5 + $0x38] sm:$0xff]   ;;  %v1571_v23 = vld [vmem:[%s1847_s10 + $0x8] sm:$0xff]  }
  0x14   : > { %v1718_v19 = vld [vmem:[%s1806_s5 + $0x70] sm:$0xff]   ;;  %v1720_v21 = vld [vmem:[%s1806_s5 + $0x78] sm:$0xff]   ;;  %v1579_v24 = vld [vmem:[%s1847_s10 + $0x48] sm:$0xff]   ;;  %v1433_v30 = vunpack.c.l.bf16 %v1571_v23  ;;  %v1434_v35 = vunpack.c.h.bf16 %v1571_v23 }
  0x15   : > { %v1428_v27 = vld [vmem:[%s1847_s10] sm:$0xff]   ;;  %v1465_v32 = vunpack.c.l.bf16 %v1579_v24  ;;  %v1466_v36 = vunpack.c.h.bf16 %v1579_v24  ;;  %v1573_v55 = vld [vmem:[%s1847_s10 + $0x18] sm:$0xff]   ;;  %v1572_v1 = vld [vmem:[%s1847_s10 + $0x10] sm:$0xff]  }
  0x16   : > { %1627 = vmatpush3.bf16.msra.mxu0 %v1702_v3  ;;  %1671 = vmatpush3.bf16.msra.mxu1 %v1702_v3  ;;  %v1578_v28 = vld [vmem:[%s1847_s10 + $0x40] sm:$0xff]   ;;  %v1429_v38 = vunpack.c.l.bf16 %v1428_v27  ;;  %v1430_v45 = vunpack.c.h.bf16 %v1428_v27  ;;  %v1581_v56 = vld [vmem:[%s1847_s10 + $0x58] sm:$0xff]   ;;  %v1580_v2 = vld [vmem:[%s1847_s10 + $0x50] sm:$0xff]  }
  0x17   : > { %1628 = vmatprep.subr.bf16.mxu0 %v1703_v4  ;;  %1667 = vmatprep.subr.bf16.mxu1 %v1703_v4  ;;  %v1461_v40 = vunpack.c.l.bf16 %v1578_v28  ;;  %v1462_v46 = vunpack.c.h.bf16 %v1578_v28  ;;  %v1473_v6 = vunpack.c.l.bf16 %v1581_v56  ;;  %v1470_v23 = vunpack.c.h.bf16 %v1580_v2 }
  0x1a   : > { %1629 = vmatpush3.bf16.msra.mxu0 %v1703_v4  ;;  %1672 = vmatpush3.bf16.msra.mxu1 %v1703_v4  ;;  %v1441_v4 = vunpack.c.l.bf16 %v1573_v55 }
  0x1b   : > { %1630 = vmatprep.subr.bf16.mxu0 %v1704_v7  ;;  %1668 = vmatprep.subr.bf16.mxu1 %v1704_v7 }
  0x1e   : > { %1631 = vmatpush3.bf16.msra.mxu0 %v1704_v7  ;;  %1673 = vmatpush3.bf16.msra.mxu1 %v1704_v7 }
  0x21   : > { %1633 = vmatmul.mubr.msk.bf16.vlgmr.msra.gmra.mxu0 %vm558_vm1, %v1707_v8  ;;  %1649 = vmatmul.mubr.msk.bf16.vlgmr.msra.gmra.mxu1 %vm558_vm1, %v1708_v9 }
  0x22   : > { %1636 = vmatprep.mubr.msk.bf16.mxu0 %vm558_vm1, %v1709_v10  ;;  %1652 = vmatprep.mubr.msk.bf16.mxu1 %vm558_vm1, %v1710_v11  ;;  %v1442_v11 = vunpack.c.h.bf16 %v1573_v55 }
  0x29   : > { %1637 = vmatmul.mubr.msk.bf16.gmra.mxu0 %vm558_vm1, %v1711_v12  ;;  %1653 = vmatmul.mubr.msk.bf16.gmra.mxu1 %vm558_vm1, %v1712_v13  ;;  %v1474_v12 = vunpack.c.h.bf16 %v1581_v56 }
  0x2a   : > { %1640 = vmatprep.mubr.msk.bf16.mxu0 %vm558_vm1, %v1713_v14  ;;  %1656 = vmatprep.mubr.msk.bf16.mxu1 %vm558_vm1, %v1714_v15  ;;  %v1437_v14 = vunpack.c.l.bf16 %v1572_v1 }
  0x31   : > { %1641 = vmatmul.mubr.msk.bf16.gmra.mxu0 %vm558_vm1, %v1715_v16  ;;  %1657 = vmatmul.mubr.msk.bf16.gmra.mxu1 %vm558_vm1, %v1716_v17  ;;  %v1469_v16 = vunpack.c.l.bf16 %v1580_v2 }
  0x32   : > { %1644 = vmatprep.mubr.msk.bf16.mxu0 %vm558_vm1, %v1717_v18  ;;  %1660 = vmatprep.mubr.msk.bf16.mxu1 %vm558_vm1, %v1718_v19 }
  0x39   : > { %1645 = vmatmul.mubr.msk.bf16.gmra.mxu0 %vm558_vm1, %v1719_v20  ;;  %1661 = vmatmul.mubr.msk.bf16.gmra.mxu1 %vm558_vm1, %v1720_v21  ;;  %v1438_v21 = vunpack.c.h.bf16 %v1572_v1 }
  0xe1   : > { %v1634_v25 = vpop.f32.mrf.mxu0  ;;  %v1650_v26 = vpop.f32.mrf.mxu1 }
  0xe2   : > { %v880_v29 = vadd.f32 %v1634_v25, %v1852_v22  ;;  %v896_v31 = vadd.f32 %v1650_v26, %v1852_v22 }
  0xe3   : > { %v645_v33 = vpop.f32.mrf.mxu0  ;;  %v709_v34 = vpop.f32.mrf.mxu1 }
  0xe4   : > { %v878_v37 = vadd.f32 %v1852_v22, %v645_v33  ;;  %v894_v39 = vadd.f32 %v1852_v22, %v709_v34  ;;  %v976_v47 = vadd.f32 %v1433_v30, %v880_v29  ;;  %v992_v48 = vadd.f32 %v1465_v32, %v896_v31  ;;  %v1575_v32 = vld [vmem:[%s1847_s10 + $0x28] sm:$0xff]  }
  0xe5   : > { %v1635_v41 = vpop.f32.mrf.mxu0  ;;  %v1651_v42 = vpop.f32.mrf.mxu1  ;;  %v1583_v33 = vld [vmem:[%s1847_s10 + $0x68] sm:$0xff]  }
  0xe6   : > { %v881_v43 = vadd.f32 %v1635_v41, %v1852_v22  ;;  %v897_v44 = vadd.f32 %v1651_v42, %v1852_v22  ;;  %v974_v57 = vadd.f32 %v1429_v38, %v878_v37  ;;  %v990_v58 = vadd.f32 %v1461_v40, %v894_v39  ;;  %v1574_v42 = vld [vmem:[%s1847_s10 + $0x20] sm:$0xff]  }
  0xe7   : > { %v648_v49 = vpop.f32.mrf.mxu0  ;;  %v712_v50 = vpop.f32.mrf.mxu1  ;;  %v1445_v55 = vunpack.c.l.bf16 %v1574_v42 }
  0xe8   : > { %v977_v51 = vadd.f32 %v1434_v35, %v881_v43  ;;  %v993_v52 = vadd.f32 %v1466_v36, %v897_v44  ;;  %v879_v53 = vadd.f32 %v1852_v22, %v648_v49  ;;  %v895_v54 = vadd.f32 %v1852_v22, %v712_v50  ;;  %v1582_v43 = vld [vmem:[%s1847_s10 + $0x60] sm:$0xff]  }
  0xe9   : > { %v1638_v59 = vpop.f32.mrf.mxu0  ;;  %v1654_v60 = vpop.f32.mrf.mxu1 }
  0xea   : > { %v1499_v61 = vpack.c.bf16 %v977_v51, %v976_v47  ;;  %v1539_v62 = vpack.c.bf16 %v993_v52, %v992_v48  ;;  %v975_v63 = vadd.f32 %v1430_v45, %v879_v53  ;;  %v991_v0 = vadd.f32 %v1462_v46, %v895_v54 }
  0xeb   : > { %v884_v3 = vadd.f32 %v1638_v59, %v1852_v22  ;;  %v900_v5 = vadd.f32 %v1654_v60, %v1852_v22  ;;  %v661_v7 = vpop.f32.mrf.mxu0  ;;  %v725_v8 = vpop.f32.mrf.mxu1  ;;  %v1449_v45 = vunpack.c.l.bf16 %v1575_v32  ;;  %v1481_v47 = vunpack.c.l.bf16 %v1583_v33 }
  0xec   : > { %1586 = vst [vmem:[%s1872_s15 + $0x8] sm:$0xff] %v1499_v61   ;;  %1594 = vst [vmem:[%s1872_s15 + $0x48] sm:$0xff] %v1539_v62   ;;  %v1494_v9 = vpack.c.bf16 %v975_v63, %v974_v57  ;;  %v1534_v10 = vpack.c.bf16 %v991_v0, %v990_v58  ;;  %v882_v13 = vadd.f32 %v1852_v22, %v661_v7  ;;  %v1450_v52 = vunpack.c.h.bf16 %v1575_v32 }
  0xed   : > { %v898_v15 = vadd.f32 %v1852_v22, %v725_v8  ;;  %v1639_v17 = vpop.f32.mrf.mxu0  ;;  %v1655_v18 = vpop.f32.mrf.mxu1  ;;  %v980_v24 = vadd.f32 %v1441_v4, %v884_v3  ;;  %v996_v25 = vadd.f32 %v1473_v6, %v900_v5  ;;  %v1482_v53 = vunpack.c.h.bf16 %v1583_v33  ;;  %v1577_v8 = vld [vmem:[%s1847_s10 + $0x38] sm:$0xff]  }
  0xee   : > { %1495 = vst [vmem:[%s1872_s15] sm:$0xff] %v1494_v9   ;;  %1593 = vst [vmem:[%s1872_s15 + $0x40] sm:$0xff] %v1534_v10   ;;  %v885_v19 = vadd.f32 %v1639_v17, %v1852_v22  ;;  %v901_v20 = vadd.f32 %v1655_v18, %v1852_v22  ;;  %v978_v34 = vadd.f32 %v1437_v14, %v882_v13  ;;  %v1477_v57 = vunpack.c.l.bf16 %v1582_v43  ;;  %v1585_v9 = vld [vmem:[%s1847_s10 + $0x78] sm:$0xff]   ;;  %v1576_v18 = vld [vmem:[%s1847_s10 + $0x30] sm:$0xff]  }
  0xef   : > { %v664_v26 = vpop.f32.mrf.mxu0  ;;  %v728_v27 = vpop.f32.mrf.mxu1  ;;  %v994_v35 = vadd.f32 %v1469_v16, %v898_v15  ;;  %v1446_v62 = vunpack.c.h.bf16 %v1574_v42  ;;  %v1478_v63 = vunpack.c.h.bf16 %v1582_v43  ;;  %v1453_v32 = vunpack.c.l.bf16 %v1576_v18 }
  0xf0   : > { %v981_v28 = vadd.f32 %v1442_v11, %v885_v19  ;;  %v997_v29 = vadd.f32 %v1474_v12, %v901_v20  ;;  %v883_v30 = vadd.f32 %v1852_v22, %v664_v26  ;;  %v899_v31 = vadd.f32 %v1852_v22, %v728_v27  ;;  %v1584_v19 = vld [vmem:[%s1847_s10 + $0x70] sm:$0xff]  }
  0xf1   : > { %v1642_v36 = vpop.f32.mrf.mxu0  ;;  %v1658_v37 = vpop.f32.mrf.mxu1 }
  0xf2   : > { %v1509_v38 = vpack.c.bf16 %v981_v28, %v980_v24  ;;  %v1549_v39 = vpack.c.bf16 %v997_v29, %v996_v25  ;;  %v979_v40 = vadd.f32 %v1438_v21, %v883_v30  ;;  %v995_v41 = vadd.f32 %v1470_v23, %v899_v31 }
  0xf3   : > { %v888_v44 = vadd.f32 %v1642_v36, %v1852_v22  ;;  %v904_v46 = vadd.f32 %v1658_v37, %v1852_v22  ;;  %v677_v48 = vpop.f32.mrf.mxu0  ;;  %v741_v49 = vpop.f32.mrf.mxu1  ;;  %v1457_v21 = vunpack.c.l.bf16 %v1577_v8  ;;  %v1489_v24 = vunpack.c.l.bf16 %v1585_v9 }
  0xf4   : > { %1588 = vst [vmem:[%s1872_s15 + $0x18] sm:$0xff] %v1509_v38   ;;  %1596 = vst [vmem:[%s1872_s15 + $0x58] sm:$0xff] %v1549_v39   ;;  %v1504_v50 = vpack.c.bf16 %v979_v40, %v978_v34  ;;  %v1544_v51 = vpack.c.bf16 %v995_v41, %v994_v35  ;;  %v886_v54 = vadd.f32 %v1852_v22, %v677_v48  ;;  %v1458_v29 = vunpack.c.h.bf16 %v1577_v8 }
  0xf5   : > { %v902_v56 = vadd.f32 %v1852_v22, %v741_v49  ;;  %v1643_v58 = vpop.f32.mrf.mxu0  ;;  %v1659_v59 = vpop.f32.mrf.mxu1  ;;  %v984_v0 = vadd.f32 %v1449_v45, %v888_v44  ;;  %v1000_v1 = vadd.f32 %v1481_v47, %v904_v46  ;;  %v1490_v30 = vunpack.c.h.bf16 %v1585_v9 }
  0xf6   : > { %1587 = vst [vmem:[%s1872_s15 + $0x10] sm:$0xff] %v1504_v50   ;;  %1595 = vst [vmem:[%s1872_s15 + $0x50] sm:$0xff] %v1544_v51   ;;  %v889_v60 = vadd.f32 %v1643_v58, %v1852_v22  ;;  %v905_v61 = vadd.f32 %v1659_v59, %v1852_v22  ;;  %v982_v10 = vadd.f32 %v1445_v55, %v886_v54  ;;  %v1485_v34 = vunpack.c.l.bf16 %v1584_v19 }
  0xf7   : > { %v680_v2 = vpop.f32.mrf.mxu0  ;;  %v744_v3 = vpop.f32.mrf.mxu1  ;;  %v998_v11 = vadd.f32 %v1477_v57, %v902_v56  ;;  %v1454_v39 = vunpack.c.h.bf16 %v1576_v18  ;;  %v1486_v40 = vunpack.c.h.bf16 %v1584_v19 }
  0xf8   : > { %v985_v4 = vadd.f32 %v1450_v52, %v889_v60  ;;  %v1001_v5 = vadd.f32 %v1482_v53, %v905_v61  ;;  %v887_v6 = vadd.f32 %v1852_v22, %v680_v2  ;;  %v903_v7 = vadd.f32 %v1852_v22, %v744_v3 }
  0xf9   : > { %v1646_v12 = vpop.f32.mrf.mxu0  ;;  %v1662_v13 = vpop.f32.mrf.mxu1 }
  0xfa   : > { %v1519_v14 = vpack.c.bf16 %v985_v4, %v984_v0  ;;  %v1559_v15 = vpack.c.bf16 %v1001_v5, %v1000_v1  ;;  %v983_v16 = vadd.f32 %v1446_v62, %v887_v6  ;;  %v999_v17 = vadd.f32 %v1478_v63, %v903_v7 }
  0xfb   : > { %v892_v20 = vadd.f32 %v1646_v12, %v1852_v22  ;;  %v908_v23 = vadd.f32 %v1662_v13, %v1852_v22  ;;  %v693_v25 = vpop.f32.mrf.mxu0  ;;  %v757_v26 = vpop.f32.mrf.mxu1 }
  0xfc   : > { %1590 = vst [vmem:[%s1872_s15 + $0x28] sm:$0xff] %v1519_v14   ;;  %1598 = vst [vmem:[%s1872_s15 + $0x68] sm:$0xff] %v1559_v15   ;;  %v1514_v27 = vpack.c.bf16 %v983_v16, %v982_v10  ;;  %v1554_v28 = vpack.c.bf16 %v999_v17, %v998_v11  ;;  %v890_v31 = vadd.f32 %v1852_v22, %v693_v25 }
  0xfd   : > { %v906_v33 = vadd.f32 %v1852_v22, %v757_v26  ;;  %v1647_v35 = vpop.f32.mrf.mxu0  ;;  %v1663_v36 = vpop.f32.mrf.mxu1  ;;  %v988_v41 = vadd.f32 %v1457_v21, %v892_v20  ;;  %v1004_v42 = vadd.f32 %v1489_v24, %v908_v23 }
  0xfe   : > { %1589 = vst [vmem:[%s1872_s15 + $0x20] sm:$0xff] %v1514_v27   ;;  %1597 = vst [vmem:[%s1872_s15 + $0x60] sm:$0xff] %v1554_v28   ;;  %v893_v37 = vadd.f32 %v1647_v35, %v1852_v22  ;;  %v909_v38 = vadd.f32 %v1663_v36, %v1852_v22  ;;  %v986_v49 = vadd.f32 %v1453_v32, %v890_v31 }
  0xff   : > { %v696_v43 = vpop.f32.mrf.mxu0  ;;  %v760_v44 = vpop.f32.mrf.mxu1  ;;  %v1002_v50 = vadd.f32 %v1485_v34, %v906_v33 }
 0x100   : > { %v989_v45 = vadd.f32 %v1458_v29, %v893_v37  ;;  %v1005_v46 = vadd.f32 %v1490_v30, %v909_v38  ;;  %v891_v47 = vadd.f32 %v1852_v22, %v696_v43  ;;  %v907_v48 = vadd.f32 %v1852_v22, %v760_v44 }
 0x102   : > { %v1529_v51 = vpack.c.bf16 %v989_v45, %v988_v41  ;;  %v1569_v52 = vpack.c.bf16 %v1005_v46, %v1004_v42  ;;  %v987_v53 = vadd.f32 %v1454_v39, %v891_v47  ;;  %v1003_v54 = vadd.f32 %v1486_v40, %v907_v48 }
 0x104   : > { %1592 = vst [vmem:[%s1872_s15 + $0x38] sm:$0xff] %v1529_v51   ;;  %1600 = vst [vmem:[%s1872_s15 + $0x78] sm:$0xff] %v1569_v52   ;;  %v1524_v55 = vpack.c.bf16 %v987_v53, %v986_v49  ;;  %v1564_v56 = vpack.c.bf16 %v1003_v54, %v1002_v50 }
 0x106   : > { %1591 = vst [vmem:[%s1872_s15 + $0x30] sm:$0xff] %v1524_v55   ;;  %1599 = vst [vmem:[%s1872_s15 + $0x70] sm:$0xff] %v1564_v56  }
 0x107 PF: > { %s14_s17 = sadd.s32 1, %s1743_s17   ;;  %s1938_s15 = smov %s1739_s16 }
 0x108   : > { %p11_p5 = scmp.ge.s32.totalorder %s14_s17, 4   ;;  %s1939_s16 = smov %s1941_s18 }
 0x10a   :  { %13 = sbr.rel (!%p11_p5) target bundleno = 2 (0x2), region = 83 }

// kernel: _lambda_.73
= control target key start
LH: loop header
LB: loop body
LE: loop exit
PB: predicated region body
PF: predicated region fallthrough
CT: control target
= control target key end

     0   :  { %s1571_s12 = smov 0   ;;  %s1573_s13 = smov 0   ;;  %s1720_s0 = inlined_call_operand.vmem [shape: bf16[1,512,72], index: 0, kind: input, shape index: {}]   ;;  %s1721_s1 = inlined_call_operand.vmem [shape: bf16[1,72,128], index: 1, kind: input, shape index: {}]   ;;  %s1722_s2 = inlined_call_operand.vmem [shape: f32[1,1,128], index: 2, kind: input, shape index: {}]   ;;  %s1723_s3 = inlined_call_operand.vmem [shape: bf16[1,512,128], index: 3, kind: output, shape index: {}]  }
   0x1   :  { %s1575_s14 = smov 0  }
   0x2 LB: > { %s28_s15 = sadd.s32 1, %s1545_s13  ;;  %p1203_p0 = scmp.ge.s32.totalorder %s1549_s14, 1  ;;  %s1549_s14 = sphi %s1575_s14, %s13_s14   ;;  %s1545_s13 = sphi %s1573_s13, %s1725_s13   ;;  %s1541_s12 = sphi %s1571_s12, %s1724_s12  }
   0x3   : > { %p30_p1 = scmp.ge.s32.totalorder %s28_s15, 2  ;;  %p195_p2 = scmp.lt.s32.totalorder %s1549_s14, 3 }
   0x5   : > { %s1727_s15 = smov (%p30_p1, %s28_s15), 0  ;;  %p196_p3 = pnand %p1203_p0, %p195_p2 }
   0x6   : > { %s1204_s20 = sshll.u32 (!%p196_p3), %s1541_s12, 5 }
   0x7   : > { %199 = sbr.rel (%p196_p3) target bundleno = 263 (0x107), region = 32  ;;  %p245_p4 = scmp.lt.s32.totalorder (!%p196_p3), %s1204_s20, 63 }
   0xc   : > { %v1506_v0 = vld [vmem:[%s1721_s1 + $0x20] ss:$0 sps:$4 sm:$0xff]   ;;  %vm544_vm0 = vcmask 1043456   ;;  %v1507_v1 = vld [vmem:[%s1721_s1 + $0x18] sm:$0xff]   ;;  %v1508_v3 = vld [vmem:[%s1721_s1 + $0x10] sm:$0xff]   ;;  %s1729_s20 = smov (!%p245_p4, %s1204_s20), 63 }
   0xd   : > { %1480 = vmatprep.subr.msk.bf16.mxu0 %vm544_vm0, %v1506_v0  ;;  %1481 = vmatprep.subr.msk.bf16.mxu1 %vm544_vm0, %v1506_v0  ;;  %v546_v2 = vsel %vm544_vm0, %v1506_v0, 0  ;;  %v1509_v4 = vld [vmem:[%s1721_s1 + $0x8] sm:$0xff]   ;;  %s1205_s25 = sshll.u32 %s1729_s20, 2  ;;  %vm495_vm1 = vcmask 588800   ;;  %v1510_v7 = vld [vmem:[%s1721_s1] sm:$0xff]  }
   0xe   : > { %1429 = vmatpush3.bf16.msra.mxu0 %v546_v2  ;;  %1475 = vmatpush3.bf16.msra.mxu1 %v546_v2  ;;  %s1609_s28 = scalar_lea.vmem %s1720_s0, %s1205_s25  ;;  %v1649_v22 = vld [vmem:[%s1722_s2] ss:$0 sm:$0xff]  ;;  %s1662_s8 = scalar_lea.vmem %s1723_s3, %s1205_s25 }
   0xf   : > { %1430 = vmatprep.subr.bf16.mxu0 %v1507_v1  ;;  %1471 = vmatprep.subr.bf16.mxu1 %v1507_v1  ;;  %v1511_v5 = vld [vmem:[%s1609_s28] sm:$0xff]   ;;  %v1513_v8 = vld [vmem:[%s1609_s28 + $0x8] sm:$0xff]   ;;  %v1515_v10 = vld [vmem:[%s1609_s28 + $0x10] sm:$0xff]  }
  0x10   : > { %v1512_v6 = vld [vmem:[%s1609_s28 + $0x40] sm:$0xff]   ;;  %1438 = vmatprep.mubr.msk.bf16.mxu0 %vm495_vm1, %v1511_v5  ;;  %v1514_v9 = vld [vmem:[%s1609_s28 + $0x48] sm:$0xff]   ;;  %v1516_v11 = vld [vmem:[%s1609_s28 + $0x50] sm:$0xff]  }
  0x11   : > { %1454 = vmatprep.mubr.msk.bf16.mxu1 %vm495_vm1, %v1512_v6  ;;  %v1517_v12 = vld [vmem:[%s1609_s28 + $0x18] sm:$0xff]   ;;  %v1519_v14 = vld [vmem:[%s1609_s28 + $0x20] sm:$0xff]   ;;  %v1521_v16 = vld [vmem:[%s1609_s28 + $0x28] sm:$0xff]  }
  0x12   : > { %1431 = vmatpush3.bf16.msra.mxu0 %v1507_v1  ;;  %1476 = vmatpush3.bf16.msra.mxu1 %v1507_v1  ;;  %v1518_v13 = vld [vmem:[%s1609_s28 + $0x58] sm:$0xff]   ;;  %v1520_v15 = vld [vmem:[%s1609_s28 + $0x60] sm:$0xff]   ;;  %v1522_v17 = vld [vmem:[%s1609_s28 + $0x68] sm:$0xff]  }
  0x13   : > { %1432 = vmatprep.subr.bf16.mxu0 %v1508_v3  ;;  %1472 = vmatprep.subr.bf16.mxu1 %v1508_v3  ;;  %v1523_v18 = vld [vmem:[%s1609_s28 + $0x30] sm:$0xff]   ;;  %v1525_v20 = vld [vmem:[%s1609_s28 + $0x38] sm:$0xff]  }
  0x14   : > { %v1524_v19 = vld [vmem:[%s1609_s28 + $0x70] sm:$0xff]   ;;  %v1526_v21 = vld [vmem:[%s1609_s28 + $0x78] sm:$0xff]  }
  0x16   : > { %1433 = vmatpush3.bf16.msra.mxu0 %v1508_v3  ;;  %1477 = vmatpush3.bf16.msra.mxu1 %v1508_v3 }
  0x17   : > { %1434 = vmatprep.subr.bf16.mxu0 %v1509_v4  ;;  %1473 = vmatprep.subr.bf16.mxu1 %v1509_v4 }
  0x1a   : > { %1435 = vmatpush3.bf16.msra.mxu0 %v1509_v4  ;;  %1478 = vmatpush3.bf16.msra.mxu1 %v1509_v4 }
  0x1b   : > { %1436 = vmatprep.subr.bf16.mxu0 %v1510_v7  ;;  %1474 = vmatprep.subr.bf16.mxu1 %v1510_v7 }
  0x1e   : > { %1437 = vmatpush3.bf16.msra.mxu0 %v1510_v7  ;;  %1479 = vmatpush3.bf16.msra.mxu1 %v1510_v7 }
  0x21   : > { %1439 = vmatmul.mubr.msk.bf16.vlgmr.msra.gmra.mxu0 %vm495_vm1, %v1513_v8  ;;  %1455 = vmatmul.mubr.msk.bf16.vlgmr.msra.gmra.mxu1 %vm495_vm1, %v1514_v9 }
  0x22   : > { %1442 = vmatprep.mubr.msk.bf16.mxu0 %vm495_vm1, %v1515_v10  ;;  %1458 = vmatprep.mubr.msk.bf16.mxu1 %vm495_vm1, %v1516_v11 }
  0x29   : > { %1443 = vmatmul.mubr.msk.bf16.gmra.mxu0 %vm495_vm1, %v1517_v12  ;;  %1459 = vmatmul.mubr.msk.bf16.gmra.mxu1 %vm495_vm1, %v1518_v13 }
  0x2a   : > { %1446 = vmatprep.mubr.msk.bf16.mxu0 %vm495_vm1, %v1519_v14  ;;  %1462 = vmatprep.mubr.msk.bf16.mxu1 %vm495_vm1, %v1520_v15 }
  0x31   : > { %1447 = vmatmul.mubr.msk.bf16.gmra.mxu0 %vm495_vm1, %v1521_v16  ;;  %1463 = vmatmul.mubr.msk.bf16.gmra.mxu1 %vm495_vm1, %v1522_v17 }
  0x32   : > { %1450 = vmatprep.mubr.msk.bf16.mxu0 %vm495_vm1, %v1523_v18  ;;  %1466 = vmatprep.mubr.msk.bf16.mxu1 %vm495_vm1, %v1524_v19 }
  0x39   : > { %1451 = vmatmul.mubr.msk.bf16.gmra.mxu0 %vm495_vm1, %v1525_v20  ;;  %1467 = vmatmul.mubr.msk.bf16.gmra.mxu1 %vm495_vm1, %v1526_v21 }
  0xe1   : > { %v1440_v23 = vpop.f32.mrf.mxu0  ;;  %v1456_v24 = vpop.f32.mrf.mxu1 }
  0xe2   : > { %vm810_vm2 = vcmp.ge.f32.partialorder %v1440_v23, 0.0  ;;  %v849_v25 = vmul.f32 %v1440_v23, %v1649_v22  ;;  %v865_v26 = vmul.f32 %v1456_v24, %v1649_v22  ;;  %vm826_vm3 = vcmp.ge.f32.partialorder %v1456_v24, 0.0 }
  0xe3   : > { %v582_v27 = vpop.f32.mrf.mxu0  ;;  %v646_v28 = vpop.f32.mrf.mxu1 }
  0xe4   : > { %v881_v29 = vsel %vm810_vm2, %v1440_v23, %v849_v25  ;;  %v847_v30 = vmul.f32 %v1649_v22, %v582_v27  ;;  %vm808_vm4 = vcmp.ge.f32.partialorder %v582_v27, 0.0  ;;  %v897_v34 = vsel %vm826_vm3, %v1456_v24, %v865_v26 }
  0xe5   : > { %v1441_v31 = vpop.f32.mrf.mxu0  ;;  %v1457_v32 = vpop.f32.mrf.mxu1  ;;  %vm824_vm7 = vcmp.ge.f32.partialorder %v646_v28, 0.0  ;;  %v863_v35 = vmul.f32 %v1649_v22, %v646_v28 }
  0xe6   : > { %vm811_vm5 = vcmp.ge.f32.partialorder %v1441_v31, 0.0  ;;  %v850_v33 = vmul.f32 %v1441_v31, %v1649_v22  ;;  %vm827_vm6 = vcmp.ge.f32.partialorder %v1457_v32, 0.0  ;;  %v866_v36 = vmul.f32 %v1457_v32, %v1649_v22 }
  0xe7   : > { %v585_v37 = vpop.f32.mrf.mxu0  ;;  %v649_v38 = vpop.f32.mrf.mxu1  ;;  %v879_v41 = vsel %vm808_vm4, %v582_v27, %v847_v30  ;;  %v895_v50 = vsel %vm824_vm7, %v646_v28, %v863_v35 }
  0xe8   : > { %v882_v39 = vsel %vm811_vm5, %v1441_v31, %v850_v33  ;;  %vm809_vm8 = vcmp.ge.f32.partialorder %v585_v37, 0.0  ;;  %v848_v40 = vmul.f32 %v1649_v22, %v585_v37  ;;  %vm825_vm9 = vcmp.ge.f32.partialorder %v649_v38, 0.0 }
  0xe9   : > { %v1320_v42 = vpack.c.bf16 %v882_v39, %v881_v29  ;;  %v898_v43 = vsel %vm827_vm6, %v1457_v32, %v866_v36  ;;  %v864_v44 = vmul.f32 %v1649_v22, %v649_v38  ;;  %v1444_v45 = vpop.f32.mrf.mxu0  ;;  %v1460_v46 = vpop.f32.mrf.mxu1 }
  0xea   : > { %v1360_v47 = vpack.c.bf16 %v898_v43, %v897_v34  ;;  %v880_v48 = vsel %vm809_vm8, %v585_v37, %v848_v40  ;;  %vm814_vm10 = vcmp.ge.f32.partialorder %v1444_v45, 0.0  ;;  %v853_v49 = vmul.f32 %v1444_v45, %v1649_v22 }
  0xeb   : > { %1392 = vst [vmem:[%s1662_s8 + $0x8] sm:$0xff] %v1320_v42   ;;  %v1315_v51 = vpack.c.bf16 %v880_v48, %v879_v41  ;;  %v896_v52 = vsel %vm825_vm9, %v649_v38, %v864_v44  ;;  %v869_v53 = vmul.f32 %v1460_v46, %v1649_v22  ;;  %v598_v54 = vpop.f32.mrf.mxu0  ;;  %v662_v55 = vpop.f32.mrf.mxu1  ;;  %vm830_vm11 = vcmp.ge.f32.partialorder %v1460_v46, 0.0 }
  0xec   : > { %1400 = vst [vmem:[%s1662_s8 + $0x48] sm:$0xff] %v1360_v47   ;;  %v1355_v56 = vpack.c.bf16 %v896_v52, %v895_v50  ;;  %v885_v57 = vsel %vm814_vm10, %v1444_v45, %v853_v49  ;;  %v851_v58 = vmul.f32 %v1649_v22, %v598_v54  ;;  %vm812_vm12 = vcmp.ge.f32.partialorder %v598_v54, 0.0 }
  0xed   : > { %1316 = vst [vmem:[%s1662_s8] sm:$0xff] %v1315_v51   ;;  %v1445_v59 = vpop.f32.mrf.mxu0  ;;  %v1461_v60 = vpop.f32.mrf.mxu1  ;;  %v901_v62 = vsel %vm830_vm11, %v1460_v46, %v869_v53  ;;  %vm828_vm15 = vcmp.ge.f32.partialorder %v662_v55, 0.0  ;;  %v867_v63 = vmul.f32 %v1649_v22, %v662_v55 }
  0xee   : > { %1399 = vst [vmem:[%s1662_s8 + $0x40] sm:$0xff] %v1355_v56   ;;  %vm815_vm13 = vcmp.ge.f32.partialorder %v1445_v59, 0.0  ;;  %v854_v61 = vmul.f32 %v1445_v59, %v1649_v22  ;;  %vm831_vm14 = vcmp.ge.f32.partialorder %v1461_v60, 0.0  ;;  %v870_v0 = vmul.f32 %v1461_v60, %v1649_v22 }
  0xef   : > { %v601_v1 = vpop.f32.mrf.mxu0  ;;  %v665_v2 = vpop.f32.mrf.mxu1  ;;  %v883_v5 = vsel %vm812_vm12, %v598_v54, %v851_v58  ;;  %v899_v14 = vsel %vm828_vm15, %v662_v55, %v867_v63 }
  0xf0   : > { %v886_v3 = vsel %vm815_vm13, %v1445_v59, %v854_v61  ;;  %vm813_vm0 = vcmp.ge.f32.partialorder %v601_v1, 0.0  ;;  %v852_v4 = vmul.f32 %v1649_v22, %v601_v1  ;;  %vm829_vm1 = vcmp.ge.f32.partialorder %v665_v2, 0.0 }
  0xf1   : > { %v1330_v6 = vpack.c.bf16 %v886_v3, %v885_v57  ;;  %v902_v7 = vsel %vm831_vm14, %v1461_v60, %v870_v0  ;;  %v868_v8 = vmul.f32 %v1649_v22, %v665_v2  ;;  %v1448_v9 = vpop.f32.mrf.mxu0  ;;  %v1464_v10 = vpop.f32.mrf.mxu1 }
  0xf2   : > { %v1370_v11 = vpack.c.bf16 %v902_v7, %v901_v62  ;;  %v884_v12 = vsel %vm813_vm0, %v601_v1, %v852_v4  ;;  %vm818_vm2 = vcmp.ge.f32.partialorder %v1448_v9, 0.0  ;;  %v857_v13 = vmul.f32 %v1448_v9, %v1649_v22 }
  0xf3   : > { %1394 = vst [vmem:[%s1662_s8 + $0x18] sm:$0xff] %v1330_v6   ;;  %v1325_v15 = vpack.c.bf16 %v884_v12, %v883_v5  ;;  %v900_v16 = vsel %vm829_vm1, %v665_v2, %v868_v8  ;;  %v873_v17 = vmul.f32 %v1464_v10, %v1649_v22  ;;  %v614_v18 = vpop.f32.mrf.mxu0  ;;  %v678_v19 = vpop.f32.mrf.mxu1  ;;  %vm834_vm3 = vcmp.ge.f32.partialorder %v1464_v10, 0.0 }
  0xf4   : > { %1402 = vst [vmem:[%s1662_s8 + $0x58] sm:$0xff] %v1370_v11   ;;  %v1365_v20 = vpack.c.bf16 %v900_v16, %v899_v14  ;;  %v889_v21 = vsel %vm818_vm2, %v1448_v9, %v857_v13  ;;  %v855_v23 = vmul.f32 %v1649_v22, %v614_v18  ;;  %vm816_vm4 = vcmp.ge.f32.partialorder %v614_v18, 0.0 }
  0xf5   : > { %1393 = vst [vmem:[%s1662_s8 + $0x10] sm:$0xff] %v1325_v15   ;;  %v1449_v24 = vpop.f32.mrf.mxu0  ;;  %v1465_v25 = vpop.f32.mrf.mxu1  ;;  %v905_v27 = vsel %vm834_vm3, %v1464_v10, %v873_v17  ;;  %vm832_vm7 = vcmp.ge.f32.partialorder %v678_v19, 0.0  ;;  %v871_v28 = vmul.f32 %v1649_v22, %v678_v19 }
  0xf6   : > { %1401 = vst [vmem:[%s1662_s8 + $0x50] sm:$0xff] %v1365_v20   ;;  %vm819_vm5 = vcmp.ge.f32.partialorder %v1449_v24, 0.0  ;;  %v858_v26 = vmul.f32 %v1449_v24, %v1649_v22  ;;  %vm835_vm6 = vcmp.ge.f32.partialorder %v1465_v25, 0.0  ;;  %v874_v29 = vmul.f32 %v1465_v25, %v1649_v22 }
  0xf7   : > { %v617_v30 = vpop.f32.mrf.mxu0  ;;  %v681_v31 = vpop.f32.mrf.mxu1  ;;  %v887_v34 = vsel %vm816_vm4, %v614_v18, %v855_v23  ;;  %v903_v43 = vsel %vm832_vm7, %v678_v19, %v871_v28 }
  0xf8   : > { %v890_v32 = vsel %vm819_vm5, %v1449_v24, %v858_v26  ;;  %vm817_vm8 = vcmp.ge.f32.partialorder %v617_v30, 0.0  ;;  %v856_v33 = vmul.f32 %v1649_v22, %v617_v30  ;;  %vm833_vm9 = vcmp.ge.f32.partialorder %v681_v31, 0.0 }
  0xf9   : > { %v1340_v35 = vpack.c.bf16 %v890_v32, %v889_v21  ;;  %v906_v36 = vsel %vm835_vm6, %v1465_v25, %v874_v29  ;;  %v872_v37 = vmul.f32 %v1649_v22, %v681_v31  ;;  %v1452_v38 = vpop.f32.mrf.mxu0  ;;  %v1468_v39 = vpop.f32.mrf.mxu1 }
  0xfa   : > { %v1380_v40 = vpack.c.bf16 %v906_v36, %v905_v27  ;;  %v888_v41 = vsel %vm817_vm8, %v617_v30, %v856_v33  ;;  %vm822_vm10 = vcmp.ge.f32.partialorder %v1452_v38, 0.0  ;;  %v861_v42 = vmul.f32 %v1452_v38, %v1649_v22 }
  0xfb   : > { %1396 = vst [vmem:[%s1662_s8 + $0x28] sm:$0xff] %v1340_v35   ;;  %v1335_v44 = vpack.c.bf16 %v888_v41, %v887_v34  ;;  %v904_v45 = vsel %vm833_vm9, %v681_v31, %v872_v37  ;;  %v630_v46 = vpop.f32.mrf.mxu0  ;;  %v694_v47 = vpop.f32.mrf.mxu1  ;;  %vm838_vm11 = vcmp.ge.f32.partialorder %v1468_v39, 0.0  ;;  %v877_v50 = vmul.f32 %v1468_v39, %v1649_v22 }
  0xfc   : > { %1404 = vst [vmem:[%s1662_s8 + $0x68] sm:$0xff] %v1380_v40   ;;  %v1375_v48 = vpack.c.bf16 %v904_v45, %v903_v43  ;;  %v893_v49 = vsel %vm822_vm10, %v1452_v38, %v861_v42  ;;  %v859_v53 = vmul.f32 %v1649_v22, %v630_v46  ;;  %vm820_vm14 = vcmp.ge.f32.partialorder %v630_v46, 0.0 }
  0xfd   : > { %1395 = vst [vmem:[%s1662_s8 + $0x20] sm:$0xff] %v1335_v44   ;;  %v1453_v51 = vpop.f32.mrf.mxu0  ;;  %v1469_v52 = vpop.f32.mrf.mxu1  ;;  %vm836_vm15 = vcmp.ge.f32.partialorder %v694_v47, 0.0  ;;  %v875_v55 = vmul.f32 %v1649_v22, %v694_v47  ;;  %v909_v61 = vsel %vm838_vm11, %v1468_v39, %v877_v50 }
  0xfe   : > { %1403 = vst [vmem:[%s1662_s8 + $0x60] sm:$0xff] %v1375_v48   ;;  %vm823_vm12 = vcmp.ge.f32.partialorder %v1453_v51, 0.0  ;;  %v862_v54 = vmul.f32 %v1453_v51, %v1649_v22  ;;  %vm839_vm13 = vcmp.ge.f32.partialorder %v1469_v52, 0.0  ;;  %v878_v56 = vmul.f32 %v1469_v52, %v1649_v22 }
  0xff   : > { %v633_v57 = vpop.f32.mrf.mxu0  ;;  %v697_v58 = vpop.f32.mrf.mxu1  ;;  %v891_v1 = vsel %vm820_vm14, %v630_v46, %v859_v53  ;;  %v907_v4 = vsel %vm836_vm15, %v694_v47, %v875_v55 }
 0x100   : > { %v894_v59 = vsel %vm823_vm12, %v1453_v51, %v862_v54  ;;  %vm821_vm0 = vcmp.ge.f32.partialorder %v633_v57, 0.0  ;;  %v860_v60 = vmul.f32 %v1649_v22, %v633_v57  ;;  %vm837_vm1 = vcmp.ge.f32.partialorder %v697_v58, 0.0 }
 0x101   : > { %v1350_v62 = vpack.c.bf16 %v894_v59, %v893_v49  ;;  %v910_v63 = vsel %vm839_vm13, %v1469_v52, %v878_v56  ;;  %v876_v0 = vmul.f32 %v1649_v22, %v697_v58 }
 0x102   : > { %v1390_v2 = vpack.c.bf16 %v910_v63, %v909_v61  ;;  %v892_v3 = vsel %vm821_vm0, %v633_v57, %v860_v60 }
 0x103   : > { %1398 = vst [vmem:[%s1662_s8 + $0x38] sm:$0xff] %v1350_v62   ;;  %v1345_v5 = vpack.c.bf16 %v892_v3, %v891_v1  ;;  %v908_v6 = vsel %vm837_vm1, %v697_v58, %v876_v0 }
 0x104   : > { %1406 = vst [vmem:[%s1662_s8 + $0x78] sm:$0xff] %v1390_v2   ;;  %v1385_v7 = vpack.c.bf16 %v908_v6, %v907_v4 }
 0x105   : > { %1397 = vst [vmem:[%s1662_s8 + $0x30] sm:$0xff] %v1345_v5  }
 0x106   : > { %1405 = vst [vmem:[%s1662_s8 + $0x70] sm:$0xff] %v1385_v7  }
 0x107 PF: > { %s13_s14 = sadd.s32 1, %s1549_s14   ;;  %s1724_s12 = smov %s1545_s13 }
 0x108   : > { %p10_p5 = scmp.ge.s32.totalorder %s13_s14, 4   ;;  %s1725_s13 = smov %s1727_s15 }
 0x10a   :  { %12 = sbr.rel (!%p10_p5) target bundleno = 2 (0x2), region = 76 }

// kernel: _lambda_.77
= control target key start
LH: loop header
LB: loop body
LE: loop exit
PB: predicated region body
PF: predicated region fallthrough
CT: control target
= control target key end

     0   :  { %s759_s12 = smov 0   ;;  %s761_s13 = smov 0   ;;  %s798_s0 = inlined_call_operand.vmem [shape: bf16[1,128,8], index: 0, kind: input, shape index: {}]   ;;  %s799_s1 = inlined_call_operand.vmem [shape: bf16[1,8,128], index: 1, kind: input, shape index: {}]   ;;  %s800_s2 = inlined_call_operand.vmem [shape: f32[1,1,128], index: 2, kind: input, shape index: {}]   ;;  %s801_s3 = inlined_call_operand.vmem [shape: bf16[1,128,128], index: 3, kind: output, shape index: {}]  }
   0x1   :  { %s763_s14 = smov 0  }
   0x2 LB: > { %s28_s15 = sadd.s32 1, %s733_s13  ;;  %p613_p0 = scmp.ge.s32.totalorder %s737_s14, 1  ;;  %s737_s14 = sphi %s763_s14, %s13_s14   ;;  %s733_s13 = sphi %s761_s13, %s803_s13   ;;  %s729_s12 = sphi %s759_s12, %s802_s12  }
   0x3   : > { %p30_p1 = scmp.ge.s32.totalorder %s28_s15, 2  ;;  %p192_p2 = scmp.lt.s32.totalorder %s737_s14, 3 }
   0x5   : > { %s805_s15 = smov (%p30_p1, %s28_s15), 0  ;;  %p193_p3 = pnand %p613_p0, %p192_p2 }
   0x6   : > { %s614_s18 = sshll.u32 (!%p193_p3), %s729_s12, 3 }
   0x7   : > { %196 = sbr.rel (%p193_p3) target bundleno = 221 (0xdd), region = 32  ;;  %p240_p4 = scmp.lt.s32.totalorder (!%p193_p3), %s614_s18, 15 }
   0xc   : > { %v299_v0 = vld [vmem:[%s799_s1] sm:$0xf]  ;;  %vm333_vm0 = vcmask 1043456   ;;  %s807_s18 = smov (!%p240_p4, %s614_s18), 15  ;;  %vm320_vm1 = vcmask 64512  }
   0xd   : > { %685 = vmatprep.subr.msk.bf16.mxu0 %vm333_vm0, %v299_v0  ;;  %686 = vmatprep.subr.msk.bf16.mxu1 %vm333_vm0, %v299_v0  ;;  %v335_v1 = vsel %vm333_vm0, %v299_v0, 0  ;;  %s615_s19 = sshll.u32 %s807_s18, 2  ;;  %v626_v8 = vld [vmem:[%s800_s2] ss:$0 sm:$0xff] }
   0xe   : > { %674 = vmatpush3.bf16.msra.mxu0 %v335_v1  ;;  %684 = vmatpush3.bf16.msra.mxu1 %v335_v1  ;;  %s248_s22 = scalar_lea.vmem %s798_s0, %s615_s19  ;;  %s268_s27 = scalar_lea.vmem %s801_s3, %s615_s19 }
   0xf   : > { %v711_v2 = vld [vmem:[%s248_s22] sm:$0xff]   ;;  %v712_v3 = vld [vmem:[%s248_s22 + $0x10] sm:$0xff]   ;;  %v713_v4 = vld [vmem:[%s248_s22 + $0x8] sm:$0xff]  }
  0x10   : > { %675 = vmatprep.mubr.msk.bf16.mxu0 %vm320_vm1, %v711_v2  ;;  %679 = vmatprep.mubr.msk.bf16.mxu1 %vm320_vm1, %v712_v3  ;;  %v714_v5 = vld [vmem:[%s248_s22 + $0x18] sm:$0xff]  }
  0x11   : > { %676 = vmatmul.mubr.msk.bf16.vlgmr.msra.gmra.mxu0 %vm320_vm1, %v713_v4  ;;  %680 = vmatmul.mubr.msk.bf16.vlgmr.msra.gmra.mxu1 %vm320_vm1, %v714_v5 }
  0xd1   : > { %v677_v6 = vpop.f32.mrf.mxu0  ;;  %v681_v7 = vpop.f32.mrf.mxu1 }
  0xd2   : > { %v438_v12 = vadd.f32 %v677_v6, %v626_v8  ;;  %v442_v15 = vadd.f32 %v681_v7, %v626_v8 }
  0xd3   : > { %v371_v9 = vpop.f32.mrf.mxu0  ;;  %v387_v10 = vpop.f32.mrf.mxu1 }
  0xd4   : > { %v436_v18 = vadd.f32 %v626_v8, %v371_v9  ;;  %v440_v22 = vadd.f32 %v626_v8, %v387_v10 }
  0xd5   : > { %v678_v11 = vpop.f32.mrf.mxu0  ;;  %v682_v14 = vpop.f32.mrf.mxu1 }
  0xd6   : > { %v439_v13 = vadd.f32 %v678_v11, %v626_v8  ;;  %v443_v16 = vadd.f32 %v682_v14, %v626_v8 }
  0xd7   : > { %v374_v17 = vpop.f32.mrf.mxu0  ;;  %v390_v21 = vpop.f32.mrf.mxu1 }
  0xd8   : > { %v653_v19 = vpack.c.bf16 %v439_v13, %v438_v12  ;;  %v437_v20 = vadd.f32 %v626_v8, %v374_v17  ;;  %v663_v23 = vpack.c.bf16 %v443_v16, %v442_v15  ;;  %v441_v24 = vadd.f32 %v626_v8, %v390_v21 }
  0xda   : > { %665 = vst [vmem:[%s268_s27 + $0x8] sm:$0xff] %v653_v19   ;;  %v648_v25 = vpack.c.bf16 %v437_v20, %v436_v18  ;;  %667 = vst [vmem:[%s268_s27 + $0x18] sm:$0xff] %v663_v23   ;;  %v658_v26 = vpack.c.bf16 %v441_v24, %v440_v22 }
  0xdc   : > { %649 = vst [vmem:[%s268_s27] sm:$0xff] %v648_v25   ;;  %666 = vst [vmem:[%s268_s27 + $0x10] sm:$0xff] %v658_v26  }
  0xdd PF: > { %s13_s14 = sadd.s32 1, %s737_s14   ;;  %s802_s12 = smov %s733_s13 }
  0xde   : > { %p10_p5 = scmp.ge.s32.totalorder %s13_s14, 4   ;;  %s803_s13 = smov %s805_s15 }
  0xe0   :  { %12 = sbr.rel (!%p10_p5) target bundleno = 2 (0x2), region = 76 }

// kernel: _lambda_.79
= control target key start
LH: loop header
LB: loop body
LE: loop exit
PB: predicated region body
PF: predicated region fallthrough
CT: control target
= control target key end

     0   :  { %s1028_s15 = smov 0   ;;  %s1030_s16 = smov 0   ;;  %s1112_s0 = inlined_call_operand.vmem [shape: bf16[1,128,144], index: 0, kind: input, shape index: {}]   ;;  %s1113_s1 = inlined_call_operand.vmem [shape: bf16[1,144,128], index: 1, kind: input, shape index: {}]   ;;  %s1114_s2 = inlined_call_operand.vmem [shape: f32[1,1,128], index: 2, kind: input, shape index: {}]   ;;  %s1115_s3 = inlined_call_operand.vmem [shape: bf16[1,128,128], index: 3, kind: input, shape index: {}]   ;;  %s1116_s4 = inlined_call_operand.vmem [shape: bf16[1,128,128], index: 4, kind: output, shape index: {}]  }
   0x1   :  { %s1032_s17 = smov 0  }
   0x2 LB: > { %s29_s18 = sadd.s32 1, %s996_s16  ;;  %p823_p0 = scmp.ge.s32.totalorder %s1000_s17, 1  ;;  %s1000_s17 = sphi %s1032_s17, %s14_s17   ;;  %s996_s16 = sphi %s1030_s16, %s1118_s16   ;;  %s992_s15 = sphi %s1028_s15, %s1117_s15  }
   0x3   : > { %p31_p1 = scmp.ge.s32.totalorder %s29_s18, 2  ;;  %p240_p2 = scmp.lt.s32.totalorder %s1000_s17, 3 }
   0x5   : > { %s1120_s18 = smov (%p31_p1, %s29_s18), 0  ;;  %p241_p3 = pnand %p823_p0, %p240_p2 }
   0x6   : > { %s824_s21 = sshll.u32 (!%p241_p3), %s992_s15, 3 }
   0x7   : > { %244 = sbr.rel (%p241_p3) target bundleno = 261 (0x105), region = 36  ;;  %p304_p4 = scmp.lt.s32.totalorder (!%p241_p3), %s824_s21, 15 }
   0xc   : > { %v957_v0 = vld [vmem:[%s1113_s1 + $0x38] sm:$0xff]   ;;  %v1002_v1 = vmov 0   ;;  %v958_v2 = vld [vmem:[%s1113_s1 + $0x30] sm:$0xff]   ;;  %s1122_s21 = smov (!%p304_p4, %s824_s21), 15  ;;  %v959_v3 = vld [vmem:[%s1113_s1 + $0x28] sm:$0xff]   ;;  %vm486_vm0 = vcmask 130048  }
   0xd   : > { %499 = vmatprep.subr.bf16.mxu0 %v1002_v1  ;;  %914 = vmatprep.subr.bf16.mxu1 %v1002_v1  ;;  %s863_s26 = sshll.u32 %s1122_s21, 3  ;;  %v960_v4 = vld [vmem:[%s1113_s1 + $0x20] sm:$0xff]   ;;  %v961_v7 = vld [vmem:[%s1113_s1 + $0x18] sm:$0xff]   ;;  %v962_v8 = vld [vmem:[%s1113_s1 + $0x10] sm:$0xff]   ;;  %s828_s19 = sshll.u32 %s1122_s21, 2 }
   0xe   : > { %500 = vmatpush1.bf16.msra.mxu0 %v957_v0  ;;  %923 = vmatpush1.bf16.msra.mxu1 %v957_v0  ;;  %s1061_s29 = scalar_lea.vmem %s1112_s0, %s863_s26  ;;  %v963_v9 = vld [vmem:[%s1113_s1 + $0x8] sm:$0xff]   ;;  %v964_v10 = vld [vmem:[%s1113_s1] sm:$0xff]   ;;  %s337_s23 = scalar_lea.vmem %s1115_s3, %s828_s19 }
   0xf   : > { %501 = vmatprep.subr.bf16.mxu0 %v1002_v1  ;;  %915 = vmatprep.subr.bf16.mxu1 %v1002_v1  ;;  %v968_v5 = vld [vmem:[%s1061_s29 + $0x4] ss:$8 sps:$4 sm:$0xff]   ;;  %v966_v12 = vld [vmem:[%s1061_s29] ss:$8 sps:$4 sm:$0xff]   ;;  %v972_v14 = vld [vmem:[%s1061_s29 + $0x14] ss:$8 sps:$4 sm:$0xff]   ;;  %s347_s27 = scalar_lea.vmem %s1116_s4, %s828_s19 }
  0x10   : > { %v971_v6 = vld [vmem:[%s1061_s29 + $0x24] ss:$8 sps:$4 sm:$0xff]   ;;  %848 = vmatprep.mubr.msk.bf16.mxu0 %vm486_vm0, %v968_v5  ;;  %v969_v13 = vld [vmem:[%s1061_s29 + $0x20] ss:$8 sps:$4 sm:$0xff]   ;;  %v974_v15 = vld [vmem:[%s1061_s29 + $0x34] ss:$8 sps:$4 sm:$0xff]  }
  0x11   : > { %850 = vmatprep.mubr.msk.bf16.mxu1 %vm486_vm0, %v971_v6  ;;  %v965_v11 = vld [vmem:[%s1113_s1 + $0x40] sm:$0xff]   ;;  %v976_v16 = vld [vmem:[%s1061_s29 + $0x10] ss:$8 sps:$4 sm:$0xff]   ;;  %v908_v41 = vld [vmem:[%s337_s23 + $0x8] sm:$0xff]  }
  0x12   : > { %502 = vmatpush1.bf16.msra.mxu0 %v958_v2  ;;  %924 = vmatpush1.bf16.msra.mxu1 %v958_v2  ;;  %v977_v17 = vld [vmem:[%s1061_s29 + $0x30] ss:$8 sps:$4 sm:$0xff]   ;;  %v873_v18 = vld [vmem:[%s337_s23] sm:$0xff]   ;;  %v878_v47 = vunpack.c.l.bf16 %v908_v41  ;;  %v879_v53 = vunpack.c.h.bf16 %v908_v41 }
  0x13   : > { %503 = vmatprep.subr.bf16.mxu0 %v1002_v1  ;;  %916 = vmatprep.subr.bf16.mxu1 %v1002_v1  ;;  %v909_v19 = vld [vmem:[%s337_s23 + $0x10] sm:$0xff]   ;;  %v852_v21 = vld [vmem:[%s1114_s2] ss:$0 sm:$0xff]  ;;  %v874_v23 = vunpack.c.l.bf16 %v873_v18  ;;  %v875_v29 = vunpack.c.h.bf16 %v873_v18  ;;  %v910_v42 = vld [vmem:[%s337_s23 + $0x18] sm:$0xff]  }
  0x14   : > { %v882_v24 = vunpack.c.l.bf16 %v909_v19  ;;  %v883_v30 = vunpack.c.h.bf16 %v909_v19  ;;  %v886_v48 = vunpack.c.l.bf16 %v910_v42  ;;  %v887_v54 = vunpack.c.h.bf16 %v910_v42 }
  0x16   : > { %504 = vmatpush1.bf16.msra.mxu0 %v959_v3  ;;  %925 = vmatpush1.bf16.msra.mxu1 %v959_v3 }
  0x17   : > { %505 = vmatprep.subr.bf16.mxu0 %v1002_v1  ;;  %917 = vmatprep.subr.bf16.mxu1 %v1002_v1 }
  0x1a   : > { %506 = vmatpush1.bf16.msra.mxu0 %v960_v4  ;;  %926 = vmatpush1.bf16.msra.mxu1 %v960_v4 }
  0x1b   : > { %507 = vmatprep.subr.bf16.mxu0 %v1002_v1  ;;  %918 = vmatprep.subr.bf16.mxu1 %v1002_v1 }
  0x1e   : > { %508 = vmatpush1.bf16.msra.mxu0 %v961_v7  ;;  %927 = vmatpush1.bf16.msra.mxu1 %v961_v7 }
  0x1f   : > { %509 = vmatprep.subr.bf16.mxu0 %v1002_v1  ;;  %919 = vmatprep.subr.bf16.mxu1 %v1002_v1 }
  0x22   : > { %510 = vmatpush1.bf16.msra.mxu0 %v962_v8  ;;  %928 = vmatpush1.bf16.msra.mxu1 %v962_v8 }
  0x23   : > { %511 = vmatprep.subr.bf16.mxu0 %v1002_v1  ;;  %920 = vmatprep.subr.bf16.mxu1 %v1002_v1 }
  0x26   : > { %512 = vmatpush1.bf16.msra.mxu0 %v963_v9  ;;  %929 = vmatpush1.bf16.msra.mxu1 %v963_v9 }
  0x27   : > { %513 = vmatprep.subr.bf16.mxu0 %v1002_v1  ;;  %921 = vmatprep.subr.bf16.mxu1 %v1002_v1 }
  0x2a   : > { %514 = vmatpush1.bf16.msra.mxu0 %v964_v10  ;;  %930 = vmatpush1.bf16.msra.mxu1 %v964_v10 }
  0x2b   : > { %529 = vmatprep.subr.bf16.mxu0 %v1002_v1  ;;  %922 = vmatprep.subr.bf16.mxu1 %v1002_v1 }
  0x2e   : > { %530 = vmatpush2.bf16.msra.mxu0 %v965_v11  ;;  %931 = vmatpush2.bf16.msra.mxu1 %v965_v11 }
  0x31   : > { %532 = vmatmul.mubr.bf16.vlgmr.msra.gmra.mxu0 %v966_v12  ;;  %548 = vmatmul.mubr.bf16.vlgmr.msra.gmra.mxu1 %v969_v13 }
  0x32   : > { %849 = vmatprep.mubr.msk.bf16.mxu0 %vm486_vm0, %v972_v14  ;;  %851 = vmatprep.mubr.msk.bf16.mxu1 %vm486_vm0, %v974_v15 }
  0x39   : > { %540 = vmatmul.mubr.bf16.gmra.mxu0 %v976_v16  ;;  %556 = vmatmul.mubr.bf16.gmra.mxu1 %v977_v17 }
  0xf1   : > { %v533_v20 = vpop.f32.mrf.mxu0  ;;  %v549_v22 = vpop.f32.mrf.mxu1 }
  0xf2   : > { %v598_v27 = vadd.f32 %v852_v21, %v533_v20  ;;  %v602_v28 = vadd.f32 %v852_v21, %v549_v22 }
  0xf3   : > { %v535_v25 = vpop.f32.mrf.mxu0  ;;  %v551_v26 = vpop.f32.mrf.mxu1 }
  0xf4   : > { %v622_v37 = vadd.f32 %v874_v23, %v598_v27  ;;  %v626_v38 = vadd.f32 %v882_v24, %v602_v28 }
  0xf5   : > { %v536_v31 = vpop.f32.mrf.mxu0  ;;  %v552_v32 = vpop.f32.mrf.mxu1 }
  0xf6   : > { %v599_v33 = vadd.f32 %v852_v21, %v536_v31  ;;  %v603_v34 = vadd.f32 %v852_v21, %v552_v32 }
  0xf7   : > { %v538_v35 = vpop.f32.mrf.mxu0  ;;  %v554_v36 = vpop.f32.mrf.mxu1 }
  0xf8   : > { %v623_v39 = vadd.f32 %v875_v29, %v599_v33  ;;  %v627_v40 = vadd.f32 %v883_v30, %v603_v34 }
  0xf9   : > { %v541_v43 = vpop.f32.mrf.mxu0  ;;  %v557_v44 = vpop.f32.mrf.mxu1 }
  0xfa   : > { %v891_v45 = vpack.c.bf16 %v623_v39, %v622_v37  ;;  %v901_v46 = vpack.c.bf16 %v627_v40, %v626_v38  ;;  %v600_v51 = vadd.f32 %v852_v21, %v541_v43  ;;  %v604_v52 = vadd.f32 %v852_v21, %v557_v44 }
  0xfb   : > { %v543_v49 = vpop.f32.mrf.mxu0  ;;  %v559_v50 = vpop.f32.mrf.mxu1 }
  0xfc   : > { %892 = vst [vmem:[%s347_s27] sm:$0xff] %v891_v45   ;;  %912 = vst [vmem:[%s347_s27 + $0x10] sm:$0xff] %v901_v46   ;;  %v624_v61 = vadd.f32 %v878_v47, %v600_v51  ;;  %v628_v62 = vadd.f32 %v886_v48, %v604_v52 }
  0xfd   : > { %v544_v55 = vpop.f32.mrf.mxu0  ;;  %v560_v56 = vpop.f32.mrf.mxu1 }
  0xfe   : > { %v601_v57 = vadd.f32 %v852_v21, %v544_v55  ;;  %v605_v58 = vadd.f32 %v852_v21, %v560_v56 }
  0xff   : > { %v546_v59 = vpop.f32.mrf.mxu0  ;;  %v562_v60 = vpop.f32.mrf.mxu1 }
 0x100   : > { %v625_v63 = vadd.f32 %v879_v53, %v601_v57  ;;  %v629_v0 = vadd.f32 %v887_v54, %v605_v58 }
 0x102   : > { %v896_v1 = vpack.c.bf16 %v625_v63, %v624_v61  ;;  %v906_v2 = vpack.c.bf16 %v629_v0, %v628_v62 }
 0x104   : > { %911 = vst [vmem:[%s347_s27 + $0x8] sm:$0xff] %v896_v1   ;;  %913 = vst [vmem:[%s347_s27 + $0x18] sm:$0xff] %v906_v2  }
 0x105 PF: > { %s14_s17 = sadd.s32 1, %s1000_s17   ;;  %s1117_s15 = smov %s996_s16 }
 0x106   : > { %p11_p5 = scmp.ge.s32.totalorder %s14_s17, 4   ;;  %s1118_s16 = smov %s1120_s18 }
 0x108   :  { %13 = sbr.rel (!%p11_p5) target bundleno = 2 (0x2), region = 83 }

// kernel: _lambda_.80
= control target key start
LH: loop header
LB: loop body
LE: loop exit
PB: predicated region body
PF: predicated region fallthrough
CT: control target
= control target key end

     0   :  { %s913_s12 = smov 0   ;;  %s915_s13 = smov 0   ;;  %s994_s0 = inlined_call_operand.vmem [shape: bf16[1,128,144], index: 0, kind: input, shape index: {}]   ;;  %s995_s1 = inlined_call_operand.vmem [shape: bf16[1,144,128], index: 1, kind: input, shape index: {}]   ;;  %s996_s2 = inlined_call_operand.vmem [shape: f32[1,1,128], index: 2, kind: input, shape index: {}]   ;;  %s997_s3 = inlined_call_operand.vmem [shape: bf16[1,128,128], index: 3, kind: output, shape index: {}]  }
   0x1   :  { %s917_s14 = smov 0  }
   0x2 LB: > { %s28_s15 = sadd.s32 1, %s886_s13  ;;  %p734_p0 = scmp.ge.s32.totalorder %s890_s14, 1  ;;  %s890_s14 = sphi %s917_s14, %s13_s14   ;;  %s886_s13 = sphi %s915_s13, %s999_s13   ;;  %s882_s12 = sphi %s913_s12, %s998_s12  }
   0x3   : > { %p30_p1 = scmp.ge.s32.totalorder %s28_s15, 2  ;;  %p198_p2 = scmp.lt.s32.totalorder %s890_s14, 3 }
   0x5   : > { %s1001_s15 = smov (%p30_p1, %s28_s15), 0  ;;  %p199_p3 = pnand %p734_p0, %p198_p2 }
   0x6   : > { %s735_s18 = sshll.u32 (!%p199_p3), %s882_s12, 3 }
   0x7   : > { %202 = sbr.rel (%p199_p3) target bundleno = 260 (0x104), region = 32  ;;  %p251_p4 = scmp.lt.s32.totalorder (!%p199_p3), %s735_s18, 15 }
   0xc   : > { %v847_v0 = vld [vmem:[%s995_s1 + $0x38] sm:$0xff]   ;;  %v892_v1 = vmov 0   ;;  %v848_v2 = vld [vmem:[%s995_s1 + $0x30] sm:$0xff]   ;;  %s1003_s18 = smov (!%p251_p4, %s735_s18), 15  ;;  %v849_v3 = vld [vmem:[%s995_s1 + $0x28] sm:$0xff]   ;;  %vm423_vm0 = vcmask 130048  }
   0xd   : > { %436 = vmatprep.subr.bf16.mxu0 %v892_v1  ;;  %804 = vmatprep.subr.bf16.mxu1 %v892_v1  ;;  %s772_s23 = sshll.u32 %s1003_s18, 3  ;;  %v850_v4 = vld [vmem:[%s995_s1 + $0x20] sm:$0xff]   ;;  %v851_v7 = vld [vmem:[%s995_s1 + $0x18] sm:$0xff]   ;;  %v852_v8 = vld [vmem:[%s995_s1 + $0x10] sm:$0xff]   ;;  %s739_s17 = sshll.u32 %s1003_s18, 2 }
   0xe   : > { %437 = vmatpush1.bf16.msra.mxu0 %v847_v0  ;;  %813 = vmatpush1.bf16.msra.mxu1 %v847_v0  ;;  %s946_s26 = scalar_lea.vmem %s994_s0, %s772_s23  ;;  %v853_v9 = vld [vmem:[%s995_s1 + $0x8] sm:$0xff]   ;;  %v854_v10 = vld [vmem:[%s995_s1] sm:$0xff]   ;;  %s284_s21 = scalar_lea.vmem %s997_s3, %s739_s17 }
   0xf   : > { %438 = vmatprep.subr.bf16.mxu0 %v892_v1  ;;  %805 = vmatprep.subr.bf16.mxu1 %v892_v1  ;;  %v858_v5 = vld [vmem:[%s946_s26 + $0x4] ss:$8 sps:$4 sm:$0xff]   ;;  %v856_v12 = vld [vmem:[%s946_s26] ss:$8 sps:$4 sm:$0xff]   ;;  %v862_v14 = vld [vmem:[%s946_s26 + $0x14] ss:$8 sps:$4 sm:$0xff]  }
  0x10   : > { %v861_v6 = vld [vmem:[%s946_s26 + $0x24] ss:$8 sps:$4 sm:$0xff]   ;;  %757 = vmatprep.mubr.msk.bf16.mxu0 %vm423_vm0, %v858_v5  ;;  %v859_v13 = vld [vmem:[%s946_s26 + $0x20] ss:$8 sps:$4 sm:$0xff]   ;;  %v864_v15 = vld [vmem:[%s946_s26 + $0x34] ss:$8 sps:$4 sm:$0xff]  }
  0x11   : > { %759 = vmatprep.mubr.msk.bf16.mxu1 %vm423_vm0, %v861_v6  ;;  %v855_v11 = vld [vmem:[%s995_s1 + $0x40] sm:$0xff]   ;;  %v866_v16 = vld [vmem:[%s946_s26 + $0x10] ss:$8 sps:$4 sm:$0xff]  }
  0x12   : > { %439 = vmatpush1.bf16.msra.mxu0 %v848_v2  ;;  %814 = vmatpush1.bf16.msra.mxu1 %v848_v2  ;;  %v867_v17 = vld [vmem:[%s946_s26 + $0x30] ss:$8 sps:$4 sm:$0xff]   ;;  %v761_v19 = vld [vmem:[%s996_s2] ss:$0 sm:$0xff] }
  0x13   : > { %440 = vmatprep.subr.bf16.mxu0 %v892_v1  ;;  %806 = vmatprep.subr.bf16.mxu1 %v892_v1 }
  0x16   : > { %441 = vmatpush1.bf16.msra.mxu0 %v849_v3  ;;  %815 = vmatpush1.bf16.msra.mxu1 %v849_v3 }
  0x17   : > { %442 = vmatprep.subr.bf16.mxu0 %v892_v1  ;;  %807 = vmatprep.subr.bf16.mxu1 %v892_v1 }
  0x1a   : > { %443 = vmatpush1.bf16.msra.mxu0 %v850_v4  ;;  %816 = vmatpush1.bf16.msra.mxu1 %v850_v4 }
  0x1b   : > { %444 = vmatprep.subr.bf16.mxu0 %v892_v1  ;;  %808 = vmatprep.subr.bf16.mxu1 %v892_v1 }
  0x1e   : > { %445 = vmatpush1.bf16.msra.mxu0 %v851_v7  ;;  %817 = vmatpush1.bf16.msra.mxu1 %v851_v7 }
  0x1f   : > { %446 = vmatprep.subr.bf16.mxu0 %v892_v1  ;;  %809 = vmatprep.subr.bf16.mxu1 %v892_v1 }
  0x22   : > { %447 = vmatpush1.bf16.msra.mxu0 %v852_v8  ;;  %818 = vmatpush1.bf16.msra.mxu1 %v852_v8 }
  0x23   : > { %448 = vmatprep.subr.bf16.mxu0 %v892_v1  ;;  %810 = vmatprep.subr.bf16.mxu1 %v892_v1 }
  0x26   : > { %449 = vmatpush1.bf16.msra.mxu0 %v853_v9  ;;  %819 = vmatpush1.bf16.msra.mxu1 %v853_v9 }
  0x27   : > { %450 = vmatprep.subr.bf16.mxu0 %v892_v1  ;;  %811 = vmatprep.subr.bf16.mxu1 %v892_v1 }
  0x2a   : > { %451 = vmatpush1.bf16.msra.mxu0 %v854_v10  ;;  %820 = vmatpush1.bf16.msra.mxu1 %v854_v10 }
  0x2b   : > { %466 = vmatprep.subr.bf16.mxu0 %v892_v1  ;;  %812 = vmatprep.subr.bf16.mxu1 %v892_v1 }
  0x2e   : > { %467 = vmatpush2.bf16.msra.mxu0 %v855_v11  ;;  %821 = vmatpush2.bf16.msra.mxu1 %v855_v11 }
  0x31   : > { %469 = vmatmul.mubr.bf16.vlgmr.msra.gmra.mxu0 %v856_v12  ;;  %485 = vmatmul.mubr.bf16.vlgmr.msra.gmra.mxu1 %v859_v13 }
  0x32   : > { %758 = vmatprep.mubr.msk.bf16.mxu0 %vm423_vm0, %v862_v14  ;;  %760 = vmatprep.mubr.msk.bf16.mxu1 %vm423_vm0, %v864_v15 }
  0x39   : > { %477 = vmatmul.mubr.bf16.gmra.mxu0 %v866_v16  ;;  %493 = vmatmul.mubr.bf16.gmra.mxu1 %v867_v17 }
  0xf1   : > { %v470_v18 = vpop.f32.mrf.mxu0  ;;  %v486_v20 = vpop.f32.mrf.mxu1 }
  0xf2   : > { %v543_v23 = vmul.f32 %v761_v19, %v470_v18  ;;  %v547_v24 = vmul.f32 %v761_v19, %v486_v20  ;;  %vm528_vm1 = vcmp.ge.f32.partialorder %v470_v18, 0.0  ;;  %vm532_vm2 = vcmp.ge.f32.partialorder %v486_v20, 0.0 }
  0xf3   : > { %v472_v21 = vpop.f32.mrf.mxu0  ;;  %v488_v22 = vpop.f32.mrf.mxu1 }
  0xf4   : > { %v551_v31 = vsel %vm528_vm1, %v470_v18, %v543_v23  ;;  %v555_v32 = vsel %vm532_vm2, %v486_v20, %v547_v24 }
  0xf5   : > { %v473_v25 = vpop.f32.mrf.mxu0  ;;  %v489_v26 = vpop.f32.mrf.mxu1 }
  0xf6   : > { %vm529_vm3 = vcmp.ge.f32.partialorder %v473_v25, 0.0  ;;  %v544_v27 = vmul.f32 %v761_v19, %v473_v25  ;;  %vm533_vm4 = vcmp.ge.f32.partialorder %v489_v26, 0.0  ;;  %v548_v28 = vmul.f32 %v761_v19, %v489_v26 }
  0xf7   : > { %v475_v29 = vpop.f32.mrf.mxu0  ;;  %v491_v30 = vpop.f32.mrf.mxu1 }
  0xf8   : > { %v552_v33 = vsel %vm529_vm3, %v473_v25, %v544_v27  ;;  %v556_v34 = vsel %vm533_vm4, %v489_v26, %v548_v28 }
  0xf9   : > { %v784_v35 = vpack.c.bf16 %v552_v33, %v551_v31  ;;  %v794_v36 = vpack.c.bf16 %v556_v34, %v555_v32  ;;  %v478_v37 = vpop.f32.mrf.mxu0  ;;  %v494_v38 = vpop.f32.mrf.mxu1 }
  0xfa   : > { %v545_v41 = vmul.f32 %v761_v19, %v478_v37  ;;  %v549_v42 = vmul.f32 %v761_v19, %v494_v38  ;;  %vm530_vm5 = vcmp.ge.f32.partialorder %v478_v37, 0.0  ;;  %vm534_vm6 = vcmp.ge.f32.partialorder %v494_v38, 0.0 }
  0xfb   : > { %785 = vst [vmem:[%s284_s21] sm:$0xff] %v784_v35   ;;  %802 = vst [vmem:[%s284_s21 + $0x10] sm:$0xff] %v794_v36   ;;  %v480_v39 = vpop.f32.mrf.mxu0  ;;  %v496_v40 = vpop.f32.mrf.mxu1 }
  0xfc   : > { %v553_v49 = vsel %vm530_vm5, %v478_v37, %v545_v41  ;;  %v557_v50 = vsel %vm534_vm6, %v494_v38, %v549_v42 }
  0xfd   : > { %v481_v43 = vpop.f32.mrf.mxu0  ;;  %v497_v44 = vpop.f32.mrf.mxu1 }
  0xfe   : > { %vm531_vm7 = vcmp.ge.f32.partialorder %v481_v43, 0.0  ;;  %v546_v45 = vmul.f32 %v761_v19, %v481_v43  ;;  %vm535_vm8 = vcmp.ge.f32.partialorder %v497_v44, 0.0  ;;  %v550_v46 = vmul.f32 %v761_v19, %v497_v44 }
  0xff   : > { %v483_v47 = vpop.f32.mrf.mxu0  ;;  %v499_v48 = vpop.f32.mrf.mxu1 }
 0x100   : > { %v554_v51 = vsel %vm531_vm7, %v481_v43, %v546_v45  ;;  %v558_v52 = vsel %vm535_vm8, %v497_v44, %v550_v46 }
 0x101   : > { %v789_v53 = vpack.c.bf16 %v554_v51, %v553_v49  ;;  %v799_v54 = vpack.c.bf16 %v558_v52, %v557_v50 }
 0x103   : > { %801 = vst [vmem:[%s284_s21 + $0x8] sm:$0xff] %v789_v53   ;;  %803 = vst [vmem:[%s284_s21 + $0x18] sm:$0xff] %v799_v54  }
 0x104 PF: > { %s13_s14 = sadd.s32 1, %s890_s14   ;;  %s998_s12 = smov %s886_s13 }
 0x105   : > { %p10_p5 = scmp.ge.s32.totalorder %s13_s14, 4   ;;  %s999_s13 = smov %s1001_s15 }
 0x107   :  { %12 = sbr.rel (!%p10_p5) target bundleno = 2 (0x2), region = 76 }

// kernel: _lambda_.86
= control target key start
LH: loop header
LB: loop body
LE: loop exit
PB: predicated region body
PF: predicated region fallthrough
CT: control target
= control target key end

     0   :  { %s609_s12 = smov 0   ;;  %s611_s13 = smov 0   ;;  %s648_s0 = inlined_call_operand.vmem [shape: bf16[1,32,16], index: 0, kind: input, shape index: {}]   ;;  %s649_s1 = inlined_call_operand.vmem [shape: bf16[1,16,128], index: 1, kind: input, shape index: {}]   ;;  %s650_s2 = inlined_call_operand.vmem [shape: f32[1,1,128], index: 2, kind: input, shape index: {}]   ;;  %s651_s3 = inlined_call_operand.vmem [shape: bf16[1,32,128], index: 3, kind: output, shape index: {}]  }
   0x1   :  { %s613_s14 = smov 0  }
   0x2 LB: > { %s28_s15 = sadd.s32 1, %s581_s13  ;;  %p507_p0 = scmp.ge.s32.totalorder %s585_s14, 1  ;;  %s585_s14 = sphi %s613_s14, %s13_s14   ;;  %s581_s13 = sphi %s611_s13, %s653_s13   ;;  %s577_s12 = sphi %s609_s12, %s652_s12  }
   0x3   : > { %p30_p1 = scmp.ge.s32.totalorder %s28_s15, 2  ;;  %p195_p2 = scmp.lt.s32.totalorder %s585_s14, 3 }
   0x5   : > { %s655_s15 = smov (%p30_p1, %s28_s15), 0  ;;  %p196_p3 = pnand %p507_p0, %p195_p2 }
   0x6   : > { %s508_s18 = sshll.u32 (!%p196_p3), %s577_s12, 1 }
   0x7   : > { %199 = sbr.rel (%p196_p3) target bundleno = 219 (0xdb), region = 32  ;;  %p245_p4 = scmp.lt.s32.totalorder (!%p196_p3), %s508_s18, 3 }
   0xc   : > { %v561_v0 = vld [vmem:[%s649_s1] sm:$0xff]   ;;  %v587_v1 = vmov 0.0   ;;  %vm588_vm0 = vmmov 0   ;;  %s657_s18 = smov (!%p245_p4, %s508_s18), 3  ;;  %vm302_vm1 = vcmask 130048  }
   0xd   : > { %529 = vmatprep.subr.bf16.mxu0 %v587_v1  ;;  %531 = vmatprep.mubr.msk.bf16.mxu0 %vm588_vm0, %v587_v1  ;;  %s509_s19 = sshll.u32 %s657_s18, 2  ;;  %v515_v4 = vld [vmem:[%s650_s2] ss:$0 sm:$0xff] }
   0xe   : > { %530 = vmatpush3.bf16.msra.mxu0 %v561_v0  ;;  %s253_s22 = scalar_lea.vmem %s648_s0, %s509_s19  ;;  %s276_s27 = scalar_lea.vmem %s651_s3, %s509_s19 }
   0xf   : > { %v562_v2 = vld [vmem:[%s253_s22] sm:$0xff]  }
  0x11   : > { %532 = vmatmul.mubr.msk.bf16.vlgmr.msra.gmra.mxu0 %vm302_vm1, %v562_v2 }
  0xd1   : > { %v340_v3 = vpop.f32.mrf.mxu0 }
  0xd2   : > { %v363_v7 = vadd.f32 %v515_v4, %v340_v3 }
  0xd3   : > { %v533_v5 = vpop.f32.mrf.mxu0 }
  0xd5   : > { %v343_v6 = vpop.f32.mrf.mxu0 }
  0xd6   : > { %v364_v8 = vadd.f32 %v515_v4, %v343_v6 }
  0xd7   : > { %v534_v9 = vpop.f32.mrf.mxu0 }
  0xd8   : > { %v525_v10 = vpack.c.bf16 %v364_v8, %v363_v7 }
  0xda   : > { %526 = vst [vmem:[%s276_s27] sm:$0xff] %v525_v10  }
  0xdb PF: > { %s13_s14 = sadd.s32 1, %s585_s14   ;;  %s652_s12 = smov %s581_s13 }
  0xdc   : > { %p10_p5 = scmp.ge.s32.totalorder %s13_s14, 4   ;;  %s653_s13 = smov %s655_s15 }
  0xde   :  { %12 = sbr.rel (!%p10_p5) target bundleno = 2 (0x2), region = 76 }

// kernel: _lambda_.88
= control target key start
LH: loop header
LB: loop body
LE: loop exit
PB: predicated region body
PF: predicated region fallthrough
CT: control target
= control target key end

     0   :  { %s972_s15 = smov 0   ;;  %s974_s16 = smov 0   ;;  %s1069_s0 = inlined_call_operand.vmem [shape: bf16[1,32,288], index: 0, kind: input, shape index: {}]   ;;  %s1070_s1 = inlined_call_operand.vmem [shape: bf16[1,288,128], index: 1, kind: input, shape index: {}]   ;;  %s1071_s2 = inlined_call_operand.vmem [shape: f32[1,1,128], index: 2, kind: input, shape index: {}]   ;;  %s1072_s3 = inlined_call_operand.vmem [shape: bf16[1,32,128], index: 3, kind: input, shape index: {}]   ;;  %s1073_s4 = inlined_call_operand.vmem [shape: bf16[1,32,128], index: 4, kind: output, shape index: {}]  }
   0x1   :  { %s976_s17 = smov 0  }
   0x2 LB: > { %s29_s18 = sadd.s32 1, %s939_s16  ;;  %p794_p0 = scmp.ge.s32.totalorder %s943_s17, 1  ;;  %s943_s17 = sphi %s976_s17, %s14_s17   ;;  %s939_s16 = sphi %s974_s16, %s1075_s16   ;;  %s935_s15 = sphi %s972_s15, %s1074_s15  }
   0x3   : > { %p31_p1 = scmp.ge.s32.totalorder %s29_s18, 2  ;;  %p240_p2 = scmp.lt.s32.totalorder %s943_s17, 3 }
   0x5   : > { %s1077_s18 = smov (%p31_p1, %s29_s18), 0  ;;  %p241_p3 = pnand %p794_p0, %p240_p2 }
   0x6   : > { %s795_s25 = sshll.u32 (!%p241_p3), %s935_s15, 1 }
   0x7   : > { %244 = sbr.rel (%p241_p3) target bundleno = 255 (0xff), region = 36  ;;  %p304_p4 = scmp.lt.s32.totalorder (!%p241_p3), %s795_s25, 3 }
   0xc   : > { %v899_v0 = vld [vmem:[%s1070_s1 + $0x78] sm:$0xff]   ;;  %v945_v2 = vmov 0.0   ;;  %v901_v3 = vld [vmem:[%s1070_s1 + $0x70] sm:$0xff]   ;;  %vm946_vm0 = vmmov 0   ;;  %v903_v5 = vld [vmem:[%s1070_s1 + $0x68] sm:$0xff]   ;;  %s1079_s25 = smov (!%p304_p4, %s795_s25), 3 }
   0xd   : > { %v900_v1 = vld [vmem:[%s1070_s1 + $0x38] sm:$0xff]   ;;  %864 = vmatprep.subr.bf16.mxu1 %v945_v2  ;;  %839 = vmatprep.subr.bf16.mxu0 %v899_v0  ;;  %v902_v4 = vld [vmem:[%s1070_s1 + $0x30] sm:$0xff]   ;;  %v904_v6 = vld [vmem:[%s1070_s1 + $0x28] sm:$0xff]   ;;  %s872_s12 = smul.u32 12, %s1079_s25  ;;  %vm521_vm1 = vcmask 261120  }
   0xe   : > { %868 = vmatprep.mubr.msk.bf16.mxu1 %vm946_vm0, %v945_v2  ;;  %840 = vmatpush3.bf16.msra.mxu0 %v900_v1  ;;  %v905_v7 = vld [vmem:[%s1070_s1 + $0x60] sm:$0xff]   ;;  %v907_v9 = vld [vmem:[%s1070_s1 + $0x58] sm:$0xff]   ;;  %v911_v10 = vld [vmem:[%s1070_s1 + $0x88] sm:$0xff]  }
   0xf   : > { %841 = vmatprep.subr.bf16.mxu0 %v901_v3  ;;  %v906_v8 = vld [vmem:[%s1070_s1 + $0x20] sm:$0xff]   ;;  %v908_v11 = vld [vmem:[%s1070_s1 + $0x18] sm:$0xff]   ;;  %865 = vmatpush3.bf16.msra.mxu1 %v911_v10  ;;  %s313_s24 = scalar_lea.vmem %s1069_s0, %s872_s12  ;;  %v909_v13 = vld [vmem:[%s1070_s1 + $0x50] sm:$0xff]   ;;  %s798_s12 = sshll.u32 %s1079_s25, 2 }
  0x10   : > { %866 = vmatprep.subr.bf16.mxu1 %v945_v2  ;;  %v914_v12 = vld [vmem:[%s1070_s1 + $0x80] sm:$0xff]   ;;  %v917_v14 = vld [vmem:[%s313_s24 + $0x8] ss:$12 sps:$4 sm:$0xff]   ;;  %s337_s15 = scalar_lea.vmem %s1072_s3, %s798_s12  ;;  %s347_s22 = scalar_lea.vmem %s1073_s4, %s798_s12 }
  0x11   : > { %v910_v15 = vld [vmem:[%s1070_s1 + $0x10] sm:$0xff]   ;;  %v912_v16 = vld [vmem:[%s1070_s1 + $0x48] sm:$0xff]   ;;  %v915_v19 = vld [vmem:[%s1070_s1 + $0x40] sm:$0xff]  }
  0x12   : > { %842 = vmatpush3.bf16.msra.mxu0 %v902_v4  ;;  %v920_v17 = vld [vmem:[%s313_s24 + $0x4] ss:$12 sps:$4 sm:$0xff]   ;;  %v913_v18 = vld [vmem:[%s1070_s1 + $0x8] sm:$0xff]   ;;  %v823_v31 = vld [vmem:[%s1071_s2] ss:$0 sm:$0xff] }
  0x13   : > { %843 = vmatprep.subr.bf16.mxu0 %v903_v5  ;;  %867 = vmatpush3.bf16.msra.mxu1 %v914_v12  ;;  %v916_v20 = vld [vmem:[%s1070_s1] sm:$0xff]  }
  0x14   : > { %557 = vmatprep.mubr.bf16.mxu0 %v920_v17  ;;  %v918_v21 = vld [vmem:[%s313_s24] ss:$12 sps:$4 sm:$0xff]  }
  0x15   : > { %v831_v32 = vld [vmem:[%s337_s15] sm:$0xff]  }
  0x16   : > { %844 = vmatpush3.bf16.msra.mxu0 %v904_v6  ;;  %869 = vmatmul.mubr.msk.bf16.vlgmr.msra.gmra.mxu1 %vm521_vm1, %v917_v14  ;;  %v832_v36 = vunpack.c.l.bf16 %v831_v32  ;;  %v833_v38 = vunpack.c.h.bf16 %v831_v32 }
  0x17   : > { %845 = vmatprep.subr.bf16.mxu0 %v905_v7 }
  0x1a   : > { %846 = vmatpush3.bf16.msra.mxu0 %v906_v8 }
  0x1b   : > { %847 = vmatprep.subr.bf16.mxu0 %v907_v9 }
  0x1e   : > { %848 = vmatpush3.bf16.msra.mxu0 %v908_v11 }
  0x1f   : > { %849 = vmatprep.subr.bf16.mxu0 %v909_v13 }
  0x22   : > { %850 = vmatpush3.bf16.msra.mxu0 %v910_v15 }
  0x23   : > { %851 = vmatprep.subr.bf16.mxu0 %v912_v16 }
  0x26   : > { %852 = vmatpush3.bf16.msra.mxu0 %v913_v18 }
  0x27   : > { %853 = vmatprep.subr.bf16.mxu0 %v915_v19 }
  0x2a   : > { %854 = vmatpush3.bf16.msra.mxu0 %v916_v20 }
  0x2d   : > { %558 = vmatmul.mubr.bf16.vlgmr.msra.gmra.mxu0 %v918_v21 }
  0xd6   : > { %v600_v22 = vpop.f32.mrf.mxu1 }
  0xd8   : > { %v870_v23 = vpop.f32.mrf.mxu1 }
  0xda   : > { %v603_v24 = vpop.f32.mrf.mxu1 }
  0xdc   : > { %v871_v25 = vpop.f32.mrf.mxu1 }
  0xed   : > { %v855_v26 = vpop.f32.mrf.mxu0 }
  0xef   : > { %v856_v27 = vpop.f32.mrf.mxu0 }
  0xf0   : > { %v857_v28 = vadd.f32 %v856_v27, %v855_v26 }
  0xf1   : > { %v858_v29 = vpop.f32.mrf.mxu0 }
  0xf2   : > { %v601_v30 = vadd.f32 %v857_v28, %v600_v22 }
  0xf3   : > { %v859_v33 = vpop.f32.mrf.mxu0 }
  0xf4   : > { %v860_v34 = vadd.f32 %v859_v33, %v858_v29  ;;  %v623_v35 = vadd.f32 %v823_v31, %v601_v30 }
  0xf6   : > { %v604_v37 = vadd.f32 %v860_v34, %v603_v24  ;;  %v629_v40 = vadd.f32 %v832_v36, %v623_v35 }
  0xf8   : > { %v624_v39 = vadd.f32 %v823_v31, %v604_v37 }
  0xfa   : > { %v630_v41 = vadd.f32 %v833_v38, %v624_v39 }
  0xfc   : > { %v837_v42 = vpack.c.bf16 %v630_v41, %v629_v40 }
  0xfe   : > { %838 = vst [vmem:[%s347_s22] sm:$0xff] %v837_v42  }
  0xff PF: > { %s14_s17 = sadd.s32 1, %s943_s17   ;;  %s1074_s15 = smov %s939_s16 }
 0x100   : > { %p11_p5 = scmp.ge.s32.totalorder %s14_s17, 4   ;;  %s1075_s16 = smov %s1077_s18 }
 0x102   :  { %13 = sbr.rel (!%p11_p5) target bundleno = 2 (0x2), region = 83 }

// kernel: _lambda_.89
= control target key start
LH: loop header
LB: loop body
LE: loop exit
PB: predicated region body
PF: predicated region fallthrough
CT: control target
= control target key end

     0   :  { %s878_s12 = smov 0   ;;  %s880_s13 = smov 0   ;;  %s972_s0 = inlined_call_operand.vmem [shape: bf16[1,32,288], index: 0, kind: input, shape index: {}]   ;;  %s973_s1 = inlined_call_operand.vmem [shape: bf16[1,288,128], index: 1, kind: input, shape index: {}]   ;;  %s974_s2 = inlined_call_operand.vmem [shape: f32[1,1,128], index: 2, kind: input, shape index: {}]   ;;  %s975_s3 = inlined_call_operand.vmem [shape: bf16[1,32,128], index: 3, kind: output, shape index: {}]  }
   0x1   :  { %s882_s14 = smov 0  }
   0x2 LB: > { %s28_s15 = sadd.s32 1, %s850_s13  ;;  %p711_p0 = scmp.ge.s32.totalorder %s854_s14, 1  ;;  %s854_s14 = sphi %s882_s14, %s13_s14   ;;  %s850_s13 = sphi %s880_s13, %s977_s13   ;;  %s846_s12 = sphi %s878_s12, %s976_s12  }
   0x3   : > { %p30_p1 = scmp.ge.s32.totalorder %s28_s15, 2  ;;  %p198_p2 = scmp.lt.s32.totalorder %s854_s14, 3 }
   0x5   : > { %s979_s15 = smov (%p30_p1, %s28_s15), 0  ;;  %p199_p3 = pnand %p711_p0, %p198_p2 }
   0x6   : > { %s712_s22 = sshll.u32 (!%p199_p3), %s846_s12, 1 }
   0x7   : > { %202 = sbr.rel (%p199_p3) target bundleno = 254 (0xfe), region = 32  ;;  %p251_p4 = scmp.lt.s32.totalorder (!%p199_p3), %s712_s22, 3 }
   0xc   : > { %v810_v0 = vld [vmem:[%s973_s1 + $0x78] sm:$0xff]   ;;  %v856_v2 = vmov 0.0   ;;  %v812_v3 = vld [vmem:[%s973_s1 + $0x70] sm:$0xff]   ;;  %vm857_vm0 = vmmov 0   ;;  %v814_v5 = vld [vmem:[%s973_s1 + $0x68] sm:$0xff]   ;;  %s981_s22 = smov (!%p251_p4, %s712_s22), 3 }
   0xd   : > { %v811_v1 = vld [vmem:[%s973_s1 + $0x38] sm:$0xff]   ;;  %775 = vmatprep.subr.bf16.mxu1 %v856_v2  ;;  %750 = vmatprep.subr.bf16.mxu0 %v810_v0  ;;  %v813_v4 = vld [vmem:[%s973_s1 + $0x30] sm:$0xff]   ;;  %v815_v6 = vld [vmem:[%s973_s1 + $0x28] sm:$0xff]   ;;  %s783_s8 = smul.u32 12, %s981_s22  ;;  %vm458_vm1 = vcmask 261120   ;;  %s715_s9 = sshll.u32 %s981_s22, 2 }
   0xe   : > { %779 = vmatprep.mubr.msk.bf16.mxu1 %vm857_vm0, %v856_v2  ;;  %751 = vmatpush3.bf16.msra.mxu0 %v811_v1  ;;  %v816_v7 = vld [vmem:[%s973_s1 + $0x60] sm:$0xff]   ;;  %v818_v9 = vld [vmem:[%s973_s1 + $0x58] sm:$0xff]   ;;  %v822_v10 = vld [vmem:[%s973_s1 + $0x88] sm:$0xff]   ;;  %s284_s12 = scalar_lea.vmem %s975_s3, %s715_s9 }
   0xf   : > { %752 = vmatprep.subr.bf16.mxu0 %v812_v3  ;;  %v817_v8 = vld [vmem:[%s973_s1 + $0x20] sm:$0xff]   ;;  %v819_v11 = vld [vmem:[%s973_s1 + $0x18] sm:$0xff]   ;;  %776 = vmatpush3.bf16.msra.mxu1 %v822_v10  ;;  %s260_s20 = scalar_lea.vmem %s972_s0, %s783_s8  ;;  %v820_v13 = vld [vmem:[%s973_s1 + $0x50] sm:$0xff]  }
  0x10   : > { %777 = vmatprep.subr.bf16.mxu1 %v856_v2  ;;  %v825_v12 = vld [vmem:[%s973_s1 + $0x80] sm:$0xff]   ;;  %v828_v14 = vld [vmem:[%s260_s20 + $0x8] ss:$12 sps:$4 sm:$0xff]  }
  0x11   : > { %v821_v15 = vld [vmem:[%s973_s1 + $0x10] sm:$0xff]   ;;  %v823_v16 = vld [vmem:[%s973_s1 + $0x48] sm:$0xff]   ;;  %v826_v19 = vld [vmem:[%s973_s1 + $0x40] sm:$0xff]  }
  0x12   : > { %753 = vmatpush3.bf16.msra.mxu0 %v813_v4  ;;  %v831_v17 = vld [vmem:[%s260_s20 + $0x4] ss:$12 sps:$4 sm:$0xff]   ;;  %v824_v18 = vld [vmem:[%s973_s1 + $0x8] sm:$0xff]   ;;  %v738_v31 = vld [vmem:[%s974_s2] ss:$0 sm:$0xff] }
  0x13   : > { %754 = vmatprep.subr.bf16.mxu0 %v814_v5  ;;  %778 = vmatpush3.bf16.msra.mxu1 %v825_v12  ;;  %v827_v20 = vld [vmem:[%s973_s1] sm:$0xff]  }
  0x14   : > { %494 = vmatprep.mubr.bf16.mxu0 %v831_v17  ;;  %v829_v21 = vld [vmem:[%s260_s20] ss:$12 sps:$4 sm:$0xff]  }
  0x16   : > { %755 = vmatpush3.bf16.msra.mxu0 %v815_v6  ;;  %780 = vmatmul.mubr.msk.bf16.vlgmr.msra.gmra.mxu1 %vm458_vm1, %v828_v14 }
  0x17   : > { %756 = vmatprep.subr.bf16.mxu0 %v816_v7 }
  0x1a   : > { %757 = vmatpush3.bf16.msra.mxu0 %v817_v8 }
  0x1b   : > { %758 = vmatprep.subr.bf16.mxu0 %v818_v9 }
  0x1e   : > { %759 = vmatpush3.bf16.msra.mxu0 %v819_v11 }
  0x1f   : > { %760 = vmatprep.subr.bf16.mxu0 %v820_v13 }
  0x22   : > { %761 = vmatpush3.bf16.msra.mxu0 %v821_v15 }
  0x23   : > { %762 = vmatprep.subr.bf16.mxu0 %v823_v16 }
  0x26   : > { %763 = vmatpush3.bf16.msra.mxu0 %v824_v18 }
  0x27   : > { %764 = vmatprep.subr.bf16.mxu0 %v826_v19 }
  0x2a   : > { %765 = vmatpush3.bf16.msra.mxu0 %v827_v20 }
  0x2d   : > { %495 = vmatmul.mubr.bf16.vlgmr.msra.gmra.mxu0 %v829_v21 }
  0xd6   : > { %v537_v22 = vpop.f32.mrf.mxu1 }
  0xd8   : > { %v781_v23 = vpop.f32.mrf.mxu1 }
  0xda   : > { %v540_v24 = vpop.f32.mrf.mxu1 }
  0xdc   : > { %v782_v25 = vpop.f32.mrf.mxu1 }
  0xed   : > { %v766_v26 = vpop.f32.mrf.mxu0 }
  0xef   : > { %v767_v27 = vpop.f32.mrf.mxu0 }
  0xf0   : > { %v768_v28 = vadd.f32 %v767_v27, %v766_v26 }
  0xf1   : > { %v769_v29 = vpop.f32.mrf.mxu0 }
  0xf2   : > { %v538_v30 = vadd.f32 %v768_v28, %v537_v22 }
  0xf3   : > { %v770_v32 = vpop.f32.mrf.mxu0 }
  0xf4   : > { %v771_v33 = vadd.f32 %v770_v32, %v769_v29  ;;  %v562_v34 = vmul.f32 %v738_v31, %v538_v30  ;;  %vm553_vm2 = vcmp.ge.f32.partialorder %v538_v30, 0.0 }
  0xf6   : > { %v541_v35 = vadd.f32 %v771_v33, %v540_v24  ;;  %v564_v37 = vsel %vm553_vm2, %v538_v30, %v562_v34 }
  0xf8   : > { %vm554_vm3 = vcmp.ge.f32.partialorder %v541_v35, 0.0  ;;  %v563_v36 = vmul.f32 %v738_v31, %v541_v35 }
  0xfa   : > { %v565_v38 = vsel %vm554_vm3, %v541_v35, %v563_v36 }
  0xfb   : > { %v748_v39 = vpack.c.bf16 %v565_v38, %v564_v37 }
  0xfd   : > { %749 = vst [vmem:[%s284_s12] sm:$0xff] %v748_v39  }
  0xfe PF: > { %s13_s14 = sadd.s32 1, %s854_s14   ;;  %s976_s12 = smov %s850_s13 }
  0xff   : > { %p10_p5 = scmp.ge.s32.totalorder %s13_s14, 4   ;;  %s977_s13 = smov %s979_s15 }
 0x101   :  { %12 = sbr.rel (!%p10_p5) target bundleno = 2 (0x2), region = 76 }

// kernel: _lambda_.115
= control target key start
LH: loop header
LB: loop body
LE: loop exit
PB: predicated region body
PF: predicated region fallthrough
CT: control target
= control target key end

     0   :  { %v153_v0 = vmov 0.0   ;;  %vm154_vm0 = vmmov 0   ;;  %vm46_vm1 = vcmask 261120   ;;  %s190_s1 = inlined_call_operand.vmem [shape: bf16[1,32,128], index: 1, kind: input, shape index: {}]   ;;  %s191_s0 = inlined_call_operand.vmem [shape: bf16[1,16,32], index: 0, kind: input, shape index: {}]   ;;  %s192_s2 = inlined_call_operand.vmem [shape: f32[1,1,128], index: 2, kind: input, shape index: {}]   ;;  %s193_s3 = inlined_call_operand.vmem [shape: bf16[1,16,128], index: 3, kind: output, shape index: {}]  }
   0x1   :  { %140 = vmatprep.subr.bf16.mxu0 %v153_v0  ;;  %v150_v1 = vld [vmem:[%s190_s1 + $0x8] sm:$0xff]   ;;  %144 = vmatprep.mubr.msk.bf16.mxu0 %vm154_vm0, %v153_v0  ;;  %v151_v2 = vld [vmem:[%s190_s1] sm:$0xff]  }
   0x2   :  { %141 = vmatpush3.bf16.msra.mxu0 %v150_v1  ;;  %v152_v3 = vld [vmem:[%s191_s0] sm:$0xff]  }
   0x3   :  { %142 = vmatprep.subr.bf16.mxu0 %v153_v0  ;;  %v127_v5 = vld [vmem:[%s192_s2] ss:$0 sm:$0xff] }
   0x6   :  { %143 = vmatpush3.bf16.msra.mxu0 %v151_v2 }
   0x9   :  { %145 = vmatmul.mubr.msk.bf16.vlgmr.msra.gmra.mxu0 %vm46_vm1, %v152_v3 }
  0xc9   :  { %v84_v4 = vpop.f32.mrf.mxu0 }
  0xca   :  { %v107_v8 = vadd.f32 %v127_v5, %v84_v4 }
  0xcb   :  { %v146_v6 = vpop.f32.mrf.mxu0 }
  0xcd   :  { %v87_v7 = vpop.f32.mrf.mxu0 }
  0xce   :  { %v108_v9 = vadd.f32 %v127_v5, %v87_v7 }
  0xcf   :  { %v147_v10 = vpop.f32.mrf.mxu0 }
  0xd0   :  { %v135_v11 = vpack.c.bf16 %v108_v9, %v107_v8 }
  0xd2   :  { %136 = vst [vmem:[%s193_s3] sm:$0xff] %v135_v11  }

// kernel: _lambda_.118
= control target key start
LH: loop header
LB: loop body
LE: loop exit
PB: predicated region body
PF: predicated region fallthrough
CT: control target
= control target key end

     0   :  { %v663_v34 = vmov 0.0   ;;  %vm664_vm0 = vmmov 0   ;;  %vm342_vm1 = vcmask 523264   ;;  %s814_s1 = inlined_call_operand.vmem [shape: bf16[1,576,128], index: 1, kind: input, shape index: {}]   ;;  %s815_s0 = inlined_call_operand.vmem [shape: bf16[1,16,576], index: 0, kind: input, shape index: {}]   ;;  %s816_s2 = inlined_call_operand.vmem [shape: f32[1,1,128], index: 2, kind: input, shape index: {}]   ;;  %s817_s3 = inlined_call_operand.vmem [shape: bf16[1,16,128], index: 3, kind: output, shape index: {}]  }
   0x1   :  { %v620_v0 = vld [vmem:[%s814_s1 + $0x78] sm:$0xff]   ;;  %v624_v4 = vld [vmem:[%s814_s1 + $0x70] sm:$0xff]   ;;  %v628_v8 = vld [vmem:[%s814_s1 + $0x68] sm:$0xff]  }
   0x2   :  { %v621_v1 = vld [vmem:[%s814_s1 + $0xf8] sm:$0xff]   ;;  %557 = vmatprep.subr.bf16.mxu0 %v620_v0  ;;  %v625_v5 = vld [vmem:[%s814_s1 + $0xf0] sm:$0xff]   ;;  %v629_v9 = vld [vmem:[%s814_s1 + $0xe8] sm:$0xff]  }
   0x3   :  { %v622_v2 = vld [vmem:[%s814_s1 + $0x38] sm:$0xff]   ;;  %579 = vmatprep.subr.bf16.mxu1 %v621_v1  ;;  %v626_v6 = vld [vmem:[%s814_s1 + $0x30] sm:$0xff]   ;;  %v630_v10 = vld [vmem:[%s814_s1 + $0x28] sm:$0xff]  }
   0x4   :  { %v623_v3 = vld [vmem:[%s814_s1 + $0xb8] sm:$0xff]   ;;  %558 = vmatpush3.bf16.msra.mxu0 %v622_v2  ;;  %v627_v7 = vld [vmem:[%s814_s1 + $0xb0] sm:$0xff]   ;;  %v631_v11 = vld [vmem:[%s814_s1 + $0xa8] sm:$0xff]  }
   0x5   :  { %580 = vmatpush3.bf16.msra.mxu1 %v623_v3  ;;  %559 = vmatprep.subr.bf16.mxu0 %v624_v4  ;;  %v632_v12 = vld [vmem:[%s814_s1 + $0x60] sm:$0xff]   ;;  %v636_v16 = vld [vmem:[%s814_s1 + $0x58] sm:$0xff]   ;;  %v640_v20 = vld [vmem:[%s814_s1 + $0x50] sm:$0xff]  }
   0x6   :  { %581 = vmatprep.subr.bf16.mxu1 %v625_v5  ;;  %v633_v13 = vld [vmem:[%s814_s1 + $0xe0] sm:$0xff]   ;;  %v637_v17 = vld [vmem:[%s814_s1 + $0xd8] sm:$0xff]   ;;  %v641_v21 = vld [vmem:[%s814_s1 + $0xd0] sm:$0xff]  }
   0x7   :  { %v634_v14 = vld [vmem:[%s814_s1 + $0x20] sm:$0xff]   ;;  %v638_v18 = vld [vmem:[%s814_s1 + $0x18] sm:$0xff]   ;;  %v642_v22 = vld [vmem:[%s814_s1 + $0x10] sm:$0xff]  }
   0x8   :  { %560 = vmatpush3.bf16.msra.mxu0 %v626_v6  ;;  %v635_v15 = vld [vmem:[%s814_s1 + $0xa0] sm:$0xff]   ;;  %v639_v19 = vld [vmem:[%s814_s1 + $0x98] sm:$0xff]   ;;  %v643_v23 = vld [vmem:[%s814_s1 + $0x90] sm:$0xff]  }
   0x9   :  { %582 = vmatpush3.bf16.msra.mxu1 %v627_v7  ;;  %561 = vmatprep.subr.bf16.mxu0 %v628_v8  ;;  %v644_v24 = vld [vmem:[%s814_s1 + $0x48] sm:$0xff]   ;;  %v648_v28 = vld [vmem:[%s814_s1 + $0x40] sm:$0xff]   ;;  %v658_v37 = vld [vmem:[%s814_s1 + $0x118] sm:$0xff]  }
   0xa   :  { %583 = vmatprep.subr.bf16.mxu1 %v629_v9  ;;  %v645_v25 = vld [vmem:[%s814_s1 + $0xc8] sm:$0xff]   ;;  %v649_v29 = vld [vmem:[%s814_s1 + $0xc0] sm:$0xff]   ;;  %v659_v38 = vld [vmem:[%s814_s1 + $0x110] sm:$0xff]  }
   0xb   :  { %v646_v26 = vld [vmem:[%s814_s1 + $0x8] sm:$0xff]   ;;  %v650_v30 = vld [vmem:[%s814_s1] sm:$0xff]  }
   0xc   :  { %562 = vmatpush3.bf16.msra.mxu0 %v630_v10  ;;  %v647_v27 = vld [vmem:[%s814_s1 + $0x88] sm:$0xff]   ;;  %v651_v31 = vld [vmem:[%s814_s1 + $0x80] sm:$0xff]  }
   0xd   :  { %584 = vmatpush3.bf16.msra.mxu1 %v631_v11  ;;  %563 = vmatprep.subr.bf16.mxu0 %v632_v12  ;;  %v652_v32 = vld [vmem:[%s815_s0] ss:$20 sps:$4 sm:$0xff]   ;;  %v654_v33 = vld [vmem:[%s815_s0 + $0x4] ss:$20 sps:$4 sm:$0xff]   ;;  %v655_v35 = vld [vmem:[%s815_s0 + $0x8] ss:$20 sps:$4 sm:$0xff]  }
   0xe   :  { %585 = vmatprep.subr.bf16.mxu1 %v633_v13  ;;  %v657_v36 = vld [vmem:[%s815_s0 + $0xc] ss:$20 sps:$4 sm:$0xff]   ;;  %378 = vmatprep.mubr.bf16.mxu0 %v654_v33  ;;  %v662_v41 = vld [vmem:[%s815_s0 + $0x10] ss:$20 sps:$4 sm:$0xff]  }
   0xf   :  { %419 = vmatprep.mubr.bf16.mxu1 %v657_v36  ;;  %v660_v39 = vld [vmem:[%s814_s1 + $0x108] sm:$0xff]   ;;  %v661_v40 = vld [vmem:[%s814_s1 + $0x100] sm:$0xff]  }
  0x10   :  { %564 = vmatpush3.bf16.msra.mxu0 %v634_v14  ;;  %v547_v57 = vld [vmem:[%s816_s2] ss:$0 sm:$0xff] }
  0x11   :  { %586 = vmatpush3.bf16.msra.mxu1 %v635_v15  ;;  %565 = vmatprep.subr.bf16.mxu0 %v636_v16 }
  0x12   :  { %587 = vmatprep.subr.bf16.mxu1 %v637_v17 }
  0x14   :  { %566 = vmatpush3.bf16.msra.mxu0 %v638_v18 }
  0x15   :  { %588 = vmatpush3.bf16.msra.mxu1 %v639_v19  ;;  %567 = vmatprep.subr.bf16.mxu0 %v640_v20 }
  0x16   :  { %589 = vmatprep.subr.bf16.mxu1 %v641_v21 }
  0x18   :  { %568 = vmatpush3.bf16.msra.mxu0 %v642_v22 }
  0x19   :  { %590 = vmatpush3.bf16.msra.mxu1 %v643_v23  ;;  %569 = vmatprep.subr.bf16.mxu0 %v644_v24 }
  0x1a   :  { %591 = vmatprep.subr.bf16.mxu1 %v645_v25 }
  0x1c   :  { %570 = vmatpush3.bf16.msra.mxu0 %v646_v26 }
  0x1d   :  { %592 = vmatpush3.bf16.msra.mxu1 %v647_v27  ;;  %571 = vmatprep.subr.bf16.mxu0 %v648_v28 }
  0x1e   :  { %593 = vmatprep.subr.bf16.mxu1 %v649_v29 }
  0x20   :  { %572 = vmatpush3.bf16.msra.mxu0 %v650_v30 }
  0x21   :  { %594 = vmatpush3.bf16.msra.mxu1 %v651_v31  ;;  %606 = vmatprep.subr.bf16.mxu0 %v663_v34 }
  0x23   :  { %379 = vmatmul.mubr.bf16.vlgmr.msra.gmra.mxu0 %v652_v32 }
  0x24   :  { %420 = vmatmul.mubr.bf16.vlgmr.msra.gmra.mxu1 %v655_v35  ;;  %607 = vmatpush3.bf16.msra.mxu0 %v658_v37 }
  0x25   :  { %608 = vmatprep.subr.bf16.mxu0 %v663_v34  ;;  %614 = vmatprep.mubr.msk.bf16.mxu0 %vm664_vm0, %v663_v34 }
  0x28   :  { %609 = vmatpush3.bf16.msra.mxu0 %v659_v38 }
  0x29   :  { %610 = vmatprep.subr.bf16.mxu0 %v663_v34 }
  0x2c   :  { %611 = vmatpush3.bf16.msra.mxu0 %v660_v39 }
  0x2d   :  { %612 = vmatprep.subr.bf16.mxu0 %v663_v34 }
  0x30   :  { %613 = vmatpush3.bf16.msra.mxu0 %v661_v40 }
  0x33   :  { %615 = vmatmul.mubr.msk.bf16.vlgmr.msra.gmra.mxu0 %vm342_vm1, %v662_v41 }
  0xe3   :  { %v573_v42 = vpop.f32.mrf.mxu0 }
  0xe4   :  { %v595_v43 = vpop.f32.mrf.mxu1 }
  0xe5   :  { %v574_v44 = vpop.f32.mrf.mxu0 }
  0xe6   :  { %v596_v45 = vpop.f32.mrf.mxu1  ;;  %v575_v48 = vadd.f32 %v574_v44, %v573_v42 }
  0xe7   :  { %v576_v46 = vpop.f32.mrf.mxu0  ;;  %v597_v49 = vadd.f32 %v596_v45, %v595_v43 }
  0xe8   :  { %v598_v47 = vpop.f32.mrf.mxu1 }
  0xe9   :  { %v577_v50 = vpop.f32.mrf.mxu0  ;;  %v422_v54 = vadd.f32 %v597_v49, %v575_v48 }
  0xea   :  { %v599_v51 = vpop.f32.mrf.mxu1  ;;  %v578_v52 = vadd.f32 %v577_v50, %v576_v46 }
  0xeb   :  { %v600_v53 = vadd.f32 %v599_v51, %v598_v47 }
  0xed   :  { %v425_v59 = vadd.f32 %v600_v53, %v578_v52 }
  0xf3   :  { %v462_v55 = vpop.f32.mrf.mxu0 }
  0xf4   :  { %v463_v56 = vadd.f32 %v462_v55, %v422_v54 }
  0xf5   :  { %v616_v58 = vpop.f32.mrf.mxu0 }
  0xf6   :  { %v487_v61 = vmul.f32 %v547_v57, %v463_v56  ;;  %vm478_vm2 = vcmp.ge.f32.partialorder %v463_v56, 0.0 }
  0xf7   :  { %v465_v60 = vpop.f32.mrf.mxu0 }
  0xf8   :  { %v466_v62 = vadd.f32 %v465_v60, %v425_v59  ;;  %v489_v1 = vsel %vm478_vm2, %v463_v56, %v487_v61 }
  0xf9   :  { %v617_v63 = vpop.f32.mrf.mxu0 }
  0xfa   :  { %vm479_vm3 = vcmp.ge.f32.partialorder %v466_v62, 0.0  ;;  %v488_v0 = vmul.f32 %v547_v57, %v466_v62 }
  0xfc   :  { %v490_v2 = vsel %vm479_vm3, %v466_v62, %v488_v0 }
  0xfd   :  { %v555_v3 = vpack.c.bf16 %v490_v2, %v489_v1 }
  0xff   :  { %556 = vst [vmem:[%s817_s3] sm:$0xff] %v555_v3  }

// kernel: _lambda_.117
= control target key start
LH: loop header
LB: loop body
LE: loop exit
PB: predicated region body
PF: predicated region fallthrough
CT: control target
= control target key end

     0   :  { %v672_v34 = vmov 0.0   ;;  %vm673_vm0 = vmmov 0   ;;  %vm345_vm1 = vcmask 523264   ;;  %s831_s1 = inlined_call_operand.vmem [shape: bf16[1,576,128], index: 1, kind: input, shape index: {}]   ;;  %s832_s0 = inlined_call_operand.vmem [shape: bf16[1,16,576], index: 0, kind: input, shape index: {}]   ;;  %s833_s2 = inlined_call_operand.vmem [shape: f32[1,1,128], index: 2, kind: input, shape index: {}]   ;;  %s834_s3 = inlined_call_operand.vmem [shape: bf16[1,16,128], index: 3, kind: input, shape index: {}]   ;;  %s835_s4 = inlined_call_operand.vmem [shape: bf16[1,16,128], index: 4, kind: output, shape index: {}]  }
   0x1   :  { %v629_v0 = vld [vmem:[%s831_s1 + $0x78] sm:$0xff]   ;;  %v633_v4 = vld [vmem:[%s831_s1 + $0x70] sm:$0xff]   ;;  %v637_v8 = vld [vmem:[%s831_s1 + $0x68] sm:$0xff]  }
   0x2   :  { %v630_v1 = vld [vmem:[%s831_s1 + $0xf8] sm:$0xff]   ;;  %566 = vmatprep.subr.bf16.mxu0 %v629_v0  ;;  %v634_v5 = vld [vmem:[%s831_s1 + $0xf0] sm:$0xff]   ;;  %v638_v9 = vld [vmem:[%s831_s1 + $0xe8] sm:$0xff]  }
   0x3   :  { %v631_v2 = vld [vmem:[%s831_s1 + $0x38] sm:$0xff]   ;;  %588 = vmatprep.subr.bf16.mxu1 %v630_v1  ;;  %v635_v6 = vld [vmem:[%s831_s1 + $0x30] sm:$0xff]   ;;  %v639_v10 = vld [vmem:[%s831_s1 + $0x28] sm:$0xff]  }
   0x4   :  { %v632_v3 = vld [vmem:[%s831_s1 + $0xb8] sm:$0xff]   ;;  %567 = vmatpush3.bf16.msra.mxu0 %v631_v2  ;;  %v636_v7 = vld [vmem:[%s831_s1 + $0xb0] sm:$0xff]   ;;  %v640_v11 = vld [vmem:[%s831_s1 + $0xa8] sm:$0xff]  }
   0x5   :  { %589 = vmatpush3.bf16.msra.mxu1 %v632_v3  ;;  %568 = vmatprep.subr.bf16.mxu0 %v633_v4  ;;  %v641_v12 = vld [vmem:[%s831_s1 + $0x60] sm:$0xff]   ;;  %v645_v16 = vld [vmem:[%s831_s1 + $0x58] sm:$0xff]   ;;  %v649_v20 = vld [vmem:[%s831_s1 + $0x50] sm:$0xff]  }
   0x6   :  { %590 = vmatprep.subr.bf16.mxu1 %v634_v5  ;;  %v642_v13 = vld [vmem:[%s831_s1 + $0xe0] sm:$0xff]   ;;  %v646_v17 = vld [vmem:[%s831_s1 + $0xd8] sm:$0xff]   ;;  %v650_v21 = vld [vmem:[%s831_s1 + $0xd0] sm:$0xff]  }
   0x7   :  { %v643_v14 = vld [vmem:[%s831_s1 + $0x20] sm:$0xff]   ;;  %v647_v18 = vld [vmem:[%s831_s1 + $0x18] sm:$0xff]   ;;  %v651_v22 = vld [vmem:[%s831_s1 + $0x10] sm:$0xff]  }
   0x8   :  { %569 = vmatpush3.bf16.msra.mxu0 %v635_v6  ;;  %v644_v15 = vld [vmem:[%s831_s1 + $0xa0] sm:$0xff]   ;;  %v648_v19 = vld [vmem:[%s831_s1 + $0x98] sm:$0xff]   ;;  %v652_v23 = vld [vmem:[%s831_s1 + $0x90] sm:$0xff]  }
   0x9   :  { %591 = vmatpush3.bf16.msra.mxu1 %v636_v7  ;;  %570 = vmatprep.subr.bf16.mxu0 %v637_v8  ;;  %v653_v24 = vld [vmem:[%s831_s1 + $0x48] sm:$0xff]   ;;  %v657_v28 = vld [vmem:[%s831_s1 + $0x40] sm:$0xff]   ;;  %v667_v37 = vld [vmem:[%s831_s1 + $0x118] sm:$0xff]  }
   0xa   :  { %592 = vmatprep.subr.bf16.mxu1 %v638_v9  ;;  %v654_v25 = vld [vmem:[%s831_s1 + $0xc8] sm:$0xff]   ;;  %v658_v29 = vld [vmem:[%s831_s1 + $0xc0] sm:$0xff]   ;;  %v668_v38 = vld [vmem:[%s831_s1 + $0x110] sm:$0xff]  }
   0xb   :  { %v655_v26 = vld [vmem:[%s831_s1 + $0x8] sm:$0xff]   ;;  %v659_v30 = vld [vmem:[%s831_s1] sm:$0xff]  }
   0xc   :  { %571 = vmatpush3.bf16.msra.mxu0 %v639_v10  ;;  %v656_v27 = vld [vmem:[%s831_s1 + $0x88] sm:$0xff]   ;;  %v660_v31 = vld [vmem:[%s831_s1 + $0x80] sm:$0xff]  }
   0xd   :  { %593 = vmatpush3.bf16.msra.mxu1 %v640_v11  ;;  %572 = vmatprep.subr.bf16.mxu0 %v641_v12  ;;  %v661_v32 = vld [vmem:[%s832_s0] ss:$20 sps:$4 sm:$0xff]   ;;  %v663_v33 = vld [vmem:[%s832_s0 + $0x4] ss:$20 sps:$4 sm:$0xff]   ;;  %v664_v35 = vld [vmem:[%s832_s0 + $0x8] ss:$20 sps:$4 sm:$0xff]  }
   0xe   :  { %594 = vmatprep.subr.bf16.mxu1 %v642_v13  ;;  %v666_v36 = vld [vmem:[%s832_s0 + $0xc] ss:$20 sps:$4 sm:$0xff]   ;;  %381 = vmatprep.mubr.bf16.mxu0 %v663_v33  ;;  %v671_v41 = vld [vmem:[%s832_s0 + $0x10] ss:$20 sps:$4 sm:$0xff]  }
   0xf   :  { %422 = vmatprep.mubr.bf16.mxu1 %v666_v36  ;;  %v669_v39 = vld [vmem:[%s831_s1 + $0x108] sm:$0xff]   ;;  %v670_v40 = vld [vmem:[%s831_s1 + $0x100] sm:$0xff]  }
  0x10   :  { %573 = vmatpush3.bf16.msra.mxu0 %v643_v14  ;;  %v552_v57 = vld [vmem:[%s833_s2] ss:$0 sm:$0xff] }
  0x11   :  { %595 = vmatpush3.bf16.msra.mxu1 %v644_v15  ;;  %574 = vmatprep.subr.bf16.mxu0 %v645_v16  ;;  %v558_v58 = vld [vmem:[%s834_s3] sm:$0xff]  }
  0x12   :  { %596 = vmatprep.subr.bf16.mxu1 %v646_v17  ;;  %v559_v63 = vunpack.c.l.bf16 %v558_v58  ;;  %v560_v1 = vunpack.c.h.bf16 %v558_v58 }
  0x14   :  { %575 = vmatpush3.bf16.msra.mxu0 %v647_v18 }
  0x15   :  { %597 = vmatpush3.bf16.msra.mxu1 %v648_v19  ;;  %576 = vmatprep.subr.bf16.mxu0 %v649_v20 }
  0x16   :  { %598 = vmatprep.subr.bf16.mxu1 %v650_v21 }
  0x18   :  { %577 = vmatpush3.bf16.msra.mxu0 %v651_v22 }
  0x19   :  { %599 = vmatpush3.bf16.msra.mxu1 %v652_v23  ;;  %578 = vmatprep.subr.bf16.mxu0 %v653_v24 }
  0x1a   :  { %600 = vmatprep.subr.bf16.mxu1 %v654_v25 }
  0x1c   :  { %579 = vmatpush3.bf16.msra.mxu0 %v655_v26 }
  0x1d   :  { %601 = vmatpush3.bf16.msra.mxu1 %v656_v27  ;;  %580 = vmatprep.subr.bf16.mxu0 %v657_v28 }
  0x1e   :  { %602 = vmatprep.subr.bf16.mxu1 %v658_v29 }
  0x20   :  { %581 = vmatpush3.bf16.msra.mxu0 %v659_v30 }
  0x21   :  { %603 = vmatpush3.bf16.msra.mxu1 %v660_v31  ;;  %615 = vmatprep.subr.bf16.mxu0 %v672_v34 }
  0x23   :  { %382 = vmatmul.mubr.bf16.vlgmr.msra.gmra.mxu0 %v661_v32 }
  0x24   :  { %423 = vmatmul.mubr.bf16.vlgmr.msra.gmra.mxu1 %v664_v35  ;;  %616 = vmatpush3.bf16.msra.mxu0 %v667_v37 }
  0x25   :  { %617 = vmatprep.subr.bf16.mxu0 %v672_v34  ;;  %623 = vmatprep.mubr.msk.bf16.mxu0 %vm673_vm0, %v672_v34 }
  0x28   :  { %618 = vmatpush3.bf16.msra.mxu0 %v668_v38 }
  0x29   :  { %619 = vmatprep.subr.bf16.mxu0 %v672_v34 }
  0x2c   :  { %620 = vmatpush3.bf16.msra.mxu0 %v669_v39 }
  0x2d   :  { %621 = vmatprep.subr.bf16.mxu0 %v672_v34 }
  0x30   :  { %622 = vmatpush3.bf16.msra.mxu0 %v670_v40 }
  0x33   :  { %624 = vmatmul.mubr.msk.bf16.vlgmr.msra.gmra.mxu0 %vm345_vm1, %v671_v41 }
  0xe3   :  { %v582_v42 = vpop.f32.mrf.mxu0 }
  0xe4   :  { %v604_v43 = vpop.f32.mrf.mxu1 }
  0xe5   :  { %v583_v44 = vpop.f32.mrf.mxu0 }
  0xe6   :  { %v605_v45 = vpop.f32.mrf.mxu1  ;;  %v584_v48 = vadd.f32 %v583_v44, %v582_v42 }
  0xe7   :  { %v585_v46 = vpop.f32.mrf.mxu0  ;;  %v606_v49 = vadd.f32 %v605_v45, %v604_v43 }
  0xe8   :  { %v607_v47 = vpop.f32.mrf.mxu1 }
  0xe9   :  { %v586_v50 = vpop.f32.mrf.mxu0  ;;  %v425_v54 = vadd.f32 %v606_v49, %v584_v48 }
  0xea   :  { %v608_v51 = vpop.f32.mrf.mxu1  ;;  %v587_v52 = vadd.f32 %v586_v50, %v585_v46 }
  0xeb   :  { %v609_v53 = vadd.f32 %v608_v51, %v607_v47 }
  0xed   :  { %v428_v60 = vadd.f32 %v609_v53, %v587_v52 }
  0xf3   :  { %v465_v55 = vpop.f32.mrf.mxu0 }
  0xf4   :  { %v466_v56 = vadd.f32 %v465_v55, %v425_v54 }
  0xf5   :  { %v625_v59 = vpop.f32.mrf.mxu0 }
  0xf6   :  { %v488_v62 = vadd.f32 %v552_v57, %v466_v56 }
  0xf7   :  { %v468_v61 = vpop.f32.mrf.mxu0 }
  0xf8   :  { %v469_v0 = vadd.f32 %v468_v61, %v428_v60  ;;  %v494_v4 = vadd.f32 %v559_v63, %v488_v62 }
  0xf9   :  { %v626_v2 = vpop.f32.mrf.mxu0 }
  0xfa   :  { %v489_v3 = vadd.f32 %v552_v57, %v469_v0 }
  0xfc   :  { %v495_v5 = vadd.f32 %v560_v1, %v489_v3 }
  0xfe   :  { %v564_v6 = vpack.c.bf16 %v495_v5, %v494_v4 }
 0x100   :  { %565 = vst [vmem:[%s835_s4] sm:$0xff] %v564_v6  }

// kernel: squeeze.105
= control target key start
LH: loop header
LB: loop body
LE: loop exit
PB: predicated region body
PF: predicated region fallthrough
CT: control target
= control target key end

     0   :  { %vm35_vm0 = vcmask 523264   ;;  %v161_v12 = vmov 0.0   ;;  %s211_s0 = inlined_call_operand.vmem [shape: bf16[1,8,256], index: 0, kind: input, shape index: {}]   ;;  %s212_s1 = inlined_call_operand.vmem [shape: bf16[2,2,2,4,64], index: 1, kind: output, shape index: {}]  }
   0x1   :  { %v150_v0 = vld [vmem:[%s211_s0] sm:$0xff]   ;;  %s160_s0 = smov 64  }
   0x2   :  { %v151_v1 = vunpack.c.l.bf16 %v150_v0  ;;  %v152_v2 = vunpack.c.h.bf16 %v150_v0 }
   0x4   :  { %20 = vst [vmem:[#allocation1 + $0x8] sm:$0xff] %v152_v2  ;;  %33 = vst [vmem:[#allocation1] sm:$0xff] %v151_v1 }
   0x5   :  { %42 = vst.msk [vmem:[#allocation0 + $0x2] ss:$8 sm:$0xf] %vm35_vm0, %v152_v2   ;;  %44 = vst.msk [vmem:[#allocation0 + $0x2] ss:$8 sm:$0xf0] %vm35_vm0, %v152_v2  }
   0x6   :  { %36 = vst.msk [vmem:[#allocation0] ss:$8 sm:$0xf] %vm35_vm0, %v151_v1   ;;  %37 = vst.msk [vmem:[#allocation0] ss:$8 sm:$0xf0] %vm35_vm0, %v151_v1  }
   0xb   :  { %v45_v3 = vld.sshfl [vmem:[#allocation1] sm:$0xff pattern:$0xb3a29180]   ;;  %v58_v4 = vld.sshfl [vmem:[#allocation1 + $0x4] sm:$0xff pattern:$0xb3a29180]  }
   0xc   :  { %v155_v5 = vpack.i.bf16 %v58_v4, %v45_v3 }
   0xe   :  { %156 = vrot.lane.b32.xlu0 %v155_v5, %s160_s0 }
  0x80   :  { %v157_v6 = vpop.permute.xlu0 %156 }
  0x81   :  { %v159_v7 = vunpack.i.h.bf16 %v157_v6  ;;  %v158_v8 = vunpack.i.l.bf16 %v157_v6 }
  0x83   :  { %63 = vst.msk [vmem:[#allocation0 + $0x21] ss:$2 sm:$0x3] %vm35_vm0, %v159_v7   ;;  %65 = vst.msk [vmem:[#allocation0 + $0x25] ss:$2 sm:$0xc] %vm35_vm0, %v159_v7  }
  0x84   :  { %67 = vst.msk [vmem:[#allocation0 + $0x29] ss:$2 sm:$0x30] %vm35_vm0, %v159_v7   ;;  %69 = vst.msk [vmem:[#allocation0 + $0x2d] ss:$2 sm:$0xc0] %vm35_vm0, %v159_v7  }
  0x85   :  { %50 = vst.msk [vmem:[#allocation0 + $0x1] ss:$2 sm:$0x3] %vm35_vm0, %v158_v8   ;;  %52 = vst.msk [vmem:[#allocation0 + $0x5] ss:$2 sm:$0xc] %vm35_vm0, %v158_v8  }
  0x86   :  { %54 = vst.msk [vmem:[#allocation0 + $0x9] ss:$2 sm:$0x30] %vm35_vm0, %v158_v8   ;;  %56 = vst.msk [vmem:[#allocation0 + $0xd] ss:$2 sm:$0xc0] %vm35_vm0, %v158_v8  }
  0x8a   :  { %v104_v17 = vld [vmem:[#allocation0 + $0x20] sm:$0xf]  ;;  %v112_v18 = vld [vmem:[#allocation0 + $0x28] sm:$0xf] }
  0x8b   :  { %v105_v20 = vpack.c.bf16 %v161_v12, %v104_v17  ;;  %v113_v21 = vpack.c.bf16 %v161_v12, %v112_v18  ;;  %v120_v22 = vld [vmem:[#allocation0 + $0x30] sm:$0xf]  ;;  %v128_v23 = vld [vmem:[#allocation0 + $0x38] sm:$0xf] }
  0x8c   :  { %v75_v9 = vld [vmem:[#allocation0] sm:$0xf]  ;;  %v81_v10 = vld [vmem:[#allocation0 + $0x8] sm:$0xf]  ;;  %v121_v24 = vpack.c.bf16 %v161_v12, %v120_v22  ;;  %v129_v25 = vpack.c.bf16 %v161_v12, %v128_v23 }
  0x8d   :  { %v88_v11 = vld [vmem:[#allocation0 + $0x10] sm:$0xf]  ;;  %v76_v13 = vpack.c.bf16 %v161_v12, %v75_v9  ;;  %v82_v14 = vpack.c.bf16 %v161_v12, %v81_v10  ;;  %v96_v16 = vld [vmem:[#allocation0 + $0x18] sm:$0xf]  ;;  %145 = vst [vmem:[%s212_s1 + $0x8] sm:$0x3] %v105_v20 }
  0x8e   :  { %v89_v15 = vpack.c.bf16 %v161_v12, %v88_v11  ;;  %v97_v19 = vpack.c.bf16 %v161_v12, %v96_v16  ;;  %146 = vst [vmem:[%s212_s1 + $0xa] sm:$0x3] %v113_v21  ;;  %147 = vst [vmem:[%s212_s1 + $0xc] sm:$0x3] %v121_v24 }
  0x8f   :  { %79 = vst [vmem:[%s212_s1] sm:$0x3] %v76_v13  ;;  %142 = vst [vmem:[%s212_s1 + $0x2] sm:$0x3] %v82_v14 }
  0x90   :  { %143 = vst [vmem:[%s212_s1 + $0x4] sm:$0x3] %v89_v15  ;;  %144 = vst [vmem:[%s212_s1 + $0x6] sm:$0x3] %v97_v19 }
  0x91   :  { %148 = vst [vmem:[%s212_s1 + $0xe] sm:$0x3] %v129_v25 }

// kernel: _lambda_.126
= control target key start
LH: loop header
LB: loop body
LE: loop exit
PB: predicated region body
PF: predicated region fallthrough
CT: control target
= control target key end

     0   :  { %s720_s15 = smov 0   ;;  %s722_s16 = smov 0   ;;  %s765_s0 = inlined_call_operand.vmem [shape: bf16[1,32,32], index: 0, kind: input, shape index: {}]   ;;  %s766_s1 = inlined_call_operand.vmem [shape: bf16[1,32,128], index: 1, kind: input, shape index: {}]   ;;  %s767_s2 = inlined_call_operand.vmem [shape: f32[1,1,128], index: 2, kind: input, shape index: {}]   ;;  %s768_s3 = inlined_call_operand.vmem [shape: bf16[1,32,128], index: 3, kind: input, shape index: {}]   ;;  %s769_s4 = inlined_call_operand.vmem [shape: bf16[1,32,128], index: 4, kind: output, shape index: {}]  }
   0x1   :  { %s724_s17 = smov 0  }
   0x2 LB: > { %s29_s18 = sadd.s32 1, %s687_s16  ;;  %p602_p0 = scmp.ge.s32.totalorder %s691_s17, 1  ;;  %s691_s17 = sphi %s724_s17, %s14_s17   ;;  %s687_s16 = sphi %s722_s16, %s771_s16   ;;  %s683_s15 = sphi %s720_s15, %s770_s15  }
   0x3   : > { %p31_p1 = scmp.ge.s32.totalorder %s29_s18, 2  ;;  %p237_p2 = scmp.lt.s32.totalorder %s691_s17, 3 }
   0x5   : > { %s773_s18 = smov (%p31_p1, %s29_s18), 0  ;;  %p238_p3 = pnand %p602_p0, %p237_p2 }
   0x6   : > { %s603_s23 = sshll.u32 (!%p238_p3), %s683_s15, 1 }
   0x7   : > { %241 = sbr.rel (%p238_p3) target bundleno = 225 (0xe1), region = 36  ;;  %p298_p4 = scmp.lt.s32.totalorder (!%p238_p3), %s603_s23, 3 }
   0xc   : > { %v666_v0 = vld [vmem:[%s766_s1 + $0x8] sm:$0xff]   ;;  %v693_v1 = vmov 0.0   ;;  %v667_v2 = vld [vmem:[%s766_s1] sm:$0xff]   ;;  %vm694_vm0 = vmmov 0   ;;  %s775_s23 = smov (!%p298_p4, %s603_s23), 3  ;;  %vm373_vm1 = vcmask 261120  }
   0xd   : > { %632 = vmatprep.subr.bf16.mxu0 %v693_v1  ;;  %636 = vmatprep.mubr.msk.bf16.mxu0 %vm694_vm0, %v693_v1  ;;  %s604_s24 = sshll.u32 %s775_s23, 2  ;;  %v613_v5 = vld [vmem:[%s767_s2] ss:$0 sm:$0xff] }
   0xe   : > { %633 = vmatpush3.bf16.msra.mxu0 %v666_v0  ;;  %s306_s27 = scalar_lea.vmem %s765_s0, %s604_s24  ;;  %s329_s30 = scalar_lea.vmem %s768_s3, %s604_s24 }
   0xf   : > { %634 = vmatprep.subr.bf16.mxu0 %v693_v1  ;;  %v668_v3 = vld [vmem:[%s306_s27] sm:$0xff]   ;;  %s339_s9 = scalar_lea.vmem %s769_s4, %s604_s24 }
  0x10   : > { %v621_v6 = vld [vmem:[%s329_s30] sm:$0xff]  }
  0x11   : > { %v622_v9 = vunpack.c.l.bf16 %v621_v6  ;;  %v623_v10 = vunpack.c.h.bf16 %v621_v6 }
  0x12   : > { %635 = vmatpush3.bf16.msra.mxu0 %v667_v2 }
  0x15   : > { %637 = vmatmul.mubr.msk.bf16.vlgmr.msra.gmra.mxu0 %vm373_vm1, %v668_v3 }
  0xd5   : > { %v411_v4 = vpop.f32.mrf.mxu0 }
  0xd6   : > { %v434_v8 = vadd.f32 %v613_v5, %v411_v4 }
  0xd7   : > { %v638_v7 = vpop.f32.mrf.mxu0 }
  0xd8   : > { %v440_v14 = vadd.f32 %v622_v9, %v434_v8 }
  0xd9   : > { %v414_v11 = vpop.f32.mrf.mxu0 }
  0xda   : > { %v435_v12 = vadd.f32 %v613_v5, %v414_v11 }
  0xdb   : > { %v639_v13 = vpop.f32.mrf.mxu0 }
  0xdc   : > { %v441_v15 = vadd.f32 %v623_v10, %v435_v12 }
  0xde   : > { %v627_v16 = vpack.c.bf16 %v441_v15, %v440_v14 }
  0xe0   : > { %628 = vst [vmem:[%s339_s9] sm:$0xff] %v627_v16  }
  0xe1 PF: > { %s14_s17 = sadd.s32 1, %s691_s17   ;;  %s770_s15 = smov %s687_s16 }
  0xe2   : > { %p11_p5 = scmp.ge.s32.totalorder %s14_s17, 4   ;;  %s771_s16 = smov %s773_s18 }
  0xe4   :  { %13 = sbr.rel (!%p11_p5) target bundleno = 2 (0x2), region = 83 }

// kernel: squeeze.103
= control target key start
LH: loop header
LB: loop body
LE: loop exit
PB: predicated region body
PF: predicated region fallthrough
CT: control target
= control target key end

     0   :  { %vm35_vm0 = vcmask 523264   ;;  %v70_v10 = vmov 0.0   ;;  %s93_s0 = inlined_call_operand.vmem [shape: bf16[1,2,192], index: 0, kind: input, shape index: {}]   ;;  %s94_s1 = inlined_call_operand.vmem [shape: bf16[2,1,1,3,64], index: 1, kind: output, shape index: {}]  }
   0x1   :  { %v30_v0 = vld [vmem:[%s93_s0] sm:$0x1]  ;;  %v65_v1 = vld [vmem:[%s93_s0 + $0x1] sm:$0x1]  ;;  %s69_s0 = smov 64  }
   0x2   :  { %v31_v2 = vunpack.c.l.bf16 %v30_v0  ;;  %v17_v3 = vunpack.c.l.bf16 %v65_v1 }
   0x4   :  { %33 = vst [vmem:[#allocation1] sm:$0x3] %v31_v2  ;;  %20 = vst [vmem:[#allocation1 + $0x8] sm:$0x3] %v17_v3 }
   0xb   :  { %v42_v4 = vld [vmem:[#allocation1] sm:$0x3]   ;;  %v38_v6 = vld [vmem:[#allocation1 + $0x8] sm:$0x3]  }
   0xc   :  { %v34_v5 = vld [vmem:[#allocation1] sm:$0x3]   ;;  %43 = vrot.lane.b32.xlu0 %v42_v4, %s69_s0  ;;  %41 = vst.msk [vmem:[#allocation0 + $0x2] ss:$8 sm:$0x3] %vm35_vm0, %v38_v6  }
   0xd   :  { %36 = vst.msk [vmem:[#allocation0] ss:$8 sm:$0x3] %vm35_vm0, %v34_v5  }
  0x7e   :  { %v44_v7 = vpop.permute.xlu0 %43  }
  0x7f   :  { %47 = vst.msk [vmem:[#allocation0 + $0x1] ss:$8 sm:$0x3] %vm35_vm0, %v44_v7  }
  0x86   :  { %v53_v8 = vld [vmem:[#allocation0] sm:$0xf]  ;;  %v59_v9 = vld [vmem:[#allocation0 + $0x8] sm:$0xf] }
  0x87   :  { %v54_v11 = vpack.c.bf16 %v70_v10, %v53_v8  ;;  %v60_v12 = vpack.c.bf16 %v70_v10, %v59_v9 }
  0x89   :  { %57 = vst [vmem:[%s94_s1] sm:$0x3] %v54_v11  ;;  %66 = vst [vmem:[%s94_s1 + $0x2] sm:$0x3] %v60_v12 }

// kernel: _lambda_.127
= control target key start
LH: loop header
LB: loop body
LE: loop exit
PB: predicated region body
PF: predicated region fallthrough
CT: control target
= control target key end

     0   :  { %vm490_vm0 = vcmask 523264   ;;  %s1143_s1 = inlined_call_operand.vmem [shape: bf16[1,576,256], index: 1, kind: input, shape index: {}]   ;;  %s1144_s0 = inlined_call_operand.vmem [shape: bf16[1,16,576], index: 0, kind: input, shape index: {}]   ;;  %s1145_s2 = inlined_call_operand.vmem [shape: f32[1,1,256], index: 2, kind: input, shape index: {}]   ;;  %s1146_s3 = inlined_call_operand.vmem [shape: bf16[1,16,256], index: 3, kind: output, shape index: {}]  }
   0x1   :  { %v767_v0 = vld [vmem:[%s1143_s1 + $0x74] ss:$8 sps:$4 sm:$0xff]   ;;  %v771_v2 = vld [vmem:[%s1143_s1 + $0x70] ss:$8 sps:$4 sm:$0xff]   ;;  %v773_v4 = vld [vmem:[%s1143_s1 + $0x64] ss:$8 sps:$4 sm:$0xff]  }
   0x2   :  { %v769_v1 = vld [vmem:[%s1143_s1 + $0x174] ss:$8 sps:$4 sm:$0xff]   ;;  %494 = vmatprep.subr.bf16.mxu0 %v767_v0  ;;  %v772_v3 = vld [vmem:[%s1143_s1 + $0x170] ss:$8 sps:$4 sm:$0xff]   ;;  %v775_v5 = vld [vmem:[%s1143_s1 + $0x164] ss:$8 sps:$4 sm:$0xff]  }
   0x3   :  { %537 = vmatprep.subr.bf16.mxu1 %v769_v1  ;;  %495 = vmatpush1.bf16.msra.mxu0 %v771_v2  ;;  %v777_v6 = vld [vmem:[%s1143_s1 + $0x60] ss:$8 sps:$4 sm:$0xff]   ;;  %v779_v8 = vld [vmem:[%s1143_s1 + $0x54] ss:$8 sps:$4 sm:$0xff]   ;;  %v783_v10 = vld [vmem:[%s1143_s1 + $0x50] ss:$8 sps:$4 sm:$0xff]  }
   0x4   :  { %538 = vmatpush1.bf16.msra.mxu1 %v772_v3  ;;  %496 = vmatprep.subr.bf16.mxu0 %v773_v4  ;;  %v778_v7 = vld [vmem:[%s1143_s1 + $0x160] ss:$8 sps:$4 sm:$0xff]   ;;  %v781_v9 = vld [vmem:[%s1143_s1 + $0x154] ss:$8 sps:$4 sm:$0xff]   ;;  %v784_v11 = vld [vmem:[%s1143_s1 + $0x150] ss:$8 sps:$4 sm:$0xff]  }
   0x5   :  { %539 = vmatprep.subr.bf16.mxu1 %v775_v5  ;;  %v785_v12 = vld [vmem:[%s1143_s1 + $0x44] ss:$8 sps:$4 sm:$0xff]   ;;  %v789_v14 = vld [vmem:[%s1143_s1 + $0x40] ss:$8 sps:$4 sm:$0xff]   ;;  %v791_v16 = vld [vmem:[%s1143_s1 + $0x34] ss:$8 sps:$4 sm:$0xff]  }
   0x6   :  { %v787_v13 = vld [vmem:[%s1143_s1 + $0x144] ss:$8 sps:$4 sm:$0xff]   ;;  %v790_v15 = vld [vmem:[%s1143_s1 + $0x140] ss:$8 sps:$4 sm:$0xff]   ;;  %v793_v17 = vld [vmem:[%s1143_s1 + $0x134] ss:$8 sps:$4 sm:$0xff]  }
   0x7   :  { %497 = vmatpush1.bf16.msra.mxu0 %v777_v6  ;;  %v795_v18 = vld [vmem:[%s1143_s1 + $0x30] ss:$8 sps:$4 sm:$0xff]   ;;  %v797_v20 = vld [vmem:[%s1143_s1 + $0x24] ss:$8 sps:$4 sm:$0xff]   ;;  %v801_v22 = vld [vmem:[%s1143_s1 + $0x20] ss:$8 sps:$4 sm:$0xff]  }
   0x8   :  { %540 = vmatpush1.bf16.msra.mxu1 %v778_v7  ;;  %498 = vmatprep.subr.bf16.mxu0 %v779_v8  ;;  %v796_v19 = vld [vmem:[%s1143_s1 + $0x130] ss:$8 sps:$4 sm:$0xff]   ;;  %v799_v21 = vld [vmem:[%s1143_s1 + $0x124] ss:$8 sps:$4 sm:$0xff]   ;;  %v802_v23 = vld [vmem:[%s1143_s1 + $0x120] ss:$8 sps:$4 sm:$0xff]  }
   0x9   :  { %541 = vmatprep.subr.bf16.mxu1 %v781_v9  ;;  %v803_v24 = vld [vmem:[%s1143_s1 + $0x14] ss:$8 sps:$4 sm:$0xff]   ;;  %v807_v26 = vld [vmem:[%s1143_s1 + $0x10] ss:$8 sps:$4 sm:$0xff]   ;;  %v809_v28 = vld [vmem:[%s1143_s1 + $0x4] ss:$8 sps:$4 sm:$0xff]  }
   0xa   :  { %v805_v25 = vld [vmem:[%s1143_s1 + $0x114] ss:$8 sps:$4 sm:$0xff]   ;;  %v808_v27 = vld [vmem:[%s1143_s1 + $0x110] ss:$8 sps:$4 sm:$0xff]   ;;  %v811_v29 = vld [vmem:[%s1143_s1 + $0x104] ss:$8 sps:$4 sm:$0xff]  }
   0xb   :  { %499 = vmatpush1.bf16.msra.mxu0 %v783_v10  ;;  %v813_v30 = vld [vmem:[%s1143_s1] ss:$8 sps:$4 sm:$0xff]   ;;  %v815_v32 = vld [vmem:[%s1143_s1 + $0xf4] ss:$8 sps:$4 sm:$0xff]   ;;  %v819_v34 = vld [vmem:[%s1143_s1 + $0xf0] ss:$8 sps:$4 sm:$0xff]  }
   0xc   :  { %542 = vmatpush1.bf16.msra.mxu1 %v784_v11  ;;  %500 = vmatprep.subr.bf16.mxu0 %v785_v12  ;;  %v814_v31 = vld [vmem:[%s1143_s1 + $0x100] ss:$8 sps:$4 sm:$0xff]   ;;  %v817_v33 = vld [vmem:[%s1143_s1 + $0x1f4] ss:$8 sps:$4 sm:$0xff]   ;;  %v820_v35 = vld [vmem:[%s1143_s1 + $0x1f0] ss:$8 sps:$4 sm:$0xff]  }
   0xd   :  { %543 = vmatprep.subr.bf16.mxu1 %v787_v13  ;;  %v821_v36 = vld [vmem:[%s1143_s1 + $0xe4] ss:$8 sps:$4 sm:$0xff]   ;;  %v825_v38 = vld [vmem:[%s1143_s1 + $0xe0] ss:$8 sps:$4 sm:$0xff]   ;;  %v827_v40 = vld [vmem:[%s1143_s1 + $0xd4] ss:$8 sps:$4 sm:$0xff]  }
   0xe   :  { %v823_v37 = vld [vmem:[%s1143_s1 + $0x1e4] ss:$8 sps:$4 sm:$0xff]   ;;  %v826_v39 = vld [vmem:[%s1143_s1 + $0x1e0] ss:$8 sps:$4 sm:$0xff]   ;;  %v829_v41 = vld [vmem:[%s1143_s1 + $0x1d4] ss:$8 sps:$4 sm:$0xff]  }
   0xf   :  { %501 = vmatpush1.bf16.msra.mxu0 %v789_v14  ;;  %v831_v42 = vld [vmem:[%s1143_s1 + $0xd0] ss:$8 sps:$4 sm:$0xff]   ;;  %v833_v44 = vld [vmem:[%s1143_s1 + $0xc4] ss:$8 sps:$4 sm:$0xff]   ;;  %v837_v46 = vld [vmem:[%s1143_s1 + $0xc0] ss:$8 sps:$4 sm:$0xff]  }
  0x10   :  { %544 = vmatpush1.bf16.msra.mxu1 %v790_v15  ;;  %502 = vmatprep.subr.bf16.mxu0 %v791_v16  ;;  %v832_v43 = vld [vmem:[%s1143_s1 + $0x1d0] ss:$8 sps:$4 sm:$0xff]   ;;  %v835_v45 = vld [vmem:[%s1143_s1 + $0x1c4] ss:$8 sps:$4 sm:$0xff]   ;;  %v838_v47 = vld [vmem:[%s1143_s1 + $0x1c0] ss:$8 sps:$4 sm:$0xff]   ;;  %v640_v15 = vlaneseq }
  0x11   :  { %545 = vmatprep.subr.bf16.mxu1 %v793_v17  ;;  %v839_v48 = vld [vmem:[%s1143_s1 + $0xb4] ss:$8 sps:$4 sm:$0xff]   ;;  %v865_v49 = vld [vmem:[%s1144_s0 + $0x4] ss:$20 sps:$4 sm:$0xff]   ;;  %v868_v51 = vld [vmem:[%s1144_s0 + $0xc] ss:$20 sps:$4 sm:$0xff]  }
  0x12   :  { %v841_v50 = vld [vmem:[%s1143_s1 + $0x1b4] ss:$8 sps:$4 sm:$0xff]   ;;  %526 = vmatprep.mubr.bf16.mxu0 %v865_v49  ;;  %v843_v52 = vld [vmem:[%s1143_s1 + $0xb0] ss:$8 sps:$4 sm:$0xff]   ;;  %569 = vmatprep.mubr.bf16.mxu1 %v868_v51  ;;  %v845_v54 = vld [vmem:[%s1143_s1 + $0xa4] ss:$8 sps:$4 sm:$0xff]  }
  0x13   :  { %503 = vmatpush1.bf16.msra.mxu0 %v795_v18  ;;  %v844_v53 = vld [vmem:[%s1143_s1 + $0x1b0] ss:$8 sps:$4 sm:$0xff]   ;;  %v847_v55 = vld [vmem:[%s1143_s1 + $0x1a4] ss:$8 sps:$4 sm:$0xff]   ;;  %v849_v56 = vld [vmem:[%s1143_s1 + $0xa0] ss:$8 sps:$4 sm:$0xff]  }
  0x14   :  { %546 = vmatpush1.bf16.msra.mxu1 %v796_v19  ;;  %504 = vmatprep.subr.bf16.mxu0 %v797_v20  ;;  %v850_v57 = vld [vmem:[%s1143_s1 + $0x1a0] ss:$8 sps:$4 sm:$0xff]   ;;  %v851_v58 = vld [vmem:[%s1143_s1 + $0x94] ss:$8 sps:$4 sm:$0xff]   ;;  %v855_v60 = vld [vmem:[%s1143_s1 + $0x90] ss:$8 sps:$4 sm:$0xff]  }
  0x15   :  { %547 = vmatprep.subr.bf16.mxu1 %v799_v21  ;;  %v853_v59 = vld [vmem:[%s1143_s1 + $0x194] ss:$8 sps:$4 sm:$0xff]   ;;  %v856_v61 = vld [vmem:[%s1143_s1 + $0x190] ss:$8 sps:$4 sm:$0xff]   ;;  %v857_v62 = vld [vmem:[%s1143_s1 + $0x84] ss:$8 sps:$4 sm:$0xff]  }
  0x16   :  { %v859_v63 = vld [vmem:[%s1143_s1 + $0x184] ss:$8 sps:$4 sm:$0xff]   ;;  %v861_v0 = vld [vmem:[%s1143_s1 + $0x80] ss:$8 sps:$4 sm:$0xff]   ;;  %v871_v2 = vld [vmem:[%s1143_s1 + $0x234] ss:$8 sps:$4 sm:$0xff]  }
  0x17   :  { %505 = vmatpush1.bf16.msra.mxu0 %v801_v22  ;;  %v862_v1 = vld [vmem:[%s1143_s1 + $0x180] ss:$8 sps:$4 sm:$0xff]   ;;  %v869_v5 = vld [vmem:[%s1143_s1 + $0x230] ss:$8 sps:$4 sm:$0xff]   ;;  %v874_v6 = vld [vmem:[%s1143_s1 + $0x224] ss:$8 sps:$4 sm:$0xff]  }
  0x18   :  { %548 = vmatpush1.bf16.msra.mxu1 %v802_v23  ;;  %506 = vmatprep.subr.bf16.mxu0 %v803_v24  ;;  %v863_v3 = vld [vmem:[%s1144_s0] ss:$20 sps:$4 sm:$0xff]   ;;  %v866_v4 = vld [vmem:[%s1144_s0 + $0x8] ss:$20 sps:$4 sm:$0xff]   ;;  %v882_v8 = vmov 0   ;;  %v641_v18 = vshrl.u32 %v640_v15, 7 }
  0x19   :  { %549 = vmatprep.subr.bf16.mxu1 %v805_v25  ;;  %v872_v7 = vld [vmem:[%s1143_s1 + $0x220] ss:$8 sps:$4 sm:$0xff]   ;;  %v877_v9 = vld [vmem:[%s1143_s1 + $0x214] ss:$8 sps:$4 sm:$0xff]   ;;  %v875_v10 = vld [vmem:[%s1143_s1 + $0x210] ss:$8 sps:$4 sm:$0xff]  }
  0x1a   :  { %v880_v11 = vld [vmem:[%s1143_s1 + $0x204] ss:$8 sps:$4 sm:$0xff]   ;;  %v878_v12 = vld [vmem:[%s1143_s1 + $0x200] ss:$8 sps:$4 sm:$0xff]   ;;  %v642_v21 = vsub.s32 0, %v641_v18  ;;  %v646_v23 = vsub.s32 1, %v641_v18 }
  0x1b   :  { %507 = vmatpush1.bf16.msra.mxu0 %v807_v26  ;;  %v881_v13 = vld [vmem:[%s1144_s0 + $0x10] ss:$20 sps:$4 sm:$0xff]   ;;  %v638_v22 = vld [vmem:[%s1145_s2] sm:$0x3] }
  0x1c   :  { %550 = vmatpush1.bf16.msra.mxu1 %v808_v27  ;;  %508 = vmatprep.subr.bf16.mxu0 %v809_v28  ;;  %v643_v27 = vrot.slane %v638_v22, %v642_v21 }
  0x1d   :  { %551 = vmatprep.subr.bf16.mxu1 %v811_v29 }
  0x1f   :  { %509 = vmatpush1.bf16.msra.mxu0 %v813_v30 }
  0x20   :  { %552 = vmatpush1.bf16.msra.mxu1 %v814_v31  ;;  %510 = vmatprep.subr.bf16.mxu0 %v815_v32  ;;  %v647_v31 = vrot.slane %v638_v22, %v646_v23 }
  0x21   :  { %553 = vmatprep.subr.bf16.mxu1 %v817_v33 }
  0x23   :  { %511 = vmatpush2.bf16.msra.mxu0 %v819_v34 }
  0x24   :  { %554 = vmatpush2.bf16.msra.mxu1 %v820_v35  ;;  %512 = vmatprep.subr.bf16.mxu0 %v821_v36 }
  0x25   :  { %555 = vmatprep.subr.bf16.mxu1 %v823_v37 }
  0x27   :  { %513 = vmatpush2.bf16.msra.mxu0 %v825_v38 }
  0x28   :  { %556 = vmatpush2.bf16.msra.mxu1 %v826_v39  ;;  %514 = vmatprep.subr.bf16.mxu0 %v827_v40 }
  0x29   :  { %557 = vmatprep.subr.bf16.mxu1 %v829_v41 }
  0x2b   :  { %515 = vmatpush2.bf16.msra.mxu0 %v831_v42 }
  0x2c   :  { %558 = vmatpush2.bf16.msra.mxu1 %v832_v43  ;;  %516 = vmatprep.subr.bf16.mxu0 %v833_v44 }
  0x2d   :  { %559 = vmatprep.subr.bf16.mxu1 %v835_v45 }
  0x2f   :  { %517 = vmatpush2.bf16.msra.mxu0 %v837_v46 }
  0x30   :  { %560 = vmatpush2.bf16.msra.mxu1 %v838_v47  ;;  %518 = vmatprep.subr.bf16.mxu0 %v839_v48 }
  0x31   :  { %561 = vmatprep.subr.bf16.mxu1 %v841_v50 }
  0x33   :  { %519 = vmatpush2.bf16.msra.mxu0 %v843_v52 }
  0x34   :  { %562 = vmatpush2.bf16.msra.mxu1 %v844_v53  ;;  %520 = vmatprep.subr.bf16.mxu0 %v845_v54 }
  0x35   :  { %563 = vmatprep.subr.bf16.mxu1 %v847_v55 }
  0x37   :  { %521 = vmatpush2.bf16.msra.mxu0 %v849_v56 }
  0x38   :  { %564 = vmatpush2.bf16.msra.mxu1 %v850_v57  ;;  %522 = vmatprep.subr.bf16.mxu0 %v851_v58 }
  0x39   :  { %565 = vmatprep.subr.bf16.mxu1 %v853_v59 }
  0x3b   :  { %523 = vmatpush2.bf16.msra.mxu0 %v855_v60 }
  0x3c   :  { %566 = vmatpush2.bf16.msra.mxu1 %v856_v61  ;;  %524 = vmatprep.subr.bf16.mxu0 %v857_v62 }
  0x3d   :  { %567 = vmatprep.subr.bf16.mxu1 %v859_v63 }
  0x3f   :  { %525 = vmatpush2.bf16.msra.mxu0 %v861_v0 }
  0x40   :  { %568 = vmatpush2.bf16.msra.mxu1 %v862_v1  ;;  %588 = vmatprep.subr.bf16.mxu0 %v871_v2 }
  0x42   :  { %527 = vmatmul.mubr.bf16.vlgmr.msra.gmra.mxu0 %v863_v3 }
  0x43   :  { %570 = vmatmul.mubr.bf16.vlgmr.msra.gmra.mxu1 %v866_v4  ;;  %589 = vmatpush1.bf16.msra.mxu0 %v869_v5 }
  0x44   :  { %612 = vmatprep.mubr.bf16.mxu0 %v882_v8  ;;  %590 = vmatprep.subr.bf16.mxu0 %v874_v6 }
  0x47   :  { %591 = vmatpush1.bf16.msra.mxu0 %v872_v7 }
  0x48   :  { %592 = vmatprep.subr.bf16.mxu0 %v877_v9 }
  0x4b   :  { %593 = vmatpush1.bf16.msra.mxu0 %v875_v10 }
  0x4c   :  { %594 = vmatprep.subr.bf16.mxu0 %v880_v11 }
  0x4f   :  { %595 = vmatpush1.bf16.msra.mxu0 %v878_v12 }
  0x52   :  { %761 = vmatmul.mubr.msk.bf16.vlgmr.msra.gmra.mxu0 %vm490_vm0, %v881_v13 }
 0x102   :  { %v528_v14 = vpop.f32.mrf.mxu0 }
 0x103   :  { %v571_v17 = vpop.f32.mrf.mxu1 }
 0x104   :  { %v530_v16 = vpop.f32.mrf.mxu0  ;;  %v572_v25 = vadd.f32 %v571_v17, %v528_v14 }
 0x105   :  { %v573_v20 = vpop.f32.mrf.mxu1 }
 0x106   :  { %v532_v19 = vpop.f32.mrf.mxu0  ;;  %v574_v29 = vadd.f32 %v573_v20, %v530_v16 }
 0x107   :  { %v575_v26 = vpop.f32.mrf.mxu1 }
 0x108   :  { %v534_v24 = vpop.f32.mrf.mxu0  ;;  %v576_v33 = vadd.f32 %v575_v26, %v532_v19 }
 0x109   :  { %v577_v34 = vpop.f32.mrf.mxu1 }
 0x10a   :  { %v578_v41 = vadd.f32 %v577_v34, %v534_v24 }
 0x112   :  { %v614_v28 = vpop.f32.mrf.mxu0 }
 0x113   :  { %v615_v30 = vadd.f32 %v614_v28, %v572_v25 }
 0x114   :  { %v616_v32 = vpop.f32.mrf.mxu0 }
 0x115   :  { %v650_v35 = vadd.f32 %v643_v27, %v615_v30  ;;  %v617_v36 = vadd.f32 %v616_v32, %v574_v29 }
 0x116   :  { %v618_v37 = vpop.f32.mrf.mxu0 }
 0x117   :  { %v658_v38 = vmul.f32 0.01, %v650_v35  ;;  %v651_v39 = vadd.f32 %v647_v31, %v617_v36  ;;  %v619_v40 = vadd.f32 %v618_v37, %v576_v33  ;;  %vm654_vm1 = vcmp.ge.f32.partialorder %v650_v35, 0.0 }
 0x118   :  { %v620_v42 = vpop.f32.mrf.mxu0 }
 0x119   :  { %vm655_vm2 = vcmp.ge.f32.partialorder %v651_v39, 0.0  ;;  %v659_v43 = vmul.f32 0.01, %v651_v39  ;;  %v652_v44 = vadd.f32 %v643_v27, %v619_v40  ;;  %v621_v45 = vadd.f32 %v620_v42, %v578_v41 }
 0x11a   :  { %v662_v46 = vsel %vm654_vm1, %v650_v35, %v658_v38 }
 0x11b   :  { %v663_v47 = vsel %vm655_vm2, %v651_v39, %v659_v43  ;;  %v660_v49 = vmul.f32 0.01, %v652_v44  ;;  %v653_v50 = vadd.f32 %v647_v31, %v621_v45  ;;  %vm656_vm3 = vcmp.ge.f32.partialorder %v652_v44, 0.0 }
 0x11c   :  { %v764_v48 = vpack.c.bf16 %v663_v47, %v662_v46 }
 0x11d   :  { %vm657_vm4 = vcmp.ge.f32.partialorder %v653_v50, 0.0  ;;  %v661_v51 = vmul.f32 0.01, %v653_v50  ;;  %v664_v52 = vsel %vm656_vm3, %v652_v44, %v660_v49 }
 0x11e   :  { %678 = vst [vmem:[%s1146_s3] sm:$0xff] %v764_v48 }
 0x11f   :  { %v665_v53 = vsel %vm657_vm4, %v653_v50, %v661_v51 }
 0x120   :  { %v765_v54 = vpack.c.bf16 %v665_v53, %v664_v52 }
 0x122   :  { %679 = vst [vmem:[%s1146_s3 + $0x8] sm:$0xff] %v765_v54 }

// kernel: _lambda_.123
= control target key start
LH: loop header
LB: loop body
LE: loop exit
PB: predicated region body
PF: predicated region fallthrough
CT: control target
= control target key end

     0   :  { %s1140_s12 = smov 0   ;;  %s1142_s13 = smov 0   ;;  %s1223_s0 = inlined_call_operand.vmem [shape: bf16[3,16,576], index: 0, kind: input, shape index: {}]   ;;  %s1224_s1 = inlined_call_operand.vmem [shape: bf16[3,576,128], index: 1, kind: input, shape index: {}]   ;;  %s1225_s2 = inlined_call_operand.vmem [shape: f32[3,1,128], index: 2, kind: input, shape index: {}]   ;;  %s1226_s3 = inlined_call_operand.vmem [shape: bf16[3,16,128], index: 3, kind: output, shape index: {}]  }
   0x1   :  { %s1144_s14 = smov 0  }
   0x2 LB: > { %s32_s15 = sadd.s32 1, %s1112_s13  ;;  %p902_p0 = scmp.ge.s32.totalorder %s1116_s14, 1  ;;  %s1116_s14 = sphi %s1144_s14, %s13_s14   ;;  %s1112_s13 = sphi %s1142_s13, %s1228_s13   ;;  %s1108_s12 = sphi %s1140_s12, %s1227_s12  }
   0x3   : > { %p34_p1 = scmp.ge.s32.totalorder %s32_s15, 3  ;;  %p198_p2 = scmp.lt.s32.totalorder %s1116_s14, 4 }
   0x5   : > { %s1230_s15 = smov (%p34_p1, %s32_s15), 0  ;;  %p199_p3 = pnand %p902_p0, %p198_p2 }
   0x6   : > { %p249_p4 = scmp.lt.s32.totalorder (!%p199_p3), %s1108_s12, 2 }
   0x7   : > { %202 = sbr.rel (%p199_p3) target bundleno = 273 (0x111), region = 32 }
   0xc   : > { %s1232_s12 = smov (!%p249_p4, %s1108_s12), 2  ;;  %v1118_v34 = vmov 0.0   ;;  %vm1119_vm0 = vmmov 0   ;;  %vm614_vm1 = vcmask 523264  }
   0xd   : > { %s1024_s16 = smul.u32 288, %s1232_s12  ;;  %s275_s26 = scalar_lea.vmem %s1225_s2, %s1232_s12 }
   0xe   : > { %s1023_s20 = smul.u32 40, %s1232_s12  ;;  %v949_v56 = vld [vmem:[%s275_s26] ss:$0 sm:$0xff]  ;;  %s954_s27 = sshll.u32 %s1232_s12, 3 }
   0xf   : > { %s1164_s19 = scalar_lea.vmem %s1224_s1, %s1024_s16  ;;  %s284_s30 = scalar_lea.vmem %s1226_s3, %s954_s27 }
  0x10   : > { %v1051_v0 = vld [vmem:[%s1164_s19 + $0x78] sm:$0xff]   ;;  %v1055_v4 = vld [vmem:[%s1164_s19 + $0x70] sm:$0xff]   ;;  %v1059_v8 = vld [vmem:[%s1164_s19 + $0x68] sm:$0xff]   ;;  %s260_s23 = scalar_lea.vmem %s1223_s0, %s1023_s20 }
  0x11   : > { %v1052_v1 = vld [vmem:[%s1164_s19 + $0xf8] sm:$0xff]   ;;  %962 = vmatprep.subr.bf16.mxu0 %v1051_v0  ;;  %v1056_v5 = vld [vmem:[%s1164_s19 + $0xf0] sm:$0xff]   ;;  %v1060_v9 = vld [vmem:[%s1164_s19 + $0xe8] sm:$0xff]  }
  0x12   : > { %v1053_v2 = vld [vmem:[%s1164_s19 + $0x38] sm:$0xff]   ;;  %984 = vmatprep.subr.bf16.mxu1 %v1052_v1  ;;  %v1057_v6 = vld [vmem:[%s1164_s19 + $0x30] sm:$0xff]   ;;  %v1061_v10 = vld [vmem:[%s1164_s19 + $0x28] sm:$0xff]  }
  0x13   : > { %v1054_v3 = vld [vmem:[%s1164_s19 + $0xb8] sm:$0xff]   ;;  %963 = vmatpush3.bf16.msra.mxu0 %v1053_v2  ;;  %v1058_v7 = vld [vmem:[%s1164_s19 + $0xb0] sm:$0xff]   ;;  %v1062_v11 = vld [vmem:[%s1164_s19 + $0xa8] sm:$0xff]  }
  0x14   : > { %985 = vmatpush3.bf16.msra.mxu1 %v1054_v3  ;;  %964 = vmatprep.subr.bf16.mxu0 %v1055_v4  ;;  %v1063_v12 = vld [vmem:[%s1164_s19 + $0x60] sm:$0xff]   ;;  %v1067_v16 = vld [vmem:[%s1164_s19 + $0x58] sm:$0xff]   ;;  %v1071_v20 = vld [vmem:[%s1164_s19 + $0x50] sm:$0xff]  }
  0x15   : > { %986 = vmatprep.subr.bf16.mxu1 %v1056_v5  ;;  %v1064_v13 = vld [vmem:[%s1164_s19 + $0xe0] sm:$0xff]   ;;  %v1068_v17 = vld [vmem:[%s1164_s19 + $0xd8] sm:$0xff]   ;;  %v1072_v21 = vld [vmem:[%s1164_s19 + $0xd0] sm:$0xff]  }
  0x16   : > { %v1065_v14 = vld [vmem:[%s1164_s19 + $0x20] sm:$0xff]   ;;  %v1069_v18 = vld [vmem:[%s1164_s19 + $0x18] sm:$0xff]   ;;  %v1073_v22 = vld [vmem:[%s1164_s19 + $0x10] sm:$0xff]  }
  0x17   : > { %965 = vmatpush3.bf16.msra.mxu0 %v1057_v6  ;;  %v1066_v15 = vld [vmem:[%s1164_s19 + $0xa0] sm:$0xff]   ;;  %v1070_v19 = vld [vmem:[%s1164_s19 + $0x98] sm:$0xff]   ;;  %v1074_v23 = vld [vmem:[%s1164_s19 + $0x90] sm:$0xff]  }
  0x18   : > { %987 = vmatpush3.bf16.msra.mxu1 %v1058_v7  ;;  %966 = vmatprep.subr.bf16.mxu0 %v1059_v8  ;;  %v1075_v24 = vld [vmem:[%s1164_s19 + $0x48] sm:$0xff]   ;;  %v1079_v28 = vld [vmem:[%s1164_s19 + $0x40] sm:$0xff]   ;;  %v1089_v37 = vld [vmem:[%s1164_s19 + $0x118] sm:$0xff]  }
  0x19   : > { %988 = vmatprep.subr.bf16.mxu1 %v1060_v9  ;;  %v1076_v25 = vld [vmem:[%s1164_s19 + $0xc8] sm:$0xff]   ;;  %v1080_v29 = vld [vmem:[%s1164_s19 + $0xc0] sm:$0xff]   ;;  %v1090_v38 = vld [vmem:[%s1164_s19 + $0x110] sm:$0xff]  }
  0x1a   : > { %v1077_v26 = vld [vmem:[%s1164_s19 + $0x8] sm:$0xff]   ;;  %v1081_v30 = vld [vmem:[%s1164_s19] sm:$0xff]  }
  0x1b   : > { %967 = vmatpush3.bf16.msra.mxu0 %v1061_v10  ;;  %v1078_v27 = vld [vmem:[%s1164_s19 + $0x88] sm:$0xff]   ;;  %v1082_v31 = vld [vmem:[%s1164_s19 + $0x80] sm:$0xff]  }
  0x1c   : > { %989 = vmatpush3.bf16.msra.mxu1 %v1062_v11  ;;  %968 = vmatprep.subr.bf16.mxu0 %v1063_v12  ;;  %v1083_v32 = vld [vmem:[%s260_s23] ss:$20 sps:$4 sm:$0xff]   ;;  %v1085_v33 = vld [vmem:[%s260_s23 + $0x4] ss:$20 sps:$4 sm:$0xff]   ;;  %v1086_v35 = vld [vmem:[%s260_s23 + $0x8] ss:$20 sps:$4 sm:$0xff]  }
  0x1d   : > { %990 = vmatprep.subr.bf16.mxu1 %v1064_v13  ;;  %v1088_v36 = vld [vmem:[%s260_s23 + $0xc] ss:$20 sps:$4 sm:$0xff]   ;;  %650 = vmatprep.mubr.bf16.mxu0 %v1085_v33  ;;  %v1093_v41 = vld [vmem:[%s260_s23 + $0x10] ss:$20 sps:$4 sm:$0xff]  }
  0x1e   : > { %691 = vmatprep.mubr.bf16.mxu1 %v1088_v36  ;;  %v1091_v39 = vld [vmem:[%s1164_s19 + $0x108] sm:$0xff]   ;;  %v1092_v40 = vld [vmem:[%s1164_s19 + $0x100] sm:$0xff]  }
  0x1f   : > { %969 = vmatpush3.bf16.msra.mxu0 %v1065_v14 }
  0x20   : > { %991 = vmatpush3.bf16.msra.mxu1 %v1066_v15  ;;  %970 = vmatprep.subr.bf16.mxu0 %v1067_v16 }
  0x21   : > { %992 = vmatprep.subr.bf16.mxu1 %v1068_v17 }
  0x23   : > { %971 = vmatpush3.bf16.msra.mxu0 %v1069_v18 }
  0x24   : > { %993 = vmatpush3.bf16.msra.mxu1 %v1070_v19  ;;  %972 = vmatprep.subr.bf16.mxu0 %v1071_v20 }
  0x25   : > { %994 = vmatprep.subr.bf16.mxu1 %v1072_v21 }
  0x27   : > { %973 = vmatpush3.bf16.msra.mxu0 %v1073_v22 }
  0x28   : > { %995 = vmatpush3.bf16.msra.mxu1 %v1074_v23  ;;  %974 = vmatprep.subr.bf16.mxu0 %v1075_v24 }
  0x29   : > { %996 = vmatprep.subr.bf16.mxu1 %v1076_v25 }
  0x2b   : > { %975 = vmatpush3.bf16.msra.mxu0 %v1077_v26 }
  0x2c   : > { %997 = vmatpush3.bf16.msra.mxu1 %v1078_v27  ;;  %976 = vmatprep.subr.bf16.mxu0 %v1079_v28 }
  0x2d   : > { %998 = vmatprep.subr.bf16.mxu1 %v1080_v29 }
  0x2f   : > { %977 = vmatpush3.bf16.msra.mxu0 %v1081_v30 }
  0x30   : > { %999 = vmatpush3.bf16.msra.mxu1 %v1082_v31  ;;  %1011 = vmatprep.subr.bf16.mxu0 %v1118_v34 }
  0x32   : > { %651 = vmatmul.mubr.bf16.vlgmr.msra.gmra.mxu0 %v1083_v32 }
  0x33   : > { %692 = vmatmul.mubr.bf16.vlgmr.msra.gmra.mxu1 %v1086_v35  ;;  %1012 = vmatpush3.bf16.msra.mxu0 %v1089_v37 }
  0x34   : > { %1013 = vmatprep.subr.bf16.mxu0 %v1118_v34  ;;  %1019 = vmatprep.mubr.msk.bf16.mxu0 %vm1119_vm0, %v1118_v34 }
  0x37   : > { %1014 = vmatpush3.bf16.msra.mxu0 %v1090_v38 }
  0x38   : > { %1015 = vmatprep.subr.bf16.mxu0 %v1118_v34 }
  0x3b   : > { %1016 = vmatpush3.bf16.msra.mxu0 %v1091_v39 }
  0x3c   : > { %1017 = vmatprep.subr.bf16.mxu0 %v1118_v34 }
  0x3f   : > { %1018 = vmatpush3.bf16.msra.mxu0 %v1092_v40 }
  0x42   : > { %1020 = vmatmul.mubr.msk.bf16.vlgmr.msra.gmra.mxu0 %vm614_vm1, %v1093_v41 }
  0xf2   : > { %v978_v42 = vpop.f32.mrf.mxu0 }
  0xf3   : > { %v1000_v43 = vpop.f32.mrf.mxu1 }
  0xf4   : > { %v979_v44 = vpop.f32.mrf.mxu0 }
  0xf5   : > { %v1001_v45 = vpop.f32.mrf.mxu1  ;;  %v980_v48 = vadd.f32 %v979_v44, %v978_v42 }
  0xf6   : > { %v981_v46 = vpop.f32.mrf.mxu0  ;;  %v1002_v49 = vadd.f32 %v1001_v45, %v1000_v43 }
  0xf7   : > { %v1003_v47 = vpop.f32.mrf.mxu1 }
  0xf8   : > { %v982_v50 = vpop.f32.mrf.mxu0  ;;  %v694_v54 = vadd.f32 %v1002_v49, %v980_v48 }
  0xf9   : > { %v1004_v51 = vpop.f32.mrf.mxu1  ;;  %v983_v52 = vadd.f32 %v982_v50, %v981_v46 }
  0xfa   : > { %v1005_v53 = vadd.f32 %v1004_v51, %v1003_v47 }
  0xfc   : > { %v697_v60 = vadd.f32 %v1005_v53, %v983_v52 }
 0x102   : > { %v734_v55 = vpop.f32.mrf.mxu0 }
 0x103   : > { %v735_v57 = vadd.f32 %v734_v55, %v694_v54 }
 0x104   : > { %v1021_v58 = vpop.f32.mrf.mxu0 }
 0x105   : > { %v757_v59 = vadd.f32 %v949_v56, %v735_v57 }
 0x106   : > { %v737_v61 = vpop.f32.mrf.mxu0 }
 0x107   : > { %v738_v62 = vadd.f32 %v737_v61, %v697_v60  ;;  %v761_v0 = vmul.f32 0.01, %v757_v59  ;;  %vm759_vm2 = vcmp.ge.f32.partialorder %v757_v59, 0.0 }
 0x108   : > { %v1022_v63 = vpop.f32.mrf.mxu0 }
 0x109   : > { %v758_v1 = vadd.f32 %v949_v56, %v738_v62  ;;  %v763_v3 = vsel %vm759_vm2, %v757_v59, %v761_v0 }
 0x10b   : > { %vm760_vm3 = vcmp.ge.f32.partialorder %v758_v1, 0.0  ;;  %v762_v2 = vmul.f32 0.01, %v758_v1 }
 0x10d   : > { %v764_v4 = vsel %vm760_vm3, %v758_v1, %v762_v2 }
 0x10e   : > { %v960_v5 = vpack.c.bf16 %v764_v4, %v763_v3 }
 0x110   : > { %961 = vst [vmem:[%s284_s30] sm:$0xff] %v960_v5  }
 0x111 PF: > { %s13_s14 = sadd.s32 1, %s1116_s14   ;;  %s1227_s12 = smov %s1112_s13 }
 0x112   : > { %p10_p5 = scmp.ge.s32.totalorder %s13_s14, 5   ;;  %s1228_s13 = smov %s1230_s15 }
 0x114   :  { %12 = sbr.rel (!%p10_p5) target bundleno = 2 (0x2), region = 76 }

// kernel: _lambda_.132
= control target key start
LH: loop header
LB: loop body
LE: loop exit
PB: predicated region body
PF: predicated region fallthrough
CT: control target
= control target key end

     0   :  { %s904_s15 = smov 0   ;;  %s906_s16 = smov 0   ;;  %s951_s0 = inlined_call_operand.vmem [shape: bf16[1,128,16], index: 0, kind: input, shape index: {}]   ;;  %s952_s1 = inlined_call_operand.vmem [shape: bf16[1,16,128], index: 1, kind: input, shape index: {}]   ;;  %s953_s2 = inlined_call_operand.vmem [shape: f32[1,1,128], index: 2, kind: input, shape index: {}]   ;;  %s954_s3 = inlined_call_operand.vmem [shape: bf16[1,128,128], index: 3, kind: input, shape index: {}]   ;;  %s955_s4 = inlined_call_operand.vmem [shape: bf16[1,128,128], index: 4, kind: output, shape index: {}]  }
   0x1   :  { %s908_s17 = smov 0  }
   0x2 LB: > { %s29_s18 = sadd.s32 1, %s873_s16  ;;  %p732_p0 = scmp.ge.s32.totalorder %s877_s17, 1  ;;  %s877_s17 = sphi %s908_s17, %s14_s17   ;;  %s873_s16 = sphi %s906_s16, %s957_s16   ;;  %s869_s15 = sphi %s904_s15, %s956_s15  }
   0x3   : > { %p31_p1 = scmp.ge.s32.totalorder %s29_s18, 2  ;;  %p237_p2 = scmp.lt.s32.totalorder %s877_s17, 3 }
   0x5   : > { %s959_s18 = smov (%p31_p1, %s29_s18), 0  ;;  %p238_p3 = pnand %p732_p0, %p237_p2 }
   0x6   : > { %s733_s21 = sshll.u32 (!%p238_p3), %s869_s15, 3 }
   0x7   : > { %241 = sbr.rel (%p238_p3) target bundleno = 223 (0xdf), region = 36  ;;  %p298_p4 = scmp.lt.s32.totalorder (!%p238_p3), %s733_s21, 15 }
   0xc   : > { %v850_v0 = vld [vmem:[%s952_s1] sm:$0xff]   ;;  %s961_s21 = smov (!%p298_p4, %s733_s21), 15  ;;  %vm398_vm0 = vcmask 130048  }
   0xd   : > { %814 = vmatprep.subr.bf16.mxu0 %v850_v0  ;;  %824 = vmatprep.subr.bf16.mxu1 %v850_v0  ;;  %s925_s22 = sshll.u32 %s961_s21, 2  ;;  %v748_v6 = vld [vmem:[%s953_s2] ss:$0 sm:$0xff] }
   0xe   : > { %815 = vmatpush3.bf16.msra.mxu0 %v850_v0  ;;  %825 = vmatpush3.bf16.msra.mxu1 %v850_v0  ;;  %s306_s25 = scalar_lea.vmem %s951_s0, %s925_s22  ;;  %s329_s28 = scalar_lea.vmem %s954_s3, %s925_s22 }
   0xf   : > { %v851_v1 = vld [vmem:[%s306_s25] sm:$0xff]   ;;  %v852_v2 = vld [vmem:[%s306_s25 + $0x10] sm:$0xff]   ;;  %v853_v3 = vld [vmem:[%s306_s25 + $0x8] sm:$0xff]   ;;  %s339_s7 = scalar_lea.vmem %s955_s4, %s925_s22 }
  0x10   : > { %816 = vmatprep.mubr.msk.bf16.mxu0 %vm398_vm0, %v851_v1  ;;  %820 = vmatprep.mubr.msk.bf16.mxu1 %vm398_vm0, %v852_v2  ;;  %v854_v4 = vld [vmem:[%s306_s25 + $0x18] sm:$0xff]   ;;  %v803_v7 = vld [vmem:[%s329_s28 + $0x8] sm:$0xff]   ;;  %v768_v11 = vld [vmem:[%s329_s28] sm:$0xff]  }
  0x11   : > { %817 = vmatmul.mubr.msk.bf16.vlgmr.msra.gmra.mxu0 %vm398_vm0, %v853_v3  ;;  %821 = vmatmul.mubr.msk.bf16.vlgmr.msra.gmra.mxu1 %vm398_vm0, %v854_v4  ;;  %v805_v9 = vld [vmem:[%s329_s28 + $0x18] sm:$0xff]   ;;  %v773_v13 = vunpack.c.l.bf16 %v803_v7  ;;  %v804_v15 = vld [vmem:[%s329_s28 + $0x10] sm:$0xff]   ;;  %v774_v16 = vunpack.c.h.bf16 %v803_v7  ;;  %v769_v22 = vunpack.c.l.bf16 %v768_v11  ;;  %v770_v25 = vunpack.c.h.bf16 %v768_v11 }
  0x12   : > { %v781_v18 = vunpack.c.l.bf16 %v805_v9  ;;  %v782_v20 = vunpack.c.h.bf16 %v805_v9  ;;  %v777_v27 = vunpack.c.l.bf16 %v804_v15  ;;  %v778_v30 = vunpack.c.h.bf16 %v804_v15 }
  0xd1   : > { %v818_v5 = vpop.f32.mrf.mxu0  ;;  %v822_v8 = vpop.f32.mrf.mxu1 }
  0xd2   : > { %v512_v12 = vadd.f32 %v818_v5, %v748_v6  ;;  %v516_v17 = vadd.f32 %v822_v8, %v748_v6 }
  0xd3   : > { %v445_v10 = vpop.f32.mrf.mxu0  ;;  %v461_v14 = vpop.f32.mrf.mxu1 }
  0xd4   : > { %v510_v21 = vadd.f32 %v748_v6, %v445_v10  ;;  %v514_v26 = vadd.f32 %v748_v6, %v461_v14  ;;  %v536_v31 = vadd.f32 %v773_v13, %v512_v12  ;;  %v540_v35 = vadd.f32 %v781_v18, %v516_v17 }
  0xd5   : > { %v819_v19 = vpop.f32.mrf.mxu0  ;;  %v823_v24 = vpop.f32.mrf.mxu1 }
  0xd6   : > { %v513_v23 = vadd.f32 %v819_v19, %v748_v6  ;;  %v517_v28 = vadd.f32 %v823_v24, %v748_v6  ;;  %v534_v38 = vadd.f32 %v769_v22, %v510_v21  ;;  %v538_v41 = vadd.f32 %v777_v27, %v514_v26 }
  0xd7   : > { %v448_v29 = vpop.f32.mrf.mxu0  ;;  %v464_v34 = vpop.f32.mrf.mxu1 }
  0xd8   : > { %v537_v32 = vadd.f32 %v774_v16, %v513_v23  ;;  %v511_v33 = vadd.f32 %v748_v6, %v448_v29  ;;  %v541_v36 = vadd.f32 %v782_v20, %v517_v28  ;;  %v515_v37 = vadd.f32 %v748_v6, %v464_v34 }
  0xda   : > { %v791_v39 = vpack.c.bf16 %v537_v32, %v536_v31  ;;  %v535_v40 = vadd.f32 %v770_v25, %v511_v33  ;;  %v801_v42 = vpack.c.bf16 %v541_v36, %v540_v35  ;;  %v539_v43 = vadd.f32 %v778_v30, %v515_v37 }
  0xdc   : > { %806 = vst [vmem:[%s339_s7 + $0x8] sm:$0xff] %v791_v39   ;;  %v786_v44 = vpack.c.bf16 %v535_v40, %v534_v38  ;;  %808 = vst [vmem:[%s339_s7 + $0x18] sm:$0xff] %v801_v42   ;;  %v796_v45 = vpack.c.bf16 %v539_v43, %v538_v41 }
  0xde   : > { %787 = vst [vmem:[%s339_s7] sm:$0xff] %v786_v44   ;;  %807 = vst [vmem:[%s339_s7 + $0x10] sm:$0xff] %v796_v45  }
  0xdf PF: > { %s14_s17 = sadd.s32 1, %s877_s17   ;;  %s956_s15 = smov %s873_s16 }
  0xe0   : > { %p11_p5 = scmp.ge.s32.totalorder %s14_s17, 4   ;;  %s957_s16 = smov %s959_s18 }
  0xe2   :  { %13 = sbr.rel (!%p11_p5) target bundleno = 2 (0x2), region = 83 }

// kernel: squeeze.107
= control target key start
LH: loop header
LB: loop body
LE: loop exit
PB: predicated region body
PF: predicated region fallthrough
CT: control target
= control target key end

     0   :  { %s2044_s30 = smov 192  ;;  %vm387_vm0 = vcmask 523264   ;;  %s2051_s2 = smov 48  ;;  %vm649_vm1 = vcmask 1045508   ;;  %vm654_vm2 = vcmask 1047558   ;;  %s2439_s0 = inlined_call_operand.vmem [shape: bf16[1,32,704], index: 0, kind: input, shape index: {}]   ;;  %s2440_s1 = inlined_call_operand.vmem [shape: bf16[2,4,4,11,64], index: 1, kind: output, shape index: {}]  }
   0x1   :  { %v1893_v0 = vld [vmem:[%s2439_s0 + $0x48] sm:$0xff]   ;;  %v1895_v1 = vld [vmem:[%s2439_s0 + $0x38] sm:$0xff]   ;;  %v1900_v7 = vld [vmem:[%s2439_s0 + $0x10] sm:$0xff]   ;;  %s2053_s3 = smov 192  ;;  %s666_s4 = smov 48 }
   0x2   :  { %v1897_v2 = vld [vmem:[%s2439_s0 + $0x28] sm:$0xff]   ;;  %v1964_v3 = vunpack.c.h.bf16 %v1893_v0  ;;  %v1966_v4 = vunpack.c.h.bf16 %v1895_v1  ;;  %v1899_v6 = vld [vmem:[%s2439_s0 + $0x18] sm:$0xff]   ;;  %v1981_v10 = vunpack.c.l.bf16 %v1900_v7  ;;  %v1728_v13 = vld [vmem:[%s2439_s0] sm:$0xff]   ;;  %v1722_v31 = vunpack.c.h.bf16 %v1900_v7  ;;  %s671_s5 = smov 192  ;;  %s704_s6 = smov 48 }
   0x3   :  { %v1968_v5 = vunpack.c.h.bf16 %v1897_v2  ;;  %v1901_v8 = vld [vmem:[%s2439_s0 + $0x8] sm:$0xff]   ;;  %v1979_v9 = vunpack.c.h.bf16 %v1899_v6  ;;  %v1892_v14 = vld [vmem:[%s2439_s0 + $0x50] sm:$0xff]   ;;  %v1894_v15 = vld [vmem:[%s2439_s0 + $0x40] sm:$0xff]   ;;  %v1729_v16 = vunpack.c.l.bf16 %v1728_v13  ;;  %v1730_v17 = vunpack.c.h.bf16 %v1728_v13  ;;  %s709_s7 = smov 192  ;;  %s2235_s8 = smov 48 }
   0x4   :  { %v1983_v11 = vunpack.c.l.bf16 %v1901_v8  ;;  %v1985_v12 = vunpack.c.h.bf16 %v1901_v8  ;;  %85 = vst [vmem:[#allocation1 + $0x98] sm:$0xff] %v1964_v3  ;;  %149 = vst [vmem:[#allocation1 + $0x78] sm:$0xff] %v1966_v4  ;;  %v1999_v18 = vunpack.c.l.bf16 %v1892_v14  ;;  %v2001_v19 = vunpack.c.l.bf16 %v1894_v15  ;;  %v1896_v20 = vld [vmem:[%s2439_s0 + $0x30] sm:$0xff]   ;;  %v1898_v21 = vld [vmem:[%s2439_s0 + $0x20] sm:$0xff]   ;;  %s2237_s9 = smov 192  ;;  %s742_s10 = smov 48 }
   0x5   :  { %213 = vst [vmem:[#allocation1 + $0x58] sm:$0xff] %v1968_v5  ;;  %v1891_v22 = vld [vmem:[%s2439_s0 + $0x58] sm:$0xff]   ;;  %277 = vst [vmem:[#allocation1 + $0x38] sm:$0xff] %v1979_v9  ;;  %v2016_v23 = vunpack.c.l.bf16 %v1896_v20  ;;  %v2018_v24 = vunpack.c.l.bf16 %v1898_v21  ;;  %v2020_v25 = vunpack.c.h.bf16 %v1892_v14  ;;  %v2022_v26 = vunpack.c.h.bf16 %v1894_v15  ;;  %s2032_s0 = smov 48  ;;  %s747_s11 = smov 192 }
   0x6   :  { %325 = vst [vmem:[#allocation1 + $0x20] sm:$0xff] %v1981_v10  ;;  %341 = vst [vmem:[#allocation1 + $0x18] sm:$0xff] %v1985_v12  ;;  %v2026_v27 = vunpack.c.h.bf16 %v1896_v20  ;;  %v2028_v28 = vunpack.c.l.bf16 %v1897_v2  ;;  %v2030_v29 = vunpack.c.h.bf16 %v1898_v21  ;;  %v1717_v30 = vunpack.c.l.bf16 %v1899_v6  ;;  %s1944_s12 = smov 64   ;;  %s780_s13 = smov 48 }
   0x7   :  { %357 = vst [vmem:[#allocation1 + $0x10] sm:$0xff] %v1983_v11  ;;  %372 = vst [vmem:[#allocation1 + $0x8] sm:$0xff] %v1730_v17  ;;  %v2038_v32 = vunpack.c.l.bf16 %v1893_v0  ;;  %v2040_v33 = vunpack.c.l.bf16 %v1895_v1  ;;  %v2042_v34 = vunpack.c.l.bf16 %v1891_v22  ;;  %v2049_v35 = vunpack.c.h.bf16 %v1891_v22  ;;  %s785_s14 = smov 192  ;;  %s761_s15 = smov 48 }
   0x8   :  { %385 = vst [vmem:[#allocation1] sm:$0xff] %v1729_v16  ;;  %69 = vst [vmem:[#allocation1 + $0xa0] sm:$0xff] %v1999_v18  ;;  %s766_s16 = smov 192  ;;  %s818_s17 = smov 48 }
   0x9   :  { %133 = vst [vmem:[#allocation1 + $0x80] sm:$0xff] %v2001_v19  ;;  %197 = vst [vmem:[#allocation1 + $0x60] sm:$0xff] %v2016_v23  ;;  %s799_s18 = smov 48  ;;  %s804_s19 = smov 192 }
   0xa   :  { %261 = vst [vmem:[#allocation1 + $0x40] sm:$0xff] %v2018_v24  ;;  %53 = vst [vmem:[#allocation1 + $0xa8] sm:$0xff] %v2020_v25  ;;  %s837_s20 = smov 48  ;;  %s823_s21 = smov 192 }
   0xb   :  { %117 = vst [vmem:[#allocation1 + $0x88] sm:$0xff] %v2022_v26  ;;  %181 = vst [vmem:[#allocation1 + $0x68] sm:$0xff] %v2026_v27  ;;  %s856_s22 = smov 48  ;;  %s842_s23 = smov 192 }
   0xc   :  { %229 = vst [vmem:[#allocation1 + $0x50] sm:$0xff] %v2028_v28  ;;  %245 = vst [vmem:[#allocation1 + $0x48] sm:$0xff] %v2030_v29  ;;  %s875_s24 = smov 48  ;;  %s861_s25 = smov 192 }
   0xd   :  { %293 = vst [vmem:[#allocation1 + $0x30] sm:$0xff] %v1717_v30  ;;  %309 = vst [vmem:[#allocation1 + $0x28] sm:$0xff] %v1722_v31  ;;  %s894_s26 = smov 48  ;;  %s880_s27 = smov 192 }
   0xe   :  { %101 = vst [vmem:[#allocation1 + $0x90] sm:$0xff] %v2038_v32  ;;  %165 = vst [vmem:[#allocation1 + $0x70] sm:$0xff] %v2040_v33  ;;  %s913_s28 = smov 48  ;;  %s899_s29 = smov 192 }
   0xf   :  { %37 = vst [vmem:[#allocation1 + $0xb0] sm:$0xff] %v2042_v34  ;;  %388 = vst.msk [vmem:[#allocation0] ss:$16 sm:$0x3] %vm387_vm0, %v1729_v16   ;;  %v648_v37 = vld [vmem:[#allocation1 + $0x9c] ss:$-31 sm:%s2032_s0]  }
  0x10   :  { %396 = vst.msk [vmem:[#allocation0 + $0x2] ss:$16 sm:$0x3] %vm387_vm0, %v1730_v17   ;;  %407 = vst.msk [vmem:[#allocation0 + $0x4] ss:$16 sm:$0x3] %vm387_vm0, %v1983_v11  }
  0x11   :  { %418 = vst.msk [vmem:[#allocation0 + $0x6] ss:$16 sm:$0x3] %vm387_vm0, %v1985_v12   ;;  %429 = vst.msk [vmem:[#allocation0 + $0x8] ss:$16 sm:$0x3] %vm387_vm0, %v1981_v10  }
  0x12   :  { %440 = vst.msk [vmem:[#allocation0 + $0xa] ss:$16 sm:$0x3] %vm387_vm0, %v1722_v31   ;;  %389 = vst.msk [vmem:[#allocation0] ss:$16 sm:$0xc] %vm387_vm0, %v1729_v16  }
  0x13   :  { %390 = vst.msk [vmem:[#allocation0] ss:$16 sm:$0x30] %vm387_vm0, %v1729_v16   ;;  %391 = vst.msk [vmem:[#allocation0] ss:$16 sm:$0xc0] %vm387_vm0, %v1729_v16  }
  0x14   :  { %398 = vst.msk [vmem:[#allocation0 + $0x2] ss:$16 sm:$0xc] %vm387_vm0, %v1730_v17   ;;  %400 = vst.msk [vmem:[#allocation0 + $0x2] ss:$16 sm:$0x30] %vm387_vm0, %v1730_v17  }
  0x15   :  { %402 = vst.msk [vmem:[#allocation0 + $0x2] ss:$16 sm:$0xc0] %vm387_vm0, %v1730_v17   ;;  %409 = vst.msk [vmem:[#allocation0 + $0x4] ss:$16 sm:$0xc] %vm387_vm0, %v1983_v11  }
  0x16   :  { %411 = vst.msk [vmem:[#allocation0 + $0x4] ss:$16 sm:$0x30] %vm387_vm0, %v1983_v11   ;;  %413 = vst.msk [vmem:[#allocation0 + $0x4] ss:$16 sm:$0xc0] %vm387_vm0, %v1983_v11  }
  0x17   :  { %420 = vst.msk [vmem:[#allocation0 + $0x6] ss:$16 sm:$0xc] %vm387_vm0, %v1985_v12   ;;  %422 = vst.msk [vmem:[#allocation0 + $0x6] ss:$16 sm:$0x30] %vm387_vm0, %v1985_v12  }
  0x18   :  { %424 = vst.msk [vmem:[#allocation0 + $0x6] ss:$16 sm:$0xc0] %vm387_vm0, %v1985_v12   ;;  %431 = vst.msk [vmem:[#allocation0 + $0x8] ss:$16 sm:$0xc] %vm387_vm0, %v1981_v10  }
  0x19   :  { %433 = vst.msk [vmem:[#allocation0 + $0x8] ss:$16 sm:$0x30] %vm387_vm0, %v1981_v10   ;;  %435 = vst.msk [vmem:[#allocation0 + $0x8] ss:$16 sm:$0xc0] %vm387_vm0, %v1981_v10  }
  0x1a   :  { %442 = vst.msk [vmem:[#allocation0 + $0xa] ss:$16 sm:$0xc] %vm387_vm0, %v1722_v31   ;;  %444 = vst.msk [vmem:[#allocation0 + $0xa] ss:$16 sm:$0x30] %vm387_vm0, %v1722_v31  }
  0x1b   :  { %446 = vst.msk [vmem:[#allocation0 + $0xa] ss:$16 sm:$0xc0] %vm387_vm0, %v1722_v31   ;;  %451 = vst.msk [vmem:[#allocation0 + $0x80] ss:$16 sm:$0x3] %vm387_vm0, %v1717_v30  }
  0x1c   :  { %462 = vst.msk [vmem:[#allocation0 + $0x82] ss:$16 sm:$0x3] %vm387_vm0, %v1979_v9   ;;  %473 = vst.msk [vmem:[#allocation0 + $0x84] ss:$16 sm:$0x3] %vm387_vm0, %v2018_v24  }
  0x1d   :  { %484 = vst.msk [vmem:[#allocation0 + $0x86] ss:$16 sm:$0x3] %vm387_vm0, %v2030_v29   ;;  %495 = vst.msk [vmem:[#allocation0 + $0x88] ss:$16 sm:$0x3] %vm387_vm0, %v2028_v28  }
  0x1e   :  { %506 = vst.msk [vmem:[#allocation0 + $0x8a] ss:$16 sm:$0x3] %vm387_vm0, %v1968_v5   ;;  %453 = vst.msk [vmem:[#allocation0 + $0x80] ss:$16 sm:$0xc] %vm387_vm0, %v1717_v30  }
  0x1f   :  { %455 = vst.msk [vmem:[#allocation0 + $0x80] ss:$16 sm:$0x30] %vm387_vm0, %v1717_v30   ;;  %457 = vst.msk [vmem:[#allocation0 + $0x80] ss:$16 sm:$0xc0] %vm387_vm0, %v1717_v30  }
  0x20   :  { %464 = vst.msk [vmem:[#allocation0 + $0x82] ss:$16 sm:$0xc] %vm387_vm0, %v1979_v9   ;;  %466 = vst.msk [vmem:[#allocation0 + $0x82] ss:$16 sm:$0x30] %vm387_vm0, %v1979_v9  }
  0x21   :  { %468 = vst.msk [vmem:[#allocation0 + $0x82] ss:$16 sm:$0xc0] %vm387_vm0, %v1979_v9   ;;  %475 = vst.msk [vmem:[#allocation0 + $0x84] ss:$16 sm:$0xc] %vm387_vm0, %v2018_v24  }
  0x22   :  { %477 = vst.msk [vmem:[#allocation0 + $0x84] ss:$16 sm:$0x30] %vm387_vm0, %v2018_v24   ;;  %479 = vst.msk [vmem:[#allocation0 + $0x84] ss:$16 sm:$0xc0] %vm387_vm0, %v2018_v24  }
  0x23   :  { %486 = vst.msk [vmem:[#allocation0 + $0x86] ss:$16 sm:$0xc] %vm387_vm0, %v2030_v29   ;;  %488 = vst.msk [vmem:[#allocation0 + $0x86] ss:$16 sm:$0x30] %vm387_vm0, %v2030_v29  }
  0x24   :  { %490 = vst.msk [vmem:[#allocation0 + $0x86] ss:$16 sm:$0xc0] %vm387_vm0, %v2030_v29   ;;  %497 = vst.msk [vmem:[#allocation0 + $0x88] ss:$16 sm:$0xc] %vm387_vm0, %v2028_v28  }
  0x25   :  { %499 = vst.msk [vmem:[#allocation0 + $0x88] ss:$16 sm:$0x30] %vm387_vm0, %v2028_v28   ;;  %501 = vst.msk [vmem:[#allocation0 + $0x88] ss:$16 sm:$0xc0] %vm387_vm0, %v2028_v28  }
  0x26   :  { %508 = vst.msk [vmem:[#allocation0 + $0x8a] ss:$16 sm:$0xc] %vm387_vm0, %v1968_v5   ;;  %510 = vst.msk [vmem:[#allocation0 + $0x8a] ss:$16 sm:$0x30] %vm387_vm0, %v1968_v5  }
  0x27   :  { %512 = vst.msk [vmem:[#allocation0 + $0x8a] ss:$16 sm:$0xc0] %vm387_vm0, %v1968_v5   ;;  %519 = vst.msk [vmem:[#allocation0 + $0x100] ss:$16 sm:$0xc] %vm387_vm0, %v2016_v23  }
  0x28   :  { %530 = vst.msk [vmem:[#allocation0 + $0x102] ss:$16 sm:$0xc] %vm387_vm0, %v2026_v27   ;;  %541 = vst.msk [vmem:[#allocation0 + $0x104] ss:$16 sm:$0xc] %vm387_vm0, %v2040_v33  }
  0x29   :  { %552 = vst.msk [vmem:[#allocation0 + $0x106] ss:$16 sm:$0xc] %vm387_vm0, %v1966_v4   ;;  %563 = vst.msk [vmem:[#allocation0 + $0x108] ss:$16 sm:$0xc] %vm387_vm0, %v2001_v19  }
  0x2a   :  { %574 = vst.msk [vmem:[#allocation0 + $0x10a] ss:$16 sm:$0xc] %vm387_vm0, %v2022_v26   ;;  %517 = vst.msk [vmem:[#allocation0 + $0x100] ss:$16 sm:$0x3] %vm387_vm0, %v2016_v23  }
  0x2b   :  { %521 = vst.msk [vmem:[#allocation0 + $0x100] ss:$16 sm:$0x30] %vm387_vm0, %v2016_v23   ;;  %523 = vst.msk [vmem:[#allocation0 + $0x100] ss:$16 sm:$0xc0] %vm387_vm0, %v2016_v23  }
  0x2c   :  { %528 = vst.msk [vmem:[#allocation0 + $0x102] ss:$16 sm:$0x3] %vm387_vm0, %v2026_v27   ;;  %532 = vst.msk [vmem:[#allocation0 + $0x102] ss:$16 sm:$0x30] %vm387_vm0, %v2026_v27  }
  0x2d   :  { %534 = vst.msk [vmem:[#allocation0 + $0x102] ss:$16 sm:$0xc0] %vm387_vm0, %v2026_v27   ;;  %539 = vst.msk [vmem:[#allocation0 + $0x104] ss:$16 sm:$0x3] %vm387_vm0, %v2040_v33  }
  0x2e   :  { %543 = vst.msk [vmem:[#allocation0 + $0x104] ss:$16 sm:$0x30] %vm387_vm0, %v2040_v33   ;;  %545 = vst.msk [vmem:[#allocation0 + $0x104] ss:$16 sm:$0xc0] %vm387_vm0, %v2040_v33  }
  0x2f   :  { %550 = vst.msk [vmem:[#allocation0 + $0x106] ss:$16 sm:$0x3] %vm387_vm0, %v1966_v4   ;;  %554 = vst.msk [vmem:[#allocation0 + $0x106] ss:$16 sm:$0x30] %vm387_vm0, %v1966_v4  }
  0x30   :  { %556 = vst.msk [vmem:[#allocation0 + $0x106] ss:$16 sm:$0xc0] %vm387_vm0, %v1966_v4   ;;  %561 = vst.msk [vmem:[#allocation0 + $0x108] ss:$16 sm:$0x3] %vm387_vm0, %v2001_v19  }
  0x31   :  { %565 = vst.msk [vmem:[#allocation0 + $0x108] ss:$16 sm:$0x30] %vm387_vm0, %v2001_v19   ;;  %567 = vst.msk [vmem:[#allocation0 + $0x108] ss:$16 sm:$0xc0] %vm387_vm0, %v2001_v19  }
  0x32   :  { %572 = vst.msk [vmem:[#allocation0 + $0x10a] ss:$16 sm:$0x3] %vm387_vm0, %v2022_v26   ;;  %576 = vst.msk [vmem:[#allocation0 + $0x10a] ss:$16 sm:$0x30] %vm387_vm0, %v2022_v26  }
  0x33   :  { %578 = vst.msk [vmem:[#allocation0 + $0x10a] ss:$16 sm:$0xc0] %vm387_vm0, %v2022_v26   ;;  %585 = vst.msk [vmem:[#allocation0 + $0x180] ss:$16 sm:$0xc] %vm387_vm0, %v2038_v32  }
  0x34   :  { %596 = vst.msk [vmem:[#allocation0 + $0x182] ss:$16 sm:$0xc] %vm387_vm0, %v1964_v3   ;;  %607 = vst.msk [vmem:[#allocation0 + $0x184] ss:$16 sm:$0xc] %vm387_vm0, %v1999_v18  }
  0x35   :  { %618 = vst.msk [vmem:[#allocation0 + $0x186] ss:$16 sm:$0xc] %vm387_vm0, %v2020_v25   ;;  %629 = vst.msk [vmem:[#allocation0 + $0x188] ss:$16 sm:$0xc] %vm387_vm0, %v2042_v34  }
  0x36   :  { %583 = vst.msk [vmem:[#allocation0 + $0x180] ss:$16 sm:$0x3] %vm387_vm0, %v2038_v32   ;;  %587 = vst.msk [vmem:[#allocation0 + $0x180] ss:$16 sm:$0x30] %vm387_vm0, %v2038_v32  }
  0x37   :  { %589 = vst.msk [vmem:[#allocation0 + $0x180] ss:$16 sm:$0xc0] %vm387_vm0, %v2038_v32   ;;  %594 = vst.msk [vmem:[#allocation0 + $0x182] ss:$16 sm:$0x3] %vm387_vm0, %v1964_v3  }
  0x38   :  { %598 = vst.msk [vmem:[#allocation0 + $0x182] ss:$16 sm:$0x30] %vm387_vm0, %v1964_v3   ;;  %600 = vst.msk [vmem:[#allocation0 + $0x182] ss:$16 sm:$0xc0] %vm387_vm0, %v1964_v3  }
  0x39   :  { %605 = vst.msk [vmem:[#allocation0 + $0x184] ss:$16 sm:$0x3] %vm387_vm0, %v1999_v18   ;;  %609 = vst.msk [vmem:[#allocation0 + $0x184] ss:$16 sm:$0x30] %vm387_vm0, %v1999_v18  }
  0x3a   :  { %611 = vst.msk [vmem:[#allocation0 + $0x184] ss:$16 sm:$0xc0] %vm387_vm0, %v1999_v18   ;;  %616 = vst.msk [vmem:[#allocation0 + $0x186] ss:$16 sm:$0x3] %vm387_vm0, %v2020_v25  }
  0x3b   :  { %620 = vst.msk [vmem:[#allocation0 + $0x186] ss:$16 sm:$0x30] %vm387_vm0, %v2020_v25   ;;  %622 = vst.msk [vmem:[#allocation0 + $0x186] ss:$16 sm:$0xc0] %vm387_vm0, %v2020_v25  }
  0x3c   :  { %627 = vst.msk [vmem:[#allocation0 + $0x188] ss:$16 sm:$0x3] %vm387_vm0, %v2042_v34   ;;  %631 = vst.msk [vmem:[#allocation0 + $0x188] ss:$16 sm:$0x30] %vm387_vm0, %v2042_v34  }
  0x3d   :  { %633 = vst.msk [vmem:[#allocation0 + $0x188] ss:$16 sm:$0xc0] %vm387_vm0, %v2042_v34   ;;  %21 = vst [vmem:[#allocation1 + $0xb8] sm:$0xff] %v2049_v35  ;;  %v653_v39 = vld [vmem:[#allocation1 - $0x27] ss:$8 sm:%s2044_s30]  }
  0x3e   :  { %638 = vst.msk [vmem:[#allocation0 + $0x18a] ss:$16 sm:$0x3] %vm387_vm0, %v2049_v35   ;;  %640 = vst.msk [vmem:[#allocation0 + $0x18a] ss:$16 sm:$0xc] %vm387_vm0, %v2049_v35  }
  0x3f   :  { %642 = vst.msk [vmem:[#allocation0 + $0x18a] ss:$16 sm:$0x30] %vm387_vm0, %v2049_v35   ;;  %644 = vst.msk [vmem:[#allocation0 + $0x18a] ss:$16 sm:$0xc0] %vm387_vm0, %v2049_v35  }
  0x40   :  { %v645_v36 = vld [vmem:[#allocation1] ss:$8 sm:$0xf]   ;;  %v683_v40 = vld [vmem:[#allocation1 + $0x4] ss:$8 sm:$0xf]  }
  0x41   :  { %v650_v38 = vsel %vm649_vm1, %v648_v37, %v645_v36  ;;  %v686_v42 = vld [vmem:[#allocation1 + $0xa0] ss:$-31 sm:%s2051_s2]   ;;  %v724_v57 = vld [vmem:[#allocation1 + $0xcc] ss:$-31 sm:%s2235_s8]   ;;  %s932_s0 = smov 48  ;;  %s918_s30 = smov 192 }
  0x42   :  { %v655_v41 = vsel %vm654_vm2, %v653_v39, %v650_v38  ;;  %v691_v43 = vld [vmem:[#allocation1 - $0x23] ss:$8 sm:%s2053_s3]   ;;  %v688_v45 = vsel %vm649_vm1, %v686_v42, %v683_v40  ;;  %v664_v46 = vld [vmem:[#allocation1 + $0x2] ss:$8 sm:$0xf]   ;;  %s937_s2 = smov 192 }
  0x43   :  { %v667_v44 = vld [vmem:[#allocation1 + $0x9e] ss:$-31 sm:%s666_s4]   ;;  %656 = vrot.lane.b32.xlu0 %v655_v41, %s1944_s12  ;;  %v693_v48 = vsel %vm654_vm2, %v691_v43, %v688_v45  ;;  %v743_v59 = vld [vmem:[#allocation1 + $0xce] ss:$-31 sm:%s742_s10]  }
  0x44   :  { %v672_v47 = vld [vmem:[#allocation1 - $0x25] ss:$8 sm:%s671_s5]   ;;  %v669_v49 = vsel %vm649_vm1, %v667_v44, %v664_v46  ;;  %v702_v50 = vld [vmem:[#allocation1 + $0x6] ss:$8 sm:$0xf]   ;;  %694 = vrot.lane.b32.xlu1 %v693_v48, %s1944_s12 }
  0x45   :  { %v705_v51 = vld [vmem:[#allocation1 + $0xa2] ss:$-31 sm:%s704_s6]   ;;  %v674_v52 = vsel %vm654_vm2, %v672_v47, %v669_v49  ;;  %v781_v2 = vld [vmem:[#allocation1 + $0xd2] ss:$-31 sm:%s780_s13]  }
  0x46   :  { %v707_v53 = vsel %vm649_vm1, %v705_v51, %v702_v50  ;;  %v710_v54 = vld [vmem:[#allocation1 - $0x21] ss:$8 sm:%s709_s7]   ;;  %v721_v55 = vld [vmem:[#allocation1 + $0x30] ss:$8 sm:$0xf]  }
  0x47   :  { %v712_v56 = vsel %vm654_vm2, %v710_v54, %v707_v53  ;;  %v729_v58 = vld [vmem:[#allocation1 + $0x9] ss:$8 sm:%s2237_s9]   ;;  %675 = vrot.lane.b32.xlu0 %v674_v52, %s1944_s12  ;;  %v726_v60 = vsel %vm649_vm1, %v724_v57, %v721_v55  ;;  %v740_v61 = vld [vmem:[#allocation1 + $0x32] ss:$8 sm:$0xf]  }
  0x48   :  { %v748_v62 = vld [vmem:[#allocation1 + $0xb] ss:$8 sm:%s747_s11]   ;;  %v731_v63 = vsel %vm654_vm2, %v729_v58, %v726_v60  ;;  %v745_v0 = vsel %vm649_vm1, %v743_v59, %v740_v61  ;;  %v778_v1 = vld [vmem:[#allocation1 + $0x36] ss:$8 sm:$0xf]   ;;  %713 = vrot.lane.b32.xlu1 %v712_v56, %s1944_s12 }
  0x49   :  { %v759_v3 = vld [vmem:[#allocation1 + $0x34] ss:$8 sm:$0xf]   ;;  %v750_v4 = vsel %vm654_vm2, %v748_v62, %v745_v0  ;;  %v786_v5 = vld [vmem:[#allocation1 + $0xf] ss:$8 sm:%s785_s14]   ;;  %v783_v8 = vsel %vm649_vm1, %v781_v2, %v778_v1 }
  0x4a   :  { %v762_v6 = vld [vmem:[#allocation1 + $0xd0] ss:$-31 sm:%s761_s15]   ;;  %v819_v11 = vld [vmem:[#allocation1 + $0xfe] ss:$-31 sm:%s818_s17]   ;;  %v788_v17 = vsel %vm654_vm2, %v786_v5, %v783_v8 }
  0x4b   :  { %v767_v7 = vld [vmem:[#allocation1 + $0xd] ss:$8 sm:%s766_s16]   ;;  %732 = vrot.lane.b32.xlu0 %v731_v63, %s1944_s12  ;;  %v764_v9 = vsel %vm649_vm1, %v762_v6, %v759_v3  ;;  %v816_v10 = vld [vmem:[#allocation1 + $0x62] ss:$8 sm:$0xf]  }
  0x4c   :  { %v769_v12 = vsel %vm654_vm2, %v767_v7, %v764_v9  ;;  %v797_v13 = vld [vmem:[#allocation1 + $0x60] ss:$8 sm:$0xf]   ;;  %751 = vrot.lane.b32.xlu1 %v750_v4, %s1944_s12  ;;  %v805_v16 = vld [vmem:[#allocation1 + $0x39] ss:$8 sm:%s804_s19]   ;;  %v821_v19 = vsel %vm649_vm1, %v819_v11, %v816_v10 }
  0x4d   :  { %v800_v14 = vld [vmem:[#allocation1 + $0xfc] ss:$-31 sm:%s799_s18]   ;;  %v876_v29 = vld [vmem:[#allocation1 + $0x12c] ss:$-31 sm:%s875_s24]  }
  0x4e   :  { %v802_v15 = vsel %vm649_vm1, %v800_v14, %v797_v13  ;;  %v838_v18 = vld [vmem:[#allocation1 + $0x100] ss:$-31 sm:%s837_s20]   ;;  %v895_v34 = vld [vmem:[#allocation1 + $0x12e] ss:$-31 sm:%s894_s26]  }
  0x4f   :  { %770 = vrot.lane.b32.xlu0 %v769_v12, %s1944_s12  ;;  %v824_v20 = vld [vmem:[#allocation1 + $0x3b] ss:$8 sm:%s823_s21]   ;;  %v835_v21 = vld [vmem:[#allocation1 + $0x64] ss:$8 sm:$0xf]   ;;  %v807_v22 = vsel %vm654_vm2, %v805_v16, %v802_v15 }
  0x50   :  { %v854_v23 = vld [vmem:[#allocation1 + $0x66] ss:$8 sm:$0xf]   ;;  %789 = vrot.lane.b32.xlu1 %v788_v17, %s1944_s12  ;;  %v840_v25 = vsel %vm649_vm1, %v838_v18, %v835_v21  ;;  %v843_v26 = vld [vmem:[#allocation1 + $0x3d] ss:$8 sm:%s842_s23]   ;;  %v826_v27 = vsel %vm654_vm2, %v824_v20, %v821_v19 }
  0x51   :  { %v857_v24 = vld [vmem:[#allocation1 + $0x102] ss:$-31 sm:%s856_s22]   ;;  %v845_v32 = vsel %vm654_vm2, %v843_v26, %v840_v25  ;;  %v914_v39 = vld [vmem:[#allocation1 + $0x130] ss:$-31 sm:%s913_s28]  }
  0x52   :  { %v873_v28 = vld [vmem:[#allocation1 + $0x90] ss:$8 sm:$0xf]   ;;  %v859_v30 = vsel %vm649_vm1, %v857_v24, %v854_v23  ;;  %v862_v31 = vld [vmem:[#allocation1 + $0x3f] ss:$8 sm:%s861_s25]  }
  0x53   :  { %808 = vrot.lane.b32.xlu0 %v807_v22, %s1944_s12  ;;  %v892_v33 = vld [vmem:[#allocation1 + $0x92] ss:$8 sm:$0xf]   ;;  %v878_v35 = vsel %vm649_vm1, %v876_v29, %v873_v28  ;;  %v881_v36 = vld [vmem:[#allocation1 + $0x69] ss:$8 sm:%s880_s27]   ;;  %v864_v37 = vsel %vm654_vm2, %v862_v31, %v859_v30 }
  0x54   :  { %827 = vrot.lane.b32.xlu1 %v826_v27, %s1944_s12  ;;  %v911_v38 = vld [vmem:[#allocation1 + $0x94] ss:$8 sm:$0xf]   ;;  %v897_v40 = vsel %vm649_vm1, %v895_v34, %v892_v33  ;;  %v900_v41 = vld [vmem:[#allocation1 + $0x6b] ss:$8 sm:%s899_s29]   ;;  %v883_v42 = vsel %vm654_vm2, %v881_v36, %v878_v35 }
  0x55   :  { %v930_v43 = vld [vmem:[#allocation1 + $0x96] ss:$8 sm:$0xf]   ;;  %v916_v45 = vsel %vm649_vm1, %v914_v39, %v911_v38  ;;  %v919_v46 = vld [vmem:[#allocation1 + $0x6d] ss:$8 sm:%s918_s30]   ;;  %v902_v47 = vsel %vm654_vm2, %v900_v41, %v897_v40 }
  0x56   :  { %v933_v44 = vld [vmem:[#allocation1 + $0x132] ss:$-31 sm:%s932_s0]   ;;  %v921_v50 = vsel %vm654_vm2, %v919_v46, %v916_v45 }
  0x57   :  { %846 = vrot.lane.b32.xlu0 %v845_v32, %s1944_s12  ;;  %v935_v48 = vsel %vm649_vm1, %v933_v44, %v930_v43  ;;  %v938_v49 = vld [vmem:[#allocation1 + $0x6f] ss:$8 sm:%s937_s2]  }
  0x58   :  { %865 = vrot.lane.b32.xlu1 %v864_v37, %s1944_s12  ;;  %v949_v51 = vld.sshfl [vmem:[#allocation1 + $0x19] sm:$0xff pattern:$0xe6c4a280]   ;;  %v962_v52 = vld.sshfl [vmem:[#allocation1 + $0x49] sm:$0xff pattern:$0xe6c4a280]   ;;  %v940_v53 = vsel %vm654_vm2, %v938_v49, %v935_v48 }
  0x59   :  { %v975_v54 = vld.sshfl [vmem:[#allocation1 + $0x79] sm:$0xff pattern:$0xe6c4a280]   ;;  %v988_v55 = vld.sshfl [vmem:[#allocation1 + $0xa9] sm:$0xff pattern:$0xe6c4a280]   ;;  %v1934_v56 = vpack.i.bf16 %v962_v52, %v949_v51 }
  0x5a   :  { %v1939_v57 = vpack.i.bf16 %v988_v55, %v975_v54 }
  0x5b   :  { %884 = vrot.lane.b32.xlu0 %v883_v42, %s1944_s12 }
  0x5c   :  { %903 = vrot.lane.b32.xlu1 %v902_v47, %s1944_s12 }
  0x5f   :  { %922 = vrot.lane.b32.xlu0 %v921_v50, %s1944_s12 }
  0x60   :  { %941 = vrot.lane.b32.xlu1 %v940_v53, %s1944_s12 }
  0x63   :  { %1935 = vrot.lane.b32.xlu0 %v1934_v56, %s1944_s12 }
  0x64   :  { %1940 = vrot.lane.b32.xlu1 %v1939_v57, %s1944_s12 }
  0xb5   :  { %v657_v58 = vpop.permute.xlu0 %656  }
  0xb6   :  { %660 = vst.msk [vmem:[#allocation0 + $0x1] ss:$2 sm:$0x1f] %vm387_vm0, %v657_v58   ;;  %662 = vst.msk [vmem:[#allocation0 + $0x7] ss:$2 sm:$0xe0] %vm387_vm0, %v657_v58   ;;  %v695_v59 = vpop.permute.xlu1 %694  }
  0xb7   :  { %698 = vst.msk [vmem:[#allocation0 + $0x41] ss:$2 sm:$0x1f] %vm387_vm0, %v695_v59   ;;  %700 = vst.msk [vmem:[#allocation0 + $0x47] ss:$2 sm:$0xe0] %vm387_vm0, %v695_v59  }
  0xb9   :  { %v676_v60 = vpop.permute.xlu0 %675  }
  0xba   :  { %679 = vst.msk [vmem:[#allocation0 + $0x21] ss:$2 sm:$0x1f] %vm387_vm0, %v676_v60   ;;  %681 = vst.msk [vmem:[#allocation0 + $0x27] ss:$2 sm:$0xe0] %vm387_vm0, %v676_v60   ;;  %v714_v61 = vpop.permute.xlu1 %713  }
  0xbb   :  { %717 = vst.msk [vmem:[#allocation0 + $0x61] ss:$2 sm:$0x1f] %vm387_vm0, %v714_v61   ;;  %719 = vst.msk [vmem:[#allocation0 + $0x67] ss:$2 sm:$0xe0] %vm387_vm0, %v714_v61  }
  0xbd   :  { %v1005_v62 = vld [vmem:[#allocation0] sm:$0xff]  ;;  %v1011_v63 = vld [vmem:[#allocation0 + $0x8] sm:$0xff]  ;;  %v733_v0 = vpop.permute.xlu0 %732  }
  0xbe   :  { %v1734_v1 = vpack.c.bf16 %v1011_v63, %v1005_v62  ;;  %736 = vst.msk [vmem:[#allocation0 + $0x81] ss:$2 sm:$0x1f] %vm387_vm0, %v733_v0   ;;  %738 = vst.msk [vmem:[#allocation0 + $0x87] ss:$2 sm:$0xe0] %vm387_vm0, %v733_v0   ;;  %v752_v4 = vpop.permute.xlu1 %751  }
  0xbf   :  { %v1066_v2 = vld [vmem:[#allocation0 + $0x40] sm:$0xff]  ;;  %v1074_v3 = vld [vmem:[#allocation0 + $0x48] sm:$0xff]  ;;  %755 = vst.msk [vmem:[#allocation0 + $0xa1] ss:$2 sm:$0x1f] %vm387_vm0, %v752_v4  }
  0xc0   :  { %1735 = vst [vmem:[%s2440_s1] sm:$0xff] %v1734_v1   ;;  %v1754_v5 = vpack.c.bf16 %v1074_v3, %v1066_v2  ;;  %757 = vst.msk [vmem:[#allocation0 + $0xa7] ss:$2 sm:$0xe0] %vm387_vm0, %v752_v4  }
  0xc1   :  { %v1034_v6 = vld [vmem:[#allocation0 + $0x20] sm:$0xff]  ;;  %v1042_v7 = vld [vmem:[#allocation0 + $0x28] sm:$0xff]  ;;  %v771_v8 = vpop.permute.xlu0 %770  }
  0xc2   :  { %1905 = vst [vmem:[%s2440_s1 + $0x20] sm:$0xff] %v1754_v5   ;;  %v1744_v9 = vpack.c.bf16 %v1042_v7, %v1034_v6  ;;  %774 = vst.msk [vmem:[#allocation0 + $0xc1] ss:$2 sm:$0x1f] %vm387_vm0, %v771_v8   ;;  %v1098_v10 = vld [vmem:[#allocation0 + $0x60] sm:$0xff]  ;;  %v1106_v11 = vld [vmem:[#allocation0 + $0x68] sm:$0xff]  ;;  %v790_v12 = vpop.permute.xlu1 %789  }
  0xc3   :  { %776 = vst.msk [vmem:[#allocation0 + $0xc7] ss:$2 sm:$0xe0] %vm387_vm0, %v771_v8   ;;  %v1764_v13 = vpack.c.bf16 %v1106_v11, %v1098_v10  ;;  %793 = vst.msk [vmem:[#allocation0 + $0xe1] ss:$2 sm:$0x1f] %vm387_vm0, %v790_v12  }
  0xc4   :  { %1903 = vst [vmem:[%s2440_s1 + $0x10] sm:$0xff] %v1744_v9   ;;  %795 = vst.msk [vmem:[#allocation0 + $0xe7] ss:$2 sm:$0xe0] %vm387_vm0, %v790_v12  }
  0xc5   :  { %v1130_v14 = vld [vmem:[#allocation0 + $0x80] sm:$0xff]  ;;  %v1138_v15 = vld [vmem:[#allocation0 + $0x88] sm:$0xff]  ;;  %v809_v16 = vpop.permute.xlu0 %808   ;;  %1907 = vst [vmem:[%s2440_s1 + $0x30] sm:$0xff] %v1764_v13  }
  0xc6   :  { %v1774_v17 = vpack.c.bf16 %v1138_v15, %v1130_v14  ;;  %812 = vst.msk [vmem:[#allocation0 + $0x101] ss:$2 sm:$0x1f] %vm387_vm0, %v809_v16   ;;  %814 = vst.msk [vmem:[#allocation0 + $0x107] ss:$2 sm:$0xe0] %vm387_vm0, %v809_v16   ;;  %v828_v20 = vpop.permute.xlu1 %827  }
  0xc7   :  { %v1162_v18 = vld [vmem:[#allocation0 + $0xa0] sm:$0xff]  ;;  %v1170_v19 = vld [vmem:[#allocation0 + $0xa8] sm:$0xff]  ;;  %831 = vst.msk [vmem:[#allocation0 + $0x121] ss:$2 sm:$0x1f] %vm387_vm0, %v828_v20  }
  0xc8   :  { %1909 = vst [vmem:[%s2440_s1 + $0x40] sm:$0xff] %v1774_v17   ;;  %v1784_v21 = vpack.c.bf16 %v1170_v19, %v1162_v18  ;;  %833 = vst.msk [vmem:[#allocation0 + $0x127] ss:$2 sm:$0xe0] %vm387_vm0, %v828_v20  }
  0xc9   :  { %v1194_v22 = vld [vmem:[#allocation0 + $0xc0] sm:$0xff]  ;;  %v1202_v23 = vld [vmem:[#allocation0 + $0xc8] sm:$0xff]  ;;  %v847_v24 = vpop.permute.xlu0 %846  }
  0xca   :  { %1911 = vst [vmem:[%s2440_s1 + $0x50] sm:$0xff] %v1784_v21   ;;  %v1794_v25 = vpack.c.bf16 %v1202_v23, %v1194_v22  ;;  %850 = vst.msk [vmem:[#allocation0 + $0x141] ss:$2 sm:$0x1f] %vm387_vm0, %v847_v24   ;;  %v1226_v26 = vld [vmem:[#allocation0 + $0xe0] sm:$0xff]  ;;  %v1234_v27 = vld [vmem:[#allocation0 + $0xe8] sm:$0xff]  ;;  %v866_v28 = vpop.permute.xlu1 %865  }
  0xcb   :  { %852 = vst.msk [vmem:[#allocation0 + $0x147] ss:$2 sm:$0xe0] %vm387_vm0, %v847_v24   ;;  %v1804_v29 = vpack.c.bf16 %v1234_v27, %v1226_v26  ;;  %869 = vst.msk [vmem:[#allocation0 + $0x161] ss:$2 sm:$0x1f] %vm387_vm0, %v866_v28  }
  0xcc   :  { %1913 = vst [vmem:[%s2440_s1 + $0x60] sm:$0xff] %v1794_v25   ;;  %871 = vst.msk [vmem:[#allocation0 + $0x167] ss:$2 sm:$0xe0] %vm387_vm0, %v866_v28  }
  0xcd   :  { %v1258_v30 = vld [vmem:[#allocation0 + $0x100] sm:$0xff]  ;;  %v1266_v31 = vld [vmem:[#allocation0 + $0x108] sm:$0xff]  ;;  %v885_v32 = vpop.permute.xlu0 %884   ;;  %1915 = vst [vmem:[%s2440_s1 + $0x70] sm:$0xff] %v1804_v29  }
  0xce   :  { %v1814_v33 = vpack.c.bf16 %v1266_v31, %v1258_v30  ;;  %888 = vst.msk [vmem:[#allocation0 + $0x181] ss:$2 sm:$0x1f] %vm387_vm0, %v885_v32   ;;  %890 = vst.msk [vmem:[#allocation0 + $0x187] ss:$2 sm:$0xe0] %vm387_vm0, %v885_v32   ;;  %v904_v36 = vpop.permute.xlu1 %903  }
  0xcf   :  { %v1290_v34 = vld [vmem:[#allocation0 + $0x120] sm:$0xff]  ;;  %v1298_v35 = vld [vmem:[#allocation0 + $0x128] sm:$0xff]  ;;  %907 = vst.msk [vmem:[#allocation0 + $0x1a1] ss:$2 sm:$0x1f] %vm387_vm0, %v904_v36  }
  0xd0   :  { %v1824_v37 = vpack.c.bf16 %v1298_v35, %v1290_v34  ;;  %1917 = vst [vmem:[%s2440_s1 + $0x80] sm:$0xff] %v1814_v33   ;;  %909 = vst.msk [vmem:[#allocation0 + $0x1a7] ss:$2 sm:$0xe0] %vm387_vm0, %v904_v36  }
  0xd1   :  { %v1322_v38 = vld [vmem:[#allocation0 + $0x140] sm:$0xff]  ;;  %v1330_v39 = vld [vmem:[#allocation0 + $0x148] sm:$0xff]  ;;  %v923_v40 = vpop.permute.xlu0 %922  }
  0xd2   :  { %1919 = vst [vmem:[%s2440_s1 + $0x90] sm:$0xff] %v1824_v37   ;;  %v1834_v41 = vpack.c.bf16 %v1330_v39, %v1322_v38  ;;  %926 = vst.msk [vmem:[#allocation0 + $0x1c1] ss:$2 sm:$0x1f] %vm387_vm0, %v923_v40   ;;  %v1354_v42 = vld [vmem:[#allocation0 + $0x160] sm:$0xff]  ;;  %v1362_v43 = vld [vmem:[#allocation0 + $0x168] sm:$0xff]  ;;  %v942_v44 = vpop.permute.xlu1 %941  }
  0xd3   :  { %928 = vst.msk [vmem:[#allocation0 + $0x1c7] ss:$2 sm:$0xe0] %vm387_vm0, %v923_v40   ;;  %v1844_v45 = vpack.c.bf16 %v1362_v43, %v1354_v42  ;;  %945 = vst.msk [vmem:[#allocation0 + $0x1e1] ss:$2 sm:$0x1f] %vm387_vm0, %v942_v44  }
  0xd4   :  { %1921 = vst [vmem:[%s2440_s1 + $0xa0] sm:$0xff] %v1834_v41   ;;  %947 = vst.msk [vmem:[#allocation0 + $0x1e7] ss:$2 sm:$0xe0] %vm387_vm0, %v942_v44  }
  0xd5   :  { %v1386_v46 = vld [vmem:[#allocation0 + $0x180] sm:$0xff]  ;;  %v1394_v47 = vld [vmem:[#allocation0 + $0x188] sm:$0xff]  ;;  %v1936_v48 = vpop.permute.xlu0 %1935  ;;  %1923 = vst [vmem:[%s2440_s1 + $0xb0] sm:$0xff] %v1844_v45  }
  0xd6   :  { %v1854_v49 = vpack.c.bf16 %v1394_v47, %v1386_v46  ;;  %v1938_v50 = vunpack.i.h.bf16 %v1936_v48  ;;  %v1937_v51 = vunpack.i.l.bf16 %v1936_v48  ;;  %v1418_v52 = vld [vmem:[#allocation0 + $0x1a0] sm:$0xff]  ;;  %v1426_v53 = vld [vmem:[#allocation0 + $0x1a8] sm:$0xff]  ;;  %v1941_v54 = vpop.permute.xlu1 %1940 }
  0xd7   :  { %v1864_v55 = vpack.c.bf16 %v1426_v53, %v1418_v52  ;;  %v1943_v56 = vunpack.i.h.bf16 %v1941_v54  ;;  %v1942_v57 = vunpack.i.l.bf16 %v1941_v54 }
  0xd8   :  { %1925 = vst [vmem:[%s2440_s1 + $0xc0] sm:$0xff] %v1854_v49   ;;  %967 = vst.msk [vmem:[#allocation0 + $0x97] ss:$2 sm:$0x3] %vm387_vm0, %v1938_v50  }
  0xd9   :  { %969 = vst.msk [vmem:[#allocation0 + $0xb3] ss:$2 sm:$0xc] %vm387_vm0, %v1938_v50   ;;  %971 = vst.msk [vmem:[#allocation0 + $0xcf] ss:$2 sm:$0x30] %vm387_vm0, %v1938_v50  }
  0xda   :  { %973 = vst.msk [vmem:[#allocation0 + $0xeb] ss:$2 sm:$0xc0] %vm387_vm0, %v1938_v50   ;;  %954 = vst.msk [vmem:[#allocation0 + $0x17] ss:$2 sm:$0x3] %vm387_vm0, %v1937_v51  }
  0xdb   :  { %956 = vst.msk [vmem:[#allocation0 + $0x33] ss:$2 sm:$0xc] %vm387_vm0, %v1937_v51   ;;  %958 = vst.msk [vmem:[#allocation0 + $0x4f] ss:$2 sm:$0x30] %vm387_vm0, %v1937_v51  }
  0xdc   :  { %960 = vst.msk [vmem:[#allocation0 + $0x6b] ss:$2 sm:$0xc0] %vm387_vm0, %v1937_v51   ;;  %v1450_v58 = vld [vmem:[#allocation0 + $0x1c0] sm:$0xff]  ;;  %v1458_v59 = vld [vmem:[#allocation0 + $0x1c8] sm:$0xff]  ;;  %1927 = vst [vmem:[%s2440_s1 + $0xd0] sm:$0xff] %v1864_v55  }
  0xdd   :  { %v1874_v60 = vpack.c.bf16 %v1458_v59, %v1450_v58  ;;  %993 = vst.msk [vmem:[#allocation0 + $0x197] ss:$2 sm:$0x3] %vm387_vm0, %v1943_v56   ;;  %995 = vst.msk [vmem:[#allocation0 + $0x1b3] ss:$2 sm:$0xc] %vm387_vm0, %v1943_v56  }
  0xde   :  { %997 = vst.msk [vmem:[#allocation0 + $0x1cf] ss:$2 sm:$0x30] %vm387_vm0, %v1943_v56   ;;  %999 = vst.msk [vmem:[#allocation0 + $0x1eb] ss:$2 sm:$0xc0] %vm387_vm0, %v1943_v56  }
  0xdf   :  { %980 = vst.msk [vmem:[#allocation0 + $0x117] ss:$2 sm:$0x3] %vm387_vm0, %v1942_v57   ;;  %982 = vst.msk [vmem:[#allocation0 + $0x133] ss:$2 sm:$0xc] %vm387_vm0, %v1942_v57  }
  0xe0   :  { %984 = vst.msk [vmem:[#allocation0 + $0x14f] ss:$2 sm:$0x30] %vm387_vm0, %v1942_v57   ;;  %986 = vst.msk [vmem:[#allocation0 + $0x16b] ss:$2 sm:$0xc0] %vm387_vm0, %v1942_v57  }
  0xe1   :  { %v1482_v61 = vld [vmem:[#allocation0 + $0x1e0] sm:$0xff]  ;;  %v1490_v62 = vld [vmem:[#allocation0 + $0x1e8] sm:$0xff]  ;;  %1929 = vst [vmem:[%s2440_s1 + $0xe0] sm:$0xff] %v1874_v60   ;;  %v1146_v0 = vld [vmem:[#allocation0 + $0x90] sm:$0xff] }
  0xe2   :  { %v1884_v63 = vpack.c.bf16 %v1490_v62, %v1482_v61  ;;  %v1154_v1 = vld [vmem:[#allocation0 + $0x98] sm:$0xff]  ;;  %v1178_v2 = vld [vmem:[#allocation0 + $0xb0] sm:$0xff] }
  0xe3   :  { %v1779_v3 = vpack.c.bf16 %v1154_v1, %v1146_v0  ;;  %v1186_v4 = vld [vmem:[#allocation0 + $0xb8] sm:$0xff]  ;;  %v1210_v5 = vld [vmem:[#allocation0 + $0xd0] sm:$0xff] }
  0xe4   :  { %1931 = vst [vmem:[%s2440_s1 + $0xf0] sm:$0xff] %v1884_v63   ;;  %v1218_v6 = vld [vmem:[#allocation0 + $0xd8] sm:$0xff]  ;;  %v1434_v7 = vld [vmem:[#allocation0 + $0x1b0] sm:$0xff]  ;;  %v1789_v9 = vpack.c.bf16 %v1186_v4, %v1178_v2 }
  0xe5   :  { %v1799_v10 = vpack.c.bf16 %v1218_v6, %v1210_v5  ;;  %v1498_v11 = vld [vmem:[#allocation0 + $0x1f0] sm:$0xff]  ;;  %1910 = vst [vmem:[%s2440_s1 + $0x48] sm:$0xff] %v1779_v3   ;;  %v1410_v23 = vld [vmem:[#allocation0 + $0x198] sm:$0xff] }
  0xe6   :  { %v1274_v8 = vld [vmem:[#allocation0 + $0x110] sm:$0xff]  ;;  %v1282_v12 = vld [vmem:[#allocation0 + $0x118] sm:$0xff]  ;;  %1912 = vst [vmem:[%s2440_s1 + $0x58] sm:$0xff] %v1789_v9  }
  0xe7   :  { %v1306_v13 = vld [vmem:[#allocation0 + $0x130] sm:$0xff]  ;;  %v1314_v14 = vld [vmem:[#allocation0 + $0x138] sm:$0xff]  ;;  %v1819_v15 = vpack.c.bf16 %v1282_v12, %v1274_v8  ;;  %1914 = vst [vmem:[%s2440_s1 + $0x68] sm:$0xff] %v1799_v10  }
  0xe8   :  { %v1829_v16 = vpack.c.bf16 %v1314_v14, %v1306_v13  ;;  %v1338_v17 = vld [vmem:[#allocation0 + $0x150] sm:$0xff]  ;;  %v1346_v18 = vld [vmem:[#allocation0 + $0x158] sm:$0xff] }
  0xe9   :  { %v1370_v19 = vld [vmem:[#allocation0 + $0x170] sm:$0xff]  ;;  %v1839_v20 = vpack.c.bf16 %v1346_v18, %v1338_v17  ;;  %v1378_v21 = vld [vmem:[#allocation0 + $0x178] sm:$0xff]  ;;  %1918 = vst [vmem:[%s2440_s1 + $0x88] sm:$0xff] %v1819_v15  }
  0xea   :  { %v1402_v22 = vld [vmem:[#allocation0 + $0x190] sm:$0xff]  ;;  %1920 = vst [vmem:[%s2440_s1 + $0x98] sm:$0xff] %v1829_v16   ;;  %v1849_v24 = vpack.c.bf16 %v1378_v21, %v1370_v19  ;;  %v1442_v26 = vld [vmem:[#allocation0 + $0x1b8] sm:$0xff] }
  0xeb   :  { %v1859_v25 = vpack.c.bf16 %v1410_v23, %v1402_v22  ;;  %v1466_v27 = vld [vmem:[#allocation0 + $0x1d0] sm:$0xff]  ;;  %v1474_v28 = vld [vmem:[#allocation0 + $0x1d8] sm:$0xff]  ;;  %1922 = vst [vmem:[%s2440_s1 + $0xa8] sm:$0xff] %v1839_v20   ;;  %v1869_v29 = vpack.c.bf16 %v1442_v26, %v1434_v7 }
  0xec   :  { %v1879_v30 = vpack.c.bf16 %v1474_v28, %v1466_v27  ;;  %v1506_v31 = vld [vmem:[#allocation0 + $0x1f8] sm:$0xff]  ;;  %v1242_v32 = vld [vmem:[#allocation0 + $0xf0] sm:$0xff]  ;;  %1924 = vst [vmem:[%s2440_s1 + $0xb8] sm:$0xff] %v1849_v24  }
  0xed   :  { %v1250_v33 = vld [vmem:[#allocation0 + $0xf8] sm:$0xff]  ;;  %1926 = vst [vmem:[%s2440_s1 + $0xc8] sm:$0xff] %v1859_v25   ;;  %v1889_v34 = vpack.c.bf16 %v1506_v31, %v1498_v11  ;;  %v1018_v36 = vld [vmem:[#allocation0 + $0x10] sm:$0xff]  ;;  %1928 = vst [vmem:[%s2440_s1 + $0xd8] sm:$0xff] %v1869_v29  }
  0xee   :  { %v1809_v35 = vpack.c.bf16 %v1250_v33, %v1242_v32  ;;  %v1026_v37 = vld [vmem:[#allocation0 + $0x18] sm:$0xff]  ;;  %v1050_v38 = vld [vmem:[#allocation0 + $0x30] sm:$0xff]  ;;  %1930 = vst [vmem:[%s2440_s1 + $0xe8] sm:$0xff] %v1879_v30  }
  0xef   :  { %v1739_v39 = vpack.c.bf16 %v1026_v37, %v1018_v36  ;;  %v1058_v40 = vld [vmem:[#allocation0 + $0x38] sm:$0xff]  ;;  %v1082_v41 = vld [vmem:[#allocation0 + $0x50] sm:$0xff]  ;;  %1932 = vst [vmem:[%s2440_s1 + $0xf8] sm:$0xff] %v1889_v34  }
  0xf0   :  { %v1090_v42 = vld [vmem:[#allocation0 + $0x58] sm:$0xff]  ;;  %1916 = vst [vmem:[%s2440_s1 + $0x78] sm:$0xff] %v1809_v35   ;;  %v1749_v43 = vpack.c.bf16 %v1058_v40, %v1050_v38  ;;  %v1114_v45 = vld [vmem:[#allocation0 + $0x70] sm:$0xff] }
  0xf1   :  { %v1759_v44 = vpack.c.bf16 %v1090_v42, %v1082_v41  ;;  %v1122_v46 = vld [vmem:[#allocation0 + $0x78] sm:$0xff]  ;;  %1902 = vst [vmem:[%s2440_s1 + $0x8] sm:$0xff] %v1739_v39  }
  0xf2   :  { %v1769_v47 = vpack.c.bf16 %v1122_v46, %v1114_v45  ;;  %1904 = vst [vmem:[%s2440_s1 + $0x18] sm:$0xff] %v1749_v43  }
  0xf3   :  { %1906 = vst [vmem:[%s2440_s1 + $0x28] sm:$0xff] %v1759_v44  }
  0xf4   :  { %1908 = vst [vmem:[%s2440_s1 + $0x38] sm:$0xff] %v1769_v47  }

// kernel: _lambda_.128
= control target key start
LH: loop header
LB: loop body
LE: loop exit
PB: predicated region body
PF: predicated region fallthrough
CT: control target
= control target key end

     0   :  { %s1140_s12 = smov 0   ;;  %s1142_s13 = smov 0   ;;  %s1223_s0 = inlined_call_operand.vmem [shape: bf16[4,16,576], index: 0, kind: input, shape index: {}]   ;;  %s1224_s1 = inlined_call_operand.vmem [shape: bf16[4,576,128], index: 1, kind: input, shape index: {}]   ;;  %s1225_s2 = inlined_call_operand.vmem [shape: f32[4,1,128], index: 2, kind: input, shape index: {}]   ;;  %s1226_s3 = inlined_call_operand.vmem [shape: bf16[4,16,128], index: 3, kind: output, shape index: {}]  }
   0x1   :  { %s1144_s14 = smov 0  }
   0x2 LB: > { %s32_s15 = sadd.s32 1, %s1112_s13  ;;  %p902_p0 = scmp.ge.s32.totalorder %s1116_s14, 1  ;;  %s1116_s14 = sphi %s1144_s14, %s13_s14   ;;  %s1112_s13 = sphi %s1142_s13, %s1228_s13   ;;  %s1108_s12 = sphi %s1140_s12, %s1227_s12  }
   0x3   : > { %p34_p1 = scmp.ge.s32.totalorder %s32_s15, 4  ;;  %p198_p2 = scmp.lt.s32.totalorder %s1116_s14, 5 }
   0x5   : > { %s1230_s15 = smov (%p34_p1, %s32_s15), 0  ;;  %p199_p3 = pnand %p902_p0, %p198_p2 }
   0x6   : > { %p249_p4 = scmp.lt.s32.totalorder (!%p199_p3), %s1108_s12, 3 }
   0x7   : > { %202 = sbr.rel (%p199_p3) target bundleno = 273 (0x111), region = 32 }
   0xc   : > { %s1232_s12 = smov (!%p249_p4, %s1108_s12), 3  ;;  %v1118_v34 = vmov 0.0   ;;  %vm1119_vm0 = vmmov 0   ;;  %vm614_vm1 = vcmask 523264  }
   0xd   : > { %s1024_s16 = smul.u32 288, %s1232_s12  ;;  %s275_s26 = scalar_lea.vmem %s1225_s2, %s1232_s12 }
   0xe   : > { %s1023_s20 = smul.u32 40, %s1232_s12  ;;  %v949_v56 = vld [vmem:[%s275_s26] ss:$0 sm:$0xff]  ;;  %s954_s27 = sshll.u32 %s1232_s12, 3 }
   0xf   : > { %s1164_s19 = scalar_lea.vmem %s1224_s1, %s1024_s16  ;;  %s284_s30 = scalar_lea.vmem %s1226_s3, %s954_s27 }
  0x10   : > { %v1051_v0 = vld [vmem:[%s1164_s19 + $0x78] sm:$0xff]   ;;  %v1055_v4 = vld [vmem:[%s1164_s19 + $0x70] sm:$0xff]   ;;  %v1059_v8 = vld [vmem:[%s1164_s19 + $0x68] sm:$0xff]   ;;  %s260_s23 = scalar_lea.vmem %s1223_s0, %s1023_s20 }
  0x11   : > { %v1052_v1 = vld [vmem:[%s1164_s19 + $0xf8] sm:$0xff]   ;;  %962 = vmatprep.subr.bf16.mxu0 %v1051_v0  ;;  %v1056_v5 = vld [vmem:[%s1164_s19 + $0xf0] sm:$0xff]   ;;  %v1060_v9 = vld [vmem:[%s1164_s19 + $0xe8] sm:$0xff]  }
  0x12   : > { %v1053_v2 = vld [vmem:[%s1164_s19 + $0x38] sm:$0xff]   ;;  %984 = vmatprep.subr.bf16.mxu1 %v1052_v1  ;;  %v1057_v6 = vld [vmem:[%s1164_s19 + $0x30] sm:$0xff]   ;;  %v1061_v10 = vld [vmem:[%s1164_s19 + $0x28] sm:$0xff]  }
  0x13   : > { %v1054_v3 = vld [vmem:[%s1164_s19 + $0xb8] sm:$0xff]   ;;  %963 = vmatpush3.bf16.msra.mxu0 %v1053_v2  ;;  %v1058_v7 = vld [vmem:[%s1164_s19 + $0xb0] sm:$0xff]   ;;  %v1062_v11 = vld [vmem:[%s1164_s19 + $0xa8] sm:$0xff]  }
  0x14   : > { %985 = vmatpush3.bf16.msra.mxu1 %v1054_v3  ;;  %964 = vmatprep.subr.bf16.mxu0 %v1055_v4  ;;  %v1063_v12 = vld [vmem:[%s1164_s19 + $0x60] sm:$0xff]   ;;  %v1067_v16 = vld [vmem:[%s1164_s19 + $0x58] sm:$0xff]   ;;  %v1071_v20 = vld [vmem:[%s1164_s19 + $0x50] sm:$0xff]  }
  0x15   : > { %986 = vmatprep.subr.bf16.mxu1 %v1056_v5  ;;  %v1064_v13 = vld [vmem:[%s1164_s19 + $0xe0] sm:$0xff]   ;;  %v1068_v17 = vld [vmem:[%s1164_s19 + $0xd8] sm:$0xff]   ;;  %v1072_v21 = vld [vmem:[%s1164_s19 + $0xd0] sm:$0xff]  }
  0x16   : > { %v1065_v14 = vld [vmem:[%s1164_s19 + $0x20] sm:$0xff]   ;;  %v1069_v18 = vld [vmem:[%s1164_s19 + $0x18] sm:$0xff]   ;;  %v1073_v22 = vld [vmem:[%s1164_s19 + $0x10] sm:$0xff]  }
  0x17   : > { %965 = vmatpush3.bf16.msra.mxu0 %v1057_v6  ;;  %v1066_v15 = vld [vmem:[%s1164_s19 + $0xa0] sm:$0xff]   ;;  %v1070_v19 = vld [vmem:[%s1164_s19 + $0x98] sm:$0xff]   ;;  %v1074_v23 = vld [vmem:[%s1164_s19 + $0x90] sm:$0xff]  }
  0x18   : > { %987 = vmatpush3.bf16.msra.mxu1 %v1058_v7  ;;  %966 = vmatprep.subr.bf16.mxu0 %v1059_v8  ;;  %v1075_v24 = vld [vmem:[%s1164_s19 + $0x48] sm:$0xff]   ;;  %v1079_v28 = vld [vmem:[%s1164_s19 + $0x40] sm:$0xff]   ;;  %v1089_v37 = vld [vmem:[%s1164_s19 + $0x118] sm:$0xff]  }
  0x19   : > { %988 = vmatprep.subr.bf16.mxu1 %v1060_v9  ;;  %v1076_v25 = vld [vmem:[%s1164_s19 + $0xc8] sm:$0xff]   ;;  %v1080_v29 = vld [vmem:[%s1164_s19 + $0xc0] sm:$0xff]   ;;  %v1090_v38 = vld [vmem:[%s1164_s19 + $0x110] sm:$0xff]  }
  0x1a   : > { %v1077_v26 = vld [vmem:[%s1164_s19 + $0x8] sm:$0xff]   ;;  %v1081_v30 = vld [vmem:[%s1164_s19] sm:$0xff]  }
  0x1b   : > { %967 = vmatpush3.bf16.msra.mxu0 %v1061_v10  ;;  %v1078_v27 = vld [vmem:[%s1164_s19 + $0x88] sm:$0xff]   ;;  %v1082_v31 = vld [vmem:[%s1164_s19 + $0x80] sm:$0xff]  }
  0x1c   : > { %989 = vmatpush3.bf16.msra.mxu1 %v1062_v11  ;;  %968 = vmatprep.subr.bf16.mxu0 %v1063_v12  ;;  %v1083_v32 = vld [vmem:[%s260_s23] ss:$20 sps:$4 sm:$0xff]   ;;  %v1085_v33 = vld [vmem:[%s260_s23 + $0x4] ss:$20 sps:$4 sm:$0xff]   ;;  %v1086_v35 = vld [vmem:[%s260_s23 + $0x8] ss:$20 sps:$4 sm:$0xff]  }
  0x1d   : > { %990 = vmatprep.subr.bf16.mxu1 %v1064_v13  ;;  %v1088_v36 = vld [vmem:[%s260_s23 + $0xc] ss:$20 sps:$4 sm:$0xff]   ;;  %650 = vmatprep.mubr.bf16.mxu0 %v1085_v33  ;;  %v1093_v41 = vld [vmem:[%s260_s23 + $0x10] ss:$20 sps:$4 sm:$0xff]  }
  0x1e   : > { %691 = vmatprep.mubr.bf16.mxu1 %v1088_v36  ;;  %v1091_v39 = vld [vmem:[%s1164_s19 + $0x108] sm:$0xff]   ;;  %v1092_v40 = vld [vmem:[%s1164_s19 + $0x100] sm:$0xff]  }
  0x1f   : > { %969 = vmatpush3.bf16.msra.mxu0 %v1065_v14 }
  0x20   : > { %991 = vmatpush3.bf16.msra.mxu1 %v1066_v15  ;;  %970 = vmatprep.subr.bf16.mxu0 %v1067_v16 }
  0x21   : > { %992 = vmatprep.subr.bf16.mxu1 %v1068_v17 }
  0x23   : > { %971 = vmatpush3.bf16.msra.mxu0 %v1069_v18 }
  0x24   : > { %993 = vmatpush3.bf16.msra.mxu1 %v1070_v19  ;;  %972 = vmatprep.subr.bf16.mxu0 %v1071_v20 }
  0x25   : > { %994 = vmatprep.subr.bf16.mxu1 %v1072_v21 }
  0x27   : > { %973 = vmatpush3.bf16.msra.mxu0 %v1073_v22 }
  0x28   : > { %995 = vmatpush3.bf16.msra.mxu1 %v1074_v23  ;;  %974 = vmatprep.subr.bf16.mxu0 %v1075_v24 }
  0x29   : > { %996 = vmatprep.subr.bf16.mxu1 %v1076_v25 }
  0x2b   : > { %975 = vmatpush3.bf16.msra.mxu0 %v1077_v26 }
  0x2c   : > { %997 = vmatpush3.bf16.msra.mxu1 %v1078_v27  ;;  %976 = vmatprep.subr.bf16.mxu0 %v1079_v28 }
  0x2d   : > { %998 = vmatprep.subr.bf16.mxu1 %v1080_v29 }
  0x2f   : > { %977 = vmatpush3.bf16.msra.mxu0 %v1081_v30 }
  0x30   : > { %999 = vmatpush3.bf16.msra.mxu1 %v1082_v31  ;;  %1011 = vmatprep.subr.bf16.mxu0 %v1118_v34 }
  0x32   : > { %651 = vmatmul.mubr.bf16.vlgmr.msra.gmra.mxu0 %v1083_v32 }
  0x33   : > { %692 = vmatmul.mubr.bf16.vlgmr.msra.gmra.mxu1 %v1086_v35  ;;  %1012 = vmatpush3.bf16.msra.mxu0 %v1089_v37 }
  0x34   : > { %1013 = vmatprep.subr.bf16.mxu0 %v1118_v34  ;;  %1019 = vmatprep.mubr.msk.bf16.mxu0 %vm1119_vm0, %v1118_v34 }
  0x37   : > { %1014 = vmatpush3.bf16.msra.mxu0 %v1090_v38 }
  0x38   : > { %1015 = vmatprep.subr.bf16.mxu0 %v1118_v34 }
  0x3b   : > { %1016 = vmatpush3.bf16.msra.mxu0 %v1091_v39 }
  0x3c   : > { %1017 = vmatprep.subr.bf16.mxu0 %v1118_v34 }
  0x3f   : > { %1018 = vmatpush3.bf16.msra.mxu0 %v1092_v40 }
  0x42   : > { %1020 = vmatmul.mubr.msk.bf16.vlgmr.msra.gmra.mxu0 %vm614_vm1, %v1093_v41 }
  0xf2   : > { %v978_v42 = vpop.f32.mrf.mxu0 }
  0xf3   : > { %v1000_v43 = vpop.f32.mrf.mxu1 }
  0xf4   : > { %v979_v44 = vpop.f32.mrf.mxu0 }
  0xf5   : > { %v1001_v45 = vpop.f32.mrf.mxu1  ;;  %v980_v48 = vadd.f32 %v979_v44, %v978_v42 }
  0xf6   : > { %v981_v46 = vpop.f32.mrf.mxu0  ;;  %v1002_v49 = vadd.f32 %v1001_v45, %v1000_v43 }
  0xf7   : > { %v1003_v47 = vpop.f32.mrf.mxu1 }
  0xf8   : > { %v982_v50 = vpop.f32.mrf.mxu0  ;;  %v694_v54 = vadd.f32 %v1002_v49, %v980_v48 }
  0xf9   : > { %v1004_v51 = vpop.f32.mrf.mxu1  ;;  %v983_v52 = vadd.f32 %v982_v50, %v981_v46 }
  0xfa   : > { %v1005_v53 = vadd.f32 %v1004_v51, %v1003_v47 }
  0xfc   : > { %v697_v60 = vadd.f32 %v1005_v53, %v983_v52 }
 0x102   : > { %v734_v55 = vpop.f32.mrf.mxu0 }
 0x103   : > { %v735_v57 = vadd.f32 %v734_v55, %v694_v54 }
 0x104   : > { %v1021_v58 = vpop.f32.mrf.mxu0 }
 0x105   : > { %v757_v59 = vadd.f32 %v949_v56, %v735_v57 }
 0x106   : > { %v737_v61 = vpop.f32.mrf.mxu0 }
 0x107   : > { %v738_v62 = vadd.f32 %v737_v61, %v697_v60  ;;  %v761_v0 = vmul.f32 0.01, %v757_v59  ;;  %vm759_vm2 = vcmp.ge.f32.partialorder %v757_v59, 0.0 }
 0x108   : > { %v1022_v63 = vpop.f32.mrf.mxu0 }
 0x109   : > { %v758_v1 = vadd.f32 %v949_v56, %v738_v62  ;;  %v763_v3 = vsel %vm759_vm2, %v757_v59, %v761_v0 }
 0x10b   : > { %vm760_vm3 = vcmp.ge.f32.partialorder %v758_v1, 0.0  ;;  %v762_v2 = vmul.f32 0.01, %v758_v1 }
 0x10d   : > { %v764_v4 = vsel %vm760_vm3, %v758_v1, %v762_v2 }
 0x10e   : > { %v960_v5 = vpack.c.bf16 %v764_v4, %v763_v3 }
 0x110   : > { %961 = vst [vmem:[%s284_s30] sm:$0xff] %v960_v5  }
 0x111 PF: > { %s13_s14 = sadd.s32 1, %s1116_s14   ;;  %s1227_s12 = smov %s1112_s13 }
 0x112   : > { %p10_p5 = scmp.ge.s32.totalorder %s13_s14, 6   ;;  %s1228_s13 = smov %s1230_s15 }
 0x114   :  { %12 = sbr.rel (!%p10_p5) target bundleno = 2 (0x2), region = 76 }

// kernel: _lambda_.133
= control target key start
LH: loop header
LB: loop body
LE: loop exit
PB: predicated region body
PF: predicated region fallthrough
CT: control target
= control target key end

     0   :  { %s2995_s12 = smov 0   ;;  %s2997_s13 = smov 0   ;;  %s3748_s0 = inlined_call_operand.vmem [shape: bf16[1,32,576], index: 0, kind: input, shape index: {}]   ;;  %s3749_s1 = inlined_call_operand.vmem [shape: bf16[1,576,768], index: 1, kind: input, shape index: {}]   ;;  %s3750_s2 = inlined_call_operand.vmem [shape: f32[1,1,768], index: 2, kind: input, shape index: {}]   ;;  %s3751_s3 = inlined_call_operand.vmem [shape: bf16[1,32,768], index: 3, kind: output, shape index: {}]  }
   0x1   :  { %s2999_s14 = smov 0  }
   0x2 LB: > { %s28_s15 = sadd.s32 1, %s2968_s13  ;;  %p2349_p0 = scmp.ge.s32.totalorder %s2972_s14, 1  ;;  %s2972_s14 = sphi %s2999_s14, %s13_s14   ;;  %s2968_s13 = sphi %s2997_s13, %s3753_s13   ;;  %s2964_s12 = sphi %s2995_s12, %s3752_s12  }
   0x3   : > { %p30_p1 = scmp.ge.s32.totalorder %s28_s15, 2  ;;  %p200_p2 = scmp.lt.s32.totalorder %s2972_s14, 3 }
   0x5   : > { %s3755_s15 = smov (%p30_p1, %s28_s15), 0  ;;  %p201_p3 = pnand %p2349_p0, %p200_p2 }
   0x6   : > { %s2350_s30 = sshll.u32 (!%p201_p3), %s2964_s12, 1 }
   0x7   : > { %204 = sbr.rel (%p201_p3) target bundleno = 446 (0x1be), region = 32  ;;  %p256_p4 = scmp.lt.s32.totalorder (!%p201_p3), %s2350_s30, 3 }
   0xc   : > { %v2619_v0 = vld [vmem:[%s3749_s1 + $0x154] ss:$24 sps:$4 sm:$0xff]   ;;  %v2623_v2 = vld [vmem:[%s3749_s1 + $0x150] ss:$24 sps:$4 sm:$0xff]   ;;  %v2625_v4 = vld [vmem:[%s3749_s1 + $0x124] ss:$24 sps:$4 sm:$0xff]  }
   0xd   : > { %v2621_v1 = vld [vmem:[%s3749_s1 + $0x454] ss:$24 sps:$4 sm:$0xff]   ;;  %1654 = vmatprep.subr.bf16.mxu0 %v2619_v0  ;;  %v2624_v3 = vld [vmem:[%s3749_s1 + $0x450] ss:$24 sps:$4 sm:$0xff]   ;;  %v2627_v5 = vld [vmem:[%s3749_s1 + $0x424] ss:$24 sps:$4 sm:$0xff]  }
   0xe   : > { %1697 = vmatprep.subr.bf16.mxu1 %v2621_v1  ;;  %1655 = vmatpush1.bf16.msra.mxu0 %v2623_v2  ;;  %v2629_v6 = vld [vmem:[%s3749_s1 + $0x120] ss:$24 sps:$4 sm:$0xff]   ;;  %v2631_v8 = vld [vmem:[%s3749_s1 + $0xf4] ss:$24 sps:$4 sm:$0xff]   ;;  %v2635_v10 = vld [vmem:[%s3749_s1 + $0xf0] ss:$24 sps:$4 sm:$0xff]  }
   0xf   : > { %1698 = vmatpush1.bf16.msra.mxu1 %v2624_v3  ;;  %1656 = vmatprep.subr.bf16.mxu0 %v2625_v4  ;;  %v2630_v7 = vld [vmem:[%s3749_s1 + $0x420] ss:$24 sps:$4 sm:$0xff]   ;;  %v2633_v9 = vld [vmem:[%s3749_s1 + $0x3f4] ss:$24 sps:$4 sm:$0xff]   ;;  %v2636_v11 = vld [vmem:[%s3749_s1 + $0x3f0] ss:$24 sps:$4 sm:$0xff]  }
  0x10   : > { %1699 = vmatprep.subr.bf16.mxu1 %v2627_v5  ;;  %v2637_v12 = vld [vmem:[%s3749_s1 + $0xc4] ss:$24 sps:$4 sm:$0xff]   ;;  %v2641_v14 = vld [vmem:[%s3749_s1 + $0xc0] ss:$24 sps:$4 sm:$0xff]   ;;  %v2643_v16 = vld [vmem:[%s3749_s1 + $0x94] ss:$24 sps:$4 sm:$0xff]  }
  0x11   : > { %v2639_v13 = vld [vmem:[%s3749_s1 + $0x3c4] ss:$24 sps:$4 sm:$0xff]   ;;  %v2642_v15 = vld [vmem:[%s3749_s1 + $0x3c0] ss:$24 sps:$4 sm:$0xff]   ;;  %v2645_v17 = vld [vmem:[%s3749_s1 + $0x394] ss:$24 sps:$4 sm:$0xff]  }
  0x12   : > { %1657 = vmatpush1.bf16.msra.mxu0 %v2629_v6  ;;  %v2647_v18 = vld [vmem:[%s3749_s1 + $0x90] ss:$24 sps:$4 sm:$0xff]   ;;  %v2649_v20 = vld [vmem:[%s3749_s1 + $0x64] ss:$24 sps:$4 sm:$0xff]   ;;  %v2653_v22 = vld [vmem:[%s3749_s1 + $0x60] ss:$24 sps:$4 sm:$0xff]  }
  0x13   : > { %1700 = vmatpush1.bf16.msra.mxu1 %v2630_v7  ;;  %1658 = vmatprep.subr.bf16.mxu0 %v2631_v8  ;;  %v2648_v19 = vld [vmem:[%s3749_s1 + $0x390] ss:$24 sps:$4 sm:$0xff]   ;;  %v2651_v21 = vld [vmem:[%s3749_s1 + $0x364] ss:$24 sps:$4 sm:$0xff]   ;;  %v2654_v23 = vld [vmem:[%s3749_s1 + $0x360] ss:$24 sps:$4 sm:$0xff]  }
  0x14   : > { %1701 = vmatprep.subr.bf16.mxu1 %v2633_v9  ;;  %v2655_v24 = vld [vmem:[%s3749_s1 + $0x34] ss:$24 sps:$4 sm:$0xff]   ;;  %v2659_v26 = vld [vmem:[%s3749_s1 + $0x30] ss:$24 sps:$4 sm:$0xff]   ;;  %v2661_v28 = vld [vmem:[%s3749_s1 + $0x4] ss:$24 sps:$4 sm:$0xff]  }
  0x15   : > { %v2657_v25 = vld [vmem:[%s3749_s1 + $0x334] ss:$24 sps:$4 sm:$0xff]   ;;  %v2660_v27 = vld [vmem:[%s3749_s1 + $0x330] ss:$24 sps:$4 sm:$0xff]   ;;  %v2663_v29 = vld [vmem:[%s3749_s1 + $0x304] ss:$24 sps:$4 sm:$0xff]  }
  0x16   : > { %1659 = vmatpush1.bf16.msra.mxu0 %v2635_v10  ;;  %v2665_v30 = vld [vmem:[%s3749_s1] ss:$24 sps:$4 sm:$0xff]   ;;  %v2667_v32 = vld [vmem:[%s3749_s1 + $0x2d4] ss:$24 sps:$4 sm:$0xff]   ;;  %v2671_v34 = vld [vmem:[%s3749_s1 + $0x2d0] ss:$24 sps:$4 sm:$0xff]  }
  0x17   : > { %1702 = vmatpush1.bf16.msra.mxu1 %v2636_v11  ;;  %1660 = vmatprep.subr.bf16.mxu0 %v2637_v12  ;;  %v2666_v31 = vld [vmem:[%s3749_s1 + $0x300] ss:$24 sps:$4 sm:$0xff]   ;;  %v2669_v33 = vld [vmem:[%s3749_s1 + $0x5d4] ss:$24 sps:$4 sm:$0xff]   ;;  %v2672_v35 = vld [vmem:[%s3749_s1 + $0x5d0] ss:$24 sps:$4 sm:$0xff]  }
  0x18   : > { %1703 = vmatprep.subr.bf16.mxu1 %v2639_v13  ;;  %v2673_v36 = vld [vmem:[%s3749_s1 + $0x2a4] ss:$24 sps:$4 sm:$0xff]   ;;  %s3757_s30 = smov (!%p256_p4, %s2350_s30), 3  ;;  %v2677_v38 = vld [vmem:[%s3749_s1 + $0x2a0] ss:$24 sps:$4 sm:$0xff]   ;;  %vm1650_vm0 = vcmask 523264  }
  0x19   : > { %v2675_v37 = vld [vmem:[%s3749_s1 + $0x5a4] ss:$24 sps:$4 sm:$0xff]   ;;  %v2678_v39 = vld [vmem:[%s3749_s1 + $0x5a0] ss:$24 sps:$4 sm:$0xff]   ;;  %v2679_v40 = vld [vmem:[%s3749_s1 + $0x274] ss:$24 sps:$4 sm:$0xff]  }
  0x1a   : > { %1661 = vmatpush1.bf16.msra.mxu0 %v2641_v14  ;;  %s2592_s29 = smul.u32 20, %s3757_s30  ;;  %v2681_v41 = vld [vmem:[%s3749_s1 + $0x574] ss:$24 sps:$4 sm:$0xff]   ;;  %v2683_v42 = vld [vmem:[%s3749_s1 + $0x270] ss:$24 sps:$4 sm:$0xff]   ;;  %v2974_v14 = vmov 0  }
  0x1b   : > { %1704 = vmatpush1.bf16.msra.mxu1 %v2642_v15  ;;  %1662 = vmatprep.subr.bf16.mxu0 %v2643_v16  ;;  %v2684_v43 = vld [vmem:[%s3749_s1 + $0x570] ss:$24 sps:$4 sm:$0xff]   ;;  %v2685_v44 = vld [vmem:[%s3749_s1 + $0x244] ss:$24 sps:$4 sm:$0xff]   ;;  %v2689_v46 = vld [vmem:[%s3749_s1 + $0x240] ss:$24 sps:$4 sm:$0xff]  }
  0x1c   : > { %1705 = vmatprep.subr.bf16.mxu1 %v2645_v17  ;;  %s3157_s17 = scalar_lea.vmem %s3748_s0, %s2592_s29  ;;  %v2687_v45 = vld [vmem:[%s3749_s1 + $0x544] ss:$24 sps:$4 sm:$0xff]   ;;  %v2690_v47 = vld [vmem:[%s3749_s1 + $0x540] ss:$24 sps:$4 sm:$0xff]   ;;  %v2691_v49 = vld [vmem:[%s3749_s1 + $0x214] ss:$24 sps:$4 sm:$0xff]  }
  0x1d   : > { %v3169_v48 = vld [vmem:[%s3157_s17 + $0x4] ss:$20 sps:$4 sm:$0xff]   ;;  %v3175_v50 = vld [vmem:[%s3157_s17 + $0xc] ss:$20 sps:$4 sm:$0xff]   ;;  %v2695_v52 = vld [vmem:[%s3749_s1 + $0x210] ss:$24 sps:$4 sm:$0xff]  }
  0x1e   : > { %1663 = vmatpush1.bf16.msra.mxu0 %v2647_v18  ;;  %v2693_v51 = vld [vmem:[%s3749_s1 + $0x514] ss:$24 sps:$4 sm:$0xff]   ;;  %1686 = vmatprep.mubr.bf16.mxu0 %v3169_v48  ;;  %v2696_v53 = vld [vmem:[%s3749_s1 + $0x510] ss:$24 sps:$4 sm:$0xff]   ;;  %v2697_v54 = vld [vmem:[%s3749_s1 + $0x1e4] ss:$24 sps:$4 sm:$0xff]  }
  0x1f   : > { %1706 = vmatpush1.bf16.msra.mxu1 %v2648_v19  ;;  %1664 = vmatprep.subr.bf16.mxu0 %v2649_v20  ;;  %v2699_v55 = vld [vmem:[%s3749_s1 + $0x4e4] ss:$24 sps:$4 sm:$0xff]   ;;  %v2701_v56 = vld [vmem:[%s3749_s1 + $0x1e0] ss:$24 sps:$4 sm:$0xff]   ;;  %v2703_v58 = vld [vmem:[%s3749_s1 + $0x1b4] ss:$24 sps:$4 sm:$0xff]  }
  0x20   : > { %1707 = vmatprep.subr.bf16.mxu1 %v2651_v21  ;;  %1729 = vmatprep.mubr.bf16.mxu1 %v3175_v50  ;;  %v2702_v57 = vld [vmem:[%s3749_s1 + $0x4e0] ss:$24 sps:$4 sm:$0xff]   ;;  %v2705_v59 = vld [vmem:[%s3749_s1 + $0x4b4] ss:$24 sps:$4 sm:$0xff]   ;;  %v2707_v60 = vld [vmem:[%s3749_s1 + $0x1b0] ss:$24 sps:$4 sm:$0xff]  }
  0x21   : > { %v2708_v61 = vld [vmem:[%s3749_s1 + $0x4b0] ss:$24 sps:$4 sm:$0xff]   ;;  %v2709_v62 = vld [vmem:[%s3749_s1 + $0x184] ss:$24 sps:$4 sm:$0xff]   ;;  %v2713_v0 = vld [vmem:[%s3749_s1 + $0x180] ss:$24 sps:$4 sm:$0xff]  }
  0x22   : > { %1665 = vmatpush1.bf16.msra.mxu0 %v2653_v22  ;;  %v2711_v63 = vld [vmem:[%s3749_s1 + $0x484] ss:$24 sps:$4 sm:$0xff]   ;;  %v2714_v1 = vld [vmem:[%s3749_s1 + $0x480] ss:$24 sps:$4 sm:$0xff]   ;;  %v2723_v2 = vld [vmem:[%s3749_s1 + $0x694] ss:$24 sps:$4 sm:$0xff]  }
  0x23   : > { %1708 = vmatpush1.bf16.msra.mxu1 %v2654_v23  ;;  %1666 = vmatprep.subr.bf16.mxu0 %v2655_v24  ;;  %v2726_v3 = vld [vmem:[%s3749_s1 + $0x15c] ss:$24 sps:$4 sm:$0xff]   ;;  %v2721_v6 = vld [vmem:[%s3749_s1 + $0x690] ss:$24 sps:$4 sm:$0xff]   ;;  %v2732_v9 = vld [vmem:[%s3749_s1 + $0x12c] ss:$24 sps:$4 sm:$0xff]  }
  0x24   : > { %1709 = vmatprep.subr.bf16.mxu1 %v2657_v25  ;;  %v3231_v4 = vld [vmem:[%s3157_s17] ss:$20 sps:$4 sm:$0xff]   ;;  %v3234_v5 = vld [vmem:[%s3157_s17 + $0x8] ss:$20 sps:$4 sm:$0xff]   ;;  %v2724_v7 = vld [vmem:[%s3749_s1 + $0x158] ss:$24 sps:$4 sm:$0xff]  }
  0x25   : > { %v2729_v8 = vld [vmem:[%s3749_s1 + $0x664] ss:$24 sps:$4 sm:$0xff]   ;;  %v2727_v10 = vld [vmem:[%s3749_s1 + $0x660] ss:$24 sps:$4 sm:$0xff]   ;;  %v2735_v12 = vld [vmem:[%s3749_s1 + $0x634] ss:$24 sps:$4 sm:$0xff]  }
  0x26   : > { %1667 = vmatpush1.bf16.msra.mxu0 %v2659_v26  ;;  %v2730_v11 = vld [vmem:[%s3749_s1 + $0x128] ss:$24 sps:$4 sm:$0xff]   ;;  %v2738_v13 = vld [vmem:[%s3749_s1 + $0xfc] ss:$24 sps:$4 sm:$0xff]   ;;  %v2736_v16 = vld [vmem:[%s3749_s1 + $0xf8] ss:$24 sps:$4 sm:$0xff]  }
  0x27   : > { %1710 = vmatpush1.bf16.msra.mxu1 %v2660_v27  ;;  %1668 = vmatprep.subr.bf16.mxu0 %v2661_v28  ;;  %v2733_v15 = vld [vmem:[%s3749_s1 + $0x630] ss:$24 sps:$4 sm:$0xff]   ;;  %v2741_v17 = vld [vmem:[%s3749_s1 + $0x604] ss:$24 sps:$4 sm:$0xff]   ;;  %v2739_v19 = vld [vmem:[%s3749_s1 + $0x600] ss:$24 sps:$4 sm:$0xff]  }
  0x28   : > { %1711 = vmatprep.subr.bf16.mxu1 %v2663_v29  ;;  %v2744_v18 = vld [vmem:[%s3749_s1 + $0xcc] ss:$24 sps:$4 sm:$0xff]   ;;  %v2742_v20 = vld [vmem:[%s3749_s1 + $0xc8] ss:$24 sps:$4 sm:$0xff]   ;;  %v2748_v21 = vld [vmem:[%s3749_s1 + $0x9c] ss:$24 sps:$4 sm:$0xff]  }
  0x29   : > { %v2751_v22 = vld [vmem:[%s3749_s1 + $0x45c] ss:$24 sps:$4 sm:$0xff]   ;;  %v3289_v23 = vld [vmem:[%s3157_s17 + $0x10] ss:$20 sps:$4 sm:$0xff]   ;;  %v2752_v28 = vld [vmem:[%s3749_s1 + $0x68] ss:$24 sps:$4 sm:$0xff]  }
  0x2a   : > { %1669 = vmatpush1.bf16.msra.mxu0 %v2665_v30  ;;  %v2746_v24 = vld [vmem:[%s3749_s1 + $0x98] ss:$24 sps:$4 sm:$0xff]   ;;  %v2754_v26 = vld [vmem:[%s3749_s1 + $0x6c] ss:$24 sps:$4 sm:$0xff]   ;;  %v2755_v29 = vld [vmem:[%s3749_s1 + $0x428] ss:$24 sps:$4 sm:$0xff]  }
  0x2b   : > { %1712 = vmatpush1.bf16.msra.mxu1 %v2666_v31  ;;  %1670 = vmatprep.subr.bf16.mxu0 %v2667_v32  ;;  %v2749_v25 = vld [vmem:[%s3749_s1 + $0x458] ss:$24 sps:$4 sm:$0xff]   ;;  %v2757_v27 = vld [vmem:[%s3749_s1 + $0x42c] ss:$24 sps:$4 sm:$0xff]   ;;  %v2760_v30 = vld [vmem:[%s3749_s1 + $0x3c] ss:$24 sps:$4 sm:$0xff]  }
  0x2c   : > { %1713 = vmatprep.subr.bf16.mxu1 %v2669_v33  ;;  %v2763_v31 = vld [vmem:[%s3749_s1 + $0x3fc] ss:$24 sps:$4 sm:$0xff]   ;;  %v2758_v32 = vld [vmem:[%s3749_s1 + $0x38] ss:$24 sps:$4 sm:$0xff]   ;;  %s2593_s20 = smul.u32 24, %s3757_s30 }
  0x2d   : > { %v2761_v33 = vld [vmem:[%s3749_s1 + $0x3f8] ss:$24 sps:$4 sm:$0xff]  }
  0x2e   : > { %1671 = vmatpush2.bf16.msra.mxu0 %v2671_v34  ;;  %v2766_v34 = vld [vmem:[%s3749_s1 + $0xc] ss:$24 sps:$4 sm:$0xff]   ;;  %s3723_s23 = scalar_lea.vmem %s3751_s3, %s2593_s20 }
  0x2f   : > { %1714 = vmatpush2.bf16.msra.mxu1 %v2672_v35  ;;  %1672 = vmatprep.subr.bf16.mxu0 %v2673_v36  ;;  %v2769_v35 = vld [vmem:[%s3749_s1 + $0x3cc] ss:$24 sps:$4 sm:$0xff]   ;;  %v2764_v36 = vld [vmem:[%s3749_s1 + $0x8] ss:$24 sps:$4 sm:$0xff]  }
  0x30   : > { %1715 = vmatprep.subr.bf16.mxu1 %v2675_v37  ;;  %v2767_v37 = vld [vmem:[%s3749_s1 + $0x3c8] ss:$24 sps:$4 sm:$0xff]  }
  0x32   : > { %1673 = vmatpush2.bf16.msra.mxu0 %v2677_v38  ;;  %v2772_v38 = vld [vmem:[%s3749_s1 + $0x2dc] ss:$24 sps:$4 sm:$0xff]  }
  0x33   : > { %1716 = vmatpush2.bf16.msra.mxu1 %v2678_v39  ;;  %1674 = vmatprep.subr.bf16.mxu0 %v2679_v40  ;;  %v2775_v39 = vld [vmem:[%s3749_s1 + $0x39c] ss:$24 sps:$4 sm:$0xff]   ;;  %v2770_v40 = vld [vmem:[%s3749_s1 + $0x2d8] ss:$24 sps:$4 sm:$0xff]  }
  0x34   : > { %1717 = vmatprep.subr.bf16.mxu1 %v2681_v41  ;;  %v2773_v41 = vld [vmem:[%s3749_s1 + $0x398] ss:$24 sps:$4 sm:$0xff]  }
  0x36   : > { %1675 = vmatpush2.bf16.msra.mxu0 %v2683_v42  ;;  %v2778_v42 = vld [vmem:[%s3749_s1 + $0x2ac] ss:$24 sps:$4 sm:$0xff]  }
  0x37   : > { %1718 = vmatpush2.bf16.msra.mxu1 %v2684_v43  ;;  %1676 = vmatprep.subr.bf16.mxu0 %v2685_v44  ;;  %v2781_v43 = vld [vmem:[%s3749_s1 + $0x36c] ss:$24 sps:$4 sm:$0xff]   ;;  %v2776_v44 = vld [vmem:[%s3749_s1 + $0x2a8] ss:$24 sps:$4 sm:$0xff]  }
  0x38   : > { %1719 = vmatprep.subr.bf16.mxu1 %v2687_v45  ;;  %v2779_v45 = vld [vmem:[%s3749_s1 + $0x368] ss:$24 sps:$4 sm:$0xff]  }
  0x3a   : > { %1677 = vmatpush2.bf16.msra.mxu0 %v2689_v46  ;;  %v2784_v46 = vld [vmem:[%s3749_s1 + $0x27c] ss:$24 sps:$4 sm:$0xff]  }
  0x3b   : > { %1720 = vmatpush2.bf16.msra.mxu1 %v2690_v47  ;;  %1678 = vmatprep.subr.bf16.mxu0 %v2691_v49  ;;  %v2787_v47 = vld [vmem:[%s3749_s1 + $0x33c] ss:$24 sps:$4 sm:$0xff]   ;;  %v2782_v49 = vld [vmem:[%s3749_s1 + $0x278] ss:$24 sps:$4 sm:$0xff]  }
  0x3c   : > { %1721 = vmatprep.subr.bf16.mxu1 %v2693_v51  ;;  %v2785_v51 = vld [vmem:[%s3749_s1 + $0x338] ss:$24 sps:$4 sm:$0xff]  }
  0x3e   : > { %1679 = vmatpush2.bf16.msra.mxu0 %v2695_v52  ;;  %v2790_v52 = vld [vmem:[%s3749_s1 + $0x24c] ss:$24 sps:$4 sm:$0xff]  }
  0x3f   : > { %1722 = vmatpush2.bf16.msra.mxu1 %v2696_v53  ;;  %1680 = vmatprep.subr.bf16.mxu0 %v2697_v54  ;;  %v2793_v53 = vld [vmem:[%s3749_s1 + $0x30c] ss:$24 sps:$4 sm:$0xff]   ;;  %v2788_v54 = vld [vmem:[%s3749_s1 + $0x248] ss:$24 sps:$4 sm:$0xff]  }
  0x40   : > { %1723 = vmatprep.subr.bf16.mxu1 %v2699_v55  ;;  %v2791_v55 = vld [vmem:[%s3749_s1 + $0x308] ss:$24 sps:$4 sm:$0xff]  }
  0x42   : > { %1681 = vmatpush2.bf16.msra.mxu0 %v2701_v56  ;;  %v2796_v56 = vld [vmem:[%s3749_s1 + $0x21c] ss:$24 sps:$4 sm:$0xff]  }
  0x43   : > { %1724 = vmatpush2.bf16.msra.mxu1 %v2702_v57  ;;  %1682 = vmatprep.subr.bf16.mxu0 %v2703_v58  ;;  %v2799_v57 = vld [vmem:[%s3749_s1 + $0x5dc] ss:$24 sps:$4 sm:$0xff]   ;;  %v2794_v58 = vld [vmem:[%s3749_s1 + $0x218] ss:$24 sps:$4 sm:$0xff]  }
  0x44   : > { %1725 = vmatprep.subr.bf16.mxu1 %v2705_v59  ;;  %v2797_v59 = vld [vmem:[%s3749_s1 + $0x5d8] ss:$24 sps:$4 sm:$0xff]  }
  0x46   : > { %1683 = vmatpush2.bf16.msra.mxu0 %v2707_v60  ;;  %v2802_v60 = vld [vmem:[%s3749_s1 + $0x1ec] ss:$24 sps:$4 sm:$0xff]  }
  0x47   : > { %1726 = vmatpush2.bf16.msra.mxu1 %v2708_v61  ;;  %1684 = vmatprep.subr.bf16.mxu0 %v2709_v62  ;;  %v2805_v61 = vld [vmem:[%s3749_s1 + $0x5ac] ss:$24 sps:$4 sm:$0xff]   ;;  %v2800_v62 = vld [vmem:[%s3749_s1 + $0x1e8] ss:$24 sps:$4 sm:$0xff]  }
  0x48   : > { %1727 = vmatprep.subr.bf16.mxu1 %v2711_v63  ;;  %v2803_v63 = vld [vmem:[%s3749_s1 + $0x5a8] ss:$24 sps:$4 sm:$0xff]  }
  0x4a   : > { %1685 = vmatpush2.bf16.msra.mxu0 %v2713_v0  ;;  %v2808_v0 = vld [vmem:[%s3749_s1 + $0x1bc] ss:$24 sps:$4 sm:$0xff]  }
  0x4b   : > { %1728 = vmatpush2.bf16.msra.mxu1 %v2714_v1  ;;  %1748 = vmatprep.subr.bf16.mxu0 %v2723_v2  ;;  %v2811_v1 = vld [vmem:[%s3749_s1 + $0x57c] ss:$24 sps:$4 sm:$0xff]   ;;  %v2806_v2 = vld [vmem:[%s3749_s1 + $0x1b8] ss:$24 sps:$4 sm:$0xff]  }
  0x4c   : > { %1783 = vmatprep.subr.bf16.mxu1 %v2726_v3  ;;  %v2809_v3 = vld [vmem:[%s3749_s1 + $0x578] ss:$24 sps:$4 sm:$0xff]  }
  0x4d   : > { %1687 = vmatmul.mubr.bf16.vlgmr.msra.gmra.mxu0 %v3231_v4 }
  0x4e   : > { %1730 = vmatmul.mubr.bf16.vlgmr.msra.gmra.mxu1 %v3234_v5  ;;  %1749 = vmatpush1.bf16.msra.mxu0 %v2721_v6  ;;  %v2814_v6 = vld [vmem:[%s3749_s1 + $0x18c] ss:$24 sps:$4 sm:$0xff]  }
  0x4f   : > { %1784 = vmatpush1.bf16.msra.mxu1 %v2724_v7  ;;  %1750 = vmatprep.subr.bf16.mxu0 %v2729_v8  ;;  %v2817_v7 = vld [vmem:[%s3749_s1 + $0x54c] ss:$24 sps:$4 sm:$0xff]   ;;  %v2812_v8 = vld [vmem:[%s3749_s1 + $0x188] ss:$24 sps:$4 sm:$0xff]  }
  0x50   : > { %1785 = vmatprep.subr.bf16.mxu1 %v2732_v9  ;;  %1772 = vmatprep.mubr.bf16.mxu0 %v2974_v14  ;;  %v2815_v9 = vld [vmem:[%s3749_s1 + $0x548] ss:$24 sps:$4 sm:$0xff]  }
  0x51   : > { %1815 = vmatprep.mubr.bf16.mxu1 %v3169_v48 }
  0x52   : > { %1751 = vmatpush1.bf16.msra.mxu0 %v2727_v10  ;;  %v2820_v10 = vld [vmem:[%s3749_s1 + $0x51c] ss:$24 sps:$4 sm:$0xff]  }
  0x53   : > { %1786 = vmatpush1.bf16.msra.mxu1 %v2730_v11  ;;  %1752 = vmatprep.subr.bf16.mxu0 %v2735_v12  ;;  %v2823_v11 = vld [vmem:[%s3749_s1 + $0x69c] ss:$24 sps:$4 sm:$0xff]   ;;  %v2818_v12 = vld [vmem:[%s3749_s1 + $0x518] ss:$24 sps:$4 sm:$0xff]  }
  0x54   : > { %1787 = vmatprep.subr.bf16.mxu1 %v2738_v13  ;;  %v2821_v13 = vld [vmem:[%s3749_s1 + $0x698] ss:$24 sps:$4 sm:$0xff]  }
  0x56   : > { %1753 = vmatpush1.bf16.msra.mxu0 %v2733_v15  ;;  %v2826_v15 = vld [vmem:[%s3749_s1 + $0x4ec] ss:$24 sps:$4 sm:$0xff]  }
  0x57   : > { %1788 = vmatpush1.bf16.msra.mxu1 %v2736_v16  ;;  %1754 = vmatprep.subr.bf16.mxu0 %v2741_v17  ;;  %v2829_v16 = vld [vmem:[%s3749_s1 + $0x66c] ss:$24 sps:$4 sm:$0xff]   ;;  %v2824_v17 = vld [vmem:[%s3749_s1 + $0x4e8] ss:$24 sps:$4 sm:$0xff]  }
  0x58   : > { %1789 = vmatprep.subr.bf16.mxu1 %v2744_v18  ;;  %v2827_v18 = vld [vmem:[%s3749_s1 + $0x668] ss:$24 sps:$4 sm:$0xff]  }
  0x5a   : > { %1755 = vmatpush1.bf16.msra.mxu0 %v2739_v19  ;;  %v2832_v19 = vld [vmem:[%s3749_s1 + $0x4bc] ss:$24 sps:$4 sm:$0xff]  }
  0x5b   : > { %1790 = vmatpush1.bf16.msra.mxu1 %v2742_v20  ;;  %1826 = vmatprep.subr.bf16.mxu0 %v2751_v22  ;;  %v2835_v20 = vld [vmem:[%s3749_s1 + $0x63c] ss:$24 sps:$4 sm:$0xff]   ;;  %v2833_v22 = vld [vmem:[%s3749_s1 + $0x638] ss:$24 sps:$4 sm:$0xff]  }
  0x5c   : > { %1791 = vmatprep.subr.bf16.mxu1 %v2748_v21  ;;  %v2830_v21 = vld [vmem:[%s3749_s1 + $0x4b8] ss:$24 sps:$4 sm:$0xff]  }
  0x5d   : > { %2575 = vmatmul.mubr.msk.bf16.vlgmr.msra.gmra.mxu0 %vm1650_vm0, %v3289_v23 }
  0x5e   : > { %1827 = vmatpush1.bf16.msra.mxu0 %v2749_v25  ;;  %1858 = vmatprep.mubr.bf16.mxu0 %v3175_v50  ;;  %v2841_v25 = vld [vmem:[%s3749_s1 + $0x60c] ss:$24 sps:$4 sm:$0xff]  }
  0x5f   : > { %1792 = vmatpush1.bf16.msra.mxu1 %v2746_v24  ;;  %1828 = vmatprep.subr.bf16.mxu0 %v2757_v27  ;;  %v2838_v24 = vld [vmem:[%s3749_s1 + $0x48c] ss:$24 sps:$4 sm:$0xff]   ;;  %v2839_v27 = vld [vmem:[%s3749_s1 + $0x608] ss:$24 sps:$4 sm:$0xff]  }
  0x60   : > { %1793 = vmatprep.subr.bf16.mxu1 %v2754_v26  ;;  %v2836_v26 = vld [vmem:[%s3749_s1 + $0x488] ss:$24 sps:$4 sm:$0xff]  }
  0x62   : > { %1829 = vmatpush1.bf16.msra.mxu0 %v2755_v29  ;;  %v2847_v29 = vld [vmem:[%s3749_s1 + $0x464] ss:$24 sps:$4 sm:$0xff]  }
  0x63   : > { %1794 = vmatpush1.bf16.msra.mxu1 %v2752_v28  ;;  %1830 = vmatprep.subr.bf16.mxu0 %v2763_v31  ;;  %v2844_v28 = vld [vmem:[%s3749_s1 + $0x164] ss:$24 sps:$4 sm:$0xff]   ;;  %v2845_v31 = vld [vmem:[%s3749_s1 + $0x460] ss:$24 sps:$4 sm:$0xff]  }
  0x64   : > { %1795 = vmatprep.subr.bf16.mxu1 %v2760_v30  ;;  %v2842_v30 = vld [vmem:[%s3749_s1 + $0x160] ss:$24 sps:$4 sm:$0xff]  }
  0x66   : > { %1831 = vmatpush1.bf16.msra.mxu0 %v2761_v33  ;;  %v2853_v33 = vld [vmem:[%s3749_s1 + $0x434] ss:$24 sps:$4 sm:$0xff]  }
  0x67   : > { %1796 = vmatpush1.bf16.msra.mxu1 %v2758_v32  ;;  %1832 = vmatprep.subr.bf16.mxu0 %v2769_v35  ;;  %v2850_v32 = vld [vmem:[%s3749_s1 + $0x134] ss:$24 sps:$4 sm:$0xff]   ;;  %v2851_v35 = vld [vmem:[%s3749_s1 + $0x430] ss:$24 sps:$4 sm:$0xff]  }
  0x68   : > { %1797 = vmatprep.subr.bf16.mxu1 %v2766_v34  ;;  %v2848_v34 = vld [vmem:[%s3749_s1 + $0x130] ss:$24 sps:$4 sm:$0xff]  }
  0x6a   : > { %1833 = vmatpush1.bf16.msra.mxu0 %v2767_v37  ;;  %v2859_v37 = vld [vmem:[%s3749_s1 + $0x404] ss:$24 sps:$4 sm:$0xff]  }
  0x6b   : > { %1798 = vmatpush1.bf16.msra.mxu1 %v2764_v36  ;;  %1834 = vmatprep.subr.bf16.mxu0 %v2775_v39  ;;  %v2856_v36 = vld [vmem:[%s3749_s1 + $0x104] ss:$24 sps:$4 sm:$0xff]   ;;  %v2857_v39 = vld [vmem:[%s3749_s1 + $0x400] ss:$24 sps:$4 sm:$0xff]  }
  0x6c   : > { %1799 = vmatprep.subr.bf16.mxu1 %v2772_v38  ;;  %v2854_v38 = vld [vmem:[%s3749_s1 + $0x100] ss:$24 sps:$4 sm:$0xff]  }
  0x6e   : > { %1835 = vmatpush1.bf16.msra.mxu0 %v2773_v41  ;;  %v2863_v41 = vld [vmem:[%s3749_s1 + $0x3d0] ss:$24 sps:$4 sm:$0xff]  }
  0x6f   : > { %1800 = vmatpush2.bf16.msra.mxu1 %v2770_v40  ;;  %1836 = vmatprep.subr.bf16.mxu0 %v2781_v43  ;;  %v2862_v40 = vld [vmem:[%s3749_s1 + $0xd4] ss:$24 sps:$4 sm:$0xff]   ;;  %v2871_v43 = vld [vmem:[%s3749_s1 + $0x3a4] ss:$24 sps:$4 sm:$0xff]  }
  0x70   : > { %1801 = vmatprep.subr.bf16.mxu1 %v2778_v42  ;;  %v2868_v42 = vld [vmem:[%s3749_s1 + $0xa4] ss:$24 sps:$4 sm:$0xff]  }
  0x72   : > { %1837 = vmatpush1.bf16.msra.mxu0 %v2779_v45  ;;  %v2869_v45 = vld [vmem:[%s3749_s1 + $0x3a0] ss:$24 sps:$4 sm:$0xff]  }
  0x73   : > { %1802 = vmatpush2.bf16.msra.mxu1 %v2776_v44  ;;  %1838 = vmatprep.subr.bf16.mxu0 %v2787_v47  ;;  %v2866_v44 = vld [vmem:[%s3749_s1 + $0xa0] ss:$24 sps:$4 sm:$0xff]   ;;  %v2877_v47 = vld [vmem:[%s3749_s1 + $0x374] ss:$24 sps:$4 sm:$0xff]  }
  0x74   : > { %1803 = vmatprep.subr.bf16.mxu1 %v2784_v46  ;;  %v2874_v46 = vld [vmem:[%s3749_s1 + $0x74] ss:$24 sps:$4 sm:$0xff]  }
  0x76   : > { %1839 = vmatpush1.bf16.msra.mxu0 %v2785_v51  ;;  %v2875_v51 = vld [vmem:[%s3749_s1 + $0x370] ss:$24 sps:$4 sm:$0xff]  }
  0x77   : > { %1804 = vmatpush2.bf16.msra.mxu1 %v2782_v49  ;;  %1840 = vmatprep.subr.bf16.mxu0 %v2793_v53  ;;  %v2872_v49 = vld [vmem:[%s3749_s1 + $0x70] ss:$24 sps:$4 sm:$0xff]   ;;  %v2883_v53 = vld [vmem:[%s3749_s1 + $0x344] ss:$24 sps:$4 sm:$0xff]  }
  0x78   : > { %1805 = vmatprep.subr.bf16.mxu1 %v2790_v52  ;;  %v2880_v52 = vld [vmem:[%s3749_s1 + $0x44] ss:$24 sps:$4 sm:$0xff]  }
  0x7a   : > { %1841 = vmatpush1.bf16.msra.mxu0 %v2791_v55  ;;  %v2881_v55 = vld [vmem:[%s3749_s1 + $0x340] ss:$24 sps:$4 sm:$0xff]  }
  0x7b   : > { %1806 = vmatpush2.bf16.msra.mxu1 %v2788_v54  ;;  %1842 = vmatprep.subr.bf16.mxu0 %v2799_v57  ;;  %v2878_v54 = vld [vmem:[%s3749_s1 + $0x40] ss:$24 sps:$4 sm:$0xff]   ;;  %v2889_v57 = vld [vmem:[%s3749_s1 + $0x314] ss:$24 sps:$4 sm:$0xff]  }
  0x7c   : > { %1807 = vmatprep.subr.bf16.mxu1 %v2796_v56  ;;  %v2886_v56 = vld [vmem:[%s3749_s1 + $0x14] ss:$24 sps:$4 sm:$0xff]  }
  0x7e   : > { %1843 = vmatpush2.bf16.msra.mxu0 %v2797_v59  ;;  %v2887_v59 = vld [vmem:[%s3749_s1 + $0x310] ss:$24 sps:$4 sm:$0xff]  }
  0x7f   : > { %1808 = vmatpush2.bf16.msra.mxu1 %v2794_v58  ;;  %1844 = vmatprep.subr.bf16.mxu0 %v2805_v61  ;;  %v2884_v58 = vld [vmem:[%s3749_s1 + $0x10] ss:$24 sps:$4 sm:$0xff]   ;;  %v2895_v61 = vld [vmem:[%s3749_s1 + $0x5e4] ss:$24 sps:$4 sm:$0xff]  }
  0x80   : > { %1809 = vmatprep.subr.bf16.mxu1 %v2802_v60  ;;  %v2892_v60 = vld [vmem:[%s3749_s1 + $0x2e4] ss:$24 sps:$4 sm:$0xff]  }
  0x82   : > { %1845 = vmatpush2.bf16.msra.mxu0 %v2803_v63  ;;  %v2893_v63 = vld [vmem:[%s3749_s1 + $0x5e0] ss:$24 sps:$4 sm:$0xff]  }
  0x83   : > { %1810 = vmatpush2.bf16.msra.mxu1 %v2800_v62  ;;  %1846 = vmatprep.subr.bf16.mxu0 %v2811_v1  ;;  %v2890_v62 = vld [vmem:[%s3749_s1 + $0x2e0] ss:$24 sps:$4 sm:$0xff]   ;;  %v2901_v1 = vld [vmem:[%s3749_s1 + $0x5b4] ss:$24 sps:$4 sm:$0xff]  }
  0x84   : > { %1811 = vmatprep.subr.bf16.mxu1 %v2808_v0  ;;  %v2898_v0 = vld [vmem:[%s3749_s1 + $0x2b4] ss:$24 sps:$4 sm:$0xff]  }
  0x86   : > { %1847 = vmatpush2.bf16.msra.mxu0 %v2809_v3  ;;  %v2899_v3 = vld [vmem:[%s3749_s1 + $0x5b0] ss:$24 sps:$4 sm:$0xff]  }
  0x87   : > { %1812 = vmatpush2.bf16.msra.mxu1 %v2806_v2  ;;  %1848 = vmatprep.subr.bf16.mxu0 %v2817_v7  ;;  %v2896_v2 = vld [vmem:[%s3749_s1 + $0x2b0] ss:$24 sps:$4 sm:$0xff]   ;;  %v2907_v7 = vld [vmem:[%s3749_s1 + $0x584] ss:$24 sps:$4 sm:$0xff]  }
  0x88   : > { %1813 = vmatprep.subr.bf16.mxu1 %v2814_v6  ;;  %v2904_v6 = vld [vmem:[%s3749_s1 + $0x284] ss:$24 sps:$4 sm:$0xff]  }
  0x8a   : > { %1849 = vmatpush2.bf16.msra.mxu0 %v2815_v9  ;;  %v2905_v9 = vld [vmem:[%s3749_s1 + $0x580] ss:$24 sps:$4 sm:$0xff]  }
  0x8b   : > { %1814 = vmatpush2.bf16.msra.mxu1 %v2812_v8  ;;  %1850 = vmatprep.subr.bf16.mxu0 %v2820_v10  ;;  %v2902_v8 = vld [vmem:[%s3749_s1 + $0x280] ss:$24 sps:$4 sm:$0xff]   ;;  %v2910_v10 = vld [vmem:[%s3749_s1 + $0x254] ss:$24 sps:$4 sm:$0xff]  }
  0x8c   : > { %1877 = vmatprep.subr.bf16.mxu1 %v2823_v11  ;;  %v2913_v11 = vld [vmem:[%s3749_s1 + $0x554] ss:$24 sps:$4 sm:$0xff]  }
  0x8e   : > { %1816 = vmatmul.mubr.bf16.vlgmr.msra.gmra.mxu1 %v3231_v4  ;;  %1851 = vmatpush2.bf16.msra.mxu0 %v2818_v12  ;;  %v2908_v12 = vld [vmem:[%s3749_s1 + $0x250] ss:$24 sps:$4 sm:$0xff]  }
  0x8f   : > { %1878 = vmatpush1.bf16.msra.mxu1 %v2821_v13  ;;  %1852 = vmatprep.subr.bf16.mxu0 %v2826_v15  ;;  %v2911_v13 = vld [vmem:[%s3749_s1 + $0x550] ss:$24 sps:$4 sm:$0xff]   ;;  %v2916_v15 = vld [vmem:[%s3749_s1 + $0x224] ss:$24 sps:$4 sm:$0xff]  }
  0x90   : > { %1879 = vmatprep.subr.bf16.mxu1 %v2829_v16  ;;  %1901 = vmatprep.mubr.bf16.mxu1 %v2974_v14  ;;  %v2919_v16 = vld [vmem:[%s3749_s1 + $0x524] ss:$24 sps:$4 sm:$0xff]  }
  0x92   : > { %1853 = vmatpush2.bf16.msra.mxu0 %v2824_v17  ;;  %v2914_v17 = vld [vmem:[%s3749_s1 + $0x220] ss:$24 sps:$4 sm:$0xff]  }
  0x93   : > { %1880 = vmatpush1.bf16.msra.mxu1 %v2827_v18  ;;  %1854 = vmatprep.subr.bf16.mxu0 %v2832_v19  ;;  %v2917_v18 = vld [vmem:[%s3749_s1 + $0x520] ss:$24 sps:$4 sm:$0xff]   ;;  %v2922_v19 = vld [vmem:[%s3749_s1 + $0x1f4] ss:$24 sps:$4 sm:$0xff]  }
  0x94   : > { %1881 = vmatprep.subr.bf16.mxu1 %v2835_v20  ;;  %v2925_v20 = vld [vmem:[%s3749_s1 + $0x4f4] ss:$24 sps:$4 sm:$0xff]  }
  0x96   : > { %1855 = vmatpush2.bf16.msra.mxu0 %v2830_v21  ;;  %v2920_v21 = vld [vmem:[%s3749_s1 + $0x1f0] ss:$24 sps:$4 sm:$0xff]  }
  0x97   : > { %1882 = vmatpush1.bf16.msra.mxu1 %v2833_v22  ;;  %1856 = vmatprep.subr.bf16.mxu0 %v2838_v24  ;;  %v2923_v22 = vld [vmem:[%s3749_s1 + $0x4f0] ss:$24 sps:$4 sm:$0xff]   ;;  %v2928_v24 = vld [vmem:[%s3749_s1 + $0x1c4] ss:$24 sps:$4 sm:$0xff]  }
  0x98   : > { %1883 = vmatprep.subr.bf16.mxu1 %v2841_v25  ;;  %v2931_v25 = vld [vmem:[%s3749_s1 + $0x4c4] ss:$24 sps:$4 sm:$0xff]  }
  0x9a   : > { %1857 = vmatpush2.bf16.msra.mxu0 %v2836_v26  ;;  %v2926_v26 = vld [vmem:[%s3749_s1 + $0x1c0] ss:$24 sps:$4 sm:$0xff]  }
  0x9b   : > { %1884 = vmatpush1.bf16.msra.mxu1 %v2839_v27  ;;  %1912 = vmatprep.subr.bf16.mxu0 %v2844_v28  ;;  %v2929_v27 = vld [vmem:[%s3749_s1 + $0x4c0] ss:$24 sps:$4 sm:$0xff]   ;;  %v2934_v28 = vld [vmem:[%s3749_s1 + $0x194] ss:$24 sps:$4 sm:$0xff]  }
  0x9c   : > { %1955 = vmatprep.subr.bf16.mxu1 %v2847_v29  ;;  %v2937_v29 = vld [vmem:[%s3749_s1 + $0x494] ss:$24 sps:$4 sm:$0xff]  }
  0x9d   : > { %1859 = vmatmul.mubr.bf16.vlgmr.msra.gmra.mxu0 %v3234_v5 }
  0x9e   : > { %2576 = vmatmul.mubr.msk.bf16.vlgmr.msra.gmra.mxu1 %vm1650_vm0, %v3289_v23  ;;  %1913 = vmatpush1.bf16.msra.mxu0 %v2842_v30  ;;  %v2932_v30 = vld [vmem:[%s3749_s1 + $0x190] ss:$24 sps:$4 sm:$0xff]  }
  0x9f   : > { %1956 = vmatpush1.bf16.msra.mxu1 %v2845_v31  ;;  %1914 = vmatprep.subr.bf16.mxu0 %v2850_v32  ;;  %v2935_v31 = vld [vmem:[%s3749_s1 + $0x490] ss:$24 sps:$4 sm:$0xff]   ;;  %v2940_v32 = vld [vmem:[%s3749_s1 + $0x6a4] ss:$24 sps:$4 sm:$0xff]  }
  0xa0   : > { %1957 = vmatprep.subr.bf16.mxu1 %v2853_v33  ;;  %1944 = vmatprep.mubr.bf16.mxu0 %v3169_v48  ;;  %v2865_v48 = vld [vmem:[%s3749_s1 + $0x3d4] ss:$24 sps:$4 sm:$0xff]   ;;  %v2938_v33 = vld [vmem:[%s3749_s1 + $0x6a0] ss:$24 sps:$4 sm:$0xff]  }
  0xa1   : > { %1987 = vmatprep.mubr.bf16.mxu1 %v3175_v50  ;;  %v2860_v50 = vld [vmem:[%s3749_s1 + $0xd0] ss:$24 sps:$4 sm:$0xff]  }
  0xa2   : > { %1915 = vmatpush1.bf16.msra.mxu0 %v2848_v34  ;;  %v2943_v34 = vld [vmem:[%s3749_s1 + $0x674] ss:$24 sps:$4 sm:$0xff]  }
  0xa3   : > { %1958 = vmatpush1.bf16.msra.mxu1 %v2851_v35  ;;  %1916 = vmatprep.subr.bf16.mxu0 %v2856_v36  ;;  %v2941_v35 = vld [vmem:[%s3749_s1 + $0x670] ss:$24 sps:$4 sm:$0xff]   ;;  %v2946_v36 = vld [vmem:[%s3749_s1 + $0x644] ss:$24 sps:$4 sm:$0xff]  }
  0xa4   : > { %1959 = vmatprep.subr.bf16.mxu1 %v2859_v37  ;;  %v2944_v37 = vld [vmem:[%s3749_s1 + $0x640] ss:$24 sps:$4 sm:$0xff]  }
  0xa6   : > { %1917 = vmatpush1.bf16.msra.mxu0 %v2854_v38  ;;  %v2082_v38 = vlaneseq }
  0xa7   : > { %1960 = vmatpush1.bf16.msra.mxu1 %v2857_v39  ;;  %1918 = vmatprep.subr.bf16.mxu0 %v2862_v40 }
  0xa8   : > { %1961 = vmatprep.subr.bf16.mxu1 %v2865_v48  ;;  %v3708_v48 = vshrl.u32 %v2082_v38, 7 }
  0xaa   : > { %1919 = vmatpush1.bf16.msra.mxu0 %v2860_v50 }
  0xab   : > { %1962 = vmatpush1.bf16.msra.mxu1 %v2863_v41  ;;  %1920 = vmatprep.subr.bf16.mxu0 %v2868_v42  ;;  %v2084_v42 = vsub.s32 0, %v3708_v48 }
  0xac   : > { %1963 = vmatprep.subr.bf16.mxu1 %v2871_v43  ;;  %v3714_v43 = vld [vmem:[%s3750_s2] sm:$0x3f] }
  0xae   : > { %1921 = vmatpush1.bf16.msra.mxu0 %v2866_v44  ;;  %v2088_v44 = vsub.s32 1, %v3708_v48 }
  0xaf   : > { %1964 = vmatpush1.bf16.msra.mxu1 %v2869_v45  ;;  %1922 = vmatprep.subr.bf16.mxu0 %v2874_v46 }
  0xb0   : > { %1965 = vmatprep.subr.bf16.mxu1 %v2877_v47  ;;  %v2085_v47 = vrot.slane %v3714_v43, %v2084_v42 }
  0xb2   : > { %1923 = vmatpush1.bf16.msra.mxu0 %v2872_v49 }
  0xb3   : > { %1966 = vmatpush1.bf16.msra.mxu1 %v2875_v51  ;;  %1924 = vmatprep.subr.bf16.mxu0 %v2880_v52 }
  0xb4   : > { %1967 = vmatprep.subr.bf16.mxu1 %v2883_v53  ;;  %v2089_v53 = vrot.slane %v3714_v43, %v2088_v44 }
  0xb6   : > { %1925 = vmatpush1.bf16.msra.mxu0 %v2878_v54 }
  0xb7   : > { %1968 = vmatpush1.bf16.msra.mxu1 %v2881_v55  ;;  %1926 = vmatprep.subr.bf16.mxu0 %v2886_v56 }
  0xb8   : > { %1969 = vmatprep.subr.bf16.mxu1 %v2889_v57 }
  0xba   : > { %1927 = vmatpush1.bf16.msra.mxu0 %v2884_v58 }
  0xbb   : > { %1970 = vmatpush1.bf16.msra.mxu1 %v2887_v59  ;;  %1928 = vmatprep.subr.bf16.mxu0 %v2892_v60 }
  0xbc   : > { %1971 = vmatprep.subr.bf16.mxu1 %v2895_v61 }
  0xbe   : > { %1929 = vmatpush2.bf16.msra.mxu0 %v2890_v62 }
  0xbf   : > { %1972 = vmatpush2.bf16.msra.mxu1 %v2893_v63  ;;  %1930 = vmatprep.subr.bf16.mxu0 %v2898_v0 }
  0xc0   : > { %1973 = vmatprep.subr.bf16.mxu1 %v2901_v1 }
  0xc2   : > { %1931 = vmatpush2.bf16.msra.mxu0 %v2896_v2 }
  0xc3   : > { %1974 = vmatpush2.bf16.msra.mxu1 %v2899_v3  ;;  %1932 = vmatprep.subr.bf16.mxu0 %v2904_v6 }
  0xc4   : > { %1975 = vmatprep.subr.bf16.mxu1 %v2907_v7 }
  0xc6   : > { %1933 = vmatpush2.bf16.msra.mxu0 %v2902_v8 }
  0xc7   : > { %1976 = vmatpush2.bf16.msra.mxu1 %v2905_v9  ;;  %1934 = vmatprep.subr.bf16.mxu0 %v2910_v10 }
  0xc8   : > { %1977 = vmatprep.subr.bf16.mxu1 %v2913_v11 }
  0xca   : > { %1935 = vmatpush2.bf16.msra.mxu0 %v2908_v12 }
  0xcb   : > { %1978 = vmatpush2.bf16.msra.mxu1 %v2911_v13  ;;  %1936 = vmatprep.subr.bf16.mxu0 %v2916_v15 }
  0xcc   : > { %1979 = vmatprep.subr.bf16.mxu1 %v2919_v16 }
  0xce   : > { %1937 = vmatpush2.bf16.msra.mxu0 %v2914_v17 }
  0xcf   : > { %1980 = vmatpush2.bf16.msra.mxu1 %v2917_v18  ;;  %1938 = vmatprep.subr.bf16.mxu0 %v2922_v19 }
  0xd0   : > { %1981 = vmatprep.subr.bf16.mxu1 %v2925_v20  ;;  %v2092_v20 = vsub.s32 2, %v3708_v48 }
  0xd2   : > { %1939 = vmatpush2.bf16.msra.mxu0 %v2920_v21  ;;  %v2096_v21 = vsub.s32 3, %v3708_v48 }
  0xd3   : > { %1982 = vmatpush2.bf16.msra.mxu1 %v2923_v22  ;;  %1940 = vmatprep.subr.bf16.mxu0 %v2928_v24 }
  0xd4   : > { %1983 = vmatprep.subr.bf16.mxu1 %v2931_v25 }
  0xd6   : > { %1941 = vmatpush2.bf16.msra.mxu0 %v2926_v26  ;;  %v2093_v26 = vrot.slane %v3714_v43, %v2092_v20 }
  0xd7   : > { %1984 = vmatpush2.bf16.msra.mxu1 %v2929_v27  ;;  %1942 = vmatprep.subr.bf16.mxu0 %v2934_v28 }
  0xd8   : > { %1985 = vmatprep.subr.bf16.mxu1 %v2937_v29 }
  0xda   : > { %1943 = vmatpush2.bf16.msra.mxu0 %v2932_v30 }
  0xdb   : > { %1986 = vmatpush2.bf16.msra.mxu1 %v2935_v31  ;;  %2006 = vmatprep.subr.bf16.mxu0 %v2940_v32  ;;  %v2097_v31 = vrot.slane %v3714_v43, %v2096_v21 }
  0xdd   : > { %1945 = vmatmul.mubr.bf16.vlgmr.msra.gmra.mxu0 %v3231_v4  ;;  %v2949_v4 = vld [vmem:[%s3749_s1 + $0x614] ss:$24 sps:$4 sm:$0xff]  }
  0xde   : > { %1988 = vmatmul.mubr.bf16.vlgmr.msra.gmra.mxu1 %v3234_v5  ;;  %2007 = vmatpush1.bf16.msra.mxu0 %v2938_v33  ;;  %v2947_v5 = vld [vmem:[%s3749_s1 + $0x610] ss:$24 sps:$4 sm:$0xff]  }
  0xdf   : > { %2030 = vmatprep.mubr.bf16.mxu0 %v2974_v14  ;;  %2008 = vmatprep.subr.bf16.mxu0 %v2943_v34 }
  0xe2   : > { %2009 = vmatpush1.bf16.msra.mxu0 %v2941_v35 }
  0xe3   : > { %2010 = vmatprep.subr.bf16.mxu0 %v2946_v36 }
  0xe6   : > { %2011 = vmatpush1.bf16.msra.mxu0 %v2944_v37 }
  0xe7   : > { %2012 = vmatprep.subr.bf16.mxu0 %v2949_v4 }
  0xea   : > { %2013 = vmatpush1.bf16.msra.mxu0 %v2947_v5 }
  0xed   : > { %2577 = vmatmul.mubr.msk.bf16.vlgmr.msra.gmra.mxu0 %vm1650_vm0, %v3289_v23 }
 0x10d   : > { %v1688_v14 = vpop.f32.mrf.mxu0 }
 0x10e   : > { %v1731_v40 = vpop.f32.mrf.mxu1 }
 0x10f   : > { %v1690_v39 = vpop.f32.mrf.mxu0  ;;  %v1732_v23 = vadd.f32 %v1731_v40, %v1688_v14 }
 0x110   : > { %v1733_v41 = vpop.f32.mrf.mxu1 }
 0x111   : > { %v1692_v50 = vpop.f32.mrf.mxu0  ;;  %v1734_v51 = vadd.f32 %v1733_v41, %v1690_v39 }
 0x112   : > { %v1735_v46 = vpop.f32.mrf.mxu1 }
 0x113   : > { %v1694_v45 = vpop.f32.mrf.mxu0  ;;  %v1736_v55 = vadd.f32 %v1735_v46, %v1692_v50 }
 0x114   : > { %v1737_v56 = vpop.f32.mrf.mxu1 }
 0x115   : > { %v1738_v63 = vadd.f32 %v1737_v56, %v1694_v45 }
 0x11d   : > { %v1774_v49 = vpop.f32.mrf.mxu0 }
 0x11e   : > { %v1775_v52 = vadd.f32 %v1774_v49, %v1732_v23 }
 0x11f   : > { %v1776_v54 = vpop.f32.mrf.mxu0 }
 0x120   : > { %v2112_v57 = vadd.f32 %v2085_v47, %v1775_v52  ;;  %v1777_v58 = vadd.f32 %v1776_v54, %v1734_v51 }
 0x121   : > { %v1778_v59 = vpop.f32.mrf.mxu0 }
 0x122   : > { %v2136_v60 = vmul.f32 0.01, %v2112_v57  ;;  %v2113_v61 = vadd.f32 %v2089_v53, %v1777_v58  ;;  %v1779_v62 = vadd.f32 %v1778_v59, %v1736_v55  ;;  %vm2124_vm1 = vcmp.ge.f32.partialorder %v2112_v57, 0.0 }
 0x123   : > { %v1780_v0 = vpop.f32.mrf.mxu0  ;;  %v2100_v58 = vsub.s32 4, %v3708_v48  ;;  %v2104_v59 = vsub.s32 5, %v3708_v48 }
 0x124   : > { %vm2125_vm2 = vcmp.ge.f32.partialorder %v2113_v61, 0.0  ;;  %v2137_v1 = vmul.f32 0.01, %v2113_v61  ;;  %v2118_v2 = vadd.f32 %v2085_v47, %v1779_v62  ;;  %v1781_v3 = vadd.f32 %v1780_v0, %v1738_v63 }
 0x125   : > { %v2148_v6 = vsel %vm2124_vm1, %v2112_v57, %v2136_v60  ;;  %v2101_v63 = vrot.slane %v3714_v43, %v2100_v58 }
 0x126   : > { %v2149_v7 = vsel %vm2125_vm2, %v2113_v61, %v2137_v1  ;;  %v2142_v9 = vmul.f32 0.01, %v2118_v2  ;;  %v2119_v10 = vadd.f32 %v2089_v53, %v1781_v3  ;;  %vm2130_vm3 = vcmp.ge.f32.partialorder %v2118_v2, 0.0 }
 0x127   : > { %v2586_v8 = vpack.c.bf16 %v2149_v7, %v2148_v6  ;;  %v2105_v3 = vrot.slane %v3714_v43, %v2104_v59 }
 0x128   : > { %vm2131_vm4 = vcmp.ge.f32.partialorder %v2119_v10, 0.0  ;;  %v2143_v11 = vmul.f32 0.01, %v2119_v10  ;;  %v2154_v12 = vsel %vm2130_vm3, %v2118_v2, %v2142_v9 }
 0x129   : > { %2196 = vst [vmem:[%s3723_s23] sm:$0xff] %v2586_v8 }
 0x12a   : > { %v2155_v13 = vsel %vm2131_vm4, %v2119_v10, %v2143_v11 }
 0x12b   : > { %v2589_v15 = vpack.c.bf16 %v2155_v13, %v2154_v12 }
 0x12d   : > { %2199 = vst [vmem:[%s3723_s23 + $0x18] sm:$0xff] %v2589_v15 }
 0x14e   : > { %v1817_v16 = vpop.f32.mrf.mxu1 }
 0x150   : > { %v1819_v17 = vpop.f32.mrf.mxu1 }
 0x152   : > { %v1821_v18 = vpop.f32.mrf.mxu1 }
 0x154   : > { %v1823_v19 = vpop.f32.mrf.mxu1 }
 0x15d   : > { %v1860_v22 = vpop.f32.mrf.mxu0 }
 0x15e   : > { %v1903_v24 = vpop.f32.mrf.mxu1  ;;  %v1861_v25 = vadd.f32 %v1860_v22, %v1817_v16 }
 0x15f   : > { %v1862_v27 = vpop.f32.mrf.mxu0 }
 0x160   : > { %v1905_v28 = vpop.f32.mrf.mxu1  ;;  %v1863_v29 = vadd.f32 %v1862_v27, %v1819_v17  ;;  %v1904_v30 = vadd.f32 %v1903_v24, %v1861_v25 }
 0x161   : > { %v1864_v32 = vpop.f32.mrf.mxu0 }
 0x162   : > { %v1907_v33 = vpop.f32.mrf.mxu1  ;;  %v2114_v34 = vadd.f32 %v2093_v26, %v1904_v30  ;;  %v1865_v35 = vadd.f32 %v1864_v32, %v1821_v18  ;;  %v1906_v36 = vadd.f32 %v1905_v28, %v1863_v29 }
 0x163   : > { %v1866_v37 = vpop.f32.mrf.mxu0 }
 0x164   : > { %v1909_v4 = vpop.f32.mrf.mxu1  ;;  %v2138_v5 = vmul.f32 0.01, %v2114_v34  ;;  %v2115_v14 = vadd.f32 %v2097_v31, %v1906_v36  ;;  %v1867_v38 = vadd.f32 %v1866_v37, %v1823_v19  ;;  %vm2126_vm5 = vcmp.ge.f32.partialorder %v2114_v34, 0.0 }
 0x165   : > { %v1908_v39 = vadd.f32 %v1907_v33, %v1865_v35 }
 0x166   : > { %vm2127_vm6 = vcmp.ge.f32.partialorder %v2115_v14, 0.0  ;;  %v2139_v40 = vmul.f32 0.01, %v2115_v14  ;;  %v1910_v50 = vadd.f32 %v1909_v4, %v1867_v38  ;;  %v2150_v42 = vsel %vm2126_vm5, %v2114_v34, %v2138_v5 }
 0x167   : > { %v2120_v41 = vadd.f32 %v2093_v26, %v1908_v39 }
 0x168   : > { %v2151_v44 = vsel %vm2127_vm6, %v2115_v14, %v2139_v40  ;;  %v2121_v45 = vadd.f32 %v2097_v31, %v1910_v50 }
 0x169   : > { %v2587_v23 = vpack.c.bf16 %v2151_v44, %v2150_v42  ;;  %vm2132_vm7 = vcmp.ge.f32.partialorder %v2120_v41, 0.0  ;;  %v2144_v46 = vmul.f32 0.01, %v2120_v41 }
 0x16a   : > { %vm2133_vm8 = vcmp.ge.f32.partialorder %v2121_v45, 0.0  ;;  %v2145_v47 = vmul.f32 0.01, %v2121_v45 }
 0x16b   : > { %2197 = vst [vmem:[%s3723_s23 + $0x8] sm:$0xff] %v2587_v23  ;;  %v2156_v49 = vsel %vm2132_vm7, %v2120_v41, %v2144_v46 }
 0x16c   : > { %v2157_v51 = vsel %vm2133_vm8, %v2121_v45, %v2145_v47 }
 0x16d   : > { %v2590_v52 = vpack.c.bf16 %v2157_v51, %v2156_v49 }
 0x16f   : > { %2200 = vst [vmem:[%s3723_s23 + $0x20] sm:$0xff] %v2590_v52 }
 0x19d   : > { %v1946_v53 = vpop.f32.mrf.mxu0 }
 0x19e   : > { %v1989_v55 = vpop.f32.mrf.mxu1 }
 0x19f   : > { %v1948_v54 = vpop.f32.mrf.mxu0  ;;  %v1990_v61 = vadd.f32 %v1989_v55, %v1946_v53 }
 0x1a0   : > { %v1991_v57 = vpop.f32.mrf.mxu1 }
 0x1a1   : > { %v1950_v56 = vpop.f32.mrf.mxu0  ;;  %v1992_v1 = vadd.f32 %v1991_v57, %v1948_v54 }
 0x1a2   : > { %v1993_v62 = vpop.f32.mrf.mxu1 }
 0x1a3   : > { %v1952_v60 = vpop.f32.mrf.mxu0  ;;  %v1994_v7 = vadd.f32 %v1993_v62, %v1950_v56 }
 0x1a4   : > { %v1995_v8 = vpop.f32.mrf.mxu1 }
 0x1a5   : > { %v1996_v15 = vadd.f32 %v1995_v8, %v1952_v60 }
 0x1ad   : > { %v2032_v0 = vpop.f32.mrf.mxu0 }
 0x1ae   : > { %v2033_v2 = vadd.f32 %v2032_v0, %v1990_v61 }
 0x1af   : > { %v2034_v6 = vpop.f32.mrf.mxu0 }
 0x1b0   : > { %v2116_v9 = vadd.f32 %v2101_v63, %v2033_v2  ;;  %v2035_v10 = vadd.f32 %v2034_v6, %v1992_v1 }
 0x1b1   : > { %v2036_v11 = vpop.f32.mrf.mxu0 }
 0x1b2   : > { %v2140_v12 = vmul.f32 0.01, %v2116_v9  ;;  %v2117_v13 = vadd.f32 %v2105_v3, %v2035_v10  ;;  %v2037_v48 = vadd.f32 %v2036_v11, %v1994_v7  ;;  %vm2128_vm9 = vcmp.ge.f32.partialorder %v2116_v9, 0.0 }
 0x1b3   : > { %v2038_v16 = vpop.f32.mrf.mxu0 }
 0x1b4   : > { %vm2129_vm10 = vcmp.ge.f32.partialorder %v2117_v13, 0.0  ;;  %v2141_v17 = vmul.f32 0.01, %v2117_v13  ;;  %v2122_v18 = vadd.f32 %v2101_v63, %v2037_v48  ;;  %v2039_v19 = vadd.f32 %v2038_v16, %v1996_v15 }
 0x1b5   : > { %v2152_v20 = vsel %vm2128_vm9, %v2116_v9, %v2140_v12 }
 0x1b6   : > { %v2153_v43 = vsel %vm2129_vm10, %v2117_v13, %v2141_v17  ;;  %v2146_v22 = vmul.f32 0.01, %v2122_v18  ;;  %v2123_v24 = vadd.f32 %v2105_v3, %v2039_v19  ;;  %vm2134_vm11 = vcmp.ge.f32.partialorder %v2122_v18, 0.0 }
 0x1b7   : > { %v2588_v21 = vpack.c.bf16 %v2153_v43, %v2152_v20 }
 0x1b8   : > { %vm2135_vm12 = vcmp.ge.f32.partialorder %v2123_v24, 0.0  ;;  %v2147_v25 = vmul.f32 0.01, %v2123_v24  ;;  %v2158_v26 = vsel %vm2134_vm11, %v2122_v18, %v2146_v22 }
 0x1b9   : > { %2198 = vst [vmem:[%s3723_s23 + $0x10] sm:$0xff] %v2588_v21 }
 0x1ba   : > { %v2159_v27 = vsel %vm2135_vm12, %v2123_v24, %v2147_v25 }
 0x1bb   : > { %v2591_v28 = vpack.c.bf16 %v2159_v27, %v2158_v26 }
 0x1bd   : > { %2201 = vst [vmem:[%s3723_s23 + $0x28] sm:$0xff] %v2591_v28 }
 0x1be PF: > { %s13_s14 = sadd.s32 1, %s2972_s14   ;;  %s3752_s12 = smov %s2968_s13 }
 0x1bf   : > { %p10_p5 = scmp.ge.s32.totalorder %s13_s14, 4   ;;  %s3753_s13 = smov %s3755_s15 }
 0x1c1   :  { %12 = sbr.rel (!%p10_p5) target bundleno = 2 (0x2), region = 76 }

// kernel: _lambda_.134
= control target key start
LH: loop header
LB: loop body
LE: loop exit
PB: predicated region body
PF: predicated region fallthrough
CT: control target
= control target key end

     0   :  { %s1140_s12 = smov 0   ;;  %s1142_s13 = smov 0   ;;  %s1223_s0 = inlined_call_operand.vmem [shape: bf16[11,16,576], index: 0, kind: input, shape index: {}]   ;;  %s1224_s1 = inlined_call_operand.vmem [shape: bf16[11,576,128], index: 1, kind: input, shape index: {}]   ;;  %s1225_s2 = inlined_call_operand.vmem [shape: f32[11,1,128], index: 2, kind: input, shape index: {}]   ;;  %s1226_s3 = inlined_call_operand.vmem [shape: bf16[11,16,128], index: 3, kind: output, shape index: {}]  }
   0x1   :  { %s1144_s14 = smov 0  }
   0x2 LB: > { %s32_s15 = sadd.s32 1, %s1112_s13  ;;  %p902_p0 = scmp.ge.s32.totalorder %s1116_s14, 1  ;;  %s1116_s14 = sphi %s1144_s14, %s13_s14   ;;  %s1112_s13 = sphi %s1142_s13, %s1228_s13   ;;  %s1108_s12 = sphi %s1140_s12, %s1227_s12  }
   0x3   : > { %p34_p1 = scmp.ge.s32.totalorder %s32_s15, 11  ;;  %p198_p2 = scmp.lt.s32.totalorder %s1116_s14, 12 }
   0x5   : > { %s1230_s15 = smov (%p34_p1, %s32_s15), 0  ;;  %p199_p3 = pnand %p902_p0, %p198_p2 }
   0x6   : > { %p249_p4 = scmp.lt.s32.totalorder (!%p199_p3), %s1108_s12, 10 }
   0x7   : > { %202 = sbr.rel (%p199_p3) target bundleno = 273 (0x111), region = 32 }
   0xc   : > { %s1232_s12 = smov (!%p249_p4, %s1108_s12), 10  ;;  %v1118_v34 = vmov 0.0   ;;  %vm1119_vm0 = vmmov 0   ;;  %vm614_vm1 = vcmask 523264  }
   0xd   : > { %s1024_s16 = smul.u32 288, %s1232_s12  ;;  %s275_s26 = scalar_lea.vmem %s1225_s2, %s1232_s12 }
   0xe   : > { %s1023_s20 = smul.u32 40, %s1232_s12  ;;  %v949_v56 = vld [vmem:[%s275_s26] ss:$0 sm:$0xff]  ;;  %s954_s27 = sshll.u32 %s1232_s12, 3 }
   0xf   : > { %s1164_s19 = scalar_lea.vmem %s1224_s1, %s1024_s16  ;;  %s284_s30 = scalar_lea.vmem %s1226_s3, %s954_s27 }
  0x10   : > { %v1051_v0 = vld [vmem:[%s1164_s19 + $0x78] sm:$0xff]   ;;  %v1055_v4 = vld [vmem:[%s1164_s19 + $0x70] sm:$0xff]   ;;  %v1059_v8 = vld [vmem:[%s1164_s19 + $0x68] sm:$0xff]   ;;  %s260_s23 = scalar_lea.vmem %s1223_s0, %s1023_s20 }
  0x11   : > { %v1052_v1 = vld [vmem:[%s1164_s19 + $0xf8] sm:$0xff]   ;;  %962 = vmatprep.subr.bf16.mxu0 %v1051_v0  ;;  %v1056_v5 = vld [vmem:[%s1164_s19 + $0xf0] sm:$0xff]   ;;  %v1060_v9 = vld [vmem:[%s1164_s19 + $0xe8] sm:$0xff]  }
  0x12   : > { %v1053_v2 = vld [vmem:[%s1164_s19 + $0x38] sm:$0xff]   ;;  %984 = vmatprep.subr.bf16.mxu1 %v1052_v1  ;;  %v1057_v6 = vld [vmem:[%s1164_s19 + $0x30] sm:$0xff]   ;;  %v1061_v10 = vld [vmem:[%s1164_s19 + $0x28] sm:$0xff]  }
  0x13   : > { %v1054_v3 = vld [vmem:[%s1164_s19 + $0xb8] sm:$0xff]   ;;  %963 = vmatpush3.bf16.msra.mxu0 %v1053_v2  ;;  %v1058_v7 = vld [vmem:[%s1164_s19 + $0xb0] sm:$0xff]   ;;  %v1062_v11 = vld [vmem:[%s1164_s19 + $0xa8] sm:$0xff]  }
  0x14   : > { %985 = vmatpush3.bf16.msra.mxu1 %v1054_v3  ;;  %964 = vmatprep.subr.bf16.mxu0 %v1055_v4  ;;  %v1063_v12 = vld [vmem:[%s1164_s19 + $0x60] sm:$0xff]   ;;  %v1067_v16 = vld [vmem:[%s1164_s19 + $0x58] sm:$0xff]   ;;  %v1071_v20 = vld [vmem:[%s1164_s19 + $0x50] sm:$0xff]  }
  0x15   : > { %986 = vmatprep.subr.bf16.mxu1 %v1056_v5  ;;  %v1064_v13 = vld [vmem:[%s1164_s19 + $0xe0] sm:$0xff]   ;;  %v1068_v17 = vld [vmem:[%s1164_s19 + $0xd8] sm:$0xff]   ;;  %v1072_v21 = vld [vmem:[%s1164_s19 + $0xd0] sm:$0xff]  }
  0x16   : > { %v1065_v14 = vld [vmem:[%s1164_s19 + $0x20] sm:$0xff]   ;;  %v1069_v18 = vld [vmem:[%s1164_s19 + $0x18] sm:$0xff]   ;;  %v1073_v22 = vld [vmem:[%s1164_s19 + $0x10] sm:$0xff]  }
  0x17   : > { %965 = vmatpush3.bf16.msra.mxu0 %v1057_v6  ;;  %v1066_v15 = vld [vmem:[%s1164_s19 + $0xa0] sm:$0xff]   ;;  %v1070_v19 = vld [vmem:[%s1164_s19 + $0x98] sm:$0xff]   ;;  %v1074_v23 = vld [vmem:[%s1164_s19 + $0x90] sm:$0xff]  }
  0x18   : > { %987 = vmatpush3.bf16.msra.mxu1 %v1058_v7  ;;  %966 = vmatprep.subr.bf16.mxu0 %v1059_v8  ;;  %v1075_v24 = vld [vmem:[%s1164_s19 + $0x48] sm:$0xff]   ;;  %v1079_v28 = vld [vmem:[%s1164_s19 + $0x40] sm:$0xff]   ;;  %v1089_v37 = vld [vmem:[%s1164_s19 + $0x118] sm:$0xff]  }
  0x19   : > { %988 = vmatprep.subr.bf16.mxu1 %v1060_v9  ;;  %v1076_v25 = vld [vmem:[%s1164_s19 + $0xc8] sm:$0xff]   ;;  %v1080_v29 = vld [vmem:[%s1164_s19 + $0xc0] sm:$0xff]   ;;  %v1090_v38 = vld [vmem:[%s1164_s19 + $0x110] sm:$0xff]  }
  0x1a   : > { %v1077_v26 = vld [vmem:[%s1164_s19 + $0x8] sm:$0xff]   ;;  %v1081_v30 = vld [vmem:[%s1164_s19] sm:$0xff]  }
  0x1b   : > { %967 = vmatpush3.bf16.msra.mxu0 %v1061_v10  ;;  %v1078_v27 = vld [vmem:[%s1164_s19 + $0x88] sm:$0xff]   ;;  %v1082_v31 = vld [vmem:[%s1164_s19 + $0x80] sm:$0xff]  }
  0x1c   : > { %989 = vmatpush3.bf16.msra.mxu1 %v1062_v11  ;;  %968 = vmatprep.subr.bf16.mxu0 %v1063_v12  ;;  %v1083_v32 = vld [vmem:[%s260_s23] ss:$20 sps:$4 sm:$0xff]   ;;  %v1085_v33 = vld [vmem:[%s260_s23 + $0x4] ss:$20 sps:$4 sm:$0xff]   ;;  %v1086_v35 = vld [vmem:[%s260_s23 + $0x8] ss:$20 sps:$4 sm:$0xff]  }
  0x1d   : > { %990 = vmatprep.subr.bf16.mxu1 %v1064_v13  ;;  %v1088_v36 = vld [vmem:[%s260_s23 + $0xc] ss:$20 sps:$4 sm:$0xff]   ;;  %650 = vmatprep.mubr.bf16.mxu0 %v1085_v33  ;;  %v1093_v41 = vld [vmem:[%s260_s23 + $0x10] ss:$20 sps:$4 sm:$0xff]  }
  0x1e   : > { %691 = vmatprep.mubr.bf16.mxu1 %v1088_v36  ;;  %v1091_v39 = vld [vmem:[%s1164_s19 + $0x108] sm:$0xff]   ;;  %v1092_v40 = vld [vmem:[%s1164_s19 + $0x100] sm:$0xff]  }
  0x1f   : > { %969 = vmatpush3.bf16.msra.mxu0 %v1065_v14 }
  0x20   : > { %991 = vmatpush3.bf16.msra.mxu1 %v1066_v15  ;;  %970 = vmatprep.subr.bf16.mxu0 %v1067_v16 }
  0x21   : > { %992 = vmatprep.subr.bf16.mxu1 %v1068_v17 }
  0x23   : > { %971 = vmatpush3.bf16.msra.mxu0 %v1069_v18 }
  0x24   : > { %993 = vmatpush3.bf16.msra.mxu1 %v1070_v19  ;;  %972 = vmatprep.subr.bf16.mxu0 %v1071_v20 }
  0x25   : > { %994 = vmatprep.subr.bf16.mxu1 %v1072_v21 }
  0x27   : > { %973 = vmatpush3.bf16.msra.mxu0 %v1073_v22 }
  0x28   : > { %995 = vmatpush3.bf16.msra.mxu1 %v1074_v23  ;;  %974 = vmatprep.subr.bf16.mxu0 %v1075_v24 }
  0x29   : > { %996 = vmatprep.subr.bf16.mxu1 %v1076_v25 }
  0x2b   : > { %975 = vmatpush3.bf16.msra.mxu0 %v1077_v26 }
  0x2c   : > { %997 = vmatpush3.bf16.msra.mxu1 %v1078_v27  ;;  %976 = vmatprep.subr.bf16.mxu0 %v1079_v28 }
  0x2d   : > { %998 = vmatprep.subr.bf16.mxu1 %v1080_v29 }
  0x2f   : > { %977 = vmatpush3.bf16.msra.mxu0 %v1081_v30 }
  0x30   : > { %999 = vmatpush3.bf16.msra.mxu1 %v1082_v31  ;;  %1011 = vmatprep.subr.bf16.mxu0 %v1118_v34 }
  0x32   : > { %651 = vmatmul.mubr.bf16.vlgmr.msra.gmra.mxu0 %v1083_v32 }
  0x33   : > { %692 = vmatmul.mubr.bf16.vlgmr.msra.gmra.mxu1 %v1086_v35  ;;  %1012 = vmatpush3.bf16.msra.mxu0 %v1089_v37 }
  0x34   : > { %1013 = vmatprep.subr.bf16.mxu0 %v1118_v34  ;;  %1019 = vmatprep.mubr.msk.bf16.mxu0 %vm1119_vm0, %v1118_v34 }
  0x37   : > { %1014 = vmatpush3.bf16.msra.mxu0 %v1090_v38 }
  0x38   : > { %1015 = vmatprep.subr.bf16.mxu0 %v1118_v34 }
  0x3b   : > { %1016 = vmatpush3.bf16.msra.mxu0 %v1091_v39 }
  0x3c   : > { %1017 = vmatprep.subr.bf16.mxu0 %v1118_v34 }
  0x3f   : > { %1018 = vmatpush3.bf16.msra.mxu0 %v1092_v40 }
  0x42   : > { %1020 = vmatmul.mubr.msk.bf16.vlgmr.msra.gmra.mxu0 %vm614_vm1, %v1093_v41 }
  0xf2   : > { %v978_v42 = vpop.f32.mrf.mxu0 }
  0xf3   : > { %v1000_v43 = vpop.f32.mrf.mxu1 }
  0xf4   : > { %v979_v44 = vpop.f32.mrf.mxu0 }
  0xf5   : > { %v1001_v45 = vpop.f32.mrf.mxu1  ;;  %v980_v48 = vadd.f32 %v979_v44, %v978_v42 }
  0xf6   : > { %v981_v46 = vpop.f32.mrf.mxu0  ;;  %v1002_v49 = vadd.f32 %v1001_v45, %v1000_v43 }
  0xf7   : > { %v1003_v47 = vpop.f32.mrf.mxu1 }
  0xf8   : > { %v982_v50 = vpop.f32.mrf.mxu0  ;;  %v694_v54 = vadd.f32 %v1002_v49, %v980_v48 }
  0xf9   : > { %v1004_v51 = vpop.f32.mrf.mxu1  ;;  %v983_v52 = vadd.f32 %v982_v50, %v981_v46 }
  0xfa   : > { %v1005_v53 = vadd.f32 %v1004_v51, %v1003_v47 }
  0xfc   : > { %v697_v60 = vadd.f32 %v1005_v53, %v983_v52 }
 0x102   : > { %v734_v55 = vpop.f32.mrf.mxu0 }
 0x103   : > { %v735_v57 = vadd.f32 %v734_v55, %v694_v54 }
 0x104   : > { %v1021_v58 = vpop.f32.mrf.mxu0 }
 0x105   : > { %v757_v59 = vadd.f32 %v949_v56, %v735_v57 }
 0x106   : > { %v737_v61 = vpop.f32.mrf.mxu0 }
 0x107   : > { %v738_v62 = vadd.f32 %v737_v61, %v697_v60  ;;  %v761_v0 = vmul.f32 0.01, %v757_v59  ;;  %vm759_vm2 = vcmp.ge.f32.partialorder %v757_v59, 0.0 }
 0x108   : > { %v1022_v63 = vpop.f32.mrf.mxu0 }
 0x109   : > { %v758_v1 = vadd.f32 %v949_v56, %v738_v62  ;;  %v763_v3 = vsel %vm759_vm2, %v757_v59, %v761_v0 }
 0x10b   : > { %vm760_vm3 = vcmp.ge.f32.partialorder %v758_v1, 0.0  ;;  %v762_v2 = vmul.f32 0.01, %v758_v1 }
 0x10d   : > { %v764_v4 = vsel %vm760_vm3, %v758_v1, %v762_v2 }
 0x10e   : > { %v960_v5 = vpack.c.bf16 %v764_v4, %v763_v3 }
 0x110   : > { %961 = vst [vmem:[%s284_s30] sm:$0xff] %v960_v5  }
 0x111 PF: > { %s13_s14 = sadd.s32 1, %s1116_s14   ;;  %s1227_s12 = smov %s1112_s13 }
 0x112   : > { %p10_p5 = scmp.ge.s32.totalorder %s13_s14, 13   ;;  %s1228_s13 = smov %s1230_s15 }
 0x114   :  { %12 = sbr.rel (!%p10_p5) target bundleno = 2 (0x2), region = 76 }

// kernel: _lambda_.139
= control target key start
LH: loop header
LB: loop body
LE: loop exit
PB: predicated region body
PF: predicated region fallthrough
CT: control target
= control target key end

     0   :  { %s628_s12 = smov 0   ;;  %s630_s13 = smov 0   ;;  %s667_s0 = inlined_call_operand.vmem [shape: bf16[18,16,64], index: 0, kind: input, shape index: {}]   ;;  %s668_s1 = inlined_call_operand.vmem [shape: bf16[18,64,128], index: 1, kind: input, shape index: {}]   ;;  %s669_s2 = inlined_call_operand.vmem [shape: f32[18,1,128], index: 2, kind: input, shape index: {}]   ;;  %s670_s3 = inlined_call_operand.vmem [shape: f32[18,16,128], index: 3, kind: output, shape index: {}]  }
   0x1   :  { %s632_s14 = smov 0  }
   0x2 LB: > { %s32_s15 = sadd.s32 1, %s600_s13  ;;  %p515_p0 = scmp.ge.s32.totalorder %s604_s14, 1  ;;  %s604_s14 = sphi %s632_s14, %s13_s14   ;;  %s600_s13 = sphi %s630_s13, %s672_s13   ;;  %s596_s12 = sphi %s628_s12, %s671_s12  }
   0x3   : > { %p34_p1 = scmp.ge.s32.totalorder %s32_s15, 18  ;;  %p195_p2 = scmp.lt.s32.totalorder %s604_s14, 19 }
   0x5   : > { %s674_s15 = smov (%p34_p1, %s32_s15), 0  ;;  %p196_p3 = pnand %p515_p0, %p195_p2 }
   0x6   : > { %p243_p4 = scmp.lt.s32.totalorder (!%p196_p3), %s596_s12, 17 }
   0x7   : > { %199 = sbr.rel (%p196_p3) target bundleno = 231 (0xe7), region = 32 }
   0xc   : > { %v606_v0 = vmov 0.0   ;;  %vm607_vm0 = vmmov 0   ;;  %s676_s12 = smov (!%p243_p4, %s596_s12), 17  ;;  %vm326_vm1 = vcmask 523264  }
   0xd   : > { %539 = vmatprep.subr.bf16.mxu0 %v606_v0  ;;  %547 = vmatprep.mubr.msk.bf16.mxu0 %vm607_vm0, %v606_v0  ;;  %s532_s16 = sshll.u32 %s676_s12, 5  ;;  %s531_s20 = sshll.u32 %s676_s12, 3 }
   0xe   : > { %s263_s19 = scalar_lea.vmem %s668_s1, %s532_s16  ;;  %s253_s23 = scalar_lea.vmem %s667_s0, %s531_s20 }
   0xf   : > { %v577_v1 = vld [vmem:[%s263_s19 + $0x18] sm:$0xff]   ;;  %v578_v2 = vld [vmem:[%s263_s19 + $0x10] sm:$0xff]   ;;  %v579_v3 = vld [vmem:[%s263_s19 + $0x8] sm:$0xff]   ;;  %s267_s26 = scalar_lea.vmem %s669_s2, %s676_s12  ;;  %s533_s27 = sshll.u32 %s676_s12, 4 }
  0x10   : > { %540 = vmatpush3.bf16.msra.mxu0 %v577_v1  ;;  %v580_v4 = vld [vmem:[%s263_s19] sm:$0xff]   ;;  %s276_s30 = scalar_lea.vmem %s670_s3, %s533_s27 }
  0x11   : > { %541 = vmatprep.subr.bf16.mxu0 %v606_v0  ;;  %v581_v5 = vld [vmem:[%s253_s23] sm:$0xff]  }
  0x12   : > { %v528_v6 = vld [vmem:[%s267_s26] ss:$0 sm:$0xff] }
  0x14   : > { %542 = vmatpush3.bf16.msra.mxu0 %v578_v2 }
  0x15   : > { %543 = vmatprep.subr.bf16.mxu0 %v606_v0 }
  0x18   : > { %544 = vmatpush3.bf16.msra.mxu0 %v579_v3 }
  0x19   : > { %545 = vmatprep.subr.bf16.mxu0 %v606_v0 }
  0x1c   : > { %546 = vmatpush3.bf16.msra.mxu0 %v580_v4 }
  0x1f   : > { %548 = vmatmul.mubr.msk.bf16.vlgmr.msra.gmra.mxu0 %vm326_vm1, %v581_v5 }
  0xdf   : > { %v364_v7 = vpop.f32.mrf.mxu0 }
  0xe0   : > { %v387_v8 = vadd.f32 %v528_v6, %v364_v7 }
  0xe1   : > { %v549_v9 = vpop.f32.mrf.mxu0 }
  0xe2   : > { %389 = vst [vmem:[%s276_s30] sm:$0xff] %v387_v8 }
  0xe3   : > { %v367_v10 = vpop.f32.mrf.mxu0 }
  0xe4   : > { %v388_v11 = vadd.f32 %v528_v6, %v367_v10 }
  0xe5   : > { %v550_v12 = vpop.f32.mrf.mxu0 }
  0xe6   : > { %390 = vst [vmem:[%s276_s30 + $0x8] sm:$0xff] %v388_v11 }
  0xe7 PF: > { %s13_s14 = sadd.s32 1, %s604_s14   ;;  %s671_s12 = smov %s600_s13 }
  0xe8   : > { %p10_p5 = scmp.ge.s32.totalorder %s13_s14, 20   ;;  %s672_s13 = smov %s674_s15 }
  0xea   :  { %12 = sbr.rel (!%p10_p5) target bundleno = 2 (0x2), region = 76 }

</bundles_post_ra>
